<compile_context>
chip_gen: v7x
topology: tpu7x:2x2x1
jax: 0.10.0
libtpu: 0.0.40
codegen_flags: <defaults>
</compile_context>

<pallas_src>
import functools

import jax
import jax.numpy as jnp
from jax import lax
from jax.experimental import pallas as pl
from jax.experimental.pallas import tpu as pltpu

IN_FEATURES = 4096
OUT_FEATURES = 4096


def _linear_kernel(x_ref, w_ref, o_ref):
    # x_ref: (tm, K), w_ref: (tn, K)  ->  o_ref: (tm, tn) = x @ w.T
    o_ref[...] = lax.dot_general(
        x_ref[...],
        w_ref[...],
        dimension_numbers=(((1,), (1,)), ((), ())),
        preferred_element_type=jnp.float32,
    ).astype(o_ref.dtype)


@functools.partial(jax.jit, static_argnames=("tm_cap", "tn"))
def linear_without_bias(x, weight, *, tm_cap=256, tn=512):
    """y = x @ weight.T   (torch.nn.Linear(bias=False) semantics).

    x:      [..., IN_FEATURES]
    weight: [OUT_FEATURES, IN_FEATURES]   (PyTorch layout, used as-is)
    """
    orig_shape = x.shape
    M = 1
    for d in orig_shape[:-1]:
        M *= d
    K = orig_shape[-1]
    N = weight.shape[0]

    assert weight.shape[1] == K
    # Module fixes N = K = 4096; tn=512 divides N and K is a multiple of 128.
    assert N % tn == 0 and K % 128 == 0

    x2d = x.reshape(M, K)

    # Pad M up to a multiple of 8 (f32 sublane).  Use a single M block when
    # the padded M fits under tm_cap (the common small-batch case), otherwise
    # cap the M tile so x / out tiles stay modest.
    Mp = ((M + 7) // 8) * 8
    tm = Mp if Mp <= tm_cap else tm_cap
    Mp = ((Mp + tm - 1) // tm) * tm
    if Mp != M:
        x2d = jnp.pad(x2d, ((0, Mp - M), (0, 0)))

    grid = (Mp // tm, N // tn)

    out = pl.pallas_call(
        _linear_kernel,
        out_shape=jax.ShapeDtypeStruct((Mp, N), x.dtype),
        grid_spec=pltpu.PrefetchScalarGridSpec(
            num_scalar_prefetch=0,
            grid=grid,
            in_specs=[
                # x tile: full K; depends only on the M-block index.
                pl.BlockSpec((tm, K), lambda i, j: (i, 0)),
                # weight tile in native [N, K] layout: (tn, K) at row-block j.
                pl.BlockSpec((tn, K), lambda i, j: (j, 0)),
            ],
            out_specs=pl.BlockSpec((tm, tn), lambda i, j: (i, j)),
        ),
        compiler_params=pltpu.CompilerParams(
            # Both grid axes independent -> megacore / multi-TC sharding.
            dimension_semantics=("parallel", "parallel"),
            # weight tile = tn*K*4B = 8 MiB, double-buffered -> 16 MiB, plus
            # x / out tiles.  Above v5e/v6e scoped defaults, comfortably under
            # v7x's 64 MiB physical VMEM per TensorCore.
            vmem_limit_bytes=48 << 20,
        ),
    )(x2d, weight)

    if Mp != M:
        out = out[:M]
    return out.reshape(*orig_shape[:-1], N)


if __name__ == "__main__":
    key = jax.random.PRNGKey(0)
    kx, kw = jax.random.split(key, 2)

    # Small batch/seq; feature dims are fixed by the module (Linear(4096, 4096)).
    batch, seq = 2, 8
    x = jax.random.normal(kx, (batch, seq, IN_FEATURES), dtype=jnp.float32)

    limit = 1.0 / (IN_FEATURES ** 0.5)
    weight = jax.random.uniform(
        kw, (OUT_FEATURES, IN_FEATURES), minval=-limit, maxval=limit,
        dtype=jnp.float32,
    )

    y = linear_without_bias(x, weight)
    y = jax.block_until_ready(y)

    # Cross-check against plain JAX reference (no bias, matching the module).
    y_ref = x @ weight.T
    assert y.shape == (batch, seq, OUT_FEATURES)
    assert jnp.allclose(y, y_ref, atol=1e-3, rtol=1e-3)

    print("KERNEL_OK")
</pallas_src>

<mosaic_0001>
module attributes {stable_mosaic.version = 11 : i64} {
  func.func @_linear_kernel(%arg0: i32, %arg1: i32, %arg2: memref<16x4096xf32, #tpu.memory_space<vmem>>, %arg3: memref<512x4096xf32, #tpu.memory_space<vmem>>, %arg4: memref<16x512xf32, #tpu.memory_space<vmem>>) attributes {dimension_semantics = [#tpu.dimension_semantics<parallel>, #tpu.dimension_semantics<parallel>], iteration_bounds = array<i64: 1, 8>, scalar_prefetch = 0 : i64, scratch_operands = 0 : i64, tpu.core_type = #tpu.core_type<tc>, window_params = [{transform_indices = @transform_0, window_bounds = array<i64: 16, 4096>}, {transform_indices = @transform_1, window_bounds = array<i64: 512, 4096>}, {transform_indices = @transform_2, window_bounds = array<i64: 16, 512>}]} {
    %c0 = arith.constant 0 : index
    %c0_0 = arith.constant 0 : index
    %0 = vector.load %arg2[%c0, %c0_0] : memref<16x4096xf32, #tpu.memory_space<vmem>>, vector<16x4096xf32>
    %c0_1 = arith.constant 0 : index
    %c0_2 = arith.constant 0 : index
    %1 = vector.load %arg3[%c0_1, %c0_2] : memref<512x4096xf32, #tpu.memory_space<vmem>>, vector<512x4096xf32>
    %cst = arith.constant dense<0.000000e+00> : vector<16x512xf32>
    %2 = tpu.matmul %0, %1, %cst {dimension_numbers = #tpu.dot_dimension_numbers<[1], [1], [0], [0], [0, 0, 1, 0], [], []>} : vector<16x4096xf32>, vector<512x4096xf32>, vector<16x512xf32> -> vector<16x512xf32>
    %c0_3 = arith.constant 0 : index
    %c0_4 = arith.constant 0 : index
    %3 = vector.load %arg4[%c0_3, %c0_4] : memref<16x512xf32, #tpu.memory_space<vmem>>, vector<16x512xf32>
    tpu.vector_store %arg4[%c0_3, %c0_4], %2 {strides = array<i32>} : memref<16x512xf32, #tpu.memory_space<vmem>>, vector<16x512xf32>,
    return
  }
  func.func @transform_0(%arg0: i32, %arg1: i32) -> (i32, i32) {
    %c0_i32 = arith.constant 0 : i32
    %c0_i32_0 = arith.constant 0 : i32
    return %arg0, %c0_i32 : i32, i32
  }
  func.func @transform_1(%arg0: i32, %arg1: i32) -> (i32, i32) {
    %c0_i32 = arith.constant 0 : i32
    %c0_i32_0 = arith.constant 0 : i32
    return %arg1, %c0_i32 : i32, i32
  }
  func.func @transform_2(%arg0: i32, %arg1: i32) -> (i32, i32) {
    %c0_i32 = arith.constant 0 : i32
    return %arg0, %arg1 : i32, i32
  }
}

</mosaic_0001>

<bundles_post_ra>
// kernel: linear_without_bias.1
= control target key start
LH: loop header
LB: loop body
LE: loop exit
PB: predicated region body
PF: predicated region fallthrough
CT: control target
= control target key end

     0   :  { %7 = vsyncpa [#allocation3], 0  ;;  %s9614_s0 = inlined_call_operand.hbm [shape: f32[16,4096], index: 0, kind: input, shape index: {}]   ;;  %s9615_s1 = inlined_call_operand.hbm [shape: f32[4096,4096], index: 1, kind: input, shape index: {}]   ;;  %s9616_s2 = inlined_call_operand.hbm [shape: f32[16,4096], index: 2, kind: output, shape index: {}]  }
   0x1   :  { %8 = vsyncpa [#allocation6], 0 }
   0x2   :  { %10 = vsyncpa [#allocation6 + $0x1], 0 }
   0x3   :  { %11 = vsyncpa [#allocation4], 0 }
   0x4   :  { %13 = vsyncpa [#allocation4 + $0x1], 0  ;;  %s7340_s9 = smov 0   ;;  %s7342_s10 = smov 0  }
   0x5   :  { %s7344_s11 = smov 0   ;;  %s7346_s12 = smov 0  }
   0x6   :  { %s7348_s13 = smov 0   ;;  %s7350_s14 = smov 0  }
   0x7 LB: > { %s4904_s15 = sadd.s32 4294967295, %s7315_s14   ;;  %s4905_s16 = sadd.s32 4294967294, %s7315_s14   ;;  %s7315_s14 = sphi %s7350_s14, %s19_s14   ;;  %s7311_s13 = sphi %s7348_s13, %s9639_s13   ;;  %s7307_s12 = sphi %s7346_s12, %s9638_s12   ;;  %s7303_s11 = sphi %s7344_s11, %s9637_s11   ;;  %s7299_s10 = sphi %s7342_s10, %s9636_s10   ;;  %s7295_s9 = sphi %s7340_s9, %s9635_s9  }
   0x8   : > { %p77_p0 = scmp.ne.s32.totalorder %s7299_s10, %s7295_s9  ;;  %p7374_p1 = scmp.eq.s32.totalorder %s4904_s15, 0 }
   0x9   : > { %p7378_p2 = scmp.eq.s32.totalorder %s4904_s15, 7  ;;  %p109_p3 = scmp.eq.s32.totalorder %s4905_s16, 7 }
   0xa   : > { %s9621_s17 = scalar_select %p7374_p1, 1, 0 }
   0xb   : > { %s9622_s18 = scalar_select %p7378_p2, 1, 0 }
   0xc   : > { %p7384_p4 = por %p7374_p1, %p77_p0  ;;  %p4906_p5 = scmp.ge.s32.totalorder %s7315_s14, 1 }
   0xd   : > { %p7389_p6 = por %p109_p3, %p77_p0  ;;  %p116_p7 = scmp.lt.s32.totalorder %s7315_s14, 9 }
   0xe   : > { %s9623_s19 = scalar_select %p7384_p4, 1, 0 }
   0xf   : > { %s9624_s20 = scalar_select %p7389_p6, 1, 0 }
  0x10   : > { %p7394_p8 = pnand %p4906_p5, %p116_p7  ;;  %s7317_s22 = smov [#allocation2]  }
  0x11   : > { %s132_s23 = sshll.u32 %s7317_s22, 4  ;;  %s28_s25 = sadd.s32 1, %s7311_s13  ;;  %s133_s23 = int_to_ptr.vmem [resolvable:$true] %s132_s23 }
  0x12   : > { %s9625_s21 = scalar_select %p7394_p8, 1, 0 }
  0x13   : > { %p7101_p9 = pneg %p7394_p8  ;;  %s7171_s28 = scalar_lea.hbm %s9614_s0, 8192 }
  0x14   : > { %p7172_p11 = scmp.ne.s32.totalorder %s9614_s0, %s7171_s28  ;;  %p7178_p3 = scmp.lt.u32.totalorder %s7171_s28, %s9614_s0 }
  0x15   : > { %p7402_p10 = pnand %p7101_p9, %p7374_p1 }
  0x17   : > { %p7173_p12 = pneg %p7402_p10 }
  0x19   : > { %p7174_p13 = pnand %p7173_p12, %p7172_p11 }
  0x1b   : > { %p7175_p0 = pneg %p7174_p13 }
  0x1d   : > { %p7180_p5 = pnand %p7178_p3, %p7175_p0 }
  0x1f   : > { %7183 = shalt.err (!%p7180_p5)
}
  0x20   : > { %s7184_s5 = scalar_lea.vmem %s133_s23, 8192  ;;  %p7192_p4 = scmp.lt.s32.totalorder %s133_s23, %s133_s23 }
  0x21   : > { %p7185_p7 = scmp.ne.s32.totalorder %s133_s23, %s7184_s5  ;;  %p7193_p1 = scmp.lt.s32.totalorder %s7184_s5, %s7184_s5 }
  0x23   : > { %p7187_p9 = pnand %p7185_p7, %p7173_p12  ;;  %p7194_p8 = por %p7193_p1, %p7192_p4 }
  0x25   : > { %p7188_p6 = pneg %p7187_p9 }
  0x27   : > { %p7195_p2 = pnand %p7194_p8, %p7188_p6 }
  0x29   : > { %7198 = shalt.err (!%p7195_p2)
}
  0x2a   : > { %s7318_s6 = smov 4096   ;;  %s7319_s7 = smov 256  }
  0x2b   : > { %7104 = dma.hbm_to_vmem [thread:$0]  (!%p7402_p10), %s9614_s0, 8192, %s133_s23, [#allocation3], %s7318_s6, %s7318_s6, %s7319_s7  }
  0x2c   : > { %p29_p1 = scmp.ge.s32.totalorder %s28_s25, 8  ;;  %s64_s16 = sadd.s32 1, %s7303_s11 }
  0x2d   : > { %p71_p2 = scmp.ne.s32.totalorder %s7303_s11, %s7299_s10  ;;  %p72_p4 = scmp.eq.s32.totalorder %s7315_s14, 0 }
  0x2e   : > { %s9641_s25 = smov (%p29_p1, %s28_s25), 0  ;;  %p9628_p8 = scmp.ne.s32.totalorder %s9622_s18, 0 }
  0x2f   : > { %p7432_p6 = por %p72_p4, %p71_p2  ;;  %s61_s26 = ssub.s32 %s7311_s13, %s9641_s25 }
  0x30   : > { %p7438_p11 = por %p9628_p8, %p71_p2  ;;  %p7114_p12 = scmp.lt.s32.totalorder %s7315_s14, 8 }
  0x31   : > { %p62_p10 = scmp.eq.s32.totalorder %s61_s26, 0  ;;  %s146_s23 = sand.u32 1, %s7303_s11  }
  0x32   : > { %s4909_s27 = sshll.u32 %s146_s23, 14  ;;  %s4923_s29 = sshll.u32 %s7311_s13, 18 }
  0x33   : > { %s7447_s28 = scalar_select %p62_p10, %s7303_s11, %s64_s16  }
  0x34   : > { %s7453_s4 = scalar_lea.hbm %s9615_s1, %s4923_s29  ;;  %s150_s18 = scalar_lea.vmem [#allocation5], %s4909_s27 }
  0x35   : > { %s158_s5 = sshll.u32 %s150_s18, 4  ;;  %p7459_p13 = pnand %p7114_p12, %p7432_p6  ;;  %s7455_s5 = int_to_ptr.vmem [resolvable:$true] %s158_s5 }
  0x36   : > { %s7463_s15 = scalar_lea.sflag [#allocation6], %s146_s23  ;;  %s7199_s16 = scalar_lea.hbm %s7453_s4, 262144 }
  0x37   : > { %p7200_p0 = scmp.ne.s32.totalorder %s7453_s4, %s7199_s16  ;;  %p7201_p3 = pneg %p7459_p13 }
  0x38   : > { %s7204_s22 = scalar_lea.hbm %s9615_s1, 2097152  ;;  %p7205_p9 = scmp.lt.u32.totalorder %s7453_s4, %s9615_s1 }
  0x39   : > { %p7202_p5 = pnand %p7201_p3, %p7200_p0  ;;  %p7206_p1 = scmp.lt.u32.totalorder %s7204_s22, %s7199_s16 }
  0x3a   : > { %p7208_p4 = scmp.lt.u32.totalorder %s7199_s16, %s7453_s4 }
  0x3b   : > { %p7203_p7 = pneg %p7202_p5  ;;  %p7207_p2 = por %p7206_p1, %p7205_p9 }
  0x3d   : > { %p7209_p6 = por %p7208_p4, %p7207_p2 }
  0x3f   : > { %p7210_p8 = pnand %p7209_p6, %p7203_p7 }
  0x41   : > { %7213 = shalt.err (!%p7210_p8)
}
  0x42   : > { %s7214_s23 = scalar_lea.vmem %s7455_s5, 262144  ;;  %s7320_s3 = smov [#allocation5]  }
  0x43   : > { %p7215_p12 = scmp.ne.s32.totalorder %s7455_s5, %s7214_s23  ;;  %s7219_s18 = sshll.u32 %s7320_s3, 4  ;;  %s7220_s18 = int_to_ptr.vmem [resolvable:$false] %s7219_s18 }
  0x44   : > { %s7221_s26 = scalar_lea.vmem %s7220_s18, 524288  ;;  %p7222_p5 = scmp.lt.s32.totalorder %s7455_s5, %s7220_s18 }
  0x45   : > { %p7217_p10 = pnand %p7215_p12, %p7201_p3  ;;  %p7223_p9 = scmp.lt.s32.totalorder %s7221_s26, %s7214_s23 }
  0x47   : > { %p7218_p0 = pneg %p7217_p10  ;;  %p7224_p1 = por %p7223_p9, %p7222_p5 }
  0x49   : > { %p7225_p2 = pnand %p7224_p1, %p7218_p0 }
  0x4b   : > { %7228 = shalt.err (!%p7225_p2)
}
  0x4c   : > { %7108 = dma.hbm_to_vmem [thread:$0]  (!%p7459_p13), %s7453_s4, 262144, %s7455_s5, %s7463_s15, %s7318_s6, %s7318_s6, %s7319_s7  }
  0x4d   : > { %p9631_p3 = scmp.ne.s32.totalorder %s9625_s21, 0 }
  0x4e   : > { %p9632_p7 = scmp.ne.s32.totalorder (!%p9631_p3), %s9621_s17, 0 }
  0x4f   : > { %170 = sbr.rel (%p9631_p3) target bundleno = 2378 (0x94a), region = 28 }
  0x56   : > { %7282 = dma.done.wait (%p9632_p7), [#allocation3], 8192  }
  0x57   : > { %7284 = vsyncadd (%p9632_p7), [#allocation3], 4294959104  ;;  %s7501_s16 = sand.u32 1, %s7299_s10   ;;  %p9633_p13 = scmp.ne.s32.totalorder %s9623_s19, 0 }
  0x58   : > { %s4915_s8 = sshll.u32 %s7501_s16, 14  ;;  %s177_s27 = scalar_lea.sflag [#allocation6], %s7501_s16 }
  0x59   : > { %s7505_s22 = scalar_lea.vmem [#allocation5], %s4915_s8 }
  0x5a   : > { %7286 = dma.done.wait (%p9633_p13), %s177_s27, 262144  }
  0x5b   : > { %7288 = vsyncadd (%p9633_p13), %s177_s27, 4294705152  ;;  %v270_v0 = vld [vmem:[%s7505_s22 + $0x8] sm:$0xff]  ;;  %v269_v5 = vld [vmem:[%s7505_s22] sm:$0xff]  ;;  %s4916_s17 = sshll.u32 %s7501_s16, 6  ;;  %s4924_s6 = sshll.u32 %s7307_s12, 9 }
  0x5c   : > { %v302_v1 = vld [vmem:[%s7505_s22 + $0x108] sm:$0xff]  ;;  %v301_v6 = vld [vmem:[%s7505_s22 + $0x100] sm:$0xff]  ;;  %s200_s19 = scalar_lea.vmem [#allocation7], %s4916_s17  ;;  %s9566_s5 = scalar_lea.hbm %s9616_s2, %s4924_s6 }
  0x5d   : > { %v1294_v2 = vld [vmem:[%s7505_s22 + $0x2008] sm:$0xff]  ;;  %v4925_v3 = vpack.c.bf16 %v302_v1, %v270_v0  ;;  %v4927_v8 = vpack.c.bf16 %v301_v6, %v269_v5  ;;  %v1293_v9 = vld [vmem:[%s7505_s22 + $0x2000] sm:$0xff]  ;;  %s4806_s21 = sshll.u32 %s200_s19, 4  ;;  %s4790_s12 = scalar_lea.sflag [#allocation4], %s7501_s16  ;;  %s9561_s21 = int_to_ptr.vmem [resolvable:$true] %s4806_s21 }
  0x5e   : > { %v1326_v4 = vld [vmem:[%s7505_s22 + $0x2108] sm:$0xff]  ;;  %v1325_v10 = vld [vmem:[%s7505_s22 + $0x2100] sm:$0xff]  ;;  %s7229_s15 = scalar_lea.vmem %s9561_s21, 1024  ;;  %s7321_s29 = smov [#allocation7]  }
  0x5f   : > { %v5949_v7 = vpack.c.bf16 %v1326_v4, %v1294_v2  ;;  %v334_v11 = vld [vmem:[%s7505_s22 + $0x208] sm:$0xff]  ;;  %4926 = vmatprep.subr.bf16.mxu0 %v4925_v3  ;;  %v5951_v12 = vpack.c.bf16 %v1325_v10, %v1293_v9  ;;  %v333_v18 = vld [vmem:[%s7505_s22 + $0x200] sm:$0xff]  ;;  %p7230_p4 = scmp.ne.s32.totalorder %s9561_s21, %s7229_s15  ;;  %s7233_s30 = sshll.u32 %s7321_s29, 4  ;;  %s7234_s30 = int_to_ptr.vmem [resolvable:$false] %s7233_s30 }
  0x60   : > { %v366_v13 = vld [vmem:[%s7505_s22 + $0x308] sm:$0xff]  ;;  %4928 = vmatpush1.bf16.xpose.msra.mxu0 %v4927_v8  ;;  %v365_v19 = vld [vmem:[%s7505_s22 + $0x300] sm:$0xff]  ;;  %s7235_s23 = scalar_lea.vmem %s7234_s30, 2048  ;;  %p7236_p12 = scmp.lt.s32.totalorder %s9561_s21, %s7234_s30 }
  0x61   : > { %v1358_v14 = vld [vmem:[%s7505_s22 + $0x2208] sm:$0xff]  ;;  %5950 = vmatprep.subr.bf16.mxu1 %v5949_v7  ;;  %v4929_v16 = vpack.c.bf16 %v366_v13, %v334_v11  ;;  %v1357_v20 = vld [vmem:[%s7505_s22 + $0x2200] sm:$0xff]  ;;  %v4931_v26 = vpack.c.bf16 %v365_v19, %v333_v18  ;;  %p7231_p6 = pnand %p7230_p4, %p7438_p11  ;;  %p7237_p10 = scmp.lt.s32.totalorder %s7235_s23, %s7229_s15 }
  0x62   : > { %v1390_v15 = vld [vmem:[%s7505_s22 + $0x2308] sm:$0xff]  ;;  %5952 = vmatpush1.bf16.xpose.msra.mxu1 %v5951_v12  ;;  %v1389_v21 = vld [vmem:[%s7505_s22 + $0x2300] sm:$0xff] }
  0x63   : > { %v5953_v17 = vpack.c.bf16 %v1390_v15, %v1358_v14  ;;  %4930 = vmatprep.subr.bf16.mxu0 %v4929_v16  ;;  %v398_v22 = vld [vmem:[%s7505_s22 + $0x408] sm:$0xff]  ;;  %v5955_v27 = vpack.c.bf16 %v1389_v21, %v1357_v20  ;;  %v397_v30 = vld [vmem:[%s7505_s22 + $0x400] sm:$0xff]  ;;  %p7232_p8 = pneg %p7231_p6  ;;  %p7238_p0 = por %p7237_p10, %p7236_p12 }
  0x64   : > { %v430_v23 = vld [vmem:[%s7505_s22 + $0x508] sm:$0xff]  ;;  %v429_v31 = vld [vmem:[%s7505_s22 + $0x500] sm:$0xff] }
  0x65   : > { %5954 = vmatprep.subr.bf16.mxu1 %v5953_v17  ;;  %v1422_v24 = vld [vmem:[%s7505_s22 + $0x2408] sm:$0xff]  ;;  %v4933_v28 = vpack.c.bf16 %v430_v23, %v398_v22  ;;  %v1421_v32 = vld [vmem:[%s7505_s22 + $0x2400] sm:$0xff]  ;;  %v4935_v38 = vpack.c.bf16 %v429_v31, %v397_v30  ;;  %p7239_p5 = pnand %p7238_p0, %p7232_p8 }
  0x66   : > { %v1454_v25 = vld [vmem:[%s7505_s22 + $0x2508] sm:$0xff]  ;;  %v1453_v33 = vld [vmem:[%s7505_s22 + $0x2500] sm:$0xff] }
  0x67   : > { %v5957_v29 = vpack.c.bf16 %v1454_v25, %v1422_v24  ;;  %v462_v34 = vld [vmem:[%s7505_s22 + $0x608] sm:$0xff]  ;;  %v5959_v39 = vpack.c.bf16 %v1453_v33, %v1421_v32  ;;  %v461_v42 = vld [vmem:[%s7505_s22 + $0x600] sm:$0xff] }
  0x68   : > { %4932 = vmatpush1.bf16.xpose.msra.mxu0 %v4931_v26  ;;  %v494_v35 = vld [vmem:[%s7505_s22 + $0x708] sm:$0xff]  ;;  %v493_v43 = vld [vmem:[%s7505_s22 + $0x700] sm:$0xff] }
  0x69   : > { %4934 = vmatprep.subr.bf16.mxu0 %v4933_v28  ;;  %v1486_v36 = vld [vmem:[%s7505_s22 + $0x2608] sm:$0xff]  ;;  %v4937_v40 = vpack.c.bf16 %v494_v35, %v462_v34  ;;  %v1485_v44 = vld [vmem:[%s7505_s22 + $0x2600] sm:$0xff]  ;;  %v4939_v50 = vpack.c.bf16 %v493_v43, %v461_v42 }
  0x6a   : > { %5956 = vmatpush1.bf16.xpose.msra.mxu1 %v5955_v27  ;;  %v1518_v37 = vld [vmem:[%s7505_s22 + $0x2708] sm:$0xff]  ;;  %v1517_v45 = vld [vmem:[%s7505_s22 + $0x2700] sm:$0xff] }
  0x6b   : > { %5958 = vmatprep.subr.bf16.mxu1 %v5957_v29  ;;  %v5961_v41 = vpack.c.bf16 %v1518_v37, %v1486_v36  ;;  %v526_v46 = vld [vmem:[%s7505_s22 + $0x808] sm:$0xff]  ;;  %v5963_v51 = vpack.c.bf16 %v1517_v45, %v1485_v44  ;;  %v525_v54 = vld [vmem:[%s7505_s22 + $0x800] sm:$0xff] }
  0x6c   : > { %v558_v47 = vld [vmem:[%s7505_s22 + $0x908] sm:$0xff]  ;;  %v557_v55 = vld [vmem:[%s7505_s22 + $0x900] sm:$0xff] }
  0x6d   : > { %v1550_v48 = vld [vmem:[%s7505_s22 + $0x2808] sm:$0xff]  ;;  %v4941_v52 = vpack.c.bf16 %v558_v47, %v526_v46  ;;  %v1549_v56 = vld [vmem:[%s7505_s22 + $0x2800] sm:$0xff]  ;;  %v4943_v62 = vpack.c.bf16 %v557_v55, %v525_v54 }
  0x6e   : > { %v1582_v49 = vld [vmem:[%s7505_s22 + $0x2908] sm:$0xff]  ;;  %v1581_v57 = vld [vmem:[%s7505_s22 + $0x2900] sm:$0xff] }
  0x6f   : > { %v5965_v53 = vpack.c.bf16 %v1582_v49, %v1550_v48  ;;  %v590_v58 = vld [vmem:[%s7505_s22 + $0xa08] sm:$0xff]  ;;  %v5967_v63 = vpack.c.bf16 %v1581_v57, %v1549_v56  ;;  %v589_v2 = vld [vmem:[%s7505_s22 + $0xa00] sm:$0xff] }
  0x70   : > { %4936 = vmatpush1.bf16.xpose.msra.mxu0 %v4935_v38  ;;  %v622_v59 = vld [vmem:[%s7505_s22 + $0xb08] sm:$0xff]  ;;  %v621_v3 = vld [vmem:[%s7505_s22 + $0xb00] sm:$0xff] }
  0x71   : > { %4938 = vmatprep.subr.bf16.mxu0 %v4937_v40  ;;  %v1614_v60 = vld [vmem:[%s7505_s22 + $0x2a08] sm:$0xff]  ;;  %v4945_v0 = vpack.c.bf16 %v622_v59, %v590_v58  ;;  %v1613_v4 = vld [vmem:[%s7505_s22 + $0x2a00] sm:$0xff]  ;;  %v4947_v10 = vpack.c.bf16 %v621_v3, %v589_v2 }
  0x72   : > { %5960 = vmatpush1.bf16.xpose.msra.mxu1 %v5959_v39  ;;  %v1646_v61 = vld [vmem:[%s7505_s22 + $0x2b08] sm:$0xff]  ;;  %v1645_v5 = vld [vmem:[%s7505_s22 + $0x2b00] sm:$0xff] }
  0x73   : > { %5962 = vmatprep.subr.bf16.mxu1 %v5961_v41  ;;  %v5969_v1 = vpack.c.bf16 %v1646_v61, %v1614_v60  ;;  %v654_v6 = vld [vmem:[%s7505_s22 + $0xc08] sm:$0xff]  ;;  %v5971_v11 = vpack.c.bf16 %v1645_v5, %v1613_v4  ;;  %v653_v15 = vld [vmem:[%s7505_s22 + $0xc00] sm:$0xff] }
  0x74   : > { %v686_v7 = vld [vmem:[%s7505_s22 + $0xd08] sm:$0xff]  ;;  %v685_v16 = vld [vmem:[%s7505_s22 + $0xd00] sm:$0xff] }
  0x75   : > { %v1678_v8 = vld [vmem:[%s7505_s22 + $0x2c08] sm:$0xff]  ;;  %v4949_v12 = vpack.c.bf16 %v686_v7, %v654_v6  ;;  %v1677_v17 = vld [vmem:[%s7505_s22 + $0x2c00] sm:$0xff]  ;;  %v4951_v23 = vpack.c.bf16 %v685_v16, %v653_v15 }
  0x76   : > { %v1710_v9 = vld [vmem:[%s7505_s22 + $0x2d08] sm:$0xff]  ;;  %v1709_v18 = vld [vmem:[%s7505_s22 + $0x2d00] sm:$0xff] }
  0x77   : > { %v5973_v13 = vpack.c.bf16 %v1710_v9, %v1678_v8  ;;  %v206_v14 = vld [vmem:[#allocation2 + $0x8] sm:$0xff]  ;;  %v5975_v24 = vpack.c.bf16 %v1709_v18, %v1677_v17  ;;  %v717_v27 = vld [vmem:[%s7505_s22 + $0xe00] sm:$0xff] }
  0x78   : > { %4940 = vmatpush1.bf16.xpose.msra.mxu0 %v4939_v50  ;;  %2381 = vmatprep.mubr.f32.mxu0 %v206_v14  ;;  %v718_v19 = vld [vmem:[%s7505_s22 + $0xe08] sm:$0xff]  ;;  %v749_v28 = vld [vmem:[%s7505_s22 + $0xf00] sm:$0xff] }
  0x79   : > { %4942 = vmatprep.subr.bf16.mxu0 %v4941_v52  ;;  %3613 = vmatprep.mubr.f32.mxu1 %v206_v14  ;;  %v750_v20 = vld [vmem:[%s7505_s22 + $0xf08] sm:$0xff]  ;;  %v1741_v29 = vld [vmem:[%s7505_s22 + $0x2e00] sm:$0xff]  ;;  %v4955_v35 = vpack.c.bf16 %v749_v28, %v717_v27 }
  0x7a   : > { %5964 = vmatpush1.bf16.xpose.msra.mxu1 %v5963_v51  ;;  %v1742_v21 = vld [vmem:[%s7505_s22 + $0x2e08] sm:$0xff]  ;;  %v4953_v25 = vpack.c.bf16 %v750_v20, %v718_v19  ;;  %v1773_v30 = vld [vmem:[%s7505_s22 + $0x2f00] sm:$0xff] }
  0x7b   : > { %5966 = vmatprep.subr.bf16.mxu1 %v5965_v53  ;;  %v1774_v22 = vld [vmem:[%s7505_s22 + $0x2f08] sm:$0xff]  ;;  %v5979_v36 = vpack.c.bf16 %v1773_v30, %v1741_v29  ;;  %v781_v39 = vld [vmem:[%s7505_s22 + $0x1000] sm:$0xff] }
  0x7c   : > { %v5977_v26 = vpack.c.bf16 %v1774_v22, %v1742_v21  ;;  %v782_v31 = vld [vmem:[%s7505_s22 + $0x1008] sm:$0xff]  ;;  %v813_v40 = vld [vmem:[%s7505_s22 + $0x1100] sm:$0xff] }
  0x7d   : > { %v814_v32 = vld [vmem:[%s7505_s22 + $0x1108] sm:$0xff]  ;;  %v1805_v41 = vld [vmem:[%s7505_s22 + $0x3000] sm:$0xff]  ;;  %v4959_v47 = vpack.c.bf16 %v813_v40, %v781_v39 }
  0x7e   : > { %v1806_v33 = vld [vmem:[%s7505_s22 + $0x3008] sm:$0xff]  ;;  %v4957_v37 = vpack.c.bf16 %v814_v32, %v782_v31  ;;  %v1837_v42 = vld [vmem:[%s7505_s22 + $0x3100] sm:$0xff] }
  0x7f   : > { %v1838_v34 = vld [vmem:[%s7505_s22 + $0x3108] sm:$0xff]  ;;  %v5983_v48 = vpack.c.bf16 %v1837_v42, %v1805_v41  ;;  %v845_v51 = vld [vmem:[%s7505_s22 + $0x1200] sm:$0xff] }
  0x80   : > { %4944 = vmatpush1.bf16.xpose.msra.mxu0 %v4943_v62  ;;  %v5981_v38 = vpack.c.bf16 %v1838_v34, %v1806_v33  ;;  %v846_v43 = vld [vmem:[%s7505_s22 + $0x1208] sm:$0xff]  ;;  %v877_v52 = vld [vmem:[%s7505_s22 + $0x1300] sm:$0xff] }
  0x81   : > { %4946 = vmatprep.subr.bf16.mxu0 %v4945_v0  ;;  %v878_v44 = vld [vmem:[%s7505_s22 + $0x1308] sm:$0xff]  ;;  %v1869_v53 = vld [vmem:[%s7505_s22 + $0x3200] sm:$0xff]  ;;  %v4963_v59 = vpack.c.bf16 %v877_v52, %v845_v51 }
  0x82   : > { %5968 = vmatpush1.bf16.xpose.msra.mxu1 %v5967_v63  ;;  %v1870_v45 = vld [vmem:[%s7505_s22 + $0x3208] sm:$0xff]  ;;  %v4961_v49 = vpack.c.bf16 %v878_v44, %v846_v43  ;;  %v1901_v54 = vld [vmem:[%s7505_s22 + $0x3300] sm:$0xff] }
  0x83   : > { %5970 = vmatprep.subr.bf16.mxu1 %v5969_v1  ;;  %v1902_v46 = vld [vmem:[%s7505_s22 + $0x3308] sm:$0xff]  ;;  %v5987_v60 = vpack.c.bf16 %v1901_v54, %v1869_v53  ;;  %v909_v63 = vld [vmem:[%s7505_s22 + $0x1400] sm:$0xff] }
  0x84   : > { %v5985_v50 = vpack.c.bf16 %v1902_v46, %v1870_v45  ;;  %v910_v55 = vld [vmem:[%s7505_s22 + $0x1408] sm:$0xff]  ;;  %v941_v0 = vld [vmem:[%s7505_s22 + $0x1500] sm:$0xff] }
  0x85   : > { %v942_v56 = vld [vmem:[%s7505_s22 + $0x1508] sm:$0xff]  ;;  %v1933_v1 = vld [vmem:[%s7505_s22 + $0x3400] sm:$0xff]  ;;  %v4967_v7 = vpack.c.bf16 %v941_v0, %v909_v63  ;;  %v272_v63 = vld [vmem:[%s7505_s22 + $0x18] sm:$0xff] }
  0x86   : > { %v1934_v57 = vld [vmem:[%s7505_s22 + $0x3408] sm:$0xff]  ;;  %v4965_v61 = vpack.c.bf16 %v942_v56, %v910_v55  ;;  %v1965_v2 = vld [vmem:[%s7505_s22 + $0x3500] sm:$0xff]  ;;  %v304_v0 = vld [vmem:[%s7505_s22 + $0x118] sm:$0xff] }
  0x87   : > { %v1966_v58 = vld [vmem:[%s7505_s22 + $0x3508] sm:$0xff]  ;;  %v5991_v8 = vpack.c.bf16 %v1965_v2, %v1933_v1  ;;  %v2029_v14 = vld [vmem:[%s7505_s22 + $0x3700] sm:$0xff]  ;;  %v1296_v1 = vld [vmem:[%s7505_s22 + $0x2018] sm:$0xff] }
  0x88   : > { %4948 = vmatpush1.bf16.xpose.msra.mxu0 %v4947_v10  ;;  %v5989_v62 = vpack.c.bf16 %v1966_v58, %v1934_v57  ;;  %v974_v3 = vld [vmem:[%s7505_s22 + $0x1608] sm:$0xff]  ;;  %v1328_v2 = vld [vmem:[%s7505_s22 + $0x2118] sm:$0xff] }
  0x89   : > { %4950 = vmatprep.subr.bf16.mxu0 %v4949_v12  ;;  %v1006_v4 = vld [vmem:[%s7505_s22 + $0x1708] sm:$0xff]  ;;  %v1005_v12 = vld [vmem:[%s7505_s22 + $0x1700] sm:$0xff] }
  0x8a   : > { %5972 = vmatpush1.bf16.xpose.msra.mxu1 %v5971_v11  ;;  %v1998_v5 = vld [vmem:[%s7505_s22 + $0x3608] sm:$0xff]  ;;  %v4969_v9 = vpack.c.bf16 %v1006_v4, %v974_v3  ;;  %v973_v11 = vld [vmem:[%s7505_s22 + $0x1600] sm:$0xff] }
  0x8b   : > { %5974 = vmatprep.subr.bf16.mxu1 %v5973_v13  ;;  %v2030_v6 = vld [vmem:[%s7505_s22 + $0x3708] sm:$0xff]  ;;  %v1997_v13 = vld [vmem:[%s7505_s22 + $0x3600] sm:$0xff]  ;;  %v4971_v19 = vpack.c.bf16 %v1005_v12, %v973_v11  ;;  %v336_v11 = vld [vmem:[%s7505_s22 + $0x218] sm:$0xff] }
  0x8c   : > { %v5993_v10 = vpack.c.bf16 %v2030_v6, %v1998_v5  ;;  %v1038_v15 = vld [vmem:[%s7505_s22 + $0x1808] sm:$0xff]  ;;  %v5995_v20 = vpack.c.bf16 %v2029_v14, %v1997_v13  ;;  %v4989_v5 = vpack.c.bf16 %v304_v0, %v272_v63  ;;  %v6013_v6 = vpack.c.bf16 %v1328_v2, %v1296_v1  ;;  %v368_v12 = vld [vmem:[%s7505_s22 + $0x318] sm:$0xff] }
  0x8d   : > { %v1070_v16 = vld [vmem:[%s7505_s22 + $0x1908] sm:$0xff]  ;;  %v1360_v13 = vld [vmem:[%s7505_s22 + $0x2218] sm:$0xff] }
  0x8e   : > { %v2062_v17 = vld [vmem:[%s7505_s22 + $0x3808] sm:$0xff]  ;;  %v4973_v21 = vpack.c.bf16 %v1070_v16, %v1038_v15  ;;  %v1392_v14 = vld [vmem:[%s7505_s22 + $0x2318] sm:$0xff]  ;;  %v205_v15 = vld [vmem:[#allocation2] sm:$0xff] }
  0x8f   : > { %v2094_v18 = vld [vmem:[%s7505_s22 + $0x3908] sm:$0xff]  ;;  %v592_v63 = vld [vmem:[%s7505_s22 + $0xa18] sm:$0xff] }
  0x90   : > { %4952 = vmatpush1.bf16.xpose.msra.mxu0 %v4951_v23  ;;  %v5997_v22 = vpack.c.bf16 %v2094_v18, %v2062_v17  ;;  %v1037_v23 = vld [vmem:[%s7505_s22 + $0x1800] sm:$0xff]  ;;  %v1102_v27 = vld [vmem:[%s7505_s22 + $0x1a08] sm:$0xff]  ;;  %v4993_v18 = vpack.c.bf16 %v368_v12, %v336_v11  ;;  %v624_v0 = vld [vmem:[%s7505_s22 + $0xb18] sm:$0xff] }
  0x91   : > { %4954 = vmatprep.subr.bf16.mxu0 %v4953_v25  ;;  %v2061_v25 = vld [vmem:[%s7505_s22 + $0x3800] sm:$0xff]  ;;  %v1134_v28 = vld [vmem:[%s7505_s22 + $0x1b08] sm:$0xff]  ;;  %v1616_v1 = vld [vmem:[%s7505_s22 + $0x2a18] sm:$0xff] }
  0x92   : > { %5976 = vmatpush1.bf16.xpose.msra.mxu1 %v5975_v24  ;;  %v1069_v24 = vld [vmem:[%s7505_s22 + $0x1900] sm:$0xff]  ;;  %v2126_v29 = vld [vmem:[%s7505_s22 + $0x3a08] sm:$0xff]  ;;  %v4977_v33 = vpack.c.bf16 %v1134_v28, %v1102_v27  ;;  %v400_v27 = vld [vmem:[%s7505_s22 + $0x418] sm:$0xff] }
  0x93   : > { %5978 = vmatprep.subr.bf16.mxu1 %v5977_v26  ;;  %v2093_v26 = vld [vmem:[%s7505_s22 + $0x3900] sm:$0xff]  ;;  %v2158_v30 = vld [vmem:[%s7505_s22 + $0x3b08] sm:$0xff]  ;;  %v4975_v31 = vpack.c.bf16 %v1069_v24, %v1037_v23  ;;  %v367_v23 = vld [vmem:[%s7505_s22 + $0x310] sm:$0xff] }
  0x94   : > { %v5999_v32 = vpack.c.bf16 %v2093_v26, %v2061_v25  ;;  %v6001_v34 = vpack.c.bf16 %v2158_v30, %v2126_v29  ;;  %v1166_v39 = vld [vmem:[%s7505_s22 + $0x1c08] sm:$0xff]  ;;  %v1359_v24 = vld [vmem:[%s7505_s22 + $0x2210] sm:$0xff]  ;;  %v208_v25 = vld [vmem:[#allocation2 + $0x18] sm:$0xff] }
  0x95   : > { %v1198_v40 = vld [vmem:[%s7505_s22 + $0x1d08] sm:$0xff]  ;;  %v1391_v26 = vld [vmem:[%s7505_s22 + $0x2310] sm:$0xff]  ;;  %v432_v28 = vld [vmem:[%s7505_s22 + $0x518] sm:$0xff] }
  0x96   : > { %v2190_v41 = vld [vmem:[%s7505_s22 + $0x3c08] sm:$0xff]  ;;  %v4981_v45 = vpack.c.bf16 %v1198_v40, %v1166_v39  ;;  %v1424_v29 = vld [vmem:[%s7505_s22 + $0x2418] sm:$0xff] }
  0x97   : > { %v2222_v42 = vld [vmem:[%s7505_s22 + $0x3d08] sm:$0xff]  ;;  %v1456_v30 = vld [vmem:[%s7505_s22 + $0x2518] sm:$0xff] }
  0x98   : > { %4956 = vmatpush1.bf16.xpose.msra.mxu0 %v4955_v35  ;;  %v1101_v35 = vld [vmem:[%s7505_s22 + $0x1a00] sm:$0xff]  ;;  %v6005_v46 = vpack.c.bf16 %v2222_v42, %v2190_v41  ;;  %v1230_v51 = vld [vmem:[%s7505_s22 + $0x1e08] sm:$0xff]  ;;  %v464_v39 = vld [vmem:[%s7505_s22 + $0x618] sm:$0xff] }
  0x99   : > { %4958 = vmatprep.subr.bf16.mxu0 %v4957_v37  ;;  %v2125_v37 = vld [vmem:[%s7505_s22 + $0x3a00] sm:$0xff]  ;;  %v1262_v52 = vld [vmem:[%s7505_s22 + $0x1f08] sm:$0xff]  ;;  %v496_v40 = vld [vmem:[%s7505_s22 + $0x718] sm:$0xff] }
  0x9a   : > { %5980 = vmatpush1.bf16.xpose.msra.mxu1 %v5979_v36  ;;  %v1133_v36 = vld [vmem:[%s7505_s22 + $0x1b00] sm:$0xff]  ;;  %v2254_v53 = vld [vmem:[%s7505_s22 + $0x3e08] sm:$0xff]  ;;  %v4985_v57 = vpack.c.bf16 %v1262_v52, %v1230_v51  ;;  %v1488_v41 = vld [vmem:[%s7505_s22 + $0x2618] sm:$0xff] }
  0x9b   : > { %5982 = vmatprep.subr.bf16.mxu1 %v5981_v38  ;;  %v2157_v38 = vld [vmem:[%s7505_s22 + $0x3b00] sm:$0xff]  ;;  %v4979_v43 = vpack.c.bf16 %v1133_v36, %v1101_v35  ;;  %v2286_v54 = vld [vmem:[%s7505_s22 + $0x3f08] sm:$0xff]  ;;  %v399_v35 = vld [vmem:[%s7505_s22 + $0x410] sm:$0xff] }
  0x9c   : > { %v6003_v44 = vpack.c.bf16 %v2157_v38, %v2125_v37  ;;  %v6009_v58 = vpack.c.bf16 %v2286_v54, %v2254_v53  ;;  %v431_v36 = vld [vmem:[%s7505_s22 + $0x510] sm:$0xff]  ;;  %v1520_v42 = vld [vmem:[%s7505_s22 + $0x2718] sm:$0xff] }
  0x9d   : > { %v1423_v37 = vld [vmem:[%s7505_s22 + $0x2410] sm:$0xff]  ;;  %v528_v51 = vld [vmem:[%s7505_s22 + $0x818] sm:$0xff] }
  0x9e   : > { %v1455_v38 = vld [vmem:[%s7505_s22 + $0x2510] sm:$0xff]  ;;  %v560_v52 = vld [vmem:[%s7505_s22 + $0x918] sm:$0xff] }
  0x9f   : > { %v1552_v53 = vld [vmem:[%s7505_s22 + $0x2818] sm:$0xff] }
  0xa0   : > { %4960 = vmatpush1.bf16.xpose.msra.mxu0 %v4959_v47  ;;  %v1165_v47 = vld [vmem:[%s7505_s22 + $0x1c00] sm:$0xff]  ;;  %v1584_v54 = vld [vmem:[%s7505_s22 + $0x2918] sm:$0xff] }
  0xa1   : > { %4962 = vmatprep.subr.bf16.mxu0 %v4961_v49  ;;  %v2189_v49 = vld [vmem:[%s7505_s22 + $0x3c00] sm:$0xff]  ;;  %v1648_v2 = vld [vmem:[%s7505_s22 + $0x2b18] sm:$0xff] }
  0xa2   : > { %5984 = vmatpush1.bf16.xpose.msra.mxu1 %v5983_v48  ;;  %v1197_v48 = vld [vmem:[%s7505_s22 + $0x1d00] sm:$0xff]  ;;  %v656_v11 = vld [vmem:[%s7505_s22 + $0xc18] sm:$0xff] }
  0xa3   : > { %5986 = vmatprep.subr.bf16.mxu1 %v5985_v50  ;;  %v2221_v50 = vld [vmem:[%s7505_s22 + $0x3d00] sm:$0xff]  ;;  %v4983_v55 = vpack.c.bf16 %v1197_v48, %v1165_v47  ;;  %v463_v47 = vld [vmem:[%s7505_s22 + $0x610] sm:$0xff]  ;;  %v688_v12 = vld [vmem:[%s7505_s22 + $0xd18] sm:$0xff] }
  0xa4   : > { %v6007_v56 = vpack.c.bf16 %v2221_v50, %v2189_v49  ;;  %v495_v48 = vld [vmem:[%s7505_s22 + $0x710] sm:$0xff] }
  0xa5   : > { %v1487_v49 = vld [vmem:[%s7505_s22 + $0x2610] sm:$0xff] }
  0xa6   : > { %v1519_v50 = vld [vmem:[%s7505_s22 + $0x2710] sm:$0xff] }
  0xa8   : > { %4964 = vmatpush1.bf16.xpose.msra.mxu0 %v4963_v59  ;;  %v1229_v59 = vld [vmem:[%s7505_s22 + $0x1e00] sm:$0xff] }
  0xa9   : > { %4966 = vmatprep.subr.bf16.mxu0 %v4965_v61  ;;  %v2253_v61 = vld [vmem:[%s7505_s22 + $0x3e00] sm:$0xff] }
  0xaa   : > { %5988 = vmatpush1.bf16.xpose.msra.mxu1 %v5987_v60  ;;  %v1261_v60 = vld [vmem:[%s7505_s22 + $0x1f00] sm:$0xff] }
  0xab   : > { %5990 = vmatprep.subr.bf16.mxu1 %v5989_v62  ;;  %v2285_v62 = vld [vmem:[%s7505_s22 + $0x3f00] sm:$0xff]  ;;  %v4987_v3 = vpack.c.bf16 %v1261_v60, %v1229_v59  ;;  %v527_v59 = vld [vmem:[%s7505_s22 + $0x810] sm:$0xff] }
  0xac   : > { %v6011_v4 = vpack.c.bf16 %v2285_v62, %v2253_v61  ;;  %v559_v60 = vld [vmem:[%s7505_s22 + $0x910] sm:$0xff] }
  0xad   : > { %v1551_v61 = vld [vmem:[%s7505_s22 + $0x2810] sm:$0xff] }
  0xae   : > { %v1583_v62 = vld [vmem:[%s7505_s22 + $0x2910] sm:$0xff] }
  0xb0   : > { %4968 = vmatpush1.bf16.xpose.msra.mxu0 %v4967_v7  ;;  %v271_v7 = vld [vmem:[%s7505_s22 + $0x10] sm:$0xff] }
  0xb1   : > { %4970 = vmatprep.subr.bf16.mxu0 %v4969_v9  ;;  %v1295_v9 = vld [vmem:[%s7505_s22 + $0x2010] sm:$0xff] }
  0xb2   : > { %5992 = vmatpush1.bf16.xpose.msra.mxu1 %v5991_v8  ;;  %v303_v8 = vld [vmem:[%s7505_s22 + $0x110] sm:$0xff] }
  0xb3   : > { %5994 = vmatprep.subr.bf16.mxu1 %v5993_v10  ;;  %v1327_v10 = vld [vmem:[%s7505_s22 + $0x2110] sm:$0xff]  ;;  %v4991_v16 = vpack.c.bf16 %v303_v8, %v271_v7 }
  0xb4   : > { %v6015_v17 = vpack.c.bf16 %v1327_v10, %v1295_v9  ;;  %v591_v7 = vld [vmem:[%s7505_s22 + $0xa10] sm:$0xff] }
  0xb5   : > { %v623_v8 = vld [vmem:[%s7505_s22 + $0xb10] sm:$0xff] }
  0xb6   : > { %v1615_v9 = vld [vmem:[%s7505_s22 + $0x2a10] sm:$0xff] }
  0xb7   : > { %v1647_v10 = vld [vmem:[%s7505_s22 + $0x2b10] sm:$0xff] }
  0xb8   : > { %4972 = vmatpush1.bf16.xpose.msra.mxu0 %v4971_v19  ;;  %v6017_v19 = vpack.c.bf16 %v1392_v14, %v1360_v13  ;;  %v1680_v13 = vld [vmem:[%s7505_s22 + $0x2c18] sm:$0xff] }
  0xb9   : > { %4974 = vmatprep.subr.bf16.mxu0 %v4973_v21  ;;  %v335_v21 = vld [vmem:[%s7505_s22 + $0x210] sm:$0xff]  ;;  %v1712_v14 = vld [vmem:[%s7505_s22 + $0x2d18] sm:$0xff] }
  0xba   : > { %5996 = vmatpush1.bf16.xpose.msra.mxu1 %v5995_v20  ;;  %v238_v20 = vld [vmem:[#allocation2 + $0x108] sm:$0xff] }
  0xbb   : > { %5998 = vmatprep.subr.bf16.mxu1 %v5997_v22  ;;  %v237_v22 = vld [vmem:[#allocation2 + $0x100] sm:$0xff] }
  0xc0   : > { %4976 = vmatpush1.bf16.xpose.msra.mxu0 %v4975_v31  ;;  %v4995_v31 = vpack.c.bf16 %v367_v23, %v335_v21  ;;  %v1679_v21 = vld [vmem:[%s7505_s22 + $0x2c10] sm:$0xff]  ;;  %v720_v23 = vld [vmem:[%s7505_s22 + $0xe18] sm:$0xff] }
  0xc1   : > { %4978 = vmatprep.subr.bf16.mxu0 %v4977_v33  ;;  %v4997_v33 = vpack.c.bf16 %v432_v28, %v400_v27 }
  0xc2   : > { %6000 = vmatpush1.bf16.xpose.msra.mxu1 %v5999_v32  ;;  %v6019_v32 = vpack.c.bf16 %v1391_v26, %v1359_v24  ;;  %v752_v24 = vld [vmem:[%s7505_s22 + $0xf18] sm:$0xff] }
  0xc3   : > { %6002 = vmatprep.subr.bf16.mxu1 %v6001_v34  ;;  %v6021_v34 = vpack.c.bf16 %v1456_v30, %v1424_v29  ;;  %v1776_v26 = vld [vmem:[%s7505_s22 + $0x2f18] sm:$0xff]  ;;  %v5017_v29 = vpack.c.bf16 %v752_v24, %v720_v23 }
  0xc8   : > { %4980 = vmatpush1.bf16.xpose.msra.mxu0 %v4979_v43  ;;  %v4999_v43 = vpack.c.bf16 %v431_v36, %v399_v35  ;;  %v784_v35 = vld [vmem:[%s7505_s22 + $0x1018] sm:$0xff] }
  0xc9   : > { %4982 = vmatprep.subr.bf16.mxu0 %v4981_v45  ;;  %v5001_v45 = vpack.c.bf16 %v496_v40, %v464_v39  ;;  %v816_v36 = vld [vmem:[%s7505_s22 + $0x1118] sm:$0xff] }
  0xca   : > { %6004 = vmatpush1.bf16.xpose.msra.mxu1 %v6003_v44  ;;  %v6023_v44 = vpack.c.bf16 %v1455_v38, %v1423_v37  ;;  %v1808_v37 = vld [vmem:[%s7505_s22 + $0x3018] sm:$0xff] }
  0xcb   : > { %6006 = vmatprep.subr.bf16.mxu1 %v6005_v46  ;;  %v6025_v46 = vpack.c.bf16 %v1520_v42, %v1488_v41  ;;  %v1840_v38 = vld [vmem:[%s7505_s22 + $0x3118] sm:$0xff]  ;;  %v5021_v41 = vpack.c.bf16 %v816_v36, %v784_v35 }
  0xcc   : > { %v6045_v42 = vpack.c.bf16 %v1840_v38, %v1808_v37 }
  0xd0   : > { %4984 = vmatpush1.bf16.xpose.msra.mxu0 %v4983_v55  ;;  %v5003_v55 = vpack.c.bf16 %v495_v48, %v463_v47  ;;  %v848_v47 = vld [vmem:[%s7505_s22 + $0x1218] sm:$0xff] }
  0xd1   : > { %4986 = vmatprep.subr.bf16.mxu0 %v4985_v57  ;;  %v5005_v57 = vpack.c.bf16 %v560_v52, %v528_v51  ;;  %v880_v48 = vld [vmem:[%s7505_s22 + $0x1318] sm:$0xff] }
  0xd2   : > { %6008 = vmatpush1.bf16.xpose.msra.mxu1 %v6007_v56  ;;  %v6027_v56 = vpack.c.bf16 %v1519_v50, %v1487_v49  ;;  %v1872_v49 = vld [vmem:[%s7505_s22 + $0x3218] sm:$0xff] }
  0xd3   : > { %6010 = vmatprep.subr.bf16.mxu1 %v6009_v58  ;;  %v6029_v58 = vpack.c.bf16 %v1584_v54, %v1552_v53  ;;  %v1904_v50 = vld [vmem:[%s7505_s22 + $0x3318] sm:$0xff]  ;;  %v5025_v53 = vpack.c.bf16 %v880_v48, %v848_v47 }
  0xd4   : > { %v6049_v54 = vpack.c.bf16 %v1904_v50, %v1872_v49 }
  0xd8   : > { %4988 = vmatpush1.bf16.xpose.msra.mxu0 %v4987_v3  ;;  %v5007_v3 = vpack.c.bf16 %v559_v60, %v527_v59  ;;  %v912_v59 = vld [vmem:[%s7505_s22 + $0x1418] sm:$0xff] }
  0xd9   : > { %4990 = vmatprep.subr.bf16.mxu0 %v4989_v5  ;;  %v5009_v5 = vpack.c.bf16 %v624_v0, %v592_v63  ;;  %v944_v60 = vld [vmem:[%s7505_s22 + $0x1518] sm:$0xff] }
  0xda   : > { %6012 = vmatpush1.bf16.xpose.msra.mxu1 %v6011_v4  ;;  %v6031_v4 = vpack.c.bf16 %v1583_v62, %v1551_v61  ;;  %v1936_v61 = vld [vmem:[%s7505_s22 + $0x3418] sm:$0xff] }
  0xdb   : > { %6014 = vmatprep.subr.bf16.mxu1 %v6013_v6  ;;  %v6033_v6 = vpack.c.bf16 %v1648_v2, %v1616_v1  ;;  %v1968_v62 = vld [vmem:[%s7505_s22 + $0x3518] sm:$0xff]  ;;  %v5029_v1 = vpack.c.bf16 %v944_v60, %v912_v59 }
  0xdc   : > { %v6053_v2 = vpack.c.bf16 %v1968_v62, %v1936_v61 }
  0xdf   : > { %2382 = vmatmul.mubr.f32.vlgmr.msra.gmra.mrb[0].mxu0 %v205_v15 }
  0xe0   : > { %4992 = vmatpush1.bf16.xpose.msra.mxu0 %v4991_v16  ;;  %2387 = vmatprep.mubr.f32.mxu0 %v238_v20  ;;  %v6035_v16 = vpack.c.bf16 %v1647_v10, %v1615_v9  ;;  %v2000_v9 = vld [vmem:[%s7505_s22 + $0x3618] sm:$0xff] }
  0xe1   : > { %3614 = vmatmul.mubr.f32.vlgmr.msra.gmra.mrb[0].mxu1 %v205_v15  ;;  %4994 = vmatprep.subr.bf16.mxu0 %v4993_v18  ;;  %v5011_v15 = vpack.c.bf16 %v623_v8, %v591_v7  ;;  %v6037_v18 = vpack.c.bf16 %v1712_v14, %v1680_v13  ;;  %v976_v7 = vld [vmem:[%s7505_s22 + $0x1618] sm:$0xff] }
  0xe2   : > { %6016 = vmatpush1.bf16.xpose.msra.mxu1 %v6015_v17  ;;  %3619 = vmatprep.mubr.f32.mxu1 %v238_v20  ;;  %v5013_v17 = vpack.c.bf16 %v688_v12, %v656_v11  ;;  %v687_v20 = vld [vmem:[%s7505_s22 + $0xd10] sm:$0xff]  ;;  %v1008_v8 = vld [vmem:[%s7505_s22 + $0x1718] sm:$0xff] }
  0xe3   : > { %6018 = vmatprep.subr.bf16.mxu1 %v6017_v19  ;;  %2388 = vmatmul.mubr.f32.gmra.mrb[2].mxu0 %v237_v22  ;;  %v655_v19 = vld [vmem:[%s7505_s22 + $0xc10] sm:$0xff]  ;;  %v2032_v10 = vld [vmem:[%s7505_s22 + $0x3718] sm:$0xff]  ;;  %v5033_v13 = vpack.c.bf16 %v1008_v8, %v976_v7 }
  0xe4   : > { %2458 = vmatprep.mubr.f32.mxu0 %v208_v25  ;;  %v5015_v27 = vpack.c.bf16 %v687_v20, %v655_v19  ;;  %v6057_v14 = vpack.c.bf16 %v2032_v10, %v2000_v9  ;;  %v1040_v19 = vld [vmem:[%s7505_s22 + $0x1818] sm:$0xff] }
  0xe5   : > { %3620 = vmatmul.mubr.f32.gmra.mrb[2].mxu1 %v237_v22  ;;  %v1711_v22 = vld [vmem:[%s7505_s22 + $0x2d10] sm:$0xff]  ;;  %v1072_v20 = vld [vmem:[%s7505_s22 + $0x1918] sm:$0xff] }
  0xe6   : > { %3690 = vmatprep.mubr.f32.mxu1 %v208_v25  ;;  %v1744_v25 = vld [vmem:[%s7505_s22 + $0x2e18] sm:$0xff]  ;;  %v6039_v28 = vpack.c.bf16 %v1711_v22, %v1679_v21 }
  0xe7   : > { %v6041_v30 = vpack.c.bf16 %v1776_v26, %v1744_v25  ;;  %v2064_v21 = vld [vmem:[%s7505_s22 + $0x3818] sm:$0xff]  ;;  %v5037_v25 = vpack.c.bf16 %v1072_v20, %v1040_v19  ;;  %v207_v19 = vld [vmem:[#allocation2 + $0x10] sm:$0xff] }
  0xe8   : > { %4996 = vmatpush1.bf16.xpose.msra.mxu0 %v4995_v31  ;;  %v719_v31 = vld [vmem:[%s7505_s22 + $0xe10] sm:$0xff]  ;;  %v2096_v22 = vld [vmem:[%s7505_s22 + $0x3918] sm:$0xff] }
  0xe9   : > { %4998 = vmatprep.subr.bf16.mxu0 %v4997_v33  ;;  %v1743_v33 = vld [vmem:[%s7505_s22 + $0x2e10] sm:$0xff]  ;;  %v6061_v26 = vpack.c.bf16 %v2096_v22, %v2064_v21 }
  0xea   : > { %6020 = vmatpush1.bf16.xpose.msra.mxu1 %v6019_v32  ;;  %v751_v32 = vld [vmem:[%s7505_s22 + $0xf10] sm:$0xff] }
  0xeb   : > { %6022 = vmatprep.subr.bf16.mxu1 %v6021_v34  ;;  %v1775_v34 = vld [vmem:[%s7505_s22 + $0x2f10] sm:$0xff]  ;;  %v5019_v39 = vpack.c.bf16 %v751_v32, %v719_v31  ;;  %v1104_v31 = vld [vmem:[%s7505_s22 + $0x1a18] sm:$0xff] }
  0xec   : > { %v6043_v40 = vpack.c.bf16 %v1775_v34, %v1743_v33  ;;  %v1136_v32 = vld [vmem:[%s7505_s22 + $0x1b18] sm:$0xff] }
  0xed   : > { %v2128_v33 = vld [vmem:[%s7505_s22 + $0x3a18] sm:$0xff]  ;;  %v5041_v37 = vpack.c.bf16 %v1136_v32, %v1104_v31  ;;  %v402_v31 = vld [vmem:[%s7505_s22 + $0x428] sm:$0xff] }
  0xee   : > { %v2160_v34 = vld [vmem:[%s7505_s22 + $0x3b18] sm:$0xff]  ;;  %v434_v32 = vld [vmem:[%s7505_s22 + $0x528] sm:$0xff] }
  0xef   : > { %v6065_v38 = vpack.c.bf16 %v2160_v34, %v2128_v33  ;;  %v1426_v33 = vld [vmem:[%s7505_s22 + $0x2428] sm:$0xff] }
  0xf0   : > { %5000 = vmatpush1.bf16.xpose.msra.mxu0 %v4999_v43  ;;  %v783_v43 = vld [vmem:[%s7505_s22 + $0x1010] sm:$0xff]  ;;  %v1458_v34 = vld [vmem:[%s7505_s22 + $0x2528] sm:$0xff] }
  0xf1   : > { %5002 = vmatprep.subr.bf16.mxu0 %v5001_v45  ;;  %v1807_v45 = vld [vmem:[%s7505_s22 + $0x3010] sm:$0xff] }
  0xf2   : > { %6024 = vmatpush1.bf16.xpose.msra.mxu1 %v6023_v44  ;;  %v815_v44 = vld [vmem:[%s7505_s22 + $0x1110] sm:$0xff] }
  0xf3   : > { %6026 = vmatprep.subr.bf16.mxu1 %v6025_v46  ;;  %v1839_v46 = vld [vmem:[%s7505_s22 + $0x3110] sm:$0xff]  ;;  %v5023_v51 = vpack.c.bf16 %v815_v44, %v783_v43  ;;  %v1168_v43 = vld [vmem:[%s7505_s22 + $0x1c18] sm:$0xff] }
  0xf4   : > { %v6047_v52 = vpack.c.bf16 %v1839_v46, %v1807_v45  ;;  %v1200_v44 = vld [vmem:[%s7505_s22 + $0x1d18] sm:$0xff] }
  0xf5   : > { %v2192_v45 = vld [vmem:[%s7505_s22 + $0x3c18] sm:$0xff]  ;;  %v5045_v49 = vpack.c.bf16 %v1200_v44, %v1168_v43  ;;  %v466_v43 = vld [vmem:[%s7505_s22 + $0x628] sm:$0xff] }
  0xf6   : > { %v2224_v46 = vld [vmem:[%s7505_s22 + $0x3d18] sm:$0xff]  ;;  %v498_v44 = vld [vmem:[%s7505_s22 + $0x728] sm:$0xff] }
  0xf7   : > { %v6069_v50 = vpack.c.bf16 %v2224_v46, %v2192_v45  ;;  %v1490_v45 = vld [vmem:[%s7505_s22 + $0x2628] sm:$0xff] }
  0xf8   : > { %5004 = vmatpush1.bf16.xpose.msra.mxu0 %v5003_v55  ;;  %v847_v55 = vld [vmem:[%s7505_s22 + $0x1210] sm:$0xff]  ;;  %v1522_v46 = vld [vmem:[%s7505_s22 + $0x2728] sm:$0xff] }
  0xf9   : > { %5006 = vmatprep.subr.bf16.mxu0 %v5005_v57  ;;  %v1871_v57 = vld [vmem:[%s7505_s22 + $0x3210] sm:$0xff] }
  0xfa   : > { %6028 = vmatpush1.bf16.xpose.msra.mxu1 %v6027_v56  ;;  %v879_v56 = vld [vmem:[%s7505_s22 + $0x1310] sm:$0xff] }
  0xfb   : > { %6030 = vmatprep.subr.bf16.mxu1 %v6029_v58  ;;  %v1903_v58 = vld [vmem:[%s7505_s22 + $0x3310] sm:$0xff]  ;;  %v5027_v63 = vpack.c.bf16 %v879_v56, %v847_v55  ;;  %v1232_v55 = vld [vmem:[%s7505_s22 + $0x1e18] sm:$0xff] }
  0xfc   : > { %v6051_v0 = vpack.c.bf16 %v1903_v58, %v1871_v57  ;;  %v1264_v56 = vld [vmem:[%s7505_s22 + $0x1f18] sm:$0xff] }
  0xfd   : > { %v2256_v57 = vld [vmem:[%s7505_s22 + $0x3e18] sm:$0xff]  ;;  %v5049_v61 = vpack.c.bf16 %v1264_v56, %v1232_v55  ;;  %v530_v55 = vld [vmem:[%s7505_s22 + $0x828] sm:$0xff] }
  0xfe   : > { %v2288_v58 = vld [vmem:[%s7505_s22 + $0x3f18] sm:$0xff]  ;;  %v562_v56 = vld [vmem:[%s7505_s22 + $0x928] sm:$0xff] }
  0xff   : > { %v6073_v62 = vpack.c.bf16 %v2288_v58, %v2256_v57  ;;  %v1554_v57 = vld [vmem:[%s7505_s22 + $0x2828] sm:$0xff] }
 0x100   : > { %5008 = vmatpush1.bf16.xpose.msra.mxu0 %v5007_v3  ;;  %v911_v3 = vld [vmem:[%s7505_s22 + $0x1410] sm:$0xff]  ;;  %v1586_v58 = vld [vmem:[%s7505_s22 + $0x2928] sm:$0xff] }
 0x101   : > { %5010 = vmatprep.subr.bf16.mxu0 %v5009_v5  ;;  %v1935_v5 = vld [vmem:[%s7505_s22 + $0x3410] sm:$0xff] }
 0x102   : > { %6032 = vmatpush1.bf16.xpose.msra.mxu1 %v6031_v4  ;;  %v943_v4 = vld [vmem:[%s7505_s22 + $0x1510] sm:$0xff] }
 0x103   : > { %6034 = vmatprep.subr.bf16.mxu1 %v6033_v6  ;;  %v1967_v6 = vld [vmem:[%s7505_s22 + $0x3510] sm:$0xff]  ;;  %v5031_v11 = vpack.c.bf16 %v943_v4, %v911_v3  ;;  %v274_v3 = vld [vmem:[%s7505_s22 + $0x28] sm:$0xff] }
 0x104   : > { %v6055_v12 = vpack.c.bf16 %v1967_v6, %v1935_v5  ;;  %v306_v4 = vld [vmem:[%s7505_s22 + $0x128] sm:$0xff] }
 0x105   : > { %v1298_v5 = vld [vmem:[%s7505_s22 + $0x2028] sm:$0xff]  ;;  %v5053_v9 = vpack.c.bf16 %v306_v4, %v274_v3 }
 0x106   : > { %v1330_v6 = vld [vmem:[%s7505_s22 + $0x2128] sm:$0xff] }
 0x107   : > { %v6077_v10 = vpack.c.bf16 %v1330_v6, %v1298_v5  ;;  %v594_v3 = vld [vmem:[%s7505_s22 + $0xa28] sm:$0xff] }
 0x108   : > { %5012 = vmatpush1.bf16.xpose.msra.mxu0 %v5011_v15  ;;  %v975_v15 = vld [vmem:[%s7505_s22 + $0x1610] sm:$0xff]  ;;  %v626_v4 = vld [vmem:[%s7505_s22 + $0xb28] sm:$0xff] }
 0x109   : > { %5014 = vmatprep.subr.bf16.mxu0 %v5013_v17  ;;  %v1999_v17 = vld [vmem:[%s7505_s22 + $0x3610] sm:$0xff]  ;;  %v1618_v5 = vld [vmem:[%s7505_s22 + $0x2a28] sm:$0xff] }
 0x10a   : > { %6036 = vmatpush1.bf16.xpose.msra.mxu1 %v6035_v16  ;;  %v1007_v16 = vld [vmem:[%s7505_s22 + $0x1710] sm:$0xff]  ;;  %v1650_v6 = vld [vmem:[%s7505_s22 + $0x2b28] sm:$0xff] }
 0x10b   : > { %6038 = vmatprep.subr.bf16.mxu1 %v6037_v18  ;;  %v2031_v18 = vld [vmem:[%s7505_s22 + $0x3710] sm:$0xff]  ;;  %v5035_v23 = vpack.c.bf16 %v1007_v16, %v975_v15  ;;  %v338_v15 = vld [vmem:[%s7505_s22 + $0x228] sm:$0xff] }
 0x10c   : > { %v6059_v24 = vpack.c.bf16 %v2031_v18, %v1999_v17  ;;  %v370_v16 = vld [vmem:[%s7505_s22 + $0x328] sm:$0xff] }
 0x10d   : > { %v1362_v17 = vld [vmem:[%s7505_s22 + $0x2228] sm:$0xff]  ;;  %v5057_v22 = vpack.c.bf16 %v370_v16, %v338_v15 }
 0x10e   : > { %v1394_v18 = vld [vmem:[%s7505_s22 + $0x2328] sm:$0xff] }
 0x10f   : > { %v658_v15 = vld [vmem:[%s7505_s22 + $0xc28] sm:$0xff] }
 0x110   : > { %5016 = vmatpush1.bf16.xpose.msra.mxu0 %v5015_v27  ;;  %v1039_v27 = vld [vmem:[%s7505_s22 + $0x1810] sm:$0xff]  ;;  %v690_v16 = vld [vmem:[%s7505_s22 + $0xd28] sm:$0xff] }
 0x111   : > { %5018 = vmatprep.subr.bf16.mxu0 %v5017_v29  ;;  %v2063_v29 = vld [vmem:[%s7505_s22 + $0x3810] sm:$0xff] }
 0x112   : > { %6040 = vmatpush1.bf16.xpose.msra.mxu1 %v6039_v28  ;;  %v1071_v28 = vld [vmem:[%s7505_s22 + $0x1910] sm:$0xff] }
 0x113   : > { %6042 = vmatprep.subr.bf16.mxu1 %v6041_v30  ;;  %v2095_v30 = vld [vmem:[%s7505_s22 + $0x3910] sm:$0xff]  ;;  %v5039_v35 = vpack.c.bf16 %v1071_v28, %v1039_v27  ;;  %v369_v27 = vld [vmem:[%s7505_s22 + $0x320] sm:$0xff] }
 0x114   : > { %v6063_v36 = vpack.c.bf16 %v2095_v30, %v2063_v29  ;;  %v1361_v28 = vld [vmem:[%s7505_s22 + $0x2220] sm:$0xff]  ;;  %v210_v29 = vld [vmem:[#allocation2 + $0x28] sm:$0xff] }
 0x115   : > { %v1393_v30 = vld [vmem:[%s7505_s22 + $0x2320] sm:$0xff] }
 0x118   : > { %5020 = vmatpush1.bf16.xpose.msra.mxu0 %v5019_v39  ;;  %v1103_v39 = vld [vmem:[%s7505_s22 + $0x1a10] sm:$0xff] }
 0x119   : > { %5022 = vmatprep.subr.bf16.mxu0 %v5021_v41  ;;  %v2127_v41 = vld [vmem:[%s7505_s22 + $0x3a10] sm:$0xff] }
 0x11a   : > { %6044 = vmatpush1.bf16.xpose.msra.mxu1 %v6043_v40  ;;  %v1135_v40 = vld [vmem:[%s7505_s22 + $0x1b10] sm:$0xff] }
 0x11b   : > { %6046 = vmatprep.subr.bf16.mxu1 %v6045_v42  ;;  %v2159_v42 = vld [vmem:[%s7505_s22 + $0x3b10] sm:$0xff]  ;;  %v5043_v47 = vpack.c.bf16 %v1135_v40, %v1103_v39  ;;  %v401_v39 = vld [vmem:[%s7505_s22 + $0x420] sm:$0xff] }
 0x11c   : > { %v6067_v48 = vpack.c.bf16 %v2159_v42, %v2127_v41  ;;  %v433_v40 = vld [vmem:[%s7505_s22 + $0x520] sm:$0xff] }
 0x11d   : > { %v1425_v41 = vld [vmem:[%s7505_s22 + $0x2420] sm:$0xff] }
 0x11e   : > { %v1457_v42 = vld [vmem:[%s7505_s22 + $0x2520] sm:$0xff] }
 0x120   : > { %5024 = vmatpush1.bf16.xpose.msra.mxu0 %v5023_v51  ;;  %v1167_v51 = vld [vmem:[%s7505_s22 + $0x1c10] sm:$0xff] }
 0x121   : > { %5026 = vmatprep.subr.bf16.mxu0 %v5025_v53  ;;  %v2191_v53 = vld [vmem:[%s7505_s22 + $0x3c10] sm:$0xff] }
 0x122   : > { %6048 = vmatpush1.bf16.xpose.msra.mxu1 %v6047_v52  ;;  %v1199_v52 = vld [vmem:[%s7505_s22 + $0x1d10] sm:$0xff] }
 0x123   : > { %6050 = vmatprep.subr.bf16.mxu1 %v6049_v54  ;;  %v2223_v54 = vld [vmem:[%s7505_s22 + $0x3d10] sm:$0xff]  ;;  %v5047_v59 = vpack.c.bf16 %v1199_v52, %v1167_v51  ;;  %v465_v51 = vld [vmem:[%s7505_s22 + $0x620] sm:$0xff] }
 0x124   : > { %v6071_v60 = vpack.c.bf16 %v2223_v54, %v2191_v53  ;;  %v497_v52 = vld [vmem:[%s7505_s22 + $0x720] sm:$0xff] }
 0x125   : > { %v1489_v53 = vld [vmem:[%s7505_s22 + $0x2620] sm:$0xff] }
 0x126   : > { %v1521_v54 = vld [vmem:[%s7505_s22 + $0x2720] sm:$0xff] }
 0x128   : > { %5028 = vmatpush1.bf16.xpose.msra.mxu0 %v5027_v63  ;;  %v1231_v63 = vld [vmem:[%s7505_s22 + $0x1e10] sm:$0xff] }
 0x129   : > { %5030 = vmatprep.subr.bf16.mxu0 %v5029_v1  ;;  %v2255_v1 = vld [vmem:[%s7505_s22 + $0x3e10] sm:$0xff] }
 0x12a   : > { %6052 = vmatpush1.bf16.xpose.msra.mxu1 %v6051_v0  ;;  %v1263_v0 = vld [vmem:[%s7505_s22 + $0x1f10] sm:$0xff] }
 0x12b   : > { %6054 = vmatprep.subr.bf16.mxu1 %v6053_v2  ;;  %v2287_v2 = vld [vmem:[%s7505_s22 + $0x3f10] sm:$0xff]  ;;  %v5051_v7 = vpack.c.bf16 %v1263_v0, %v1231_v63  ;;  %v529_v63 = vld [vmem:[%s7505_s22 + $0x820] sm:$0xff] }
 0x12c   : > { %v6075_v8 = vpack.c.bf16 %v2287_v2, %v2255_v1  ;;  %v561_v0 = vld [vmem:[%s7505_s22 + $0x920] sm:$0xff] }
 0x12d   : > { %v1553_v1 = vld [vmem:[%s7505_s22 + $0x2820] sm:$0xff] }
 0x12e   : > { %v1585_v2 = vld [vmem:[%s7505_s22 + $0x2920] sm:$0xff] }
 0x130   : > { %5032 = vmatpush1.bf16.xpose.msra.mxu0 %v5031_v11  ;;  %v273_v11 = vld [vmem:[%s7505_s22 + $0x20] sm:$0xff] }
 0x131   : > { %5034 = vmatprep.subr.bf16.mxu0 %v5033_v13  ;;  %v1297_v13 = vld [vmem:[%s7505_s22 + $0x2020] sm:$0xff] }
 0x132   : > { %6056 = vmatpush1.bf16.xpose.msra.mxu1 %v6055_v12  ;;  %v305_v12 = vld [vmem:[%s7505_s22 + $0x120] sm:$0xff] }
 0x133   : > { %6058 = vmatprep.subr.bf16.mxu1 %v6057_v14  ;;  %v1329_v14 = vld [vmem:[%s7505_s22 + $0x2120] sm:$0xff]  ;;  %v5055_v20 = vpack.c.bf16 %v305_v12, %v273_v11 }
 0x134   : > { %v6079_v21 = vpack.c.bf16 %v1329_v14, %v1297_v13  ;;  %v593_v11 = vld [vmem:[%s7505_s22 + $0xa20] sm:$0xff] }
 0x135   : > { %v625_v12 = vld [vmem:[%s7505_s22 + $0xb20] sm:$0xff] }
 0x136   : > { %v1617_v13 = vld [vmem:[%s7505_s22 + $0x2a20] sm:$0xff] }
 0x137   : > { %v1649_v14 = vld [vmem:[%s7505_s22 + $0x2b20] sm:$0xff] }
 0x138   : > { %5036 = vmatpush1.bf16.xpose.msra.mxu0 %v5035_v23  ;;  %v6081_v23 = vpack.c.bf16 %v1394_v18, %v1362_v17  ;;  %v1682_v17 = vld [vmem:[%s7505_s22 + $0x2c28] sm:$0xff] }
 0x139   : > { %5038 = vmatprep.subr.bf16.mxu0 %v5037_v25  ;;  %v337_v25 = vld [vmem:[%s7505_s22 + $0x220] sm:$0xff]  ;;  %v1714_v18 = vld [vmem:[%s7505_s22 + $0x2d28] sm:$0xff] }
 0x13a   : > { %6060 = vmatpush1.bf16.xpose.msra.mxu1 %v6059_v24  ;;  %v240_v24 = vld [vmem:[#allocation2 + $0x118] sm:$0xff] }
 0x13b   : > { %6062 = vmatprep.subr.bf16.mxu1 %v6061_v26  ;;  %v239_v26 = vld [vmem:[#allocation2 + $0x110] sm:$0xff] }
 0x140   : > { %5040 = vmatpush1.bf16.xpose.msra.mxu0 %v5039_v35  ;;  %v5059_v35 = vpack.c.bf16 %v369_v27, %v337_v25  ;;  %v1681_v25 = vld [vmem:[%s7505_s22 + $0x2c20] sm:$0xff]  ;;  %v722_v27 = vld [vmem:[%s7505_s22 + $0xe28] sm:$0xff] }
 0x141   : > { %5042 = vmatprep.subr.bf16.mxu0 %v5041_v37  ;;  %v5061_v37 = vpack.c.bf16 %v434_v32, %v402_v31 }
 0x142   : > { %6064 = vmatpush1.bf16.xpose.msra.mxu1 %v6063_v36  ;;  %v6083_v36 = vpack.c.bf16 %v1393_v30, %v1361_v28  ;;  %v754_v28 = vld [vmem:[%s7505_s22 + $0xf28] sm:$0xff] }
 0x143   : > { %6066 = vmatprep.subr.bf16.mxu1 %v6065_v38  ;;  %v6085_v38 = vpack.c.bf16 %v1458_v34, %v1426_v33  ;;  %v1778_v30 = vld [vmem:[%s7505_s22 + $0x2f28] sm:$0xff]  ;;  %v5081_v33 = vpack.c.bf16 %v754_v28, %v722_v27 }
 0x148   : > { %5044 = vmatpush1.bf16.xpose.msra.mxu0 %v5043_v47  ;;  %v5063_v47 = vpack.c.bf16 %v433_v40, %v401_v39  ;;  %v786_v39 = vld [vmem:[%s7505_s22 + $0x1028] sm:$0xff] }
 0x149   : > { %5046 = vmatprep.subr.bf16.mxu0 %v5045_v49  ;;  %v5065_v49 = vpack.c.bf16 %v498_v44, %v466_v43  ;;  %v818_v40 = vld [vmem:[%s7505_s22 + $0x1128] sm:$0xff] }
 0x14a   : > { %6068 = vmatpush1.bf16.xpose.msra.mxu1 %v6067_v48  ;;  %v6087_v48 = vpack.c.bf16 %v1457_v42, %v1425_v41  ;;  %v1810_v41 = vld [vmem:[%s7505_s22 + $0x3028] sm:$0xff] }
 0x14b   : > { %6070 = vmatprep.subr.bf16.mxu1 %v6069_v50  ;;  %v6089_v50 = vpack.c.bf16 %v1522_v46, %v1490_v45  ;;  %v1842_v42 = vld [vmem:[%s7505_s22 + $0x3128] sm:$0xff]  ;;  %v5085_v45 = vpack.c.bf16 %v818_v40, %v786_v39 }
 0x14c   : > { %v6109_v46 = vpack.c.bf16 %v1842_v42, %v1810_v41 }
 0x150   : > { %5048 = vmatpush1.bf16.xpose.msra.mxu0 %v5047_v59  ;;  %v5067_v59 = vpack.c.bf16 %v497_v52, %v465_v51  ;;  %v850_v51 = vld [vmem:[%s7505_s22 + $0x1228] sm:$0xff] }
 0x151   : > { %5050 = vmatprep.subr.bf16.mxu0 %v5049_v61  ;;  %v5069_v61 = vpack.c.bf16 %v562_v56, %v530_v55  ;;  %v882_v52 = vld [vmem:[%s7505_s22 + $0x1328] sm:$0xff] }
 0x152   : > { %6072 = vmatpush1.bf16.xpose.msra.mxu1 %v6071_v60  ;;  %v6091_v60 = vpack.c.bf16 %v1521_v54, %v1489_v53  ;;  %v1874_v53 = vld [vmem:[%s7505_s22 + $0x3228] sm:$0xff] }
 0x153   : > { %6074 = vmatprep.subr.bf16.mxu1 %v6073_v62  ;;  %v6093_v62 = vpack.c.bf16 %v1586_v58, %v1554_v57  ;;  %v1906_v54 = vld [vmem:[%s7505_s22 + $0x3328] sm:$0xff]  ;;  %v5089_v57 = vpack.c.bf16 %v882_v52, %v850_v51 }
 0x154   : > { %v6113_v58 = vpack.c.bf16 %v1906_v54, %v1874_v53 }
 0x158   : > { %5052 = vmatpush1.bf16.xpose.msra.mxu0 %v5051_v7  ;;  %v5071_v7 = vpack.c.bf16 %v561_v0, %v529_v63  ;;  %v914_v63 = vld [vmem:[%s7505_s22 + $0x1428] sm:$0xff] }
 0x159   : > { %5054 = vmatprep.subr.bf16.mxu0 %v5053_v9  ;;  %v5073_v9 = vpack.c.bf16 %v626_v4, %v594_v3  ;;  %v946_v0 = vld [vmem:[%s7505_s22 + $0x1528] sm:$0xff] }
 0x15a   : > { %6076 = vmatpush1.bf16.xpose.msra.mxu1 %v6075_v8  ;;  %v6095_v8 = vpack.c.bf16 %v1585_v2, %v1553_v1  ;;  %v1938_v1 = vld [vmem:[%s7505_s22 + $0x3428] sm:$0xff] }
 0x15b   : > { %6078 = vmatprep.subr.bf16.mxu1 %v6077_v10  ;;  %v6097_v10 = vpack.c.bf16 %v1650_v6, %v1618_v5  ;;  %v1970_v2 = vld [vmem:[%s7505_s22 + $0x3528] sm:$0xff]  ;;  %v5093_v5 = vpack.c.bf16 %v946_v0, %v914_v63 }
 0x15c   : > { %v6117_v6 = vpack.c.bf16 %v1970_v2, %v1938_v1 }
 0x15f   : > { %2459 = vmatmul.mubr.f32.vlgmr.msra.gmra.mrb[0].mxu0 %v207_v19 }
 0x160   : > { %5056 = vmatpush1.bf16.xpose.msra.mxu0 %v5055_v20  ;;  %2464 = vmatprep.mubr.f32.mxu0 %v240_v24  ;;  %v6099_v20 = vpack.c.bf16 %v1649_v14, %v1617_v13  ;;  %v2002_v13 = vld [vmem:[%s7505_s22 + $0x3628] sm:$0xff] }
 0x161   : > { %3691 = vmatmul.mubr.f32.vlgmr.msra.gmra.mrb[0].mxu1 %v207_v19  ;;  %5058 = vmatprep.subr.bf16.mxu0 %v5057_v22  ;;  %v5075_v19 = vpack.c.bf16 %v625_v12, %v593_v11  ;;  %v6101_v22 = vpack.c.bf16 %v1714_v18, %v1682_v17  ;;  %v978_v11 = vld [vmem:[%s7505_s22 + $0x1628] sm:$0xff] }
 0x162   : > { %6080 = vmatpush1.bf16.xpose.msra.mxu1 %v6079_v21  ;;  %3696 = vmatprep.mubr.f32.mxu1 %v240_v24  ;;  %v5077_v21 = vpack.c.bf16 %v690_v16, %v658_v15  ;;  %v689_v24 = vld [vmem:[%s7505_s22 + $0xd20] sm:$0xff]  ;;  %v1010_v12 = vld [vmem:[%s7505_s22 + $0x1728] sm:$0xff] }
 0x163   : > { %6082 = vmatprep.subr.bf16.mxu1 %v6081_v23  ;;  %2465 = vmatmul.mubr.f32.gmra.mrb[2].mxu0 %v239_v26  ;;  %v657_v23 = vld [vmem:[%s7505_s22 + $0xc20] sm:$0xff]  ;;  %v2034_v14 = vld [vmem:[%s7505_s22 + $0x3728] sm:$0xff]  ;;  %v5097_v17 = vpack.c.bf16 %v1010_v12, %v978_v11 }
 0x164   : > { %2535 = vmatprep.mubr.f32.mxu0 %v210_v29  ;;  %v5079_v31 = vpack.c.bf16 %v689_v24, %v657_v23  ;;  %v6121_v18 = vpack.c.bf16 %v2034_v14, %v2002_v13  ;;  %v1042_v23 = vld [vmem:[%s7505_s22 + $0x1828] sm:$0xff] }
 0x165   : > { %3697 = vmatmul.mubr.f32.gmra.mrb[2].mxu1 %v239_v26  ;;  %v1713_v26 = vld [vmem:[%s7505_s22 + $0x2d20] sm:$0xff]  ;;  %v1074_v24 = vld [vmem:[%s7505_s22 + $0x1928] sm:$0xff] }
 0x166   : > { %3767 = vmatprep.mubr.f32.mxu1 %v210_v29  ;;  %v1746_v29 = vld [vmem:[%s7505_s22 + $0x2e28] sm:$0xff]  ;;  %v6103_v32 = vpack.c.bf16 %v1713_v26, %v1681_v25 }
 0x167   : > { %v6105_v34 = vpack.c.bf16 %v1778_v30, %v1746_v29  ;;  %v2066_v25 = vld [vmem:[%s7505_s22 + $0x3828] sm:$0xff]  ;;  %v5101_v29 = vpack.c.bf16 %v1074_v24, %v1042_v23  ;;  %v209_v23 = vld [vmem:[#allocation2 + $0x20] sm:$0xff] }
 0x168   : > { %5060 = vmatpush1.bf16.xpose.msra.mxu0 %v5059_v35  ;;  %v721_v35 = vld [vmem:[%s7505_s22 + $0xe20] sm:$0xff]  ;;  %v2098_v26 = vld [vmem:[%s7505_s22 + $0x3928] sm:$0xff] }
 0x169   : > { %5062 = vmatprep.subr.bf16.mxu0 %v5061_v37  ;;  %v1745_v37 = vld [vmem:[%s7505_s22 + $0x2e20] sm:$0xff]  ;;  %v6125_v30 = vpack.c.bf16 %v2098_v26, %v2066_v25 }
 0x16a   : > { %6084 = vmatpush1.bf16.xpose.msra.mxu1 %v6083_v36  ;;  %v753_v36 = vld [vmem:[%s7505_s22 + $0xf20] sm:$0xff] }
 0x16b   : > { %6086 = vmatprep.subr.bf16.mxu1 %v6085_v38  ;;  %v1777_v38 = vld [vmem:[%s7505_s22 + $0x2f20] sm:$0xff]  ;;  %v5083_v43 = vpack.c.bf16 %v753_v36, %v721_v35  ;;  %v1106_v35 = vld [vmem:[%s7505_s22 + $0x1a28] sm:$0xff] }
 0x16c   : > { %v6107_v44 = vpack.c.bf16 %v1777_v38, %v1745_v37  ;;  %v1138_v36 = vld [vmem:[%s7505_s22 + $0x1b28] sm:$0xff] }
 0x16d   : > { %v2130_v37 = vld [vmem:[%s7505_s22 + $0x3a28] sm:$0xff]  ;;  %v5105_v41 = vpack.c.bf16 %v1138_v36, %v1106_v35  ;;  %v404_v35 = vld [vmem:[%s7505_s22 + $0x438] sm:$0xff] }
 0x16e   : > { %v2162_v38 = vld [vmem:[%s7505_s22 + $0x3b28] sm:$0xff]  ;;  %v436_v36 = vld [vmem:[%s7505_s22 + $0x538] sm:$0xff] }
 0x16f   : > { %v6129_v42 = vpack.c.bf16 %v2162_v38, %v2130_v37  ;;  %v1428_v37 = vld [vmem:[%s7505_s22 + $0x2438] sm:$0xff] }
 0x170   : > { %5064 = vmatpush1.bf16.xpose.msra.mxu0 %v5063_v47  ;;  %v785_v47 = vld [vmem:[%s7505_s22 + $0x1020] sm:$0xff]  ;;  %v1460_v38 = vld [vmem:[%s7505_s22 + $0x2538] sm:$0xff] }
 0x171   : > { %5066 = vmatprep.subr.bf16.mxu0 %v5065_v49  ;;  %v1809_v49 = vld [vmem:[%s7505_s22 + $0x3020] sm:$0xff] }
 0x172   : > { %6088 = vmatpush1.bf16.xpose.msra.mxu1 %v6087_v48  ;;  %v817_v48 = vld [vmem:[%s7505_s22 + $0x1120] sm:$0xff] }
 0x173   : > { %6090 = vmatprep.subr.bf16.mxu1 %v6089_v50  ;;  %v1841_v50 = vld [vmem:[%s7505_s22 + $0x3120] sm:$0xff]  ;;  %v5087_v55 = vpack.c.bf16 %v817_v48, %v785_v47  ;;  %v1170_v47 = vld [vmem:[%s7505_s22 + $0x1c28] sm:$0xff] }
 0x174   : > { %v6111_v56 = vpack.c.bf16 %v1841_v50, %v1809_v49  ;;  %v1202_v48 = vld [vmem:[%s7505_s22 + $0x1d28] sm:$0xff] }
 0x175   : > { %v2194_v49 = vld [vmem:[%s7505_s22 + $0x3c28] sm:$0xff]  ;;  %v5109_v53 = vpack.c.bf16 %v1202_v48, %v1170_v47  ;;  %v468_v47 = vld [vmem:[%s7505_s22 + $0x638] sm:$0xff] }
 0x176   : > { %v2226_v50 = vld [vmem:[%s7505_s22 + $0x3d28] sm:$0xff]  ;;  %v500_v48 = vld [vmem:[%s7505_s22 + $0x738] sm:$0xff] }
 0x177   : > { %v6133_v54 = vpack.c.bf16 %v2226_v50, %v2194_v49  ;;  %v1492_v49 = vld [vmem:[%s7505_s22 + $0x2638] sm:$0xff] }
 0x178   : > { %5068 = vmatpush1.bf16.xpose.msra.mxu0 %v5067_v59  ;;  %v849_v59 = vld [vmem:[%s7505_s22 + $0x1220] sm:$0xff]  ;;  %v1524_v50 = vld [vmem:[%s7505_s22 + $0x2738] sm:$0xff] }
 0x179   : > { %5070 = vmatprep.subr.bf16.mxu0 %v5069_v61  ;;  %v1873_v61 = vld [vmem:[%s7505_s22 + $0x3220] sm:$0xff] }
 0x17a   : > { %6092 = vmatpush1.bf16.xpose.msra.mxu1 %v6091_v60  ;;  %v881_v60 = vld [vmem:[%s7505_s22 + $0x1320] sm:$0xff] }
 0x17b   : > { %6094 = vmatprep.subr.bf16.mxu1 %v6093_v62  ;;  %v1905_v62 = vld [vmem:[%s7505_s22 + $0x3320] sm:$0xff]  ;;  %v5091_v3 = vpack.c.bf16 %v881_v60, %v849_v59  ;;  %v1234_v59 = vld [vmem:[%s7505_s22 + $0x1e28] sm:$0xff] }
 0x17c   : > { %v6115_v4 = vpack.c.bf16 %v1905_v62, %v1873_v61  ;;  %v1266_v60 = vld [vmem:[%s7505_s22 + $0x1f28] sm:$0xff] }
 0x17d   : > { %v2258_v61 = vld [vmem:[%s7505_s22 + $0x3e28] sm:$0xff]  ;;  %v5113_v1 = vpack.c.bf16 %v1266_v60, %v1234_v59  ;;  %v532_v59 = vld [vmem:[%s7505_s22 + $0x838] sm:$0xff] }
 0x17e   : > { %v2290_v62 = vld [vmem:[%s7505_s22 + $0x3f28] sm:$0xff]  ;;  %v564_v60 = vld [vmem:[%s7505_s22 + $0x938] sm:$0xff] }
 0x17f   : > { %v6137_v2 = vpack.c.bf16 %v2290_v62, %v2258_v61  ;;  %v1556_v61 = vld [vmem:[%s7505_s22 + $0x2838] sm:$0xff] }
 0x180   : > { %5072 = vmatpush1.bf16.xpose.msra.mxu0 %v5071_v7  ;;  %v913_v7 = vld [vmem:[%s7505_s22 + $0x1420] sm:$0xff]  ;;  %v1588_v62 = vld [vmem:[%s7505_s22 + $0x2938] sm:$0xff] }
 0x181   : > { %5074 = vmatprep.subr.bf16.mxu0 %v5073_v9  ;;  %v1937_v9 = vld [vmem:[%s7505_s22 + $0x3420] sm:$0xff] }
 0x182   : > { %6096 = vmatpush1.bf16.xpose.msra.mxu1 %v6095_v8  ;;  %v945_v8 = vld [vmem:[%s7505_s22 + $0x1520] sm:$0xff] }
 0x183   : > { %6098 = vmatprep.subr.bf16.mxu1 %v6097_v10  ;;  %v1969_v10 = vld [vmem:[%s7505_s22 + $0x3520] sm:$0xff]  ;;  %v5095_v15 = vpack.c.bf16 %v945_v8, %v913_v7  ;;  %v276_v7 = vld [vmem:[%s7505_s22 + $0x38] sm:$0xff] }
 0x184   : > { %v6119_v16 = vpack.c.bf16 %v1969_v10, %v1937_v9  ;;  %v308_v8 = vld [vmem:[%s7505_s22 + $0x138] sm:$0xff] }
 0x185   : > { %v1300_v9 = vld [vmem:[%s7505_s22 + $0x2038] sm:$0xff]  ;;  %v5117_v13 = vpack.c.bf16 %v308_v8, %v276_v7 }
 0x186   : > { %v1332_v10 = vld [vmem:[%s7505_s22 + $0x2138] sm:$0xff] }
 0x187   : > { %v6141_v14 = vpack.c.bf16 %v1332_v10, %v1300_v9  ;;  %v596_v7 = vld [vmem:[%s7505_s22 + $0xa38] sm:$0xff] }
 0x188   : > { %5076 = vmatpush1.bf16.xpose.msra.mxu0 %v5075_v19  ;;  %v977_v19 = vld [vmem:[%s7505_s22 + $0x1620] sm:$0xff]  ;;  %v628_v8 = vld [vmem:[%s7505_s22 + $0xb38] sm:$0xff] }
 0x189   : > { %5078 = vmatprep.subr.bf16.mxu0 %v5077_v21  ;;  %v2001_v21 = vld [vmem:[%s7505_s22 + $0x3620] sm:$0xff]  ;;  %v1620_v9 = vld [vmem:[%s7505_s22 + $0x2a38] sm:$0xff] }
 0x18a   : > { %6100 = vmatpush1.bf16.xpose.msra.mxu1 %v6099_v20  ;;  %v1009_v20 = vld [vmem:[%s7505_s22 + $0x1720] sm:$0xff]  ;;  %v1652_v10 = vld [vmem:[%s7505_s22 + $0x2b38] sm:$0xff] }
 0x18b   : > { %6102 = vmatprep.subr.bf16.mxu1 %v6101_v22  ;;  %v2033_v22 = vld [vmem:[%s7505_s22 + $0x3720] sm:$0xff]  ;;  %v5099_v27 = vpack.c.bf16 %v1009_v20, %v977_v19  ;;  %v340_v19 = vld [vmem:[%s7505_s22 + $0x238] sm:$0xff] }
 0x18c   : > { %v6123_v28 = vpack.c.bf16 %v2033_v22, %v2001_v21  ;;  %v372_v20 = vld [vmem:[%s7505_s22 + $0x338] sm:$0xff] }
 0x18d   : > { %v1364_v21 = vld [vmem:[%s7505_s22 + $0x2238] sm:$0xff]  ;;  %v5121_v26 = vpack.c.bf16 %v372_v20, %v340_v19 }
 0x18e   : > { %v1396_v22 = vld [vmem:[%s7505_s22 + $0x2338] sm:$0xff] }
 0x18f   : > { %v660_v19 = vld [vmem:[%s7505_s22 + $0xc38] sm:$0xff] }
 0x190   : > { %5080 = vmatpush1.bf16.xpose.msra.mxu0 %v5079_v31  ;;  %v1041_v31 = vld [vmem:[%s7505_s22 + $0x1820] sm:$0xff]  ;;  %v692_v20 = vld [vmem:[%s7505_s22 + $0xd38] sm:$0xff] }
 0x191   : > { %5082 = vmatprep.subr.bf16.mxu0 %v5081_v33  ;;  %v2065_v33 = vld [vmem:[%s7505_s22 + $0x3820] sm:$0xff] }
 0x192   : > { %6104 = vmatpush1.bf16.xpose.msra.mxu1 %v6103_v32  ;;  %v1073_v32 = vld [vmem:[%s7505_s22 + $0x1920] sm:$0xff] }
 0x193   : > { %6106 = vmatprep.subr.bf16.mxu1 %v6105_v34  ;;  %v2097_v34 = vld [vmem:[%s7505_s22 + $0x3920] sm:$0xff]  ;;  %v5103_v39 = vpack.c.bf16 %v1073_v32, %v1041_v31  ;;  %v371_v31 = vld [vmem:[%s7505_s22 + $0x330] sm:$0xff] }
 0x194   : > { %v6127_v40 = vpack.c.bf16 %v2097_v34, %v2065_v33  ;;  %v1363_v32 = vld [vmem:[%s7505_s22 + $0x2230] sm:$0xff]  ;;  %v212_v33 = vld [vmem:[#allocation2 + $0x38] sm:$0xff] }
 0x195   : > { %v1395_v34 = vld [vmem:[%s7505_s22 + $0x2330] sm:$0xff] }
 0x198   : > { %5084 = vmatpush1.bf16.xpose.msra.mxu0 %v5083_v43  ;;  %v1105_v43 = vld [vmem:[%s7505_s22 + $0x1a20] sm:$0xff] }
 0x199   : > { %5086 = vmatprep.subr.bf16.mxu0 %v5085_v45  ;;  %v2129_v45 = vld [vmem:[%s7505_s22 + $0x3a20] sm:$0xff] }
 0x19a   : > { %6108 = vmatpush1.bf16.xpose.msra.mxu1 %v6107_v44  ;;  %v1137_v44 = vld [vmem:[%s7505_s22 + $0x1b20] sm:$0xff] }
 0x19b   : > { %6110 = vmatprep.subr.bf16.mxu1 %v6109_v46  ;;  %v2161_v46 = vld [vmem:[%s7505_s22 + $0x3b20] sm:$0xff]  ;;  %v5107_v51 = vpack.c.bf16 %v1137_v44, %v1105_v43  ;;  %v403_v43 = vld [vmem:[%s7505_s22 + $0x430] sm:$0xff] }
 0x19c   : > { %v6131_v52 = vpack.c.bf16 %v2161_v46, %v2129_v45  ;;  %v435_v44 = vld [vmem:[%s7505_s22 + $0x530] sm:$0xff] }
 0x19d   : > { %v1427_v45 = vld [vmem:[%s7505_s22 + $0x2430] sm:$0xff] }
 0x19e   : > { %v1459_v46 = vld [vmem:[%s7505_s22 + $0x2530] sm:$0xff] }
 0x1a0   : > { %5088 = vmatpush1.bf16.xpose.msra.mxu0 %v5087_v55  ;;  %v1169_v55 = vld [vmem:[%s7505_s22 + $0x1c20] sm:$0xff] }
 0x1a1   : > { %5090 = vmatprep.subr.bf16.mxu0 %v5089_v57  ;;  %v2193_v57 = vld [vmem:[%s7505_s22 + $0x3c20] sm:$0xff] }
 0x1a2   : > { %6112 = vmatpush1.bf16.xpose.msra.mxu1 %v6111_v56  ;;  %v1201_v56 = vld [vmem:[%s7505_s22 + $0x1d20] sm:$0xff] }
 0x1a3   : > { %6114 = vmatprep.subr.bf16.mxu1 %v6113_v58  ;;  %v2225_v58 = vld [vmem:[%s7505_s22 + $0x3d20] sm:$0xff]  ;;  %v5111_v63 = vpack.c.bf16 %v1201_v56, %v1169_v55  ;;  %v467_v55 = vld [vmem:[%s7505_s22 + $0x630] sm:$0xff] }
 0x1a4   : > { %v6135_v0 = vpack.c.bf16 %v2225_v58, %v2193_v57  ;;  %v499_v56 = vld [vmem:[%s7505_s22 + $0x730] sm:$0xff] }
 0x1a5   : > { %v1491_v57 = vld [vmem:[%s7505_s22 + $0x2630] sm:$0xff] }
 0x1a6   : > { %v1523_v58 = vld [vmem:[%s7505_s22 + $0x2730] sm:$0xff] }
 0x1a8   : > { %5092 = vmatpush1.bf16.xpose.msra.mxu0 %v5091_v3  ;;  %v1233_v3 = vld [vmem:[%s7505_s22 + $0x1e20] sm:$0xff] }
 0x1a9   : > { %5094 = vmatprep.subr.bf16.mxu0 %v5093_v5  ;;  %v2257_v5 = vld [vmem:[%s7505_s22 + $0x3e20] sm:$0xff] }
 0x1aa   : > { %6116 = vmatpush1.bf16.xpose.msra.mxu1 %v6115_v4  ;;  %v1265_v4 = vld [vmem:[%s7505_s22 + $0x1f20] sm:$0xff] }
 0x1ab   : > { %6118 = vmatprep.subr.bf16.mxu1 %v6117_v6  ;;  %v2289_v6 = vld [vmem:[%s7505_s22 + $0x3f20] sm:$0xff]  ;;  %v5115_v11 = vpack.c.bf16 %v1265_v4, %v1233_v3  ;;  %v531_v3 = vld [vmem:[%s7505_s22 + $0x830] sm:$0xff] }
 0x1ac   : > { %v6139_v12 = vpack.c.bf16 %v2289_v6, %v2257_v5  ;;  %v563_v4 = vld [vmem:[%s7505_s22 + $0x930] sm:$0xff] }
 0x1ad   : > { %v1555_v5 = vld [vmem:[%s7505_s22 + $0x2830] sm:$0xff] }
 0x1ae   : > { %v1587_v6 = vld [vmem:[%s7505_s22 + $0x2930] sm:$0xff] }
 0x1b0   : > { %5096 = vmatpush1.bf16.xpose.msra.mxu0 %v5095_v15  ;;  %v275_v15 = vld [vmem:[%s7505_s22 + $0x30] sm:$0xff] }
 0x1b1   : > { %5098 = vmatprep.subr.bf16.mxu0 %v5097_v17  ;;  %v1299_v17 = vld [vmem:[%s7505_s22 + $0x2030] sm:$0xff] }
 0x1b2   : > { %6120 = vmatpush1.bf16.xpose.msra.mxu1 %v6119_v16  ;;  %v307_v16 = vld [vmem:[%s7505_s22 + $0x130] sm:$0xff] }
 0x1b3   : > { %6122 = vmatprep.subr.bf16.mxu1 %v6121_v18  ;;  %v1331_v18 = vld [vmem:[%s7505_s22 + $0x2130] sm:$0xff]  ;;  %v5119_v24 = vpack.c.bf16 %v307_v16, %v275_v15 }
 0x1b4   : > { %v6143_v25 = vpack.c.bf16 %v1331_v18, %v1299_v17  ;;  %v595_v15 = vld [vmem:[%s7505_s22 + $0xa30] sm:$0xff] }
 0x1b5   : > { %v627_v16 = vld [vmem:[%s7505_s22 + $0xb30] sm:$0xff] }
 0x1b6   : > { %v1619_v17 = vld [vmem:[%s7505_s22 + $0x2a30] sm:$0xff] }
 0x1b7   : > { %v1651_v18 = vld [vmem:[%s7505_s22 + $0x2b30] sm:$0xff] }
 0x1b8   : > { %5100 = vmatpush1.bf16.xpose.msra.mxu0 %v5099_v27  ;;  %v6145_v27 = vpack.c.bf16 %v1396_v22, %v1364_v21  ;;  %v1684_v21 = vld [vmem:[%s7505_s22 + $0x2c38] sm:$0xff] }
 0x1b9   : > { %5102 = vmatprep.subr.bf16.mxu0 %v5101_v29  ;;  %v339_v29 = vld [vmem:[%s7505_s22 + $0x230] sm:$0xff]  ;;  %v1716_v22 = vld [vmem:[%s7505_s22 + $0x2d38] sm:$0xff] }
 0x1ba   : > { %6124 = vmatpush1.bf16.xpose.msra.mxu1 %v6123_v28  ;;  %v242_v28 = vld [vmem:[#allocation2 + $0x128] sm:$0xff] }
 0x1bb   : > { %6126 = vmatprep.subr.bf16.mxu1 %v6125_v30  ;;  %v241_v30 = vld [vmem:[#allocation2 + $0x120] sm:$0xff] }
 0x1c0   : > { %5104 = vmatpush1.bf16.xpose.msra.mxu0 %v5103_v39  ;;  %v5123_v39 = vpack.c.bf16 %v371_v31, %v339_v29  ;;  %v1683_v29 = vld [vmem:[%s7505_s22 + $0x2c30] sm:$0xff]  ;;  %v724_v31 = vld [vmem:[%s7505_s22 + $0xe38] sm:$0xff] }
 0x1c1   : > { %5106 = vmatprep.subr.bf16.mxu0 %v5105_v41  ;;  %v5125_v41 = vpack.c.bf16 %v436_v36, %v404_v35 }
 0x1c2   : > { %6128 = vmatpush1.bf16.xpose.msra.mxu1 %v6127_v40  ;;  %v6147_v40 = vpack.c.bf16 %v1395_v34, %v1363_v32  ;;  %v756_v32 = vld [vmem:[%s7505_s22 + $0xf38] sm:$0xff] }
 0x1c3   : > { %6130 = vmatprep.subr.bf16.mxu1 %v6129_v42  ;;  %v6149_v42 = vpack.c.bf16 %v1460_v38, %v1428_v37  ;;  %v1780_v34 = vld [vmem:[%s7505_s22 + $0x2f38] sm:$0xff]  ;;  %v5145_v37 = vpack.c.bf16 %v756_v32, %v724_v31 }
 0x1c8   : > { %5108 = vmatpush1.bf16.xpose.msra.mxu0 %v5107_v51  ;;  %v5127_v51 = vpack.c.bf16 %v435_v44, %v403_v43  ;;  %v788_v43 = vld [vmem:[%s7505_s22 + $0x1038] sm:$0xff] }
 0x1c9   : > { %5110 = vmatprep.subr.bf16.mxu0 %v5109_v53  ;;  %v5129_v53 = vpack.c.bf16 %v500_v48, %v468_v47  ;;  %v820_v44 = vld [vmem:[%s7505_s22 + $0x1138] sm:$0xff] }
 0x1ca   : > { %6132 = vmatpush1.bf16.xpose.msra.mxu1 %v6131_v52  ;;  %v6151_v52 = vpack.c.bf16 %v1459_v46, %v1427_v45  ;;  %v1812_v45 = vld [vmem:[%s7505_s22 + $0x3038] sm:$0xff] }
 0x1cb   : > { %6134 = vmatprep.subr.bf16.mxu1 %v6133_v54  ;;  %v6153_v54 = vpack.c.bf16 %v1524_v50, %v1492_v49  ;;  %v1844_v46 = vld [vmem:[%s7505_s22 + $0x3138] sm:$0xff]  ;;  %v5149_v49 = vpack.c.bf16 %v820_v44, %v788_v43 }
 0x1cc   : > { %v6173_v50 = vpack.c.bf16 %v1844_v46, %v1812_v45 }
 0x1d0   : > { %5112 = vmatpush1.bf16.xpose.msra.mxu0 %v5111_v63  ;;  %v5131_v63 = vpack.c.bf16 %v499_v56, %v467_v55  ;;  %v852_v55 = vld [vmem:[%s7505_s22 + $0x1238] sm:$0xff] }
 0x1d1   : > { %5114 = vmatprep.subr.bf16.mxu0 %v5113_v1  ;;  %v5133_v1 = vpack.c.bf16 %v564_v60, %v532_v59  ;;  %v884_v56 = vld [vmem:[%s7505_s22 + $0x1338] sm:$0xff] }
 0x1d2   : > { %6136 = vmatpush1.bf16.xpose.msra.mxu1 %v6135_v0  ;;  %v6155_v0 = vpack.c.bf16 %v1523_v58, %v1491_v57  ;;  %v1876_v57 = vld [vmem:[%s7505_s22 + $0x3238] sm:$0xff] }
 0x1d3   : > { %6138 = vmatprep.subr.bf16.mxu1 %v6137_v2  ;;  %v6157_v2 = vpack.c.bf16 %v1588_v62, %v1556_v61  ;;  %v1908_v58 = vld [vmem:[%s7505_s22 + $0x3338] sm:$0xff]  ;;  %v5153_v61 = vpack.c.bf16 %v884_v56, %v852_v55 }
 0x1d4   : > { %v6177_v62 = vpack.c.bf16 %v1908_v58, %v1876_v57 }
 0x1d8   : > { %5116 = vmatpush1.bf16.xpose.msra.mxu0 %v5115_v11  ;;  %v5135_v11 = vpack.c.bf16 %v563_v4, %v531_v3  ;;  %v916_v3 = vld [vmem:[%s7505_s22 + $0x1438] sm:$0xff] }
 0x1d9   : > { %5118 = vmatprep.subr.bf16.mxu0 %v5117_v13  ;;  %v5137_v13 = vpack.c.bf16 %v628_v8, %v596_v7  ;;  %v948_v4 = vld [vmem:[%s7505_s22 + $0x1538] sm:$0xff] }
 0x1da   : > { %6140 = vmatpush1.bf16.xpose.msra.mxu1 %v6139_v12  ;;  %v6159_v12 = vpack.c.bf16 %v1587_v6, %v1555_v5  ;;  %v1940_v5 = vld [vmem:[%s7505_s22 + $0x3438] sm:$0xff] }
 0x1db   : > { %6142 = vmatprep.subr.bf16.mxu1 %v6141_v14  ;;  %v6161_v14 = vpack.c.bf16 %v1652_v10, %v1620_v9  ;;  %v1972_v6 = vld [vmem:[%s7505_s22 + $0x3538] sm:$0xff]  ;;  %v5157_v9 = vpack.c.bf16 %v948_v4, %v916_v3 }
 0x1dc   : > { %v6181_v10 = vpack.c.bf16 %v1972_v6, %v1940_v5 }
 0x1df   : > { %2536 = vmatmul.mubr.f32.vlgmr.msra.gmra.mrb[0].mxu0 %v209_v23 }
 0x1e0   : > { %5120 = vmatpush1.bf16.xpose.msra.mxu0 %v5119_v24  ;;  %2541 = vmatprep.mubr.f32.mxu0 %v242_v28  ;;  %v6163_v24 = vpack.c.bf16 %v1651_v18, %v1619_v17  ;;  %v2004_v17 = vld [vmem:[%s7505_s22 + $0x3638] sm:$0xff] }
 0x1e1   : > { %3768 = vmatmul.mubr.f32.vlgmr.msra.gmra.mrb[0].mxu1 %v209_v23  ;;  %5122 = vmatprep.subr.bf16.mxu0 %v5121_v26  ;;  %v5139_v23 = vpack.c.bf16 %v627_v16, %v595_v15  ;;  %v6165_v26 = vpack.c.bf16 %v1716_v22, %v1684_v21  ;;  %v980_v15 = vld [vmem:[%s7505_s22 + $0x1638] sm:$0xff] }
 0x1e2   : > { %6144 = vmatpush1.bf16.xpose.msra.mxu1 %v6143_v25  ;;  %3773 = vmatprep.mubr.f32.mxu1 %v242_v28  ;;  %v5141_v25 = vpack.c.bf16 %v692_v20, %v660_v19  ;;  %v691_v28 = vld [vmem:[%s7505_s22 + $0xd30] sm:$0xff]  ;;  %v1012_v16 = vld [vmem:[%s7505_s22 + $0x1738] sm:$0xff] }
 0x1e3   : > { %6146 = vmatprep.subr.bf16.mxu1 %v6145_v27  ;;  %2542 = vmatmul.mubr.f32.gmra.mrb[2].mxu0 %v241_v30  ;;  %v659_v27 = vld [vmem:[%s7505_s22 + $0xc30] sm:$0xff]  ;;  %v2036_v18 = vld [vmem:[%s7505_s22 + $0x3738] sm:$0xff]  ;;  %v5161_v21 = vpack.c.bf16 %v1012_v16, %v980_v15 }
 0x1e4   : > { %2612 = vmatprep.mubr.f32.mxu0 %v212_v33  ;;  %v5143_v35 = vpack.c.bf16 %v691_v28, %v659_v27  ;;  %v6185_v22 = vpack.c.bf16 %v2036_v18, %v2004_v17  ;;  %v1044_v27 = vld [vmem:[%s7505_s22 + $0x1838] sm:$0xff] }
 0x1e5   : > { %3774 = vmatmul.mubr.f32.gmra.mrb[2].mxu1 %v241_v30  ;;  %v1715_v30 = vld [vmem:[%s7505_s22 + $0x2d30] sm:$0xff]  ;;  %v1076_v28 = vld [vmem:[%s7505_s22 + $0x1938] sm:$0xff] }
 0x1e6   : > { %3844 = vmatprep.mubr.f32.mxu1 %v212_v33  ;;  %v1748_v33 = vld [vmem:[%s7505_s22 + $0x2e38] sm:$0xff]  ;;  %v6167_v36 = vpack.c.bf16 %v1715_v30, %v1683_v29 }
 0x1e7   : > { %v6169_v38 = vpack.c.bf16 %v1780_v34, %v1748_v33  ;;  %v2068_v29 = vld [vmem:[%s7505_s22 + $0x3838] sm:$0xff]  ;;  %v5165_v33 = vpack.c.bf16 %v1076_v28, %v1044_v27  ;;  %v211_v27 = vld [vmem:[#allocation2 + $0x30] sm:$0xff] }
 0x1e8   : > { %5124 = vmatpush1.bf16.xpose.msra.mxu0 %v5123_v39  ;;  %v723_v39 = vld [vmem:[%s7505_s22 + $0xe30] sm:$0xff]  ;;  %v2100_v30 = vld [vmem:[%s7505_s22 + $0x3938] sm:$0xff] }
 0x1e9   : > { %5126 = vmatprep.subr.bf16.mxu0 %v5125_v41  ;;  %v1747_v41 = vld [vmem:[%s7505_s22 + $0x2e30] sm:$0xff]  ;;  %v6189_v34 = vpack.c.bf16 %v2100_v30, %v2068_v29 }
 0x1ea   : > { %6148 = vmatpush1.bf16.xpose.msra.mxu1 %v6147_v40  ;;  %v755_v40 = vld [vmem:[%s7505_s22 + $0xf30] sm:$0xff] }
 0x1eb   : > { %6150 = vmatprep.subr.bf16.mxu1 %v6149_v42  ;;  %v1779_v42 = vld [vmem:[%s7505_s22 + $0x2f30] sm:$0xff]  ;;  %v5147_v47 = vpack.c.bf16 %v755_v40, %v723_v39  ;;  %v1108_v39 = vld [vmem:[%s7505_s22 + $0x1a38] sm:$0xff] }
 0x1ec   : > { %v6171_v48 = vpack.c.bf16 %v1779_v42, %v1747_v41  ;;  %v1140_v40 = vld [vmem:[%s7505_s22 + $0x1b38] sm:$0xff] }
 0x1ed   : > { %v2132_v41 = vld [vmem:[%s7505_s22 + $0x3a38] sm:$0xff]  ;;  %v5169_v45 = vpack.c.bf16 %v1140_v40, %v1108_v39  ;;  %v406_v39 = vld [vmem:[%s7505_s22 + $0x448] sm:$0xff] }
 0x1ee   : > { %v2164_v42 = vld [vmem:[%s7505_s22 + $0x3b38] sm:$0xff]  ;;  %v438_v40 = vld [vmem:[%s7505_s22 + $0x548] sm:$0xff] }
 0x1ef   : > { %v6193_v46 = vpack.c.bf16 %v2164_v42, %v2132_v41  ;;  %v1430_v41 = vld [vmem:[%s7505_s22 + $0x2448] sm:$0xff] }
 0x1f0   : > { %5128 = vmatpush1.bf16.xpose.msra.mxu0 %v5127_v51  ;;  %v787_v51 = vld [vmem:[%s7505_s22 + $0x1030] sm:$0xff]  ;;  %v1462_v42 = vld [vmem:[%s7505_s22 + $0x2548] sm:$0xff] }
 0x1f1   : > { %5130 = vmatprep.subr.bf16.mxu0 %v5129_v53  ;;  %v1811_v53 = vld [vmem:[%s7505_s22 + $0x3030] sm:$0xff] }
 0x1f2   : > { %6152 = vmatpush1.bf16.xpose.msra.mxu1 %v6151_v52  ;;  %v819_v52 = vld [vmem:[%s7505_s22 + $0x1130] sm:$0xff] }
 0x1f3   : > { %6154 = vmatprep.subr.bf16.mxu1 %v6153_v54  ;;  %v1843_v54 = vld [vmem:[%s7505_s22 + $0x3130] sm:$0xff]  ;;  %v5151_v59 = vpack.c.bf16 %v819_v52, %v787_v51  ;;  %v1172_v51 = vld [vmem:[%s7505_s22 + $0x1c38] sm:$0xff] }
 0x1f4   : > { %v6175_v60 = vpack.c.bf16 %v1843_v54, %v1811_v53  ;;  %v1204_v52 = vld [vmem:[%s7505_s22 + $0x1d38] sm:$0xff] }
 0x1f5   : > { %v2196_v53 = vld [vmem:[%s7505_s22 + $0x3c38] sm:$0xff]  ;;  %v5173_v57 = vpack.c.bf16 %v1204_v52, %v1172_v51  ;;  %v470_v51 = vld [vmem:[%s7505_s22 + $0x648] sm:$0xff] }
 0x1f6   : > { %v2228_v54 = vld [vmem:[%s7505_s22 + $0x3d38] sm:$0xff]  ;;  %v502_v52 = vld [vmem:[%s7505_s22 + $0x748] sm:$0xff] }
 0x1f7   : > { %v6197_v58 = vpack.c.bf16 %v2228_v54, %v2196_v53  ;;  %v1494_v53 = vld [vmem:[%s7505_s22 + $0x2648] sm:$0xff] }
 0x1f8   : > { %5132 = vmatpush1.bf16.xpose.msra.mxu0 %v5131_v63  ;;  %v851_v63 = vld [vmem:[%s7505_s22 + $0x1230] sm:$0xff]  ;;  %v1526_v54 = vld [vmem:[%s7505_s22 + $0x2748] sm:$0xff] }
 0x1f9   : > { %5134 = vmatprep.subr.bf16.mxu0 %v5133_v1  ;;  %v1875_v1 = vld [vmem:[%s7505_s22 + $0x3230] sm:$0xff] }
 0x1fa   : > { %6156 = vmatpush1.bf16.xpose.msra.mxu1 %v6155_v0  ;;  %v883_v0 = vld [vmem:[%s7505_s22 + $0x1330] sm:$0xff] }
 0x1fb   : > { %6158 = vmatprep.subr.bf16.mxu1 %v6157_v2  ;;  %v1907_v2 = vld [vmem:[%s7505_s22 + $0x3330] sm:$0xff]  ;;  %v5155_v7 = vpack.c.bf16 %v883_v0, %v851_v63  ;;  %v1236_v63 = vld [vmem:[%s7505_s22 + $0x1e38] sm:$0xff] }
 0x1fc   : > { %v6179_v8 = vpack.c.bf16 %v1907_v2, %v1875_v1  ;;  %v1268_v0 = vld [vmem:[%s7505_s22 + $0x1f38] sm:$0xff] }
 0x1fd   : > { %v2260_v1 = vld [vmem:[%s7505_s22 + $0x3e38] sm:$0xff]  ;;  %v5177_v5 = vpack.c.bf16 %v1268_v0, %v1236_v63  ;;  %v534_v63 = vld [vmem:[%s7505_s22 + $0x848] sm:$0xff] }
 0x1fe   : > { %v2292_v2 = vld [vmem:[%s7505_s22 + $0x3f38] sm:$0xff]  ;;  %v566_v0 = vld [vmem:[%s7505_s22 + $0x948] sm:$0xff] }
 0x1ff   : > { %v6201_v6 = vpack.c.bf16 %v2292_v2, %v2260_v1  ;;  %v1558_v1 = vld [vmem:[%s7505_s22 + $0x2848] sm:$0xff] }
 0x200   : > { %5136 = vmatpush1.bf16.xpose.msra.mxu0 %v5135_v11  ;;  %v915_v11 = vld [vmem:[%s7505_s22 + $0x1430] sm:$0xff]  ;;  %v1590_v2 = vld [vmem:[%s7505_s22 + $0x2948] sm:$0xff] }
 0x201   : > { %5138 = vmatprep.subr.bf16.mxu0 %v5137_v13  ;;  %v1939_v13 = vld [vmem:[%s7505_s22 + $0x3430] sm:$0xff] }
 0x202   : > { %6160 = vmatpush1.bf16.xpose.msra.mxu1 %v6159_v12  ;;  %v947_v12 = vld [vmem:[%s7505_s22 + $0x1530] sm:$0xff] }
 0x203   : > { %6162 = vmatprep.subr.bf16.mxu1 %v6161_v14  ;;  %v1971_v14 = vld [vmem:[%s7505_s22 + $0x3530] sm:$0xff]  ;;  %v5159_v19 = vpack.c.bf16 %v947_v12, %v915_v11  ;;  %v278_v11 = vld [vmem:[%s7505_s22 + $0x48] sm:$0xff] }
 0x204   : > { %v6183_v20 = vpack.c.bf16 %v1971_v14, %v1939_v13  ;;  %v310_v12 = vld [vmem:[%s7505_s22 + $0x148] sm:$0xff] }
 0x205   : > { %v1302_v13 = vld [vmem:[%s7505_s22 + $0x2048] sm:$0xff]  ;;  %v5181_v17 = vpack.c.bf16 %v310_v12, %v278_v11 }
 0x206   : > { %v1334_v14 = vld [vmem:[%s7505_s22 + $0x2148] sm:$0xff] }
 0x207   : > { %v6205_v18 = vpack.c.bf16 %v1334_v14, %v1302_v13  ;;  %v598_v11 = vld [vmem:[%s7505_s22 + $0xa48] sm:$0xff] }
 0x208   : > { %5140 = vmatpush1.bf16.xpose.msra.mxu0 %v5139_v23  ;;  %v979_v23 = vld [vmem:[%s7505_s22 + $0x1630] sm:$0xff]  ;;  %v630_v12 = vld [vmem:[%s7505_s22 + $0xb48] sm:$0xff] }
 0x209   : > { %5142 = vmatprep.subr.bf16.mxu0 %v5141_v25  ;;  %v2003_v25 = vld [vmem:[%s7505_s22 + $0x3630] sm:$0xff]  ;;  %v1622_v13 = vld [vmem:[%s7505_s22 + $0x2a48] sm:$0xff] }
 0x20a   : > { %6164 = vmatpush1.bf16.xpose.msra.mxu1 %v6163_v24  ;;  %v1011_v24 = vld [vmem:[%s7505_s22 + $0x1730] sm:$0xff]  ;;  %v1654_v14 = vld [vmem:[%s7505_s22 + $0x2b48] sm:$0xff] }
 0x20b   : > { %6166 = vmatprep.subr.bf16.mxu1 %v6165_v26  ;;  %v2035_v26 = vld [vmem:[%s7505_s22 + $0x3730] sm:$0xff]  ;;  %v5163_v31 = vpack.c.bf16 %v1011_v24, %v979_v23  ;;  %v342_v23 = vld [vmem:[%s7505_s22 + $0x248] sm:$0xff] }
 0x20c   : > { %v6187_v32 = vpack.c.bf16 %v2035_v26, %v2003_v25  ;;  %v374_v24 = vld [vmem:[%s7505_s22 + $0x348] sm:$0xff] }
 0x20d   : > { %v1366_v25 = vld [vmem:[%s7505_s22 + $0x2248] sm:$0xff]  ;;  %v5185_v30 = vpack.c.bf16 %v374_v24, %v342_v23 }
 0x20e   : > { %v1398_v26 = vld [vmem:[%s7505_s22 + $0x2348] sm:$0xff] }
 0x20f   : > { %v662_v23 = vld [vmem:[%s7505_s22 + $0xc48] sm:$0xff] }
 0x210   : > { %5144 = vmatpush1.bf16.xpose.msra.mxu0 %v5143_v35  ;;  %v1043_v35 = vld [vmem:[%s7505_s22 + $0x1830] sm:$0xff]  ;;  %v694_v24 = vld [vmem:[%s7505_s22 + $0xd48] sm:$0xff] }
 0x211   : > { %5146 = vmatprep.subr.bf16.mxu0 %v5145_v37  ;;  %v2067_v37 = vld [vmem:[%s7505_s22 + $0x3830] sm:$0xff] }
 0x212   : > { %6168 = vmatpush1.bf16.xpose.msra.mxu1 %v6167_v36  ;;  %v1075_v36 = vld [vmem:[%s7505_s22 + $0x1930] sm:$0xff] }
 0x213   : > { %6170 = vmatprep.subr.bf16.mxu1 %v6169_v38  ;;  %v2099_v38 = vld [vmem:[%s7505_s22 + $0x3930] sm:$0xff]  ;;  %v5167_v43 = vpack.c.bf16 %v1075_v36, %v1043_v35  ;;  %v373_v35 = vld [vmem:[%s7505_s22 + $0x340] sm:$0xff] }
 0x214   : > { %v6191_v44 = vpack.c.bf16 %v2099_v38, %v2067_v37  ;;  %v1365_v36 = vld [vmem:[%s7505_s22 + $0x2240] sm:$0xff]  ;;  %v214_v37 = vld [vmem:[#allocation2 + $0x48] sm:$0xff] }
 0x215   : > { %v1397_v38 = vld [vmem:[%s7505_s22 + $0x2340] sm:$0xff] }
 0x218   : > { %5148 = vmatpush1.bf16.xpose.msra.mxu0 %v5147_v47  ;;  %v1107_v47 = vld [vmem:[%s7505_s22 + $0x1a30] sm:$0xff] }
 0x219   : > { %5150 = vmatprep.subr.bf16.mxu0 %v5149_v49  ;;  %v2131_v49 = vld [vmem:[%s7505_s22 + $0x3a30] sm:$0xff] }
 0x21a   : > { %6172 = vmatpush1.bf16.xpose.msra.mxu1 %v6171_v48  ;;  %v1139_v48 = vld [vmem:[%s7505_s22 + $0x1b30] sm:$0xff] }
 0x21b   : > { %6174 = vmatprep.subr.bf16.mxu1 %v6173_v50  ;;  %v2163_v50 = vld [vmem:[%s7505_s22 + $0x3b30] sm:$0xff]  ;;  %v5171_v55 = vpack.c.bf16 %v1139_v48, %v1107_v47  ;;  %v405_v47 = vld [vmem:[%s7505_s22 + $0x440] sm:$0xff] }
 0x21c   : > { %v6195_v56 = vpack.c.bf16 %v2163_v50, %v2131_v49  ;;  %v437_v48 = vld [vmem:[%s7505_s22 + $0x540] sm:$0xff] }
 0x21d   : > { %v1429_v49 = vld [vmem:[%s7505_s22 + $0x2440] sm:$0xff] }
 0x21e   : > { %v1461_v50 = vld [vmem:[%s7505_s22 + $0x2540] sm:$0xff] }
 0x220   : > { %5152 = vmatpush1.bf16.xpose.msra.mxu0 %v5151_v59  ;;  %v1171_v59 = vld [vmem:[%s7505_s22 + $0x1c30] sm:$0xff] }
 0x221   : > { %5154 = vmatprep.subr.bf16.mxu0 %v5153_v61  ;;  %v2195_v61 = vld [vmem:[%s7505_s22 + $0x3c30] sm:$0xff] }
 0x222   : > { %6176 = vmatpush1.bf16.xpose.msra.mxu1 %v6175_v60  ;;  %v1203_v60 = vld [vmem:[%s7505_s22 + $0x1d30] sm:$0xff] }
 0x223   : > { %6178 = vmatprep.subr.bf16.mxu1 %v6177_v62  ;;  %v2227_v62 = vld [vmem:[%s7505_s22 + $0x3d30] sm:$0xff]  ;;  %v5175_v3 = vpack.c.bf16 %v1203_v60, %v1171_v59  ;;  %v469_v59 = vld [vmem:[%s7505_s22 + $0x640] sm:$0xff] }
 0x224   : > { %v6199_v4 = vpack.c.bf16 %v2227_v62, %v2195_v61  ;;  %v501_v60 = vld [vmem:[%s7505_s22 + $0x740] sm:$0xff] }
 0x225   : > { %v1493_v61 = vld [vmem:[%s7505_s22 + $0x2640] sm:$0xff] }
 0x226   : > { %v1525_v62 = vld [vmem:[%s7505_s22 + $0x2740] sm:$0xff] }
 0x228   : > { %5156 = vmatpush1.bf16.xpose.msra.mxu0 %v5155_v7  ;;  %v1235_v7 = vld [vmem:[%s7505_s22 + $0x1e30] sm:$0xff] }
 0x229   : > { %5158 = vmatprep.subr.bf16.mxu0 %v5157_v9  ;;  %v2259_v9 = vld [vmem:[%s7505_s22 + $0x3e30] sm:$0xff] }
 0x22a   : > { %6180 = vmatpush1.bf16.xpose.msra.mxu1 %v6179_v8  ;;  %v1267_v8 = vld [vmem:[%s7505_s22 + $0x1f30] sm:$0xff] }
 0x22b   : > { %6182 = vmatprep.subr.bf16.mxu1 %v6181_v10  ;;  %v2291_v10 = vld [vmem:[%s7505_s22 + $0x3f30] sm:$0xff]  ;;  %v5179_v15 = vpack.c.bf16 %v1267_v8, %v1235_v7  ;;  %v533_v7 = vld [vmem:[%s7505_s22 + $0x840] sm:$0xff] }
 0x22c   : > { %v6203_v16 = vpack.c.bf16 %v2291_v10, %v2259_v9  ;;  %v565_v8 = vld [vmem:[%s7505_s22 + $0x940] sm:$0xff] }
 0x22d   : > { %v1557_v9 = vld [vmem:[%s7505_s22 + $0x2840] sm:$0xff] }
 0x22e   : > { %v1589_v10 = vld [vmem:[%s7505_s22 + $0x2940] sm:$0xff] }
 0x230   : > { %5160 = vmatpush1.bf16.xpose.msra.mxu0 %v5159_v19  ;;  %v277_v19 = vld [vmem:[%s7505_s22 + $0x40] sm:$0xff] }
 0x231   : > { %5162 = vmatprep.subr.bf16.mxu0 %v5161_v21  ;;  %v1301_v21 = vld [vmem:[%s7505_s22 + $0x2040] sm:$0xff] }
 0x232   : > { %6184 = vmatpush1.bf16.xpose.msra.mxu1 %v6183_v20  ;;  %v309_v20 = vld [vmem:[%s7505_s22 + $0x140] sm:$0xff] }
 0x233   : > { %6186 = vmatprep.subr.bf16.mxu1 %v6185_v22  ;;  %v1333_v22 = vld [vmem:[%s7505_s22 + $0x2140] sm:$0xff]  ;;  %v5183_v28 = vpack.c.bf16 %v309_v20, %v277_v19 }
 0x234   : > { %v6207_v29 = vpack.c.bf16 %v1333_v22, %v1301_v21  ;;  %v597_v19 = vld [vmem:[%s7505_s22 + $0xa40] sm:$0xff] }
 0x235   : > { %v629_v20 = vld [vmem:[%s7505_s22 + $0xb40] sm:$0xff] }
 0x236   : > { %v1621_v21 = vld [vmem:[%s7505_s22 + $0x2a40] sm:$0xff] }
 0x237   : > { %v1653_v22 = vld [vmem:[%s7505_s22 + $0x2b40] sm:$0xff] }
 0x238   : > { %5164 = vmatpush1.bf16.xpose.msra.mxu0 %v5163_v31  ;;  %v6209_v31 = vpack.c.bf16 %v1398_v26, %v1366_v25  ;;  %v1686_v25 = vld [vmem:[%s7505_s22 + $0x2c48] sm:$0xff] }
 0x239   : > { %5166 = vmatprep.subr.bf16.mxu0 %v5165_v33  ;;  %v341_v33 = vld [vmem:[%s7505_s22 + $0x240] sm:$0xff]  ;;  %v1718_v26 = vld [vmem:[%s7505_s22 + $0x2d48] sm:$0xff] }
 0x23a   : > { %6188 = vmatpush1.bf16.xpose.msra.mxu1 %v6187_v32  ;;  %v244_v32 = vld [vmem:[#allocation2 + $0x138] sm:$0xff] }
 0x23b   : > { %6190 = vmatprep.subr.bf16.mxu1 %v6189_v34  ;;  %v243_v34 = vld [vmem:[#allocation2 + $0x130] sm:$0xff] }
 0x240   : > { %5168 = vmatpush1.bf16.xpose.msra.mxu0 %v5167_v43  ;;  %v5187_v43 = vpack.c.bf16 %v373_v35, %v341_v33  ;;  %v1685_v33 = vld [vmem:[%s7505_s22 + $0x2c40] sm:$0xff]  ;;  %v726_v35 = vld [vmem:[%s7505_s22 + $0xe48] sm:$0xff] }
 0x241   : > { %5170 = vmatprep.subr.bf16.mxu0 %v5169_v45  ;;  %v5189_v45 = vpack.c.bf16 %v438_v40, %v406_v39 }
 0x242   : > { %6192 = vmatpush1.bf16.xpose.msra.mxu1 %v6191_v44  ;;  %v6211_v44 = vpack.c.bf16 %v1397_v38, %v1365_v36  ;;  %v758_v36 = vld [vmem:[%s7505_s22 + $0xf48] sm:$0xff] }
 0x243   : > { %6194 = vmatprep.subr.bf16.mxu1 %v6193_v46  ;;  %v6213_v46 = vpack.c.bf16 %v1462_v42, %v1430_v41  ;;  %v1782_v38 = vld [vmem:[%s7505_s22 + $0x2f48] sm:$0xff]  ;;  %v5209_v41 = vpack.c.bf16 %v758_v36, %v726_v35 }
 0x248   : > { %5172 = vmatpush1.bf16.xpose.msra.mxu0 %v5171_v55  ;;  %v5191_v55 = vpack.c.bf16 %v437_v48, %v405_v47  ;;  %v790_v47 = vld [vmem:[%s7505_s22 + $0x1048] sm:$0xff] }
 0x249   : > { %5174 = vmatprep.subr.bf16.mxu0 %v5173_v57  ;;  %v5193_v57 = vpack.c.bf16 %v502_v52, %v470_v51  ;;  %v822_v48 = vld [vmem:[%s7505_s22 + $0x1148] sm:$0xff] }
 0x24a   : > { %6196 = vmatpush1.bf16.xpose.msra.mxu1 %v6195_v56  ;;  %v6215_v56 = vpack.c.bf16 %v1461_v50, %v1429_v49  ;;  %v1814_v49 = vld [vmem:[%s7505_s22 + $0x3048] sm:$0xff] }
 0x24b   : > { %6198 = vmatprep.subr.bf16.mxu1 %v6197_v58  ;;  %v6217_v58 = vpack.c.bf16 %v1526_v54, %v1494_v53  ;;  %v1846_v50 = vld [vmem:[%s7505_s22 + $0x3148] sm:$0xff]  ;;  %v5213_v53 = vpack.c.bf16 %v822_v48, %v790_v47 }
 0x24c   : > { %v6237_v54 = vpack.c.bf16 %v1846_v50, %v1814_v49 }
 0x250   : > { %5176 = vmatpush1.bf16.xpose.msra.mxu0 %v5175_v3  ;;  %v5195_v3 = vpack.c.bf16 %v501_v60, %v469_v59  ;;  %v854_v59 = vld [vmem:[%s7505_s22 + $0x1248] sm:$0xff] }
 0x251   : > { %5178 = vmatprep.subr.bf16.mxu0 %v5177_v5  ;;  %v5197_v5 = vpack.c.bf16 %v566_v0, %v534_v63  ;;  %v886_v60 = vld [vmem:[%s7505_s22 + $0x1348] sm:$0xff] }
 0x252   : > { %6200 = vmatpush1.bf16.xpose.msra.mxu1 %v6199_v4  ;;  %v6219_v4 = vpack.c.bf16 %v1525_v62, %v1493_v61  ;;  %v1878_v61 = vld [vmem:[%s7505_s22 + $0x3248] sm:$0xff] }
 0x253   : > { %6202 = vmatprep.subr.bf16.mxu1 %v6201_v6  ;;  %v6221_v6 = vpack.c.bf16 %v1590_v2, %v1558_v1  ;;  %v1910_v62 = vld [vmem:[%s7505_s22 + $0x3348] sm:$0xff]  ;;  %v5217_v1 = vpack.c.bf16 %v886_v60, %v854_v59 }
 0x254   : > { %v6241_v2 = vpack.c.bf16 %v1910_v62, %v1878_v61 }
 0x258   : > { %5180 = vmatpush1.bf16.xpose.msra.mxu0 %v5179_v15  ;;  %v5199_v15 = vpack.c.bf16 %v565_v8, %v533_v7  ;;  %v918_v7 = vld [vmem:[%s7505_s22 + $0x1448] sm:$0xff] }
 0x259   : > { %5182 = vmatprep.subr.bf16.mxu0 %v5181_v17  ;;  %v5201_v17 = vpack.c.bf16 %v630_v12, %v598_v11  ;;  %v950_v8 = vld [vmem:[%s7505_s22 + $0x1548] sm:$0xff] }
 0x25a   : > { %6204 = vmatpush1.bf16.xpose.msra.mxu1 %v6203_v16  ;;  %v6223_v16 = vpack.c.bf16 %v1589_v10, %v1557_v9  ;;  %v1942_v9 = vld [vmem:[%s7505_s22 + $0x3448] sm:$0xff] }
 0x25b   : > { %6206 = vmatprep.subr.bf16.mxu1 %v6205_v18  ;;  %v6225_v18 = vpack.c.bf16 %v1654_v14, %v1622_v13  ;;  %v1974_v10 = vld [vmem:[%s7505_s22 + $0x3548] sm:$0xff]  ;;  %v5221_v13 = vpack.c.bf16 %v950_v8, %v918_v7 }
 0x25c   : > { %v6245_v14 = vpack.c.bf16 %v1974_v10, %v1942_v9 }
 0x25f   : > { %2613 = vmatmul.mubr.f32.vlgmr.msra.gmra.mrb[0].mxu0 %v211_v27 }
 0x260   : > { %5184 = vmatpush1.bf16.xpose.msra.mxu0 %v5183_v28  ;;  %2618 = vmatprep.mubr.f32.mxu0 %v244_v32  ;;  %v6227_v28 = vpack.c.bf16 %v1653_v22, %v1621_v21  ;;  %v2006_v21 = vld [vmem:[%s7505_s22 + $0x3648] sm:$0xff] }
 0x261   : > { %3845 = vmatmul.mubr.f32.vlgmr.msra.gmra.mrb[0].mxu1 %v211_v27  ;;  %5186 = vmatprep.subr.bf16.mxu0 %v5185_v30  ;;  %v5203_v27 = vpack.c.bf16 %v629_v20, %v597_v19  ;;  %v6229_v30 = vpack.c.bf16 %v1718_v26, %v1686_v25  ;;  %v982_v19 = vld [vmem:[%s7505_s22 + $0x1648] sm:$0xff] }
 0x262   : > { %6208 = vmatpush1.bf16.xpose.msra.mxu1 %v6207_v29  ;;  %3850 = vmatprep.mubr.f32.mxu1 %v244_v32  ;;  %v5205_v29 = vpack.c.bf16 %v694_v24, %v662_v23  ;;  %v693_v32 = vld [vmem:[%s7505_s22 + $0xd40] sm:$0xff]  ;;  %v1014_v20 = vld [vmem:[%s7505_s22 + $0x1748] sm:$0xff] }
 0x263   : > { %6210 = vmatprep.subr.bf16.mxu1 %v6209_v31  ;;  %2619 = vmatmul.mubr.f32.gmra.mrb[2].mxu0 %v243_v34  ;;  %v661_v31 = vld [vmem:[%s7505_s22 + $0xc40] sm:$0xff]  ;;  %v2038_v22 = vld [vmem:[%s7505_s22 + $0x3748] sm:$0xff]  ;;  %v5225_v25 = vpack.c.bf16 %v1014_v20, %v982_v19 }
 0x264   : > { %2689 = vmatprep.mubr.f32.mxu0 %v214_v37  ;;  %v5207_v39 = vpack.c.bf16 %v693_v32, %v661_v31  ;;  %v6249_v26 = vpack.c.bf16 %v2038_v22, %v2006_v21  ;;  %v1046_v31 = vld [vmem:[%s7505_s22 + $0x1848] sm:$0xff] }
 0x265   : > { %3851 = vmatmul.mubr.f32.gmra.mrb[2].mxu1 %v243_v34  ;;  %v1717_v34 = vld [vmem:[%s7505_s22 + $0x2d40] sm:$0xff]  ;;  %v1078_v32 = vld [vmem:[%s7505_s22 + $0x1948] sm:$0xff] }
 0x266   : > { %3921 = vmatprep.mubr.f32.mxu1 %v214_v37  ;;  %v1750_v37 = vld [vmem:[%s7505_s22 + $0x2e48] sm:$0xff]  ;;  %v6231_v40 = vpack.c.bf16 %v1717_v34, %v1685_v33 }
 0x267   : > { %v6233_v42 = vpack.c.bf16 %v1782_v38, %v1750_v37  ;;  %v2070_v33 = vld [vmem:[%s7505_s22 + $0x3848] sm:$0xff]  ;;  %v5229_v37 = vpack.c.bf16 %v1078_v32, %v1046_v31  ;;  %v213_v31 = vld [vmem:[#allocation2 + $0x40] sm:$0xff] }
 0x268   : > { %5188 = vmatpush1.bf16.xpose.msra.mxu0 %v5187_v43  ;;  %v725_v43 = vld [vmem:[%s7505_s22 + $0xe40] sm:$0xff]  ;;  %v2102_v34 = vld [vmem:[%s7505_s22 + $0x3948] sm:$0xff] }
 0x269   : > { %5190 = vmatprep.subr.bf16.mxu0 %v5189_v45  ;;  %v1749_v45 = vld [vmem:[%s7505_s22 + $0x2e40] sm:$0xff]  ;;  %v6253_v38 = vpack.c.bf16 %v2102_v34, %v2070_v33 }
 0x26a   : > { %6212 = vmatpush1.bf16.xpose.msra.mxu1 %v6211_v44  ;;  %v757_v44 = vld [vmem:[%s7505_s22 + $0xf40] sm:$0xff] }
 0x26b   : > { %6214 = vmatprep.subr.bf16.mxu1 %v6213_v46  ;;  %v1781_v46 = vld [vmem:[%s7505_s22 + $0x2f40] sm:$0xff]  ;;  %v5211_v51 = vpack.c.bf16 %v757_v44, %v725_v43  ;;  %v1110_v43 = vld [vmem:[%s7505_s22 + $0x1a48] sm:$0xff] }
 0x26c   : > { %v6235_v52 = vpack.c.bf16 %v1781_v46, %v1749_v45  ;;  %v1142_v44 = vld [vmem:[%s7505_s22 + $0x1b48] sm:$0xff] }
 0x26d   : > { %v2134_v45 = vld [vmem:[%s7505_s22 + $0x3a48] sm:$0xff]  ;;  %v5233_v49 = vpack.c.bf16 %v1142_v44, %v1110_v43  ;;  %v408_v43 = vld [vmem:[%s7505_s22 + $0x458] sm:$0xff] }
 0x26e   : > { %v2166_v46 = vld [vmem:[%s7505_s22 + $0x3b48] sm:$0xff]  ;;  %v440_v44 = vld [vmem:[%s7505_s22 + $0x558] sm:$0xff] }
 0x26f   : > { %v6257_v50 = vpack.c.bf16 %v2166_v46, %v2134_v45  ;;  %v1432_v45 = vld [vmem:[%s7505_s22 + $0x2458] sm:$0xff] }
 0x270   : > { %5192 = vmatpush1.bf16.xpose.msra.mxu0 %v5191_v55  ;;  %v789_v55 = vld [vmem:[%s7505_s22 + $0x1040] sm:$0xff]  ;;  %v1464_v46 = vld [vmem:[%s7505_s22 + $0x2558] sm:$0xff] }
 0x271   : > { %5194 = vmatprep.subr.bf16.mxu0 %v5193_v57  ;;  %v1813_v57 = vld [vmem:[%s7505_s22 + $0x3040] sm:$0xff] }
 0x272   : > { %6216 = vmatpush1.bf16.xpose.msra.mxu1 %v6215_v56  ;;  %v821_v56 = vld [vmem:[%s7505_s22 + $0x1140] sm:$0xff] }
 0x273   : > { %6218 = vmatprep.subr.bf16.mxu1 %v6217_v58  ;;  %v1845_v58 = vld [vmem:[%s7505_s22 + $0x3140] sm:$0xff]  ;;  %v5215_v63 = vpack.c.bf16 %v821_v56, %v789_v55  ;;  %v1174_v55 = vld [vmem:[%s7505_s22 + $0x1c48] sm:$0xff] }
 0x274   : > { %v6239_v0 = vpack.c.bf16 %v1845_v58, %v1813_v57  ;;  %v1206_v56 = vld [vmem:[%s7505_s22 + $0x1d48] sm:$0xff] }
 0x275   : > { %v2198_v57 = vld [vmem:[%s7505_s22 + $0x3c48] sm:$0xff]  ;;  %v5237_v61 = vpack.c.bf16 %v1206_v56, %v1174_v55  ;;  %v472_v55 = vld [vmem:[%s7505_s22 + $0x658] sm:$0xff] }
 0x276   : > { %v2230_v58 = vld [vmem:[%s7505_s22 + $0x3d48] sm:$0xff]  ;;  %v504_v56 = vld [vmem:[%s7505_s22 + $0x758] sm:$0xff] }
 0x277   : > { %v6261_v62 = vpack.c.bf16 %v2230_v58, %v2198_v57  ;;  %v1496_v57 = vld [vmem:[%s7505_s22 + $0x2658] sm:$0xff] }
 0x278   : > { %5196 = vmatpush1.bf16.xpose.msra.mxu0 %v5195_v3  ;;  %v853_v3 = vld [vmem:[%s7505_s22 + $0x1240] sm:$0xff]  ;;  %v1528_v58 = vld [vmem:[%s7505_s22 + $0x2758] sm:$0xff] }
 0x279   : > { %5198 = vmatprep.subr.bf16.mxu0 %v5197_v5  ;;  %v1877_v5 = vld [vmem:[%s7505_s22 + $0x3240] sm:$0xff] }
 0x27a   : > { %6220 = vmatpush1.bf16.xpose.msra.mxu1 %v6219_v4  ;;  %v885_v4 = vld [vmem:[%s7505_s22 + $0x1340] sm:$0xff] }
 0x27b   : > { %6222 = vmatprep.subr.bf16.mxu1 %v6221_v6  ;;  %v1909_v6 = vld [vmem:[%s7505_s22 + $0x3340] sm:$0xff]  ;;  %v5219_v11 = vpack.c.bf16 %v885_v4, %v853_v3  ;;  %v1238_v3 = vld [vmem:[%s7505_s22 + $0x1e48] sm:$0xff] }
 0x27c   : > { %v6243_v12 = vpack.c.bf16 %v1909_v6, %v1877_v5  ;;  %v1270_v4 = vld [vmem:[%s7505_s22 + $0x1f48] sm:$0xff] }
 0x27d   : > { %v2262_v5 = vld [vmem:[%s7505_s22 + $0x3e48] sm:$0xff]  ;;  %v5241_v9 = vpack.c.bf16 %v1270_v4, %v1238_v3  ;;  %v536_v3 = vld [vmem:[%s7505_s22 + $0x858] sm:$0xff] }
 0x27e   : > { %v2294_v6 = vld [vmem:[%s7505_s22 + $0x3f48] sm:$0xff]  ;;  %v568_v4 = vld [vmem:[%s7505_s22 + $0x958] sm:$0xff] }
 0x27f   : > { %v6265_v10 = vpack.c.bf16 %v2294_v6, %v2262_v5  ;;  %v1560_v5 = vld [vmem:[%s7505_s22 + $0x2858] sm:$0xff] }
 0x280   : > { %5200 = vmatpush1.bf16.xpose.msra.mxu0 %v5199_v15  ;;  %v917_v15 = vld [vmem:[%s7505_s22 + $0x1440] sm:$0xff]  ;;  %v1592_v6 = vld [vmem:[%s7505_s22 + $0x2958] sm:$0xff] }
 0x281   : > { %5202 = vmatprep.subr.bf16.mxu0 %v5201_v17  ;;  %v1941_v17 = vld [vmem:[%s7505_s22 + $0x3440] sm:$0xff] }
 0x282   : > { %6224 = vmatpush1.bf16.xpose.msra.mxu1 %v6223_v16  ;;  %v949_v16 = vld [vmem:[%s7505_s22 + $0x1540] sm:$0xff] }
 0x283   : > { %6226 = vmatprep.subr.bf16.mxu1 %v6225_v18  ;;  %v1973_v18 = vld [vmem:[%s7505_s22 + $0x3540] sm:$0xff]  ;;  %v5223_v23 = vpack.c.bf16 %v949_v16, %v917_v15  ;;  %v280_v15 = vld [vmem:[%s7505_s22 + $0x58] sm:$0xff] }
 0x284   : > { %v6247_v24 = vpack.c.bf16 %v1973_v18, %v1941_v17  ;;  %v312_v16 = vld [vmem:[%s7505_s22 + $0x158] sm:$0xff] }
 0x285   : > { %v1304_v17 = vld [vmem:[%s7505_s22 + $0x2058] sm:$0xff]  ;;  %v5245_v21 = vpack.c.bf16 %v312_v16, %v280_v15 }
 0x286   : > { %v1336_v18 = vld [vmem:[%s7505_s22 + $0x2158] sm:$0xff] }
 0x287   : > { %v6269_v22 = vpack.c.bf16 %v1336_v18, %v1304_v17  ;;  %v600_v15 = vld [vmem:[%s7505_s22 + $0xa58] sm:$0xff] }
 0x288   : > { %5204 = vmatpush1.bf16.xpose.msra.mxu0 %v5203_v27  ;;  %v981_v27 = vld [vmem:[%s7505_s22 + $0x1640] sm:$0xff]  ;;  %v632_v16 = vld [vmem:[%s7505_s22 + $0xb58] sm:$0xff] }
 0x289   : > { %5206 = vmatprep.subr.bf16.mxu0 %v5205_v29  ;;  %v2005_v29 = vld [vmem:[%s7505_s22 + $0x3640] sm:$0xff]  ;;  %v1624_v17 = vld [vmem:[%s7505_s22 + $0x2a58] sm:$0xff] }
 0x28a   : > { %6228 = vmatpush1.bf16.xpose.msra.mxu1 %v6227_v28  ;;  %v1013_v28 = vld [vmem:[%s7505_s22 + $0x1740] sm:$0xff]  ;;  %v1656_v18 = vld [vmem:[%s7505_s22 + $0x2b58] sm:$0xff] }
 0x28b   : > { %6230 = vmatprep.subr.bf16.mxu1 %v6229_v30  ;;  %v2037_v30 = vld [vmem:[%s7505_s22 + $0x3740] sm:$0xff]  ;;  %v5227_v35 = vpack.c.bf16 %v1013_v28, %v981_v27  ;;  %v344_v27 = vld [vmem:[%s7505_s22 + $0x258] sm:$0xff] }
 0x28c   : > { %v6251_v36 = vpack.c.bf16 %v2037_v30, %v2005_v29  ;;  %v376_v28 = vld [vmem:[%s7505_s22 + $0x358] sm:$0xff] }
 0x28d   : > { %v1368_v29 = vld [vmem:[%s7505_s22 + $0x2258] sm:$0xff]  ;;  %v5249_v34 = vpack.c.bf16 %v376_v28, %v344_v27 }
 0x28e   : > { %v1400_v30 = vld [vmem:[%s7505_s22 + $0x2358] sm:$0xff] }
 0x28f   : > { %v664_v27 = vld [vmem:[%s7505_s22 + $0xc58] sm:$0xff] }
 0x290   : > { %5208 = vmatpush1.bf16.xpose.msra.mxu0 %v5207_v39  ;;  %v1045_v39 = vld [vmem:[%s7505_s22 + $0x1840] sm:$0xff]  ;;  %v696_v28 = vld [vmem:[%s7505_s22 + $0xd58] sm:$0xff] }
 0x291   : > { %5210 = vmatprep.subr.bf16.mxu0 %v5209_v41  ;;  %v2069_v41 = vld [vmem:[%s7505_s22 + $0x3840] sm:$0xff] }
 0x292   : > { %6232 = vmatpush1.bf16.xpose.msra.mxu1 %v6231_v40  ;;  %v1077_v40 = vld [vmem:[%s7505_s22 + $0x1940] sm:$0xff] }
 0x293   : > { %6234 = vmatprep.subr.bf16.mxu1 %v6233_v42  ;;  %v2101_v42 = vld [vmem:[%s7505_s22 + $0x3940] sm:$0xff]  ;;  %v5231_v47 = vpack.c.bf16 %v1077_v40, %v1045_v39  ;;  %v375_v39 = vld [vmem:[%s7505_s22 + $0x350] sm:$0xff] }
 0x294   : > { %v6255_v48 = vpack.c.bf16 %v2101_v42, %v2069_v41  ;;  %v1367_v40 = vld [vmem:[%s7505_s22 + $0x2250] sm:$0xff]  ;;  %v216_v41 = vld [vmem:[#allocation2 + $0x58] sm:$0xff] }
 0x295   : > { %v1399_v42 = vld [vmem:[%s7505_s22 + $0x2350] sm:$0xff] }
 0x298   : > { %5212 = vmatpush1.bf16.xpose.msra.mxu0 %v5211_v51  ;;  %v1109_v51 = vld [vmem:[%s7505_s22 + $0x1a40] sm:$0xff] }
 0x299   : > { %5214 = vmatprep.subr.bf16.mxu0 %v5213_v53  ;;  %v2133_v53 = vld [vmem:[%s7505_s22 + $0x3a40] sm:$0xff] }
 0x29a   : > { %6236 = vmatpush1.bf16.xpose.msra.mxu1 %v6235_v52  ;;  %v1141_v52 = vld [vmem:[%s7505_s22 + $0x1b40] sm:$0xff] }
 0x29b   : > { %6238 = vmatprep.subr.bf16.mxu1 %v6237_v54  ;;  %v2165_v54 = vld [vmem:[%s7505_s22 + $0x3b40] sm:$0xff]  ;;  %v5235_v59 = vpack.c.bf16 %v1141_v52, %v1109_v51  ;;  %v407_v51 = vld [vmem:[%s7505_s22 + $0x450] sm:$0xff] }
 0x29c   : > { %v6259_v60 = vpack.c.bf16 %v2165_v54, %v2133_v53  ;;  %v439_v52 = vld [vmem:[%s7505_s22 + $0x550] sm:$0xff] }
 0x29d   : > { %v1431_v53 = vld [vmem:[%s7505_s22 + $0x2450] sm:$0xff] }
 0x29e   : > { %v1463_v54 = vld [vmem:[%s7505_s22 + $0x2550] sm:$0xff] }
 0x2a0   : > { %5216 = vmatpush1.bf16.xpose.msra.mxu0 %v5215_v63  ;;  %v1173_v63 = vld [vmem:[%s7505_s22 + $0x1c40] sm:$0xff] }
 0x2a1   : > { %5218 = vmatprep.subr.bf16.mxu0 %v5217_v1  ;;  %v2197_v1 = vld [vmem:[%s7505_s22 + $0x3c40] sm:$0xff] }
 0x2a2   : > { %6240 = vmatpush1.bf16.xpose.msra.mxu1 %v6239_v0  ;;  %v1205_v0 = vld [vmem:[%s7505_s22 + $0x1d40] sm:$0xff] }
 0x2a3   : > { %6242 = vmatprep.subr.bf16.mxu1 %v6241_v2  ;;  %v2229_v2 = vld [vmem:[%s7505_s22 + $0x3d40] sm:$0xff]  ;;  %v5239_v7 = vpack.c.bf16 %v1205_v0, %v1173_v63  ;;  %v471_v63 = vld [vmem:[%s7505_s22 + $0x650] sm:$0xff] }
 0x2a4   : > { %v6263_v8 = vpack.c.bf16 %v2229_v2, %v2197_v1  ;;  %v503_v0 = vld [vmem:[%s7505_s22 + $0x750] sm:$0xff] }
 0x2a5   : > { %v1495_v1 = vld [vmem:[%s7505_s22 + $0x2650] sm:$0xff] }
 0x2a6   : > { %v1527_v2 = vld [vmem:[%s7505_s22 + $0x2750] sm:$0xff] }
 0x2a8   : > { %5220 = vmatpush1.bf16.xpose.msra.mxu0 %v5219_v11  ;;  %v1237_v11 = vld [vmem:[%s7505_s22 + $0x1e40] sm:$0xff] }
 0x2a9   : > { %5222 = vmatprep.subr.bf16.mxu0 %v5221_v13  ;;  %v2261_v13 = vld [vmem:[%s7505_s22 + $0x3e40] sm:$0xff] }
 0x2aa   : > { %6244 = vmatpush1.bf16.xpose.msra.mxu1 %v6243_v12  ;;  %v1269_v12 = vld [vmem:[%s7505_s22 + $0x1f40] sm:$0xff] }
 0x2ab   : > { %6246 = vmatprep.subr.bf16.mxu1 %v6245_v14  ;;  %v2293_v14 = vld [vmem:[%s7505_s22 + $0x3f40] sm:$0xff]  ;;  %v5243_v19 = vpack.c.bf16 %v1269_v12, %v1237_v11  ;;  %v535_v11 = vld [vmem:[%s7505_s22 + $0x850] sm:$0xff] }
 0x2ac   : > { %v6267_v20 = vpack.c.bf16 %v2293_v14, %v2261_v13  ;;  %v567_v12 = vld [vmem:[%s7505_s22 + $0x950] sm:$0xff] }
 0x2ad   : > { %v1559_v13 = vld [vmem:[%s7505_s22 + $0x2850] sm:$0xff] }
 0x2ae   : > { %v1591_v14 = vld [vmem:[%s7505_s22 + $0x2950] sm:$0xff] }
 0x2b0   : > { %5224 = vmatpush1.bf16.xpose.msra.mxu0 %v5223_v23  ;;  %v279_v23 = vld [vmem:[%s7505_s22 + $0x50] sm:$0xff] }
 0x2b1   : > { %5226 = vmatprep.subr.bf16.mxu0 %v5225_v25  ;;  %v1303_v25 = vld [vmem:[%s7505_s22 + $0x2050] sm:$0xff] }
 0x2b2   : > { %6248 = vmatpush1.bf16.xpose.msra.mxu1 %v6247_v24  ;;  %v311_v24 = vld [vmem:[%s7505_s22 + $0x150] sm:$0xff] }
 0x2b3   : > { %6250 = vmatprep.subr.bf16.mxu1 %v6249_v26  ;;  %v1335_v26 = vld [vmem:[%s7505_s22 + $0x2150] sm:$0xff]  ;;  %v5247_v32 = vpack.c.bf16 %v311_v24, %v279_v23 }
 0x2b4   : > { %v6271_v33 = vpack.c.bf16 %v1335_v26, %v1303_v25  ;;  %v599_v23 = vld [vmem:[%s7505_s22 + $0xa50] sm:$0xff] }
 0x2b5   : > { %v631_v24 = vld [vmem:[%s7505_s22 + $0xb50] sm:$0xff] }
 0x2b6   : > { %v1623_v25 = vld [vmem:[%s7505_s22 + $0x2a50] sm:$0xff] }
 0x2b7   : > { %v1655_v26 = vld [vmem:[%s7505_s22 + $0x2b50] sm:$0xff] }
 0x2b8   : > { %5228 = vmatpush1.bf16.xpose.msra.mxu0 %v5227_v35  ;;  %v6273_v35 = vpack.c.bf16 %v1400_v30, %v1368_v29  ;;  %v1688_v29 = vld [vmem:[%s7505_s22 + $0x2c58] sm:$0xff] }
 0x2b9   : > { %5230 = vmatprep.subr.bf16.mxu0 %v5229_v37  ;;  %v343_v37 = vld [vmem:[%s7505_s22 + $0x250] sm:$0xff]  ;;  %v1720_v30 = vld [vmem:[%s7505_s22 + $0x2d58] sm:$0xff] }
 0x2ba   : > { %6252 = vmatpush1.bf16.xpose.msra.mxu1 %v6251_v36  ;;  %v246_v36 = vld [vmem:[#allocation2 + $0x148] sm:$0xff] }
 0x2bb   : > { %6254 = vmatprep.subr.bf16.mxu1 %v6253_v38  ;;  %v245_v38 = vld [vmem:[#allocation2 + $0x140] sm:$0xff] }
 0x2c0   : > { %5232 = vmatpush1.bf16.xpose.msra.mxu0 %v5231_v47  ;;  %v5251_v47 = vpack.c.bf16 %v375_v39, %v343_v37  ;;  %v1687_v37 = vld [vmem:[%s7505_s22 + $0x2c50] sm:$0xff]  ;;  %v728_v39 = vld [vmem:[%s7505_s22 + $0xe58] sm:$0xff] }
 0x2c1   : > { %5234 = vmatprep.subr.bf16.mxu0 %v5233_v49  ;;  %v5253_v49 = vpack.c.bf16 %v440_v44, %v408_v43 }
 0x2c2   : > { %6256 = vmatpush1.bf16.xpose.msra.mxu1 %v6255_v48  ;;  %v6275_v48 = vpack.c.bf16 %v1399_v42, %v1367_v40  ;;  %v760_v40 = vld [vmem:[%s7505_s22 + $0xf58] sm:$0xff] }
 0x2c3   : > { %6258 = vmatprep.subr.bf16.mxu1 %v6257_v50  ;;  %v6277_v50 = vpack.c.bf16 %v1464_v46, %v1432_v45  ;;  %v1784_v42 = vld [vmem:[%s7505_s22 + $0x2f58] sm:$0xff]  ;;  %v5273_v45 = vpack.c.bf16 %v760_v40, %v728_v39 }
 0x2c8   : > { %5236 = vmatpush1.bf16.xpose.msra.mxu0 %v5235_v59  ;;  %v5255_v59 = vpack.c.bf16 %v439_v52, %v407_v51  ;;  %v792_v51 = vld [vmem:[%s7505_s22 + $0x1058] sm:$0xff] }
 0x2c9   : > { %5238 = vmatprep.subr.bf16.mxu0 %v5237_v61  ;;  %v5257_v61 = vpack.c.bf16 %v504_v56, %v472_v55  ;;  %v824_v52 = vld [vmem:[%s7505_s22 + $0x1158] sm:$0xff] }
 0x2ca   : > { %6260 = vmatpush1.bf16.xpose.msra.mxu1 %v6259_v60  ;;  %v6279_v60 = vpack.c.bf16 %v1463_v54, %v1431_v53  ;;  %v1816_v53 = vld [vmem:[%s7505_s22 + $0x3058] sm:$0xff] }
 0x2cb   : > { %6262 = vmatprep.subr.bf16.mxu1 %v6261_v62  ;;  %v6281_v62 = vpack.c.bf16 %v1528_v58, %v1496_v57  ;;  %v1848_v54 = vld [vmem:[%s7505_s22 + $0x3158] sm:$0xff]  ;;  %v5277_v57 = vpack.c.bf16 %v824_v52, %v792_v51 }
 0x2cc   : > { %v6301_v58 = vpack.c.bf16 %v1848_v54, %v1816_v53 }
 0x2d0   : > { %5240 = vmatpush1.bf16.xpose.msra.mxu0 %v5239_v7  ;;  %v5259_v7 = vpack.c.bf16 %v503_v0, %v471_v63  ;;  %v856_v63 = vld [vmem:[%s7505_s22 + $0x1258] sm:$0xff] }
 0x2d1   : > { %5242 = vmatprep.subr.bf16.mxu0 %v5241_v9  ;;  %v5261_v9 = vpack.c.bf16 %v568_v4, %v536_v3  ;;  %v888_v0 = vld [vmem:[%s7505_s22 + $0x1358] sm:$0xff] }
 0x2d2   : > { %6264 = vmatpush1.bf16.xpose.msra.mxu1 %v6263_v8  ;;  %v6283_v8 = vpack.c.bf16 %v1527_v2, %v1495_v1  ;;  %v1880_v1 = vld [vmem:[%s7505_s22 + $0x3258] sm:$0xff] }
 0x2d3   : > { %6266 = vmatprep.subr.bf16.mxu1 %v6265_v10  ;;  %v6285_v10 = vpack.c.bf16 %v1592_v6, %v1560_v5  ;;  %v1912_v2 = vld [vmem:[%s7505_s22 + $0x3358] sm:$0xff]  ;;  %v5281_v5 = vpack.c.bf16 %v888_v0, %v856_v63 }
 0x2d4   : > { %v6305_v6 = vpack.c.bf16 %v1912_v2, %v1880_v1 }
 0x2d8   : > { %5244 = vmatpush1.bf16.xpose.msra.mxu0 %v5243_v19  ;;  %v5263_v19 = vpack.c.bf16 %v567_v12, %v535_v11  ;;  %v920_v11 = vld [vmem:[%s7505_s22 + $0x1458] sm:$0xff] }
 0x2d9   : > { %5246 = vmatprep.subr.bf16.mxu0 %v5245_v21  ;;  %v5265_v21 = vpack.c.bf16 %v632_v16, %v600_v15  ;;  %v952_v12 = vld [vmem:[%s7505_s22 + $0x1558] sm:$0xff] }
 0x2da   : > { %6268 = vmatpush1.bf16.xpose.msra.mxu1 %v6267_v20  ;;  %v6287_v20 = vpack.c.bf16 %v1591_v14, %v1559_v13  ;;  %v1944_v13 = vld [vmem:[%s7505_s22 + $0x3458] sm:$0xff] }
 0x2db   : > { %6270 = vmatprep.subr.bf16.mxu1 %v6269_v22  ;;  %v6289_v22 = vpack.c.bf16 %v1656_v18, %v1624_v17  ;;  %v1976_v14 = vld [vmem:[%s7505_s22 + $0x3558] sm:$0xff]  ;;  %v5285_v17 = vpack.c.bf16 %v952_v12, %v920_v11 }
 0x2dc   : > { %v6309_v18 = vpack.c.bf16 %v1976_v14, %v1944_v13 }
 0x2df   : > { %2690 = vmatmul.mubr.f32.vlgmr.msra.gmra.mrb[0].mxu0 %v213_v31 }
 0x2e0   : > { %5248 = vmatpush1.bf16.xpose.msra.mxu0 %v5247_v32  ;;  %2695 = vmatprep.mubr.f32.mxu0 %v246_v36  ;;  %v6291_v32 = vpack.c.bf16 %v1655_v26, %v1623_v25  ;;  %v2008_v25 = vld [vmem:[%s7505_s22 + $0x3658] sm:$0xff] }
 0x2e1   : > { %3922 = vmatmul.mubr.f32.vlgmr.msra.gmra.mrb[0].mxu1 %v213_v31  ;;  %5250 = vmatprep.subr.bf16.mxu0 %v5249_v34  ;;  %v5267_v31 = vpack.c.bf16 %v631_v24, %v599_v23  ;;  %v6293_v34 = vpack.c.bf16 %v1720_v30, %v1688_v29  ;;  %v984_v23 = vld [vmem:[%s7505_s22 + $0x1658] sm:$0xff] }
 0x2e2   : > { %6272 = vmatpush1.bf16.xpose.msra.mxu1 %v6271_v33  ;;  %3927 = vmatprep.mubr.f32.mxu1 %v246_v36  ;;  %v5269_v33 = vpack.c.bf16 %v696_v28, %v664_v27  ;;  %v695_v36 = vld [vmem:[%s7505_s22 + $0xd50] sm:$0xff]  ;;  %v1016_v24 = vld [vmem:[%s7505_s22 + $0x1758] sm:$0xff] }
 0x2e3   : > { %6274 = vmatprep.subr.bf16.mxu1 %v6273_v35  ;;  %2696 = vmatmul.mubr.f32.gmra.mrb[2].mxu0 %v245_v38  ;;  %v663_v35 = vld [vmem:[%s7505_s22 + $0xc50] sm:$0xff]  ;;  %v2040_v26 = vld [vmem:[%s7505_s22 + $0x3758] sm:$0xff]  ;;  %v5289_v29 = vpack.c.bf16 %v1016_v24, %v984_v23 }
 0x2e4   : > { %2766 = vmatprep.mubr.f32.mxu0 %v216_v41  ;;  %v5271_v43 = vpack.c.bf16 %v695_v36, %v663_v35  ;;  %v6313_v30 = vpack.c.bf16 %v2040_v26, %v2008_v25  ;;  %v1048_v35 = vld [vmem:[%s7505_s22 + $0x1858] sm:$0xff] }
 0x2e5   : > { %3928 = vmatmul.mubr.f32.gmra.mrb[2].mxu1 %v245_v38  ;;  %v1719_v38 = vld [vmem:[%s7505_s22 + $0x2d50] sm:$0xff]  ;;  %v1080_v36 = vld [vmem:[%s7505_s22 + $0x1958] sm:$0xff] }
 0x2e6   : > { %3998 = vmatprep.mubr.f32.mxu1 %v216_v41  ;;  %v1752_v41 = vld [vmem:[%s7505_s22 + $0x2e58] sm:$0xff]  ;;  %v6295_v44 = vpack.c.bf16 %v1719_v38, %v1687_v37 }
 0x2e7   : > { %v6297_v46 = vpack.c.bf16 %v1784_v42, %v1752_v41  ;;  %v2072_v37 = vld [vmem:[%s7505_s22 + $0x3858] sm:$0xff]  ;;  %v5293_v41 = vpack.c.bf16 %v1080_v36, %v1048_v35  ;;  %v215_v35 = vld [vmem:[#allocation2 + $0x50] sm:$0xff] }
 0x2e8   : > { %5252 = vmatpush1.bf16.xpose.msra.mxu0 %v5251_v47  ;;  %v727_v47 = vld [vmem:[%s7505_s22 + $0xe50] sm:$0xff]  ;;  %v2104_v38 = vld [vmem:[%s7505_s22 + $0x3958] sm:$0xff] }
 0x2e9   : > { %5254 = vmatprep.subr.bf16.mxu0 %v5253_v49  ;;  %v1751_v49 = vld [vmem:[%s7505_s22 + $0x2e50] sm:$0xff]  ;;  %v6317_v42 = vpack.c.bf16 %v2104_v38, %v2072_v37 }
 0x2ea   : > { %6276 = vmatpush1.bf16.xpose.msra.mxu1 %v6275_v48  ;;  %v759_v48 = vld [vmem:[%s7505_s22 + $0xf50] sm:$0xff] }
 0x2eb   : > { %6278 = vmatprep.subr.bf16.mxu1 %v6277_v50  ;;  %v1783_v50 = vld [vmem:[%s7505_s22 + $0x2f50] sm:$0xff]  ;;  %v5275_v55 = vpack.c.bf16 %v759_v48, %v727_v47  ;;  %v1112_v47 = vld [vmem:[%s7505_s22 + $0x1a58] sm:$0xff] }
 0x2ec   : > { %v6299_v56 = vpack.c.bf16 %v1783_v50, %v1751_v49  ;;  %v1144_v48 = vld [vmem:[%s7505_s22 + $0x1b58] sm:$0xff] }
 0x2ed   : > { %v2136_v49 = vld [vmem:[%s7505_s22 + $0x3a58] sm:$0xff]  ;;  %v5297_v53 = vpack.c.bf16 %v1144_v48, %v1112_v47  ;;  %v410_v47 = vld [vmem:[%s7505_s22 + $0x468] sm:$0xff] }
 0x2ee   : > { %v2168_v50 = vld [vmem:[%s7505_s22 + $0x3b58] sm:$0xff]  ;;  %v442_v48 = vld [vmem:[%s7505_s22 + $0x568] sm:$0xff] }
 0x2ef   : > { %v6321_v54 = vpack.c.bf16 %v2168_v50, %v2136_v49  ;;  %v1434_v49 = vld [vmem:[%s7505_s22 + $0x2468] sm:$0xff] }
 0x2f0   : > { %5256 = vmatpush1.bf16.xpose.msra.mxu0 %v5255_v59  ;;  %v791_v59 = vld [vmem:[%s7505_s22 + $0x1050] sm:$0xff]  ;;  %v1466_v50 = vld [vmem:[%s7505_s22 + $0x2568] sm:$0xff] }
 0x2f1   : > { %5258 = vmatprep.subr.bf16.mxu0 %v5257_v61  ;;  %v1815_v61 = vld [vmem:[%s7505_s22 + $0x3050] sm:$0xff] }
 0x2f2   : > { %6280 = vmatpush1.bf16.xpose.msra.mxu1 %v6279_v60  ;;  %v823_v60 = vld [vmem:[%s7505_s22 + $0x1150] sm:$0xff] }
 0x2f3   : > { %6282 = vmatprep.subr.bf16.mxu1 %v6281_v62  ;;  %v1847_v62 = vld [vmem:[%s7505_s22 + $0x3150] sm:$0xff]  ;;  %v5279_v3 = vpack.c.bf16 %v823_v60, %v791_v59  ;;  %v1176_v59 = vld [vmem:[%s7505_s22 + $0x1c58] sm:$0xff] }
 0x2f4   : > { %v6303_v4 = vpack.c.bf16 %v1847_v62, %v1815_v61  ;;  %v1208_v60 = vld [vmem:[%s7505_s22 + $0x1d58] sm:$0xff] }
 0x2f5   : > { %v2200_v61 = vld [vmem:[%s7505_s22 + $0x3c58] sm:$0xff]  ;;  %v5301_v1 = vpack.c.bf16 %v1208_v60, %v1176_v59  ;;  %v474_v59 = vld [vmem:[%s7505_s22 + $0x668] sm:$0xff] }
 0x2f6   : > { %v2232_v62 = vld [vmem:[%s7505_s22 + $0x3d58] sm:$0xff]  ;;  %v506_v60 = vld [vmem:[%s7505_s22 + $0x768] sm:$0xff] }
 0x2f7   : > { %v6325_v2 = vpack.c.bf16 %v2232_v62, %v2200_v61  ;;  %v1498_v61 = vld [vmem:[%s7505_s22 + $0x2668] sm:$0xff] }
 0x2f8   : > { %5260 = vmatpush1.bf16.xpose.msra.mxu0 %v5259_v7  ;;  %v855_v7 = vld [vmem:[%s7505_s22 + $0x1250] sm:$0xff]  ;;  %v1530_v62 = vld [vmem:[%s7505_s22 + $0x2768] sm:$0xff] }
 0x2f9   : > { %5262 = vmatprep.subr.bf16.mxu0 %v5261_v9  ;;  %v1879_v9 = vld [vmem:[%s7505_s22 + $0x3250] sm:$0xff] }
 0x2fa   : > { %6284 = vmatpush1.bf16.xpose.msra.mxu1 %v6283_v8  ;;  %v887_v8 = vld [vmem:[%s7505_s22 + $0x1350] sm:$0xff] }
 0x2fb   : > { %6286 = vmatprep.subr.bf16.mxu1 %v6285_v10  ;;  %v1911_v10 = vld [vmem:[%s7505_s22 + $0x3350] sm:$0xff]  ;;  %v5283_v15 = vpack.c.bf16 %v887_v8, %v855_v7  ;;  %v1240_v7 = vld [vmem:[%s7505_s22 + $0x1e58] sm:$0xff] }
 0x2fc   : > { %v6307_v16 = vpack.c.bf16 %v1911_v10, %v1879_v9  ;;  %v1272_v8 = vld [vmem:[%s7505_s22 + $0x1f58] sm:$0xff] }
 0x2fd   : > { %v2264_v9 = vld [vmem:[%s7505_s22 + $0x3e58] sm:$0xff]  ;;  %v5305_v13 = vpack.c.bf16 %v1272_v8, %v1240_v7  ;;  %v538_v7 = vld [vmem:[%s7505_s22 + $0x868] sm:$0xff] }
 0x2fe   : > { %v2296_v10 = vld [vmem:[%s7505_s22 + $0x3f58] sm:$0xff]  ;;  %v570_v8 = vld [vmem:[%s7505_s22 + $0x968] sm:$0xff] }
 0x2ff   : > { %v6329_v14 = vpack.c.bf16 %v2296_v10, %v2264_v9  ;;  %v1562_v9 = vld [vmem:[%s7505_s22 + $0x2868] sm:$0xff] }
 0x300   : > { %5264 = vmatpush1.bf16.xpose.msra.mxu0 %v5263_v19  ;;  %v919_v19 = vld [vmem:[%s7505_s22 + $0x1450] sm:$0xff]  ;;  %v1594_v10 = vld [vmem:[%s7505_s22 + $0x2968] sm:$0xff] }
 0x301   : > { %5266 = vmatprep.subr.bf16.mxu0 %v5265_v21  ;;  %v1943_v21 = vld [vmem:[%s7505_s22 + $0x3450] sm:$0xff] }
 0x302   : > { %6288 = vmatpush1.bf16.xpose.msra.mxu1 %v6287_v20  ;;  %v951_v20 = vld [vmem:[%s7505_s22 + $0x1550] sm:$0xff] }
 0x303   : > { %6290 = vmatprep.subr.bf16.mxu1 %v6289_v22  ;;  %v1975_v22 = vld [vmem:[%s7505_s22 + $0x3550] sm:$0xff]  ;;  %v5287_v27 = vpack.c.bf16 %v951_v20, %v919_v19  ;;  %v282_v19 = vld [vmem:[%s7505_s22 + $0x68] sm:$0xff] }
 0x304   : > { %v6311_v28 = vpack.c.bf16 %v1975_v22, %v1943_v21  ;;  %v314_v20 = vld [vmem:[%s7505_s22 + $0x168] sm:$0xff] }
 0x305   : > { %v1306_v21 = vld [vmem:[%s7505_s22 + $0x2068] sm:$0xff]  ;;  %v5309_v25 = vpack.c.bf16 %v314_v20, %v282_v19 }
 0x306   : > { %v1338_v22 = vld [vmem:[%s7505_s22 + $0x2168] sm:$0xff] }
 0x307   : > { %v6333_v26 = vpack.c.bf16 %v1338_v22, %v1306_v21  ;;  %v602_v19 = vld [vmem:[%s7505_s22 + $0xa68] sm:$0xff] }
 0x308   : > { %5268 = vmatpush1.bf16.xpose.msra.mxu0 %v5267_v31  ;;  %v983_v31 = vld [vmem:[%s7505_s22 + $0x1650] sm:$0xff]  ;;  %v634_v20 = vld [vmem:[%s7505_s22 + $0xb68] sm:$0xff] }
 0x309   : > { %5270 = vmatprep.subr.bf16.mxu0 %v5269_v33  ;;  %v2007_v33 = vld [vmem:[%s7505_s22 + $0x3650] sm:$0xff]  ;;  %v1626_v21 = vld [vmem:[%s7505_s22 + $0x2a68] sm:$0xff] }
 0x30a   : > { %6292 = vmatpush1.bf16.xpose.msra.mxu1 %v6291_v32  ;;  %v1015_v32 = vld [vmem:[%s7505_s22 + $0x1750] sm:$0xff]  ;;  %v1658_v22 = vld [vmem:[%s7505_s22 + $0x2b68] sm:$0xff] }
 0x30b   : > { %6294 = vmatprep.subr.bf16.mxu1 %v6293_v34  ;;  %v2039_v34 = vld [vmem:[%s7505_s22 + $0x3750] sm:$0xff]  ;;  %v5291_v39 = vpack.c.bf16 %v1015_v32, %v983_v31  ;;  %v346_v31 = vld [vmem:[%s7505_s22 + $0x268] sm:$0xff] }
 0x30c   : > { %v6315_v40 = vpack.c.bf16 %v2039_v34, %v2007_v33  ;;  %v378_v32 = vld [vmem:[%s7505_s22 + $0x368] sm:$0xff] }
 0x30d   : > { %v1370_v33 = vld [vmem:[%s7505_s22 + $0x2268] sm:$0xff]  ;;  %v5313_v38 = vpack.c.bf16 %v378_v32, %v346_v31 }
 0x30e   : > { %v1402_v34 = vld [vmem:[%s7505_s22 + $0x2368] sm:$0xff] }
 0x30f   : > { %v666_v31 = vld [vmem:[%s7505_s22 + $0xc68] sm:$0xff] }
 0x310   : > { %5272 = vmatpush1.bf16.xpose.msra.mxu0 %v5271_v43  ;;  %v1047_v43 = vld [vmem:[%s7505_s22 + $0x1850] sm:$0xff]  ;;  %v698_v32 = vld [vmem:[%s7505_s22 + $0xd68] sm:$0xff] }
 0x311   : > { %5274 = vmatprep.subr.bf16.mxu0 %v5273_v45  ;;  %v2071_v45 = vld [vmem:[%s7505_s22 + $0x3850] sm:$0xff] }
 0x312   : > { %6296 = vmatpush1.bf16.xpose.msra.mxu1 %v6295_v44  ;;  %v1079_v44 = vld [vmem:[%s7505_s22 + $0x1950] sm:$0xff] }
 0x313   : > { %6298 = vmatprep.subr.bf16.mxu1 %v6297_v46  ;;  %v2103_v46 = vld [vmem:[%s7505_s22 + $0x3950] sm:$0xff]  ;;  %v5295_v51 = vpack.c.bf16 %v1079_v44, %v1047_v43  ;;  %v377_v43 = vld [vmem:[%s7505_s22 + $0x360] sm:$0xff] }
 0x314   : > { %v6319_v52 = vpack.c.bf16 %v2103_v46, %v2071_v45  ;;  %v1369_v44 = vld [vmem:[%s7505_s22 + $0x2260] sm:$0xff]  ;;  %v218_v45 = vld [vmem:[#allocation2 + $0x68] sm:$0xff] }
 0x315   : > { %v1401_v46 = vld [vmem:[%s7505_s22 + $0x2360] sm:$0xff] }
 0x318   : > { %5276 = vmatpush1.bf16.xpose.msra.mxu0 %v5275_v55  ;;  %v1111_v55 = vld [vmem:[%s7505_s22 + $0x1a50] sm:$0xff] }
 0x319   : > { %5278 = vmatprep.subr.bf16.mxu0 %v5277_v57  ;;  %v2135_v57 = vld [vmem:[%s7505_s22 + $0x3a50] sm:$0xff] }
 0x31a   : > { %6300 = vmatpush1.bf16.xpose.msra.mxu1 %v6299_v56  ;;  %v1143_v56 = vld [vmem:[%s7505_s22 + $0x1b50] sm:$0xff] }
 0x31b   : > { %6302 = vmatprep.subr.bf16.mxu1 %v6301_v58  ;;  %v2167_v58 = vld [vmem:[%s7505_s22 + $0x3b50] sm:$0xff]  ;;  %v5299_v63 = vpack.c.bf16 %v1143_v56, %v1111_v55  ;;  %v409_v55 = vld [vmem:[%s7505_s22 + $0x460] sm:$0xff] }
 0x31c   : > { %v6323_v0 = vpack.c.bf16 %v2167_v58, %v2135_v57  ;;  %v441_v56 = vld [vmem:[%s7505_s22 + $0x560] sm:$0xff] }
 0x31d   : > { %v1433_v57 = vld [vmem:[%s7505_s22 + $0x2460] sm:$0xff] }
 0x31e   : > { %v1465_v58 = vld [vmem:[%s7505_s22 + $0x2560] sm:$0xff] }
 0x320   : > { %5280 = vmatpush1.bf16.xpose.msra.mxu0 %v5279_v3  ;;  %v1175_v3 = vld [vmem:[%s7505_s22 + $0x1c50] sm:$0xff] }
 0x321   : > { %5282 = vmatprep.subr.bf16.mxu0 %v5281_v5  ;;  %v2199_v5 = vld [vmem:[%s7505_s22 + $0x3c50] sm:$0xff] }
 0x322   : > { %6304 = vmatpush1.bf16.xpose.msra.mxu1 %v6303_v4  ;;  %v1207_v4 = vld [vmem:[%s7505_s22 + $0x1d50] sm:$0xff] }
 0x323   : > { %6306 = vmatprep.subr.bf16.mxu1 %v6305_v6  ;;  %v2231_v6 = vld [vmem:[%s7505_s22 + $0x3d50] sm:$0xff]  ;;  %v5303_v11 = vpack.c.bf16 %v1207_v4, %v1175_v3  ;;  %v473_v3 = vld [vmem:[%s7505_s22 + $0x660] sm:$0xff] }
 0x324   : > { %v6327_v12 = vpack.c.bf16 %v2231_v6, %v2199_v5  ;;  %v505_v4 = vld [vmem:[%s7505_s22 + $0x760] sm:$0xff] }
 0x325   : > { %v1497_v5 = vld [vmem:[%s7505_s22 + $0x2660] sm:$0xff] }
 0x326   : > { %v1529_v6 = vld [vmem:[%s7505_s22 + $0x2760] sm:$0xff] }
 0x328   : > { %5284 = vmatpush1.bf16.xpose.msra.mxu0 %v5283_v15  ;;  %v1239_v15 = vld [vmem:[%s7505_s22 + $0x1e50] sm:$0xff] }
 0x329   : > { %5286 = vmatprep.subr.bf16.mxu0 %v5285_v17  ;;  %v2263_v17 = vld [vmem:[%s7505_s22 + $0x3e50] sm:$0xff] }
 0x32a   : > { %6308 = vmatpush1.bf16.xpose.msra.mxu1 %v6307_v16  ;;  %v1271_v16 = vld [vmem:[%s7505_s22 + $0x1f50] sm:$0xff] }
 0x32b   : > { %6310 = vmatprep.subr.bf16.mxu1 %v6309_v18  ;;  %v2295_v18 = vld [vmem:[%s7505_s22 + $0x3f50] sm:$0xff]  ;;  %v5307_v23 = vpack.c.bf16 %v1271_v16, %v1239_v15  ;;  %v537_v15 = vld [vmem:[%s7505_s22 + $0x860] sm:$0xff] }
 0x32c   : > { %v6331_v24 = vpack.c.bf16 %v2295_v18, %v2263_v17  ;;  %v569_v16 = vld [vmem:[%s7505_s22 + $0x960] sm:$0xff] }
 0x32d   : > { %v1561_v17 = vld [vmem:[%s7505_s22 + $0x2860] sm:$0xff] }
 0x32e   : > { %v1593_v18 = vld [vmem:[%s7505_s22 + $0x2960] sm:$0xff] }
 0x330   : > { %5288 = vmatpush1.bf16.xpose.msra.mxu0 %v5287_v27  ;;  %v281_v27 = vld [vmem:[%s7505_s22 + $0x60] sm:$0xff] }
 0x331   : > { %5290 = vmatprep.subr.bf16.mxu0 %v5289_v29  ;;  %v1305_v29 = vld [vmem:[%s7505_s22 + $0x2060] sm:$0xff] }
 0x332   : > { %6312 = vmatpush1.bf16.xpose.msra.mxu1 %v6311_v28  ;;  %v313_v28 = vld [vmem:[%s7505_s22 + $0x160] sm:$0xff] }
 0x333   : > { %6314 = vmatprep.subr.bf16.mxu1 %v6313_v30  ;;  %v1337_v30 = vld [vmem:[%s7505_s22 + $0x2160] sm:$0xff]  ;;  %v5311_v36 = vpack.c.bf16 %v313_v28, %v281_v27 }
 0x334   : > { %v6335_v37 = vpack.c.bf16 %v1337_v30, %v1305_v29  ;;  %v601_v27 = vld [vmem:[%s7505_s22 + $0xa60] sm:$0xff] }
 0x335   : > { %v633_v28 = vld [vmem:[%s7505_s22 + $0xb60] sm:$0xff] }
 0x336   : > { %v1625_v29 = vld [vmem:[%s7505_s22 + $0x2a60] sm:$0xff] }
 0x337   : > { %v1657_v30 = vld [vmem:[%s7505_s22 + $0x2b60] sm:$0xff] }
 0x338   : > { %5292 = vmatpush1.bf16.xpose.msra.mxu0 %v5291_v39  ;;  %v6337_v39 = vpack.c.bf16 %v1402_v34, %v1370_v33  ;;  %v1690_v33 = vld [vmem:[%s7505_s22 + $0x2c68] sm:$0xff] }
 0x339   : > { %5294 = vmatprep.subr.bf16.mxu0 %v5293_v41  ;;  %v345_v41 = vld [vmem:[%s7505_s22 + $0x260] sm:$0xff]  ;;  %v1722_v34 = vld [vmem:[%s7505_s22 + $0x2d68] sm:$0xff] }
 0x33a   : > { %6316 = vmatpush1.bf16.xpose.msra.mxu1 %v6315_v40  ;;  %v248_v40 = vld [vmem:[#allocation2 + $0x158] sm:$0xff] }
 0x33b   : > { %6318 = vmatprep.subr.bf16.mxu1 %v6317_v42  ;;  %v247_v42 = vld [vmem:[#allocation2 + $0x150] sm:$0xff] }
 0x340   : > { %5296 = vmatpush1.bf16.xpose.msra.mxu0 %v5295_v51  ;;  %v5315_v51 = vpack.c.bf16 %v377_v43, %v345_v41  ;;  %v1689_v41 = vld [vmem:[%s7505_s22 + $0x2c60] sm:$0xff]  ;;  %v730_v43 = vld [vmem:[%s7505_s22 + $0xe68] sm:$0xff] }
 0x341   : > { %5298 = vmatprep.subr.bf16.mxu0 %v5297_v53  ;;  %v5317_v53 = vpack.c.bf16 %v442_v48, %v410_v47 }
 0x342   : > { %6320 = vmatpush1.bf16.xpose.msra.mxu1 %v6319_v52  ;;  %v6339_v52 = vpack.c.bf16 %v1401_v46, %v1369_v44  ;;  %v762_v44 = vld [vmem:[%s7505_s22 + $0xf68] sm:$0xff] }
 0x343   : > { %6322 = vmatprep.subr.bf16.mxu1 %v6321_v54  ;;  %v6341_v54 = vpack.c.bf16 %v1466_v50, %v1434_v49  ;;  %v1786_v46 = vld [vmem:[%s7505_s22 + $0x2f68] sm:$0xff]  ;;  %v5337_v49 = vpack.c.bf16 %v762_v44, %v730_v43 }
 0x348   : > { %5300 = vmatpush1.bf16.xpose.msra.mxu0 %v5299_v63  ;;  %v5319_v63 = vpack.c.bf16 %v441_v56, %v409_v55  ;;  %v794_v55 = vld [vmem:[%s7505_s22 + $0x1068] sm:$0xff] }
 0x349   : > { %5302 = vmatprep.subr.bf16.mxu0 %v5301_v1  ;;  %v5321_v1 = vpack.c.bf16 %v506_v60, %v474_v59  ;;  %v826_v56 = vld [vmem:[%s7505_s22 + $0x1168] sm:$0xff] }
 0x34a   : > { %6324 = vmatpush1.bf16.xpose.msra.mxu1 %v6323_v0  ;;  %v6343_v0 = vpack.c.bf16 %v1465_v58, %v1433_v57  ;;  %v1818_v57 = vld [vmem:[%s7505_s22 + $0x3068] sm:$0xff] }
 0x34b   : > { %6326 = vmatprep.subr.bf16.mxu1 %v6325_v2  ;;  %v6345_v2 = vpack.c.bf16 %v1530_v62, %v1498_v61  ;;  %v1850_v58 = vld [vmem:[%s7505_s22 + $0x3168] sm:$0xff]  ;;  %v5341_v61 = vpack.c.bf16 %v826_v56, %v794_v55 }
 0x34c   : > { %v6365_v62 = vpack.c.bf16 %v1850_v58, %v1818_v57 }
 0x350   : > { %5304 = vmatpush1.bf16.xpose.msra.mxu0 %v5303_v11  ;;  %v5323_v11 = vpack.c.bf16 %v505_v4, %v473_v3  ;;  %v858_v3 = vld [vmem:[%s7505_s22 + $0x1268] sm:$0xff] }
 0x351   : > { %5306 = vmatprep.subr.bf16.mxu0 %v5305_v13  ;;  %v5325_v13 = vpack.c.bf16 %v570_v8, %v538_v7  ;;  %v890_v4 = vld [vmem:[%s7505_s22 + $0x1368] sm:$0xff] }
 0x352   : > { %6328 = vmatpush1.bf16.xpose.msra.mxu1 %v6327_v12  ;;  %v6347_v12 = vpack.c.bf16 %v1529_v6, %v1497_v5  ;;  %v1882_v5 = vld [vmem:[%s7505_s22 + $0x3268] sm:$0xff] }
 0x353   : > { %6330 = vmatprep.subr.bf16.mxu1 %v6329_v14  ;;  %v6349_v14 = vpack.c.bf16 %v1594_v10, %v1562_v9  ;;  %v1914_v6 = vld [vmem:[%s7505_s22 + $0x3368] sm:$0xff]  ;;  %v5345_v9 = vpack.c.bf16 %v890_v4, %v858_v3 }
 0x354   : > { %v6369_v10 = vpack.c.bf16 %v1914_v6, %v1882_v5 }
 0x358   : > { %5308 = vmatpush1.bf16.xpose.msra.mxu0 %v5307_v23  ;;  %v5327_v23 = vpack.c.bf16 %v569_v16, %v537_v15  ;;  %v922_v15 = vld [vmem:[%s7505_s22 + $0x1468] sm:$0xff] }
 0x359   : > { %5310 = vmatprep.subr.bf16.mxu0 %v5309_v25  ;;  %v5329_v25 = vpack.c.bf16 %v634_v20, %v602_v19  ;;  %v954_v16 = vld [vmem:[%s7505_s22 + $0x1568] sm:$0xff] }
 0x35a   : > { %6332 = vmatpush1.bf16.xpose.msra.mxu1 %v6331_v24  ;;  %v6351_v24 = vpack.c.bf16 %v1593_v18, %v1561_v17  ;;  %v1946_v17 = vld [vmem:[%s7505_s22 + $0x3468] sm:$0xff] }
 0x35b   : > { %6334 = vmatprep.subr.bf16.mxu1 %v6333_v26  ;;  %v6353_v26 = vpack.c.bf16 %v1658_v22, %v1626_v21  ;;  %v1978_v18 = vld [vmem:[%s7505_s22 + $0x3568] sm:$0xff]  ;;  %v5349_v21 = vpack.c.bf16 %v954_v16, %v922_v15 }
 0x35c   : > { %v6373_v22 = vpack.c.bf16 %v1978_v18, %v1946_v17 }
 0x35f   : > { %2767 = vmatmul.mubr.f32.vlgmr.msra.gmra.mrb[0].mxu0 %v215_v35 }
 0x360   : > { %5312 = vmatpush1.bf16.xpose.msra.mxu0 %v5311_v36  ;;  %2772 = vmatprep.mubr.f32.mxu0 %v248_v40  ;;  %v6355_v36 = vpack.c.bf16 %v1657_v30, %v1625_v29  ;;  %v2010_v29 = vld [vmem:[%s7505_s22 + $0x3668] sm:$0xff] }
 0x361   : > { %3999 = vmatmul.mubr.f32.vlgmr.msra.gmra.mrb[0].mxu1 %v215_v35  ;;  %5314 = vmatprep.subr.bf16.mxu0 %v5313_v38  ;;  %v5331_v35 = vpack.c.bf16 %v633_v28, %v601_v27  ;;  %v6357_v38 = vpack.c.bf16 %v1722_v34, %v1690_v33  ;;  %v986_v27 = vld [vmem:[%s7505_s22 + $0x1668] sm:$0xff] }
 0x362   : > { %6336 = vmatpush1.bf16.xpose.msra.mxu1 %v6335_v37  ;;  %4004 = vmatprep.mubr.f32.mxu1 %v248_v40  ;;  %v5333_v37 = vpack.c.bf16 %v698_v32, %v666_v31  ;;  %v697_v40 = vld [vmem:[%s7505_s22 + $0xd60] sm:$0xff]  ;;  %v1018_v28 = vld [vmem:[%s7505_s22 + $0x1768] sm:$0xff] }
 0x363   : > { %6338 = vmatprep.subr.bf16.mxu1 %v6337_v39  ;;  %2773 = vmatmul.mubr.f32.gmra.mrb[2].mxu0 %v247_v42  ;;  %v665_v39 = vld [vmem:[%s7505_s22 + $0xc60] sm:$0xff]  ;;  %v2042_v30 = vld [vmem:[%s7505_s22 + $0x3768] sm:$0xff]  ;;  %v5353_v33 = vpack.c.bf16 %v1018_v28, %v986_v27 }
 0x364   : > { %2843 = vmatprep.mubr.f32.mxu0 %v218_v45  ;;  %v5335_v47 = vpack.c.bf16 %v697_v40, %v665_v39  ;;  %v6377_v34 = vpack.c.bf16 %v2042_v30, %v2010_v29  ;;  %v1050_v39 = vld [vmem:[%s7505_s22 + $0x1868] sm:$0xff] }
 0x365   : > { %4005 = vmatmul.mubr.f32.gmra.mrb[2].mxu1 %v247_v42  ;;  %v1721_v42 = vld [vmem:[%s7505_s22 + $0x2d60] sm:$0xff]  ;;  %v1082_v40 = vld [vmem:[%s7505_s22 + $0x1968] sm:$0xff] }
 0x366   : > { %4075 = vmatprep.mubr.f32.mxu1 %v218_v45  ;;  %v1754_v45 = vld [vmem:[%s7505_s22 + $0x2e68] sm:$0xff]  ;;  %v6359_v48 = vpack.c.bf16 %v1721_v42, %v1689_v41 }
 0x367   : > { %v6361_v50 = vpack.c.bf16 %v1786_v46, %v1754_v45  ;;  %v2074_v41 = vld [vmem:[%s7505_s22 + $0x3868] sm:$0xff]  ;;  %v5357_v45 = vpack.c.bf16 %v1082_v40, %v1050_v39  ;;  %v217_v39 = vld [vmem:[#allocation2 + $0x60] sm:$0xff] }
 0x368   : > { %5316 = vmatpush1.bf16.xpose.msra.mxu0 %v5315_v51  ;;  %v729_v51 = vld [vmem:[%s7505_s22 + $0xe60] sm:$0xff]  ;;  %v2106_v42 = vld [vmem:[%s7505_s22 + $0x3968] sm:$0xff] }
 0x369   : > { %5318 = vmatprep.subr.bf16.mxu0 %v5317_v53  ;;  %v1753_v53 = vld [vmem:[%s7505_s22 + $0x2e60] sm:$0xff]  ;;  %v6381_v46 = vpack.c.bf16 %v2106_v42, %v2074_v41 }
 0x36a   : > { %6340 = vmatpush1.bf16.xpose.msra.mxu1 %v6339_v52  ;;  %v761_v52 = vld [vmem:[%s7505_s22 + $0xf60] sm:$0xff] }
 0x36b   : > { %6342 = vmatprep.subr.bf16.mxu1 %v6341_v54  ;;  %v1785_v54 = vld [vmem:[%s7505_s22 + $0x2f60] sm:$0xff]  ;;  %v5339_v59 = vpack.c.bf16 %v761_v52, %v729_v51  ;;  %v1114_v51 = vld [vmem:[%s7505_s22 + $0x1a68] sm:$0xff] }
 0x36c   : > { %v6363_v60 = vpack.c.bf16 %v1785_v54, %v1753_v53  ;;  %v1146_v52 = vld [vmem:[%s7505_s22 + $0x1b68] sm:$0xff] }
 0x36d   : > { %v2138_v53 = vld [vmem:[%s7505_s22 + $0x3a68] sm:$0xff]  ;;  %v5361_v57 = vpack.c.bf16 %v1146_v52, %v1114_v51  ;;  %v412_v51 = vld [vmem:[%s7505_s22 + $0x478] sm:$0xff] }
 0x36e   : > { %v2170_v54 = vld [vmem:[%s7505_s22 + $0x3b68] sm:$0xff]  ;;  %v444_v52 = vld [vmem:[%s7505_s22 + $0x578] sm:$0xff] }
 0x36f   : > { %v6385_v58 = vpack.c.bf16 %v2170_v54, %v2138_v53  ;;  %v1436_v53 = vld [vmem:[%s7505_s22 + $0x2478] sm:$0xff] }
 0x370   : > { %5320 = vmatpush1.bf16.xpose.msra.mxu0 %v5319_v63  ;;  %v793_v63 = vld [vmem:[%s7505_s22 + $0x1060] sm:$0xff]  ;;  %v1468_v54 = vld [vmem:[%s7505_s22 + $0x2578] sm:$0xff] }
 0x371   : > { %5322 = vmatprep.subr.bf16.mxu0 %v5321_v1  ;;  %v1817_v1 = vld [vmem:[%s7505_s22 + $0x3060] sm:$0xff] }
 0x372   : > { %6344 = vmatpush1.bf16.xpose.msra.mxu1 %v6343_v0  ;;  %v825_v0 = vld [vmem:[%s7505_s22 + $0x1160] sm:$0xff] }
 0x373   : > { %6346 = vmatprep.subr.bf16.mxu1 %v6345_v2  ;;  %v1849_v2 = vld [vmem:[%s7505_s22 + $0x3160] sm:$0xff]  ;;  %v5343_v7 = vpack.c.bf16 %v825_v0, %v793_v63  ;;  %v1178_v63 = vld [vmem:[%s7505_s22 + $0x1c68] sm:$0xff] }
 0x374   : > { %v6367_v8 = vpack.c.bf16 %v1849_v2, %v1817_v1  ;;  %v1210_v0 = vld [vmem:[%s7505_s22 + $0x1d68] sm:$0xff] }
 0x375   : > { %v2202_v1 = vld [vmem:[%s7505_s22 + $0x3c68] sm:$0xff]  ;;  %v5365_v5 = vpack.c.bf16 %v1210_v0, %v1178_v63  ;;  %v476_v63 = vld [vmem:[%s7505_s22 + $0x678] sm:$0xff] }
 0x376   : > { %v2234_v2 = vld [vmem:[%s7505_s22 + $0x3d68] sm:$0xff]  ;;  %v508_v0 = vld [vmem:[%s7505_s22 + $0x778] sm:$0xff] }
 0x377   : > { %v6389_v6 = vpack.c.bf16 %v2234_v2, %v2202_v1  ;;  %v1500_v1 = vld [vmem:[%s7505_s22 + $0x2678] sm:$0xff] }
 0x378   : > { %5324 = vmatpush1.bf16.xpose.msra.mxu0 %v5323_v11  ;;  %v857_v11 = vld [vmem:[%s7505_s22 + $0x1260] sm:$0xff]  ;;  %v1532_v2 = vld [vmem:[%s7505_s22 + $0x2778] sm:$0xff] }
 0x379   : > { %5326 = vmatprep.subr.bf16.mxu0 %v5325_v13  ;;  %v1881_v13 = vld [vmem:[%s7505_s22 + $0x3260] sm:$0xff] }
 0x37a   : > { %6348 = vmatpush1.bf16.xpose.msra.mxu1 %v6347_v12  ;;  %v889_v12 = vld [vmem:[%s7505_s22 + $0x1360] sm:$0xff] }
 0x37b   : > { %6350 = vmatprep.subr.bf16.mxu1 %v6349_v14  ;;  %v1913_v14 = vld [vmem:[%s7505_s22 + $0x3360] sm:$0xff]  ;;  %v5347_v19 = vpack.c.bf16 %v889_v12, %v857_v11  ;;  %v1242_v11 = vld [vmem:[%s7505_s22 + $0x1e68] sm:$0xff] }
 0x37c   : > { %v6371_v20 = vpack.c.bf16 %v1913_v14, %v1881_v13  ;;  %v1274_v12 = vld [vmem:[%s7505_s22 + $0x1f68] sm:$0xff] }
 0x37d   : > { %v2266_v13 = vld [vmem:[%s7505_s22 + $0x3e68] sm:$0xff]  ;;  %v5369_v17 = vpack.c.bf16 %v1274_v12, %v1242_v11  ;;  %v540_v11 = vld [vmem:[%s7505_s22 + $0x878] sm:$0xff] }
 0x37e   : > { %v2298_v14 = vld [vmem:[%s7505_s22 + $0x3f68] sm:$0xff]  ;;  %v572_v12 = vld [vmem:[%s7505_s22 + $0x978] sm:$0xff] }
 0x37f   : > { %v6393_v18 = vpack.c.bf16 %v2298_v14, %v2266_v13  ;;  %v1564_v13 = vld [vmem:[%s7505_s22 + $0x2878] sm:$0xff] }
 0x380   : > { %5328 = vmatpush1.bf16.xpose.msra.mxu0 %v5327_v23  ;;  %v921_v23 = vld [vmem:[%s7505_s22 + $0x1460] sm:$0xff]  ;;  %v1596_v14 = vld [vmem:[%s7505_s22 + $0x2978] sm:$0xff] }
 0x381   : > { %5330 = vmatprep.subr.bf16.mxu0 %v5329_v25  ;;  %v1945_v25 = vld [vmem:[%s7505_s22 + $0x3460] sm:$0xff] }
 0x382   : > { %6352 = vmatpush1.bf16.xpose.msra.mxu1 %v6351_v24  ;;  %v953_v24 = vld [vmem:[%s7505_s22 + $0x1560] sm:$0xff] }
 0x383   : > { %6354 = vmatprep.subr.bf16.mxu1 %v6353_v26  ;;  %v1977_v26 = vld [vmem:[%s7505_s22 + $0x3560] sm:$0xff]  ;;  %v5351_v31 = vpack.c.bf16 %v953_v24, %v921_v23  ;;  %v284_v23 = vld [vmem:[%s7505_s22 + $0x78] sm:$0xff] }
 0x384   : > { %v6375_v32 = vpack.c.bf16 %v1977_v26, %v1945_v25  ;;  %v316_v24 = vld [vmem:[%s7505_s22 + $0x178] sm:$0xff] }
 0x385   : > { %v1308_v25 = vld [vmem:[%s7505_s22 + $0x2078] sm:$0xff]  ;;  %v5373_v29 = vpack.c.bf16 %v316_v24, %v284_v23 }
 0x386   : > { %v1340_v26 = vld [vmem:[%s7505_s22 + $0x2178] sm:$0xff] }
 0x387   : > { %v6397_v30 = vpack.c.bf16 %v1340_v26, %v1308_v25  ;;  %v604_v23 = vld [vmem:[%s7505_s22 + $0xa78] sm:$0xff] }
 0x388   : > { %5332 = vmatpush1.bf16.xpose.msra.mxu0 %v5331_v35  ;;  %v985_v35 = vld [vmem:[%s7505_s22 + $0x1660] sm:$0xff]  ;;  %v636_v24 = vld [vmem:[%s7505_s22 + $0xb78] sm:$0xff] }
 0x389   : > { %5334 = vmatprep.subr.bf16.mxu0 %v5333_v37  ;;  %v2009_v37 = vld [vmem:[%s7505_s22 + $0x3660] sm:$0xff]  ;;  %v1628_v25 = vld [vmem:[%s7505_s22 + $0x2a78] sm:$0xff] }
 0x38a   : > { %6356 = vmatpush1.bf16.xpose.msra.mxu1 %v6355_v36  ;;  %v1017_v36 = vld [vmem:[%s7505_s22 + $0x1760] sm:$0xff]  ;;  %v1660_v26 = vld [vmem:[%s7505_s22 + $0x2b78] sm:$0xff] }
 0x38b   : > { %6358 = vmatprep.subr.bf16.mxu1 %v6357_v38  ;;  %v2041_v38 = vld [vmem:[%s7505_s22 + $0x3760] sm:$0xff]  ;;  %v5355_v43 = vpack.c.bf16 %v1017_v36, %v985_v35  ;;  %v348_v35 = vld [vmem:[%s7505_s22 + $0x278] sm:$0xff] }
 0x38c   : > { %v6379_v44 = vpack.c.bf16 %v2041_v38, %v2009_v37  ;;  %v380_v36 = vld [vmem:[%s7505_s22 + $0x378] sm:$0xff] }
 0x38d   : > { %v1372_v37 = vld [vmem:[%s7505_s22 + $0x2278] sm:$0xff]  ;;  %v5377_v42 = vpack.c.bf16 %v380_v36, %v348_v35 }
 0x38e   : > { %v1404_v38 = vld [vmem:[%s7505_s22 + $0x2378] sm:$0xff] }
 0x38f   : > { %v668_v35 = vld [vmem:[%s7505_s22 + $0xc78] sm:$0xff] }
 0x390   : > { %5336 = vmatpush1.bf16.xpose.msra.mxu0 %v5335_v47  ;;  %v1049_v47 = vld [vmem:[%s7505_s22 + $0x1860] sm:$0xff]  ;;  %v700_v36 = vld [vmem:[%s7505_s22 + $0xd78] sm:$0xff] }
 0x391   : > { %5338 = vmatprep.subr.bf16.mxu0 %v5337_v49  ;;  %v2073_v49 = vld [vmem:[%s7505_s22 + $0x3860] sm:$0xff] }
 0x392   : > { %6360 = vmatpush1.bf16.xpose.msra.mxu1 %v6359_v48  ;;  %v1081_v48 = vld [vmem:[%s7505_s22 + $0x1960] sm:$0xff] }
 0x393   : > { %6362 = vmatprep.subr.bf16.mxu1 %v6361_v50  ;;  %v2105_v50 = vld [vmem:[%s7505_s22 + $0x3960] sm:$0xff]  ;;  %v5359_v55 = vpack.c.bf16 %v1081_v48, %v1049_v47  ;;  %v379_v47 = vld [vmem:[%s7505_s22 + $0x370] sm:$0xff] }
 0x394   : > { %v6383_v56 = vpack.c.bf16 %v2105_v50, %v2073_v49  ;;  %v1371_v48 = vld [vmem:[%s7505_s22 + $0x2270] sm:$0xff]  ;;  %v220_v49 = vld [vmem:[#allocation2 + $0x78] sm:$0xff] }
 0x395   : > { %v1403_v50 = vld [vmem:[%s7505_s22 + $0x2370] sm:$0xff] }
 0x398   : > { %5340 = vmatpush1.bf16.xpose.msra.mxu0 %v5339_v59  ;;  %v1113_v59 = vld [vmem:[%s7505_s22 + $0x1a60] sm:$0xff] }
 0x399   : > { %5342 = vmatprep.subr.bf16.mxu0 %v5341_v61  ;;  %v2137_v61 = vld [vmem:[%s7505_s22 + $0x3a60] sm:$0xff] }
 0x39a   : > { %6364 = vmatpush1.bf16.xpose.msra.mxu1 %v6363_v60  ;;  %v1145_v60 = vld [vmem:[%s7505_s22 + $0x1b60] sm:$0xff] }
 0x39b   : > { %6366 = vmatprep.subr.bf16.mxu1 %v6365_v62  ;;  %v2169_v62 = vld [vmem:[%s7505_s22 + $0x3b60] sm:$0xff]  ;;  %v5363_v3 = vpack.c.bf16 %v1145_v60, %v1113_v59  ;;  %v411_v59 = vld [vmem:[%s7505_s22 + $0x470] sm:$0xff] }
 0x39c   : > { %v6387_v4 = vpack.c.bf16 %v2169_v62, %v2137_v61  ;;  %v443_v60 = vld [vmem:[%s7505_s22 + $0x570] sm:$0xff] }
 0x39d   : > { %v1435_v61 = vld [vmem:[%s7505_s22 + $0x2470] sm:$0xff] }
 0x39e   : > { %v1467_v62 = vld [vmem:[%s7505_s22 + $0x2570] sm:$0xff] }
 0x3a0   : > { %5344 = vmatpush1.bf16.xpose.msra.mxu0 %v5343_v7  ;;  %v1177_v7 = vld [vmem:[%s7505_s22 + $0x1c60] sm:$0xff] }
 0x3a1   : > { %5346 = vmatprep.subr.bf16.mxu0 %v5345_v9  ;;  %v2201_v9 = vld [vmem:[%s7505_s22 + $0x3c60] sm:$0xff] }
 0x3a2   : > { %6368 = vmatpush1.bf16.xpose.msra.mxu1 %v6367_v8  ;;  %v1209_v8 = vld [vmem:[%s7505_s22 + $0x1d60] sm:$0xff] }
 0x3a3   : > { %6370 = vmatprep.subr.bf16.mxu1 %v6369_v10  ;;  %v2233_v10 = vld [vmem:[%s7505_s22 + $0x3d60] sm:$0xff]  ;;  %v5367_v15 = vpack.c.bf16 %v1209_v8, %v1177_v7  ;;  %v475_v7 = vld [vmem:[%s7505_s22 + $0x670] sm:$0xff] }
 0x3a4   : > { %v6391_v16 = vpack.c.bf16 %v2233_v10, %v2201_v9  ;;  %v507_v8 = vld [vmem:[%s7505_s22 + $0x770] sm:$0xff] }
 0x3a5   : > { %v1499_v9 = vld [vmem:[%s7505_s22 + $0x2670] sm:$0xff] }
 0x3a6   : > { %v1531_v10 = vld [vmem:[%s7505_s22 + $0x2770] sm:$0xff] }
 0x3a8   : > { %5348 = vmatpush1.bf16.xpose.msra.mxu0 %v5347_v19  ;;  %v1241_v19 = vld [vmem:[%s7505_s22 + $0x1e60] sm:$0xff] }
 0x3a9   : > { %5350 = vmatprep.subr.bf16.mxu0 %v5349_v21  ;;  %v2265_v21 = vld [vmem:[%s7505_s22 + $0x3e60] sm:$0xff] }
 0x3aa   : > { %6372 = vmatpush1.bf16.xpose.msra.mxu1 %v6371_v20  ;;  %v1273_v20 = vld [vmem:[%s7505_s22 + $0x1f60] sm:$0xff] }
 0x3ab   : > { %6374 = vmatprep.subr.bf16.mxu1 %v6373_v22  ;;  %v2297_v22 = vld [vmem:[%s7505_s22 + $0x3f60] sm:$0xff]  ;;  %v5371_v27 = vpack.c.bf16 %v1273_v20, %v1241_v19  ;;  %v539_v19 = vld [vmem:[%s7505_s22 + $0x870] sm:$0xff] }
 0x3ac   : > { %v6395_v28 = vpack.c.bf16 %v2297_v22, %v2265_v21  ;;  %v571_v20 = vld [vmem:[%s7505_s22 + $0x970] sm:$0xff] }
 0x3ad   : > { %v1563_v21 = vld [vmem:[%s7505_s22 + $0x2870] sm:$0xff] }
 0x3ae   : > { %v1595_v22 = vld [vmem:[%s7505_s22 + $0x2970] sm:$0xff] }
 0x3b0   : > { %5352 = vmatpush1.bf16.xpose.msra.mxu0 %v5351_v31  ;;  %v283_v31 = vld [vmem:[%s7505_s22 + $0x70] sm:$0xff] }
 0x3b1   : > { %5354 = vmatprep.subr.bf16.mxu0 %v5353_v33  ;;  %v1307_v33 = vld [vmem:[%s7505_s22 + $0x2070] sm:$0xff] }
 0x3b2   : > { %6376 = vmatpush1.bf16.xpose.msra.mxu1 %v6375_v32  ;;  %v315_v32 = vld [vmem:[%s7505_s22 + $0x170] sm:$0xff] }
 0x3b3   : > { %6378 = vmatprep.subr.bf16.mxu1 %v6377_v34  ;;  %v1339_v34 = vld [vmem:[%s7505_s22 + $0x2170] sm:$0xff]  ;;  %v5375_v40 = vpack.c.bf16 %v315_v32, %v283_v31 }
 0x3b4   : > { %v6399_v41 = vpack.c.bf16 %v1339_v34, %v1307_v33  ;;  %v603_v31 = vld [vmem:[%s7505_s22 + $0xa70] sm:$0xff] }
 0x3b5   : > { %v635_v32 = vld [vmem:[%s7505_s22 + $0xb70] sm:$0xff] }
 0x3b6   : > { %v1627_v33 = vld [vmem:[%s7505_s22 + $0x2a70] sm:$0xff] }
 0x3b7   : > { %v1659_v34 = vld [vmem:[%s7505_s22 + $0x2b70] sm:$0xff] }
 0x3b8   : > { %5356 = vmatpush1.bf16.xpose.msra.mxu0 %v5355_v43  ;;  %v6401_v43 = vpack.c.bf16 %v1404_v38, %v1372_v37  ;;  %v1692_v37 = vld [vmem:[%s7505_s22 + $0x2c78] sm:$0xff] }
 0x3b9   : > { %5358 = vmatprep.subr.bf16.mxu0 %v5357_v45  ;;  %v347_v45 = vld [vmem:[%s7505_s22 + $0x270] sm:$0xff]  ;;  %v1724_v38 = vld [vmem:[%s7505_s22 + $0x2d78] sm:$0xff] }
 0x3ba   : > { %6380 = vmatpush1.bf16.xpose.msra.mxu1 %v6379_v44  ;;  %v250_v44 = vld [vmem:[#allocation2 + $0x168] sm:$0xff] }
 0x3bb   : > { %6382 = vmatprep.subr.bf16.mxu1 %v6381_v46  ;;  %v249_v46 = vld [vmem:[#allocation2 + $0x160] sm:$0xff] }
 0x3c0   : > { %5360 = vmatpush1.bf16.xpose.msra.mxu0 %v5359_v55  ;;  %v5379_v55 = vpack.c.bf16 %v379_v47, %v347_v45  ;;  %v1691_v45 = vld [vmem:[%s7505_s22 + $0x2c70] sm:$0xff]  ;;  %v732_v47 = vld [vmem:[%s7505_s22 + $0xe78] sm:$0xff] }
 0x3c1   : > { %5362 = vmatprep.subr.bf16.mxu0 %v5361_v57  ;;  %v5381_v57 = vpack.c.bf16 %v444_v52, %v412_v51 }
 0x3c2   : > { %6384 = vmatpush1.bf16.xpose.msra.mxu1 %v6383_v56  ;;  %v6403_v56 = vpack.c.bf16 %v1403_v50, %v1371_v48  ;;  %v764_v48 = vld [vmem:[%s7505_s22 + $0xf78] sm:$0xff] }
 0x3c3   : > { %6386 = vmatprep.subr.bf16.mxu1 %v6385_v58  ;;  %v6405_v58 = vpack.c.bf16 %v1468_v54, %v1436_v53  ;;  %v1788_v50 = vld [vmem:[%s7505_s22 + $0x2f78] sm:$0xff]  ;;  %v5401_v53 = vpack.c.bf16 %v764_v48, %v732_v47 }
 0x3c8   : > { %5364 = vmatpush1.bf16.xpose.msra.mxu0 %v5363_v3  ;;  %v5383_v3 = vpack.c.bf16 %v443_v60, %v411_v59  ;;  %v796_v59 = vld [vmem:[%s7505_s22 + $0x1078] sm:$0xff] }
 0x3c9   : > { %5366 = vmatprep.subr.bf16.mxu0 %v5365_v5  ;;  %v5385_v5 = vpack.c.bf16 %v508_v0, %v476_v63  ;;  %v828_v60 = vld [vmem:[%s7505_s22 + $0x1178] sm:$0xff] }
 0x3ca   : > { %6388 = vmatpush1.bf16.xpose.msra.mxu1 %v6387_v4  ;;  %v6407_v4 = vpack.c.bf16 %v1467_v62, %v1435_v61  ;;  %v1820_v61 = vld [vmem:[%s7505_s22 + $0x3078] sm:$0xff] }
 0x3cb   : > { %6390 = vmatprep.subr.bf16.mxu1 %v6389_v6  ;;  %v6409_v6 = vpack.c.bf16 %v1532_v2, %v1500_v1  ;;  %v1852_v62 = vld [vmem:[%s7505_s22 + $0x3178] sm:$0xff]  ;;  %v5405_v1 = vpack.c.bf16 %v828_v60, %v796_v59 }
 0x3cc   : > { %v6429_v2 = vpack.c.bf16 %v1852_v62, %v1820_v61 }
 0x3d0   : > { %5368 = vmatpush1.bf16.xpose.msra.mxu0 %v5367_v15  ;;  %v5387_v15 = vpack.c.bf16 %v507_v8, %v475_v7  ;;  %v860_v7 = vld [vmem:[%s7505_s22 + $0x1278] sm:$0xff] }
 0x3d1   : > { %5370 = vmatprep.subr.bf16.mxu0 %v5369_v17  ;;  %v5389_v17 = vpack.c.bf16 %v572_v12, %v540_v11  ;;  %v892_v8 = vld [vmem:[%s7505_s22 + $0x1378] sm:$0xff] }
 0x3d2   : > { %6392 = vmatpush1.bf16.xpose.msra.mxu1 %v6391_v16  ;;  %v6411_v16 = vpack.c.bf16 %v1531_v10, %v1499_v9  ;;  %v1884_v9 = vld [vmem:[%s7505_s22 + $0x3278] sm:$0xff] }
 0x3d3   : > { %6394 = vmatprep.subr.bf16.mxu1 %v6393_v18  ;;  %v6413_v18 = vpack.c.bf16 %v1596_v14, %v1564_v13  ;;  %v1916_v10 = vld [vmem:[%s7505_s22 + $0x3378] sm:$0xff]  ;;  %v5409_v13 = vpack.c.bf16 %v892_v8, %v860_v7 }
 0x3d4   : > { %v6433_v14 = vpack.c.bf16 %v1916_v10, %v1884_v9 }
 0x3d8   : > { %5372 = vmatpush1.bf16.xpose.msra.mxu0 %v5371_v27  ;;  %v5391_v27 = vpack.c.bf16 %v571_v20, %v539_v19  ;;  %v924_v19 = vld [vmem:[%s7505_s22 + $0x1478] sm:$0xff] }
 0x3d9   : > { %5374 = vmatprep.subr.bf16.mxu0 %v5373_v29  ;;  %v5393_v29 = vpack.c.bf16 %v636_v24, %v604_v23  ;;  %v956_v20 = vld [vmem:[%s7505_s22 + $0x1578] sm:$0xff] }
 0x3da   : > { %6396 = vmatpush1.bf16.xpose.msra.mxu1 %v6395_v28  ;;  %v6415_v28 = vpack.c.bf16 %v1595_v22, %v1563_v21  ;;  %v1948_v21 = vld [vmem:[%s7505_s22 + $0x3478] sm:$0xff] }
 0x3db   : > { %6398 = vmatprep.subr.bf16.mxu1 %v6397_v30  ;;  %v6417_v30 = vpack.c.bf16 %v1660_v26, %v1628_v25  ;;  %v1980_v22 = vld [vmem:[%s7505_s22 + $0x3578] sm:$0xff]  ;;  %v5413_v25 = vpack.c.bf16 %v956_v20, %v924_v19 }
 0x3dc   : > { %v6437_v26 = vpack.c.bf16 %v1980_v22, %v1948_v21 }
 0x3df   : > { %2844 = vmatmul.mubr.f32.vlgmr.msra.gmra.mrb[0].mxu0 %v217_v39 }
 0x3e0   : > { %5376 = vmatpush1.bf16.xpose.msra.mxu0 %v5375_v40  ;;  %2849 = vmatprep.mubr.f32.mxu0 %v250_v44  ;;  %v6419_v40 = vpack.c.bf16 %v1659_v34, %v1627_v33  ;;  %v2012_v33 = vld [vmem:[%s7505_s22 + $0x3678] sm:$0xff] }
 0x3e1   : > { %4076 = vmatmul.mubr.f32.vlgmr.msra.gmra.mrb[0].mxu1 %v217_v39  ;;  %5378 = vmatprep.subr.bf16.mxu0 %v5377_v42  ;;  %v5395_v39 = vpack.c.bf16 %v635_v32, %v603_v31  ;;  %v6421_v42 = vpack.c.bf16 %v1724_v38, %v1692_v37  ;;  %v988_v31 = vld [vmem:[%s7505_s22 + $0x1678] sm:$0xff] }
 0x3e2   : > { %6400 = vmatpush1.bf16.xpose.msra.mxu1 %v6399_v41  ;;  %4081 = vmatprep.mubr.f32.mxu1 %v250_v44  ;;  %v5397_v41 = vpack.c.bf16 %v700_v36, %v668_v35  ;;  %v699_v44 = vld [vmem:[%s7505_s22 + $0xd70] sm:$0xff]  ;;  %v1020_v32 = vld [vmem:[%s7505_s22 + $0x1778] sm:$0xff] }
 0x3e3   : > { %6402 = vmatprep.subr.bf16.mxu1 %v6401_v43  ;;  %2850 = vmatmul.mubr.f32.gmra.mrb[2].mxu0 %v249_v46  ;;  %v667_v43 = vld [vmem:[%s7505_s22 + $0xc70] sm:$0xff]  ;;  %v2044_v34 = vld [vmem:[%s7505_s22 + $0x3778] sm:$0xff]  ;;  %v5417_v37 = vpack.c.bf16 %v1020_v32, %v988_v31 }
 0x3e4   : > { %2920 = vmatprep.mubr.f32.mxu0 %v220_v49  ;;  %v5399_v51 = vpack.c.bf16 %v699_v44, %v667_v43  ;;  %v6441_v38 = vpack.c.bf16 %v2044_v34, %v2012_v33  ;;  %v1052_v43 = vld [vmem:[%s7505_s22 + $0x1878] sm:$0xff] }
 0x3e5   : > { %4082 = vmatmul.mubr.f32.gmra.mrb[2].mxu1 %v249_v46  ;;  %v1723_v46 = vld [vmem:[%s7505_s22 + $0x2d70] sm:$0xff]  ;;  %v1084_v44 = vld [vmem:[%s7505_s22 + $0x1978] sm:$0xff] }
 0x3e6   : > { %4152 = vmatprep.mubr.f32.mxu1 %v220_v49  ;;  %v1756_v49 = vld [vmem:[%s7505_s22 + $0x2e78] sm:$0xff]  ;;  %v6423_v52 = vpack.c.bf16 %v1723_v46, %v1691_v45 }
 0x3e7   : > { %v6425_v54 = vpack.c.bf16 %v1788_v50, %v1756_v49  ;;  %v2076_v45 = vld [vmem:[%s7505_s22 + $0x3878] sm:$0xff]  ;;  %v5421_v49 = vpack.c.bf16 %v1084_v44, %v1052_v43  ;;  %v219_v43 = vld [vmem:[#allocation2 + $0x70] sm:$0xff] }
 0x3e8   : > { %5380 = vmatpush1.bf16.xpose.msra.mxu0 %v5379_v55  ;;  %v731_v55 = vld [vmem:[%s7505_s22 + $0xe70] sm:$0xff]  ;;  %v2108_v46 = vld [vmem:[%s7505_s22 + $0x3978] sm:$0xff] }
 0x3e9   : > { %5382 = vmatprep.subr.bf16.mxu0 %v5381_v57  ;;  %v1755_v57 = vld [vmem:[%s7505_s22 + $0x2e70] sm:$0xff]  ;;  %v6445_v50 = vpack.c.bf16 %v2108_v46, %v2076_v45 }
 0x3ea   : > { %6404 = vmatpush1.bf16.xpose.msra.mxu1 %v6403_v56  ;;  %v763_v56 = vld [vmem:[%s7505_s22 + $0xf70] sm:$0xff] }
 0x3eb   : > { %6406 = vmatprep.subr.bf16.mxu1 %v6405_v58  ;;  %v1787_v58 = vld [vmem:[%s7505_s22 + $0x2f70] sm:$0xff]  ;;  %v5403_v63 = vpack.c.bf16 %v763_v56, %v731_v55  ;;  %v1116_v55 = vld [vmem:[%s7505_s22 + $0x1a78] sm:$0xff] }
 0x3ec   : > { %v6427_v0 = vpack.c.bf16 %v1787_v58, %v1755_v57  ;;  %v1148_v56 = vld [vmem:[%s7505_s22 + $0x1b78] sm:$0xff] }
 0x3ed   : > { %v2140_v57 = vld [vmem:[%s7505_s22 + $0x3a78] sm:$0xff]  ;;  %v5425_v61 = vpack.c.bf16 %v1148_v56, %v1116_v55  ;;  %v414_v55 = vld [vmem:[%s7505_s22 + $0x488] sm:$0xff] }
 0x3ee   : > { %v2172_v58 = vld [vmem:[%s7505_s22 + $0x3b78] sm:$0xff]  ;;  %v446_v56 = vld [vmem:[%s7505_s22 + $0x588] sm:$0xff] }
 0x3ef   : > { %v6449_v62 = vpack.c.bf16 %v2172_v58, %v2140_v57  ;;  %v1438_v57 = vld [vmem:[%s7505_s22 + $0x2488] sm:$0xff] }
 0x3f0   : > { %5384 = vmatpush1.bf16.xpose.msra.mxu0 %v5383_v3  ;;  %v795_v3 = vld [vmem:[%s7505_s22 + $0x1070] sm:$0xff]  ;;  %v1470_v58 = vld [vmem:[%s7505_s22 + $0x2588] sm:$0xff] }
 0x3f1   : > { %5386 = vmatprep.subr.bf16.mxu0 %v5385_v5  ;;  %v1819_v5 = vld [vmem:[%s7505_s22 + $0x3070] sm:$0xff] }
 0x3f2   : > { %6408 = vmatpush1.bf16.xpose.msra.mxu1 %v6407_v4  ;;  %v827_v4 = vld [vmem:[%s7505_s22 + $0x1170] sm:$0xff] }
 0x3f3   : > { %6410 = vmatprep.subr.bf16.mxu1 %v6409_v6  ;;  %v1851_v6 = vld [vmem:[%s7505_s22 + $0x3170] sm:$0xff]  ;;  %v5407_v11 = vpack.c.bf16 %v827_v4, %v795_v3  ;;  %v1180_v3 = vld [vmem:[%s7505_s22 + $0x1c78] sm:$0xff] }
 0x3f4   : > { %v6431_v12 = vpack.c.bf16 %v1851_v6, %v1819_v5  ;;  %v1212_v4 = vld [vmem:[%s7505_s22 + $0x1d78] sm:$0xff] }
 0x3f5   : > { %v2204_v5 = vld [vmem:[%s7505_s22 + $0x3c78] sm:$0xff]  ;;  %v5429_v9 = vpack.c.bf16 %v1212_v4, %v1180_v3  ;;  %v478_v3 = vld [vmem:[%s7505_s22 + $0x688] sm:$0xff] }
 0x3f6   : > { %v2236_v6 = vld [vmem:[%s7505_s22 + $0x3d78] sm:$0xff]  ;;  %v510_v4 = vld [vmem:[%s7505_s22 + $0x788] sm:$0xff] }
 0x3f7   : > { %v6453_v10 = vpack.c.bf16 %v2236_v6, %v2204_v5  ;;  %v1502_v5 = vld [vmem:[%s7505_s22 + $0x2688] sm:$0xff] }
 0x3f8   : > { %5388 = vmatpush1.bf16.xpose.msra.mxu0 %v5387_v15  ;;  %v859_v15 = vld [vmem:[%s7505_s22 + $0x1270] sm:$0xff]  ;;  %v1534_v6 = vld [vmem:[%s7505_s22 + $0x2788] sm:$0xff] }
 0x3f9   : > { %5390 = vmatprep.subr.bf16.mxu0 %v5389_v17  ;;  %v1883_v17 = vld [vmem:[%s7505_s22 + $0x3270] sm:$0xff] }
 0x3fa   : > { %6412 = vmatpush1.bf16.xpose.msra.mxu1 %v6411_v16  ;;  %v891_v16 = vld [vmem:[%s7505_s22 + $0x1370] sm:$0xff] }
 0x3fb   : > { %6414 = vmatprep.subr.bf16.mxu1 %v6413_v18  ;;  %v1915_v18 = vld [vmem:[%s7505_s22 + $0x3370] sm:$0xff]  ;;  %v5411_v23 = vpack.c.bf16 %v891_v16, %v859_v15  ;;  %v1244_v15 = vld [vmem:[%s7505_s22 + $0x1e78] sm:$0xff] }
 0x3fc   : > { %v6435_v24 = vpack.c.bf16 %v1915_v18, %v1883_v17  ;;  %v1276_v16 = vld [vmem:[%s7505_s22 + $0x1f78] sm:$0xff] }
 0x3fd   : > { %v2268_v17 = vld [vmem:[%s7505_s22 + $0x3e78] sm:$0xff]  ;;  %v5433_v21 = vpack.c.bf16 %v1276_v16, %v1244_v15  ;;  %v542_v15 = vld [vmem:[%s7505_s22 + $0x888] sm:$0xff] }
 0x3fe   : > { %v2300_v18 = vld [vmem:[%s7505_s22 + $0x3f78] sm:$0xff]  ;;  %v574_v16 = vld [vmem:[%s7505_s22 + $0x988] sm:$0xff] }
 0x3ff   : > { %v6457_v22 = vpack.c.bf16 %v2300_v18, %v2268_v17  ;;  %v1566_v17 = vld [vmem:[%s7505_s22 + $0x2888] sm:$0xff] }
 0x400   : > { %5392 = vmatpush1.bf16.xpose.msra.mxu0 %v5391_v27  ;;  %v923_v27 = vld [vmem:[%s7505_s22 + $0x1470] sm:$0xff]  ;;  %v1598_v18 = vld [vmem:[%s7505_s22 + $0x2988] sm:$0xff] }
 0x401   : > { %5394 = vmatprep.subr.bf16.mxu0 %v5393_v29  ;;  %v1947_v29 = vld [vmem:[%s7505_s22 + $0x3470] sm:$0xff] }
 0x402   : > { %6416 = vmatpush1.bf16.xpose.msra.mxu1 %v6415_v28  ;;  %v955_v28 = vld [vmem:[%s7505_s22 + $0x1570] sm:$0xff] }
 0x403   : > { %6418 = vmatprep.subr.bf16.mxu1 %v6417_v30  ;;  %v1979_v30 = vld [vmem:[%s7505_s22 + $0x3570] sm:$0xff]  ;;  %v5415_v35 = vpack.c.bf16 %v955_v28, %v923_v27  ;;  %v286_v27 = vld [vmem:[%s7505_s22 + $0x88] sm:$0xff] }
 0x404   : > { %v6439_v36 = vpack.c.bf16 %v1979_v30, %v1947_v29  ;;  %v318_v28 = vld [vmem:[%s7505_s22 + $0x188] sm:$0xff] }
 0x405   : > { %v1310_v29 = vld [vmem:[%s7505_s22 + $0x2088] sm:$0xff]  ;;  %v5437_v33 = vpack.c.bf16 %v318_v28, %v286_v27 }
 0x406   : > { %v1342_v30 = vld [vmem:[%s7505_s22 + $0x2188] sm:$0xff] }
 0x407   : > { %v6461_v34 = vpack.c.bf16 %v1342_v30, %v1310_v29  ;;  %v606_v27 = vld [vmem:[%s7505_s22 + $0xa88] sm:$0xff] }
 0x408   : > { %5396 = vmatpush1.bf16.xpose.msra.mxu0 %v5395_v39  ;;  %v987_v39 = vld [vmem:[%s7505_s22 + $0x1670] sm:$0xff]  ;;  %v638_v28 = vld [vmem:[%s7505_s22 + $0xb88] sm:$0xff] }
 0x409   : > { %5398 = vmatprep.subr.bf16.mxu0 %v5397_v41  ;;  %v2011_v41 = vld [vmem:[%s7505_s22 + $0x3670] sm:$0xff]  ;;  %v1630_v29 = vld [vmem:[%s7505_s22 + $0x2a88] sm:$0xff] }
 0x40a   : > { %6420 = vmatpush1.bf16.xpose.msra.mxu1 %v6419_v40  ;;  %v1019_v40 = vld [vmem:[%s7505_s22 + $0x1770] sm:$0xff]  ;;  %v1662_v30 = vld [vmem:[%s7505_s22 + $0x2b88] sm:$0xff] }
 0x40b   : > { %6422 = vmatprep.subr.bf16.mxu1 %v6421_v42  ;;  %v2043_v42 = vld [vmem:[%s7505_s22 + $0x3770] sm:$0xff]  ;;  %v5419_v47 = vpack.c.bf16 %v1019_v40, %v987_v39  ;;  %v350_v39 = vld [vmem:[%s7505_s22 + $0x288] sm:$0xff] }
 0x40c   : > { %v6443_v48 = vpack.c.bf16 %v2043_v42, %v2011_v41  ;;  %v382_v40 = vld [vmem:[%s7505_s22 + $0x388] sm:$0xff] }
 0x40d   : > { %v1374_v41 = vld [vmem:[%s7505_s22 + $0x2288] sm:$0xff]  ;;  %v5441_v46 = vpack.c.bf16 %v382_v40, %v350_v39 }
 0x40e   : > { %v1406_v42 = vld [vmem:[%s7505_s22 + $0x2388] sm:$0xff] }
 0x40f   : > { %v670_v39 = vld [vmem:[%s7505_s22 + $0xc88] sm:$0xff] }
 0x410   : > { %5400 = vmatpush1.bf16.xpose.msra.mxu0 %v5399_v51  ;;  %v1051_v51 = vld [vmem:[%s7505_s22 + $0x1870] sm:$0xff]  ;;  %v702_v40 = vld [vmem:[%s7505_s22 + $0xd88] sm:$0xff] }
 0x411   : > { %5402 = vmatprep.subr.bf16.mxu0 %v5401_v53  ;;  %v2075_v53 = vld [vmem:[%s7505_s22 + $0x3870] sm:$0xff] }
 0x412   : > { %6424 = vmatpush1.bf16.xpose.msra.mxu1 %v6423_v52  ;;  %v1083_v52 = vld [vmem:[%s7505_s22 + $0x1970] sm:$0xff] }
 0x413   : > { %6426 = vmatprep.subr.bf16.mxu1 %v6425_v54  ;;  %v2107_v54 = vld [vmem:[%s7505_s22 + $0x3970] sm:$0xff]  ;;  %v5423_v59 = vpack.c.bf16 %v1083_v52, %v1051_v51  ;;  %v381_v51 = vld [vmem:[%s7505_s22 + $0x380] sm:$0xff] }
 0x414   : > { %v6447_v60 = vpack.c.bf16 %v2107_v54, %v2075_v53  ;;  %v1373_v52 = vld [vmem:[%s7505_s22 + $0x2280] sm:$0xff]  ;;  %v222_v53 = vld [vmem:[#allocation2 + $0x88] sm:$0xff] }
 0x415   : > { %v1405_v54 = vld [vmem:[%s7505_s22 + $0x2380] sm:$0xff] }
 0x418   : > { %5404 = vmatpush1.bf16.xpose.msra.mxu0 %v5403_v63  ;;  %v1115_v63 = vld [vmem:[%s7505_s22 + $0x1a70] sm:$0xff] }
 0x419   : > { %5406 = vmatprep.subr.bf16.mxu0 %v5405_v1  ;;  %v2139_v1 = vld [vmem:[%s7505_s22 + $0x3a70] sm:$0xff] }
 0x41a   : > { %6428 = vmatpush1.bf16.xpose.msra.mxu1 %v6427_v0  ;;  %v1147_v0 = vld [vmem:[%s7505_s22 + $0x1b70] sm:$0xff] }
 0x41b   : > { %6430 = vmatprep.subr.bf16.mxu1 %v6429_v2  ;;  %v2171_v2 = vld [vmem:[%s7505_s22 + $0x3b70] sm:$0xff]  ;;  %v5427_v7 = vpack.c.bf16 %v1147_v0, %v1115_v63  ;;  %v413_v63 = vld [vmem:[%s7505_s22 + $0x480] sm:$0xff] }
 0x41c   : > { %v6451_v8 = vpack.c.bf16 %v2171_v2, %v2139_v1  ;;  %v445_v0 = vld [vmem:[%s7505_s22 + $0x580] sm:$0xff] }
 0x41d   : > { %v1437_v1 = vld [vmem:[%s7505_s22 + $0x2480] sm:$0xff] }
 0x41e   : > { %v1469_v2 = vld [vmem:[%s7505_s22 + $0x2580] sm:$0xff] }
 0x420   : > { %5408 = vmatpush1.bf16.xpose.msra.mxu0 %v5407_v11  ;;  %v1179_v11 = vld [vmem:[%s7505_s22 + $0x1c70] sm:$0xff] }
 0x421   : > { %5410 = vmatprep.subr.bf16.mxu0 %v5409_v13  ;;  %v2203_v13 = vld [vmem:[%s7505_s22 + $0x3c70] sm:$0xff] }
 0x422   : > { %6432 = vmatpush1.bf16.xpose.msra.mxu1 %v6431_v12  ;;  %v1211_v12 = vld [vmem:[%s7505_s22 + $0x1d70] sm:$0xff] }
 0x423   : > { %6434 = vmatprep.subr.bf16.mxu1 %v6433_v14  ;;  %v2235_v14 = vld [vmem:[%s7505_s22 + $0x3d70] sm:$0xff]  ;;  %v5431_v19 = vpack.c.bf16 %v1211_v12, %v1179_v11  ;;  %v477_v11 = vld [vmem:[%s7505_s22 + $0x680] sm:$0xff] }
 0x424   : > { %v6455_v20 = vpack.c.bf16 %v2235_v14, %v2203_v13  ;;  %v509_v12 = vld [vmem:[%s7505_s22 + $0x780] sm:$0xff] }
 0x425   : > { %v1501_v13 = vld [vmem:[%s7505_s22 + $0x2680] sm:$0xff] }
 0x426   : > { %v1533_v14 = vld [vmem:[%s7505_s22 + $0x2780] sm:$0xff] }
 0x428   : > { %5412 = vmatpush1.bf16.xpose.msra.mxu0 %v5411_v23  ;;  %v1243_v23 = vld [vmem:[%s7505_s22 + $0x1e70] sm:$0xff] }
 0x429   : > { %5414 = vmatprep.subr.bf16.mxu0 %v5413_v25  ;;  %v2267_v25 = vld [vmem:[%s7505_s22 + $0x3e70] sm:$0xff] }
 0x42a   : > { %6436 = vmatpush1.bf16.xpose.msra.mxu1 %v6435_v24  ;;  %v1275_v24 = vld [vmem:[%s7505_s22 + $0x1f70] sm:$0xff] }
 0x42b   : > { %6438 = vmatprep.subr.bf16.mxu1 %v6437_v26  ;;  %v2299_v26 = vld [vmem:[%s7505_s22 + $0x3f70] sm:$0xff]  ;;  %v5435_v31 = vpack.c.bf16 %v1275_v24, %v1243_v23  ;;  %v541_v23 = vld [vmem:[%s7505_s22 + $0x880] sm:$0xff] }
 0x42c   : > { %v6459_v32 = vpack.c.bf16 %v2299_v26, %v2267_v25  ;;  %v573_v24 = vld [vmem:[%s7505_s22 + $0x980] sm:$0xff] }
 0x42d   : > { %v1565_v25 = vld [vmem:[%s7505_s22 + $0x2880] sm:$0xff] }
 0x42e   : > { %v1597_v26 = vld [vmem:[%s7505_s22 + $0x2980] sm:$0xff] }
 0x430   : > { %5416 = vmatpush1.bf16.xpose.msra.mxu0 %v5415_v35  ;;  %v285_v35 = vld [vmem:[%s7505_s22 + $0x80] sm:$0xff] }
 0x431   : > { %5418 = vmatprep.subr.bf16.mxu0 %v5417_v37  ;;  %v1309_v37 = vld [vmem:[%s7505_s22 + $0x2080] sm:$0xff] }
 0x432   : > { %6440 = vmatpush1.bf16.xpose.msra.mxu1 %v6439_v36  ;;  %v317_v36 = vld [vmem:[%s7505_s22 + $0x180] sm:$0xff] }
 0x433   : > { %6442 = vmatprep.subr.bf16.mxu1 %v6441_v38  ;;  %v1341_v38 = vld [vmem:[%s7505_s22 + $0x2180] sm:$0xff]  ;;  %v5439_v44 = vpack.c.bf16 %v317_v36, %v285_v35 }
 0x434   : > { %v6463_v45 = vpack.c.bf16 %v1341_v38, %v1309_v37  ;;  %v605_v35 = vld [vmem:[%s7505_s22 + $0xa80] sm:$0xff] }
 0x435   : > { %v637_v36 = vld [vmem:[%s7505_s22 + $0xb80] sm:$0xff] }
 0x436   : > { %v1629_v37 = vld [vmem:[%s7505_s22 + $0x2a80] sm:$0xff] }
 0x437   : > { %v1661_v38 = vld [vmem:[%s7505_s22 + $0x2b80] sm:$0xff] }
 0x438   : > { %5420 = vmatpush1.bf16.xpose.msra.mxu0 %v5419_v47  ;;  %v6465_v47 = vpack.c.bf16 %v1406_v42, %v1374_v41  ;;  %v1694_v41 = vld [vmem:[%s7505_s22 + $0x2c88] sm:$0xff] }
 0x439   : > { %5422 = vmatprep.subr.bf16.mxu0 %v5421_v49  ;;  %v349_v49 = vld [vmem:[%s7505_s22 + $0x280] sm:$0xff]  ;;  %v1726_v42 = vld [vmem:[%s7505_s22 + $0x2d88] sm:$0xff] }
 0x43a   : > { %6444 = vmatpush1.bf16.xpose.msra.mxu1 %v6443_v48  ;;  %v252_v48 = vld [vmem:[#allocation2 + $0x178] sm:$0xff] }
 0x43b   : > { %6446 = vmatprep.subr.bf16.mxu1 %v6445_v50  ;;  %v251_v50 = vld [vmem:[#allocation2 + $0x170] sm:$0xff] }
 0x440   : > { %5424 = vmatpush1.bf16.xpose.msra.mxu0 %v5423_v59  ;;  %v5443_v59 = vpack.c.bf16 %v381_v51, %v349_v49  ;;  %v1693_v49 = vld [vmem:[%s7505_s22 + $0x2c80] sm:$0xff]  ;;  %v734_v51 = vld [vmem:[%s7505_s22 + $0xe88] sm:$0xff] }
 0x441   : > { %5426 = vmatprep.subr.bf16.mxu0 %v5425_v61  ;;  %v5445_v61 = vpack.c.bf16 %v446_v56, %v414_v55 }
 0x442   : > { %6448 = vmatpush1.bf16.xpose.msra.mxu1 %v6447_v60  ;;  %v6467_v60 = vpack.c.bf16 %v1405_v54, %v1373_v52  ;;  %v766_v52 = vld [vmem:[%s7505_s22 + $0xf88] sm:$0xff] }
 0x443   : > { %6450 = vmatprep.subr.bf16.mxu1 %v6449_v62  ;;  %v6469_v62 = vpack.c.bf16 %v1470_v58, %v1438_v57  ;;  %v1790_v54 = vld [vmem:[%s7505_s22 + $0x2f88] sm:$0xff]  ;;  %v5465_v57 = vpack.c.bf16 %v766_v52, %v734_v51 }
 0x448   : > { %5428 = vmatpush1.bf16.xpose.msra.mxu0 %v5427_v7  ;;  %v5447_v7 = vpack.c.bf16 %v445_v0, %v413_v63  ;;  %v798_v63 = vld [vmem:[%s7505_s22 + $0x1088] sm:$0xff] }
 0x449   : > { %5430 = vmatprep.subr.bf16.mxu0 %v5429_v9  ;;  %v5449_v9 = vpack.c.bf16 %v510_v4, %v478_v3  ;;  %v830_v0 = vld [vmem:[%s7505_s22 + $0x1188] sm:$0xff] }
 0x44a   : > { %6452 = vmatpush1.bf16.xpose.msra.mxu1 %v6451_v8  ;;  %v6471_v8 = vpack.c.bf16 %v1469_v2, %v1437_v1  ;;  %v1822_v1 = vld [vmem:[%s7505_s22 + $0x3088] sm:$0xff] }
 0x44b   : > { %6454 = vmatprep.subr.bf16.mxu1 %v6453_v10  ;;  %v6473_v10 = vpack.c.bf16 %v1534_v6, %v1502_v5  ;;  %v1854_v2 = vld [vmem:[%s7505_s22 + $0x3188] sm:$0xff]  ;;  %v5469_v5 = vpack.c.bf16 %v830_v0, %v798_v63 }
 0x44c   : > { %v6493_v6 = vpack.c.bf16 %v1854_v2, %v1822_v1 }
 0x450   : > { %5432 = vmatpush1.bf16.xpose.msra.mxu0 %v5431_v19  ;;  %v5451_v19 = vpack.c.bf16 %v509_v12, %v477_v11  ;;  %v862_v11 = vld [vmem:[%s7505_s22 + $0x1288] sm:$0xff] }
 0x451   : > { %5434 = vmatprep.subr.bf16.mxu0 %v5433_v21  ;;  %v5453_v21 = vpack.c.bf16 %v574_v16, %v542_v15  ;;  %v894_v12 = vld [vmem:[%s7505_s22 + $0x1388] sm:$0xff] }
 0x452   : > { %6456 = vmatpush1.bf16.xpose.msra.mxu1 %v6455_v20  ;;  %v6475_v20 = vpack.c.bf16 %v1533_v14, %v1501_v13  ;;  %v1886_v13 = vld [vmem:[%s7505_s22 + $0x3288] sm:$0xff] }
 0x453   : > { %6458 = vmatprep.subr.bf16.mxu1 %v6457_v22  ;;  %v6477_v22 = vpack.c.bf16 %v1598_v18, %v1566_v17  ;;  %v1918_v14 = vld [vmem:[%s7505_s22 + $0x3388] sm:$0xff]  ;;  %v5473_v17 = vpack.c.bf16 %v894_v12, %v862_v11 }
 0x454   : > { %v6497_v18 = vpack.c.bf16 %v1918_v14, %v1886_v13 }
 0x458   : > { %5436 = vmatpush1.bf16.xpose.msra.mxu0 %v5435_v31  ;;  %v5455_v31 = vpack.c.bf16 %v573_v24, %v541_v23  ;;  %v926_v23 = vld [vmem:[%s7505_s22 + $0x1488] sm:$0xff] }
 0x459   : > { %5438 = vmatprep.subr.bf16.mxu0 %v5437_v33  ;;  %v5457_v33 = vpack.c.bf16 %v638_v28, %v606_v27  ;;  %v958_v24 = vld [vmem:[%s7505_s22 + $0x1588] sm:$0xff] }
 0x45a   : > { %6460 = vmatpush1.bf16.xpose.msra.mxu1 %v6459_v32  ;;  %v6479_v32 = vpack.c.bf16 %v1597_v26, %v1565_v25  ;;  %v1950_v25 = vld [vmem:[%s7505_s22 + $0x3488] sm:$0xff] }
 0x45b   : > { %6462 = vmatprep.subr.bf16.mxu1 %v6461_v34  ;;  %v6481_v34 = vpack.c.bf16 %v1662_v30, %v1630_v29  ;;  %v1982_v26 = vld [vmem:[%s7505_s22 + $0x3588] sm:$0xff]  ;;  %v5477_v29 = vpack.c.bf16 %v958_v24, %v926_v23 }
 0x45c   : > { %v6501_v30 = vpack.c.bf16 %v1982_v26, %v1950_v25 }
 0x45f   : > { %2921 = vmatmul.mubr.f32.vlgmr.msra.gmra.mrb[0].mxu0 %v219_v43 }
 0x460   : > { %5440 = vmatpush1.bf16.xpose.msra.mxu0 %v5439_v44  ;;  %2926 = vmatprep.mubr.f32.mxu0 %v252_v48  ;;  %v6483_v44 = vpack.c.bf16 %v1661_v38, %v1629_v37  ;;  %v2014_v37 = vld [vmem:[%s7505_s22 + $0x3688] sm:$0xff] }
 0x461   : > { %4153 = vmatmul.mubr.f32.vlgmr.msra.gmra.mrb[0].mxu1 %v219_v43  ;;  %5442 = vmatprep.subr.bf16.mxu0 %v5441_v46  ;;  %v5459_v43 = vpack.c.bf16 %v637_v36, %v605_v35  ;;  %v6485_v46 = vpack.c.bf16 %v1726_v42, %v1694_v41  ;;  %v990_v35 = vld [vmem:[%s7505_s22 + $0x1688] sm:$0xff] }
 0x462   : > { %6464 = vmatpush1.bf16.xpose.msra.mxu1 %v6463_v45  ;;  %4158 = vmatprep.mubr.f32.mxu1 %v252_v48  ;;  %v5461_v45 = vpack.c.bf16 %v702_v40, %v670_v39  ;;  %v701_v48 = vld [vmem:[%s7505_s22 + $0xd80] sm:$0xff]  ;;  %v1022_v36 = vld [vmem:[%s7505_s22 + $0x1788] sm:$0xff] }
 0x463   : > { %6466 = vmatprep.subr.bf16.mxu1 %v6465_v47  ;;  %2927 = vmatmul.mubr.f32.gmra.mrb[2].mxu0 %v251_v50  ;;  %v669_v47 = vld [vmem:[%s7505_s22 + $0xc80] sm:$0xff]  ;;  %v2046_v38 = vld [vmem:[%s7505_s22 + $0x3788] sm:$0xff]  ;;  %v5481_v41 = vpack.c.bf16 %v1022_v36, %v990_v35 }
 0x464   : > { %2997 = vmatprep.mubr.f32.mxu0 %v222_v53  ;;  %v5463_v55 = vpack.c.bf16 %v701_v48, %v669_v47  ;;  %v6505_v42 = vpack.c.bf16 %v2046_v38, %v2014_v37  ;;  %v1054_v47 = vld [vmem:[%s7505_s22 + $0x1888] sm:$0xff] }
 0x465   : > { %4159 = vmatmul.mubr.f32.gmra.mrb[2].mxu1 %v251_v50  ;;  %v1725_v50 = vld [vmem:[%s7505_s22 + $0x2d80] sm:$0xff]  ;;  %v1086_v48 = vld [vmem:[%s7505_s22 + $0x1988] sm:$0xff] }
 0x466   : > { %4229 = vmatprep.mubr.f32.mxu1 %v222_v53  ;;  %v1758_v53 = vld [vmem:[%s7505_s22 + $0x2e88] sm:$0xff]  ;;  %v6487_v56 = vpack.c.bf16 %v1725_v50, %v1693_v49 }
 0x467   : > { %v6489_v58 = vpack.c.bf16 %v1790_v54, %v1758_v53  ;;  %v2078_v49 = vld [vmem:[%s7505_s22 + $0x3888] sm:$0xff]  ;;  %v5485_v53 = vpack.c.bf16 %v1086_v48, %v1054_v47  ;;  %v221_v47 = vld [vmem:[#allocation2 + $0x80] sm:$0xff] }
 0x468   : > { %5444 = vmatpush1.bf16.xpose.msra.mxu0 %v5443_v59  ;;  %v733_v59 = vld [vmem:[%s7505_s22 + $0xe80] sm:$0xff]  ;;  %v2110_v50 = vld [vmem:[%s7505_s22 + $0x3988] sm:$0xff] }
 0x469   : > { %5446 = vmatprep.subr.bf16.mxu0 %v5445_v61  ;;  %v1757_v61 = vld [vmem:[%s7505_s22 + $0x2e80] sm:$0xff]  ;;  %v6509_v54 = vpack.c.bf16 %v2110_v50, %v2078_v49 }
 0x46a   : > { %6468 = vmatpush1.bf16.xpose.msra.mxu1 %v6467_v60  ;;  %v765_v60 = vld [vmem:[%s7505_s22 + $0xf80] sm:$0xff] }
 0x46b   : > { %6470 = vmatprep.subr.bf16.mxu1 %v6469_v62  ;;  %v1789_v62 = vld [vmem:[%s7505_s22 + $0x2f80] sm:$0xff]  ;;  %v5467_v3 = vpack.c.bf16 %v765_v60, %v733_v59  ;;  %v1118_v59 = vld [vmem:[%s7505_s22 + $0x1a88] sm:$0xff] }
 0x46c   : > { %v6491_v4 = vpack.c.bf16 %v1789_v62, %v1757_v61  ;;  %v1150_v60 = vld [vmem:[%s7505_s22 + $0x1b88] sm:$0xff] }
 0x46d   : > { %v2142_v61 = vld [vmem:[%s7505_s22 + $0x3a88] sm:$0xff]  ;;  %v5489_v1 = vpack.c.bf16 %v1150_v60, %v1118_v59  ;;  %v416_v59 = vld [vmem:[%s7505_s22 + $0x498] sm:$0xff] }
 0x46e   : > { %v2174_v62 = vld [vmem:[%s7505_s22 + $0x3b88] sm:$0xff]  ;;  %v448_v60 = vld [vmem:[%s7505_s22 + $0x598] sm:$0xff] }
 0x46f   : > { %v6513_v2 = vpack.c.bf16 %v2174_v62, %v2142_v61  ;;  %v1440_v61 = vld [vmem:[%s7505_s22 + $0x2498] sm:$0xff] }
 0x470   : > { %5448 = vmatpush1.bf16.xpose.msra.mxu0 %v5447_v7  ;;  %v797_v7 = vld [vmem:[%s7505_s22 + $0x1080] sm:$0xff]  ;;  %v1472_v62 = vld [vmem:[%s7505_s22 + $0x2598] sm:$0xff] }
 0x471   : > { %5450 = vmatprep.subr.bf16.mxu0 %v5449_v9  ;;  %v1821_v9 = vld [vmem:[%s7505_s22 + $0x3080] sm:$0xff] }
 0x472   : > { %6472 = vmatpush1.bf16.xpose.msra.mxu1 %v6471_v8  ;;  %v829_v8 = vld [vmem:[%s7505_s22 + $0x1180] sm:$0xff] }
 0x473   : > { %6474 = vmatprep.subr.bf16.mxu1 %v6473_v10  ;;  %v1853_v10 = vld [vmem:[%s7505_s22 + $0x3180] sm:$0xff]  ;;  %v5471_v15 = vpack.c.bf16 %v829_v8, %v797_v7  ;;  %v1182_v7 = vld [vmem:[%s7505_s22 + $0x1c88] sm:$0xff] }
 0x474   : > { %v6495_v16 = vpack.c.bf16 %v1853_v10, %v1821_v9  ;;  %v1214_v8 = vld [vmem:[%s7505_s22 + $0x1d88] sm:$0xff] }
 0x475   : > { %v2206_v9 = vld [vmem:[%s7505_s22 + $0x3c88] sm:$0xff]  ;;  %v5493_v13 = vpack.c.bf16 %v1214_v8, %v1182_v7  ;;  %v480_v7 = vld [vmem:[%s7505_s22 + $0x698] sm:$0xff] }
 0x476   : > { %v2238_v10 = vld [vmem:[%s7505_s22 + $0x3d88] sm:$0xff]  ;;  %v512_v8 = vld [vmem:[%s7505_s22 + $0x798] sm:$0xff] }
 0x477   : > { %v6517_v14 = vpack.c.bf16 %v2238_v10, %v2206_v9  ;;  %v1504_v9 = vld [vmem:[%s7505_s22 + $0x2698] sm:$0xff] }
 0x478   : > { %5452 = vmatpush1.bf16.xpose.msra.mxu0 %v5451_v19  ;;  %v861_v19 = vld [vmem:[%s7505_s22 + $0x1280] sm:$0xff]  ;;  %v1536_v10 = vld [vmem:[%s7505_s22 + $0x2798] sm:$0xff] }
 0x479   : > { %5454 = vmatprep.subr.bf16.mxu0 %v5453_v21  ;;  %v1885_v21 = vld [vmem:[%s7505_s22 + $0x3280] sm:$0xff] }
 0x47a   : > { %6476 = vmatpush1.bf16.xpose.msra.mxu1 %v6475_v20  ;;  %v893_v20 = vld [vmem:[%s7505_s22 + $0x1380] sm:$0xff] }
 0x47b   : > { %6478 = vmatprep.subr.bf16.mxu1 %v6477_v22  ;;  %v1917_v22 = vld [vmem:[%s7505_s22 + $0x3380] sm:$0xff]  ;;  %v5475_v27 = vpack.c.bf16 %v893_v20, %v861_v19  ;;  %v1246_v19 = vld [vmem:[%s7505_s22 + $0x1e88] sm:$0xff] }
 0x47c   : > { %v6499_v28 = vpack.c.bf16 %v1917_v22, %v1885_v21  ;;  %v1278_v20 = vld [vmem:[%s7505_s22 + $0x1f88] sm:$0xff] }
 0x47d   : > { %v2270_v21 = vld [vmem:[%s7505_s22 + $0x3e88] sm:$0xff]  ;;  %v5497_v25 = vpack.c.bf16 %v1278_v20, %v1246_v19  ;;  %v544_v19 = vld [vmem:[%s7505_s22 + $0x898] sm:$0xff] }
 0x47e   : > { %v2302_v22 = vld [vmem:[%s7505_s22 + $0x3f88] sm:$0xff]  ;;  %v576_v20 = vld [vmem:[%s7505_s22 + $0x998] sm:$0xff] }
 0x47f   : > { %v6521_v26 = vpack.c.bf16 %v2302_v22, %v2270_v21  ;;  %v1568_v21 = vld [vmem:[%s7505_s22 + $0x2898] sm:$0xff] }
 0x480   : > { %5456 = vmatpush1.bf16.xpose.msra.mxu0 %v5455_v31  ;;  %v925_v31 = vld [vmem:[%s7505_s22 + $0x1480] sm:$0xff]  ;;  %v1600_v22 = vld [vmem:[%s7505_s22 + $0x2998] sm:$0xff] }
 0x481   : > { %5458 = vmatprep.subr.bf16.mxu0 %v5457_v33  ;;  %v1949_v33 = vld [vmem:[%s7505_s22 + $0x3480] sm:$0xff] }
 0x482   : > { %6480 = vmatpush1.bf16.xpose.msra.mxu1 %v6479_v32  ;;  %v957_v32 = vld [vmem:[%s7505_s22 + $0x1580] sm:$0xff] }
 0x483   : > { %6482 = vmatprep.subr.bf16.mxu1 %v6481_v34  ;;  %v1981_v34 = vld [vmem:[%s7505_s22 + $0x3580] sm:$0xff]  ;;  %v5479_v39 = vpack.c.bf16 %v957_v32, %v925_v31  ;;  %v288_v31 = vld [vmem:[%s7505_s22 + $0x98] sm:$0xff] }
 0x484   : > { %v6503_v40 = vpack.c.bf16 %v1981_v34, %v1949_v33  ;;  %v320_v32 = vld [vmem:[%s7505_s22 + $0x198] sm:$0xff] }
 0x485   : > { %v1312_v33 = vld [vmem:[%s7505_s22 + $0x2098] sm:$0xff]  ;;  %v5501_v37 = vpack.c.bf16 %v320_v32, %v288_v31 }
 0x486   : > { %v1344_v34 = vld [vmem:[%s7505_s22 + $0x2198] sm:$0xff] }
 0x487   : > { %v6525_v38 = vpack.c.bf16 %v1344_v34, %v1312_v33  ;;  %v608_v31 = vld [vmem:[%s7505_s22 + $0xa98] sm:$0xff] }
 0x488   : > { %5460 = vmatpush1.bf16.xpose.msra.mxu0 %v5459_v43  ;;  %v989_v43 = vld [vmem:[%s7505_s22 + $0x1680] sm:$0xff]  ;;  %v640_v32 = vld [vmem:[%s7505_s22 + $0xb98] sm:$0xff] }
 0x489   : > { %5462 = vmatprep.subr.bf16.mxu0 %v5461_v45  ;;  %v2013_v45 = vld [vmem:[%s7505_s22 + $0x3680] sm:$0xff]  ;;  %v1632_v33 = vld [vmem:[%s7505_s22 + $0x2a98] sm:$0xff] }
 0x48a   : > { %6484 = vmatpush1.bf16.xpose.msra.mxu1 %v6483_v44  ;;  %v1021_v44 = vld [vmem:[%s7505_s22 + $0x1780] sm:$0xff]  ;;  %v1664_v34 = vld [vmem:[%s7505_s22 + $0x2b98] sm:$0xff] }
 0x48b   : > { %6486 = vmatprep.subr.bf16.mxu1 %v6485_v46  ;;  %v2045_v46 = vld [vmem:[%s7505_s22 + $0x3780] sm:$0xff]  ;;  %v5483_v51 = vpack.c.bf16 %v1021_v44, %v989_v43  ;;  %v352_v43 = vld [vmem:[%s7505_s22 + $0x298] sm:$0xff] }
 0x48c   : > { %v6507_v52 = vpack.c.bf16 %v2045_v46, %v2013_v45  ;;  %v384_v44 = vld [vmem:[%s7505_s22 + $0x398] sm:$0xff] }
 0x48d   : > { %v1376_v45 = vld [vmem:[%s7505_s22 + $0x2298] sm:$0xff]  ;;  %v5505_v50 = vpack.c.bf16 %v384_v44, %v352_v43 }
 0x48e   : > { %v1408_v46 = vld [vmem:[%s7505_s22 + $0x2398] sm:$0xff] }
 0x48f   : > { %v672_v43 = vld [vmem:[%s7505_s22 + $0xc98] sm:$0xff] }
 0x490   : > { %5464 = vmatpush1.bf16.xpose.msra.mxu0 %v5463_v55  ;;  %v1053_v55 = vld [vmem:[%s7505_s22 + $0x1880] sm:$0xff]  ;;  %v704_v44 = vld [vmem:[%s7505_s22 + $0xd98] sm:$0xff] }
 0x491   : > { %5466 = vmatprep.subr.bf16.mxu0 %v5465_v57  ;;  %v2077_v57 = vld [vmem:[%s7505_s22 + $0x3880] sm:$0xff] }
 0x492   : > { %6488 = vmatpush1.bf16.xpose.msra.mxu1 %v6487_v56  ;;  %v1085_v56 = vld [vmem:[%s7505_s22 + $0x1980] sm:$0xff] }
 0x493   : > { %6490 = vmatprep.subr.bf16.mxu1 %v6489_v58  ;;  %v2109_v58 = vld [vmem:[%s7505_s22 + $0x3980] sm:$0xff]  ;;  %v5487_v63 = vpack.c.bf16 %v1085_v56, %v1053_v55  ;;  %v383_v55 = vld [vmem:[%s7505_s22 + $0x390] sm:$0xff] }
 0x494   : > { %v6511_v0 = vpack.c.bf16 %v2109_v58, %v2077_v57  ;;  %v1375_v56 = vld [vmem:[%s7505_s22 + $0x2290] sm:$0xff]  ;;  %v224_v57 = vld [vmem:[#allocation2 + $0x98] sm:$0xff] }
 0x495   : > { %v1407_v58 = vld [vmem:[%s7505_s22 + $0x2390] sm:$0xff] }
 0x498   : > { %5468 = vmatpush1.bf16.xpose.msra.mxu0 %v5467_v3  ;;  %v1117_v3 = vld [vmem:[%s7505_s22 + $0x1a80] sm:$0xff] }
 0x499   : > { %5470 = vmatprep.subr.bf16.mxu0 %v5469_v5  ;;  %v2141_v5 = vld [vmem:[%s7505_s22 + $0x3a80] sm:$0xff] }
 0x49a   : > { %6492 = vmatpush1.bf16.xpose.msra.mxu1 %v6491_v4  ;;  %v1149_v4 = vld [vmem:[%s7505_s22 + $0x1b80] sm:$0xff] }
 0x49b   : > { %6494 = vmatprep.subr.bf16.mxu1 %v6493_v6  ;;  %v2173_v6 = vld [vmem:[%s7505_s22 + $0x3b80] sm:$0xff]  ;;  %v5491_v11 = vpack.c.bf16 %v1149_v4, %v1117_v3  ;;  %v415_v3 = vld [vmem:[%s7505_s22 + $0x490] sm:$0xff] }
 0x49c   : > { %v6515_v12 = vpack.c.bf16 %v2173_v6, %v2141_v5  ;;  %v447_v4 = vld [vmem:[%s7505_s22 + $0x590] sm:$0xff] }
 0x49d   : > { %v1439_v5 = vld [vmem:[%s7505_s22 + $0x2490] sm:$0xff] }
 0x49e   : > { %v1471_v6 = vld [vmem:[%s7505_s22 + $0x2590] sm:$0xff] }
 0x4a0   : > { %5472 = vmatpush1.bf16.xpose.msra.mxu0 %v5471_v15  ;;  %v1181_v15 = vld [vmem:[%s7505_s22 + $0x1c80] sm:$0xff] }
 0x4a1   : > { %5474 = vmatprep.subr.bf16.mxu0 %v5473_v17  ;;  %v2205_v17 = vld [vmem:[%s7505_s22 + $0x3c80] sm:$0xff] }
 0x4a2   : > { %6496 = vmatpush1.bf16.xpose.msra.mxu1 %v6495_v16  ;;  %v1213_v16 = vld [vmem:[%s7505_s22 + $0x1d80] sm:$0xff] }
 0x4a3   : > { %6498 = vmatprep.subr.bf16.mxu1 %v6497_v18  ;;  %v2237_v18 = vld [vmem:[%s7505_s22 + $0x3d80] sm:$0xff]  ;;  %v5495_v23 = vpack.c.bf16 %v1213_v16, %v1181_v15  ;;  %v479_v15 = vld [vmem:[%s7505_s22 + $0x690] sm:$0xff] }
 0x4a4   : > { %v6519_v24 = vpack.c.bf16 %v2237_v18, %v2205_v17  ;;  %v511_v16 = vld [vmem:[%s7505_s22 + $0x790] sm:$0xff] }
 0x4a5   : > { %v1503_v17 = vld [vmem:[%s7505_s22 + $0x2690] sm:$0xff] }
 0x4a6   : > { %v1535_v18 = vld [vmem:[%s7505_s22 + $0x2790] sm:$0xff] }
 0x4a8   : > { %5476 = vmatpush1.bf16.xpose.msra.mxu0 %v5475_v27  ;;  %v1245_v27 = vld [vmem:[%s7505_s22 + $0x1e80] sm:$0xff] }
 0x4a9   : > { %5478 = vmatprep.subr.bf16.mxu0 %v5477_v29  ;;  %v2269_v29 = vld [vmem:[%s7505_s22 + $0x3e80] sm:$0xff] }
 0x4aa   : > { %6500 = vmatpush1.bf16.xpose.msra.mxu1 %v6499_v28  ;;  %v1277_v28 = vld [vmem:[%s7505_s22 + $0x1f80] sm:$0xff] }
 0x4ab   : > { %6502 = vmatprep.subr.bf16.mxu1 %v6501_v30  ;;  %v2301_v30 = vld [vmem:[%s7505_s22 + $0x3f80] sm:$0xff]  ;;  %v5499_v35 = vpack.c.bf16 %v1277_v28, %v1245_v27  ;;  %v543_v27 = vld [vmem:[%s7505_s22 + $0x890] sm:$0xff] }
 0x4ac   : > { %v6523_v36 = vpack.c.bf16 %v2301_v30, %v2269_v29  ;;  %v575_v28 = vld [vmem:[%s7505_s22 + $0x990] sm:$0xff] }
 0x4ad   : > { %v1567_v29 = vld [vmem:[%s7505_s22 + $0x2890] sm:$0xff] }
 0x4ae   : > { %v1599_v30 = vld [vmem:[%s7505_s22 + $0x2990] sm:$0xff] }
 0x4b0   : > { %5480 = vmatpush1.bf16.xpose.msra.mxu0 %v5479_v39  ;;  %v287_v39 = vld [vmem:[%s7505_s22 + $0x90] sm:$0xff] }
 0x4b1   : > { %5482 = vmatprep.subr.bf16.mxu0 %v5481_v41  ;;  %v1311_v41 = vld [vmem:[%s7505_s22 + $0x2090] sm:$0xff] }
 0x4b2   : > { %6504 = vmatpush1.bf16.xpose.msra.mxu1 %v6503_v40  ;;  %v319_v40 = vld [vmem:[%s7505_s22 + $0x190] sm:$0xff] }
 0x4b3   : > { %6506 = vmatprep.subr.bf16.mxu1 %v6505_v42  ;;  %v1343_v42 = vld [vmem:[%s7505_s22 + $0x2190] sm:$0xff]  ;;  %v5503_v48 = vpack.c.bf16 %v319_v40, %v287_v39 }
 0x4b4   : > { %v6527_v49 = vpack.c.bf16 %v1343_v42, %v1311_v41  ;;  %v607_v39 = vld [vmem:[%s7505_s22 + $0xa90] sm:$0xff] }
 0x4b5   : > { %v639_v40 = vld [vmem:[%s7505_s22 + $0xb90] sm:$0xff] }
 0x4b6   : > { %v1631_v41 = vld [vmem:[%s7505_s22 + $0x2a90] sm:$0xff] }
 0x4b7   : > { %v1663_v42 = vld [vmem:[%s7505_s22 + $0x2b90] sm:$0xff] }
 0x4b8   : > { %5484 = vmatpush1.bf16.xpose.msra.mxu0 %v5483_v51  ;;  %v6529_v51 = vpack.c.bf16 %v1408_v46, %v1376_v45  ;;  %v1696_v45 = vld [vmem:[%s7505_s22 + $0x2c98] sm:$0xff] }
 0x4b9   : > { %5486 = vmatprep.subr.bf16.mxu0 %v5485_v53  ;;  %v351_v53 = vld [vmem:[%s7505_s22 + $0x290] sm:$0xff]  ;;  %v1728_v46 = vld [vmem:[%s7505_s22 + $0x2d98] sm:$0xff] }
 0x4ba   : > { %6508 = vmatpush1.bf16.xpose.msra.mxu1 %v6507_v52  ;;  %v254_v52 = vld [vmem:[#allocation2 + $0x188] sm:$0xff] }
 0x4bb   : > { %6510 = vmatprep.subr.bf16.mxu1 %v6509_v54  ;;  %v253_v54 = vld [vmem:[#allocation2 + $0x180] sm:$0xff] }
 0x4c0   : > { %5488 = vmatpush1.bf16.xpose.msra.mxu0 %v5487_v63  ;;  %v5507_v63 = vpack.c.bf16 %v383_v55, %v351_v53  ;;  %v1695_v53 = vld [vmem:[%s7505_s22 + $0x2c90] sm:$0xff]  ;;  %v736_v55 = vld [vmem:[%s7505_s22 + $0xe98] sm:$0xff] }
 0x4c1   : > { %5490 = vmatprep.subr.bf16.mxu0 %v5489_v1  ;;  %v5509_v1 = vpack.c.bf16 %v448_v60, %v416_v59 }
 0x4c2   : > { %6512 = vmatpush1.bf16.xpose.msra.mxu1 %v6511_v0  ;;  %v6531_v0 = vpack.c.bf16 %v1407_v58, %v1375_v56  ;;  %v768_v56 = vld [vmem:[%s7505_s22 + $0xf98] sm:$0xff] }
 0x4c3   : > { %6514 = vmatprep.subr.bf16.mxu1 %v6513_v2  ;;  %v6533_v2 = vpack.c.bf16 %v1472_v62, %v1440_v61  ;;  %v1792_v58 = vld [vmem:[%s7505_s22 + $0x2f98] sm:$0xff]  ;;  %v5529_v61 = vpack.c.bf16 %v768_v56, %v736_v55 }
 0x4c8   : > { %5492 = vmatpush1.bf16.xpose.msra.mxu0 %v5491_v11  ;;  %v5511_v11 = vpack.c.bf16 %v447_v4, %v415_v3  ;;  %v800_v3 = vld [vmem:[%s7505_s22 + $0x1098] sm:$0xff] }
 0x4c9   : > { %5494 = vmatprep.subr.bf16.mxu0 %v5493_v13  ;;  %v5513_v13 = vpack.c.bf16 %v512_v8, %v480_v7  ;;  %v832_v4 = vld [vmem:[%s7505_s22 + $0x1198] sm:$0xff] }
 0x4ca   : > { %6516 = vmatpush1.bf16.xpose.msra.mxu1 %v6515_v12  ;;  %v6535_v12 = vpack.c.bf16 %v1471_v6, %v1439_v5  ;;  %v1824_v5 = vld [vmem:[%s7505_s22 + $0x3098] sm:$0xff] }
 0x4cb   : > { %6518 = vmatprep.subr.bf16.mxu1 %v6517_v14  ;;  %v6537_v14 = vpack.c.bf16 %v1536_v10, %v1504_v9  ;;  %v1856_v6 = vld [vmem:[%s7505_s22 + $0x3198] sm:$0xff]  ;;  %v5533_v9 = vpack.c.bf16 %v832_v4, %v800_v3 }
 0x4cc   : > { %v6557_v10 = vpack.c.bf16 %v1856_v6, %v1824_v5 }
 0x4d0   : > { %5496 = vmatpush1.bf16.xpose.msra.mxu0 %v5495_v23  ;;  %v5515_v23 = vpack.c.bf16 %v511_v16, %v479_v15  ;;  %v864_v15 = vld [vmem:[%s7505_s22 + $0x1298] sm:$0xff] }
 0x4d1   : > { %5498 = vmatprep.subr.bf16.mxu0 %v5497_v25  ;;  %v5517_v25 = vpack.c.bf16 %v576_v20, %v544_v19  ;;  %v896_v16 = vld [vmem:[%s7505_s22 + $0x1398] sm:$0xff] }
 0x4d2   : > { %6520 = vmatpush1.bf16.xpose.msra.mxu1 %v6519_v24  ;;  %v6539_v24 = vpack.c.bf16 %v1535_v18, %v1503_v17  ;;  %v1888_v17 = vld [vmem:[%s7505_s22 + $0x3298] sm:$0xff] }
 0x4d3   : > { %6522 = vmatprep.subr.bf16.mxu1 %v6521_v26  ;;  %v6541_v26 = vpack.c.bf16 %v1600_v22, %v1568_v21  ;;  %v1920_v18 = vld [vmem:[%s7505_s22 + $0x3398] sm:$0xff]  ;;  %v5537_v21 = vpack.c.bf16 %v896_v16, %v864_v15 }
 0x4d4   : > { %v6561_v22 = vpack.c.bf16 %v1920_v18, %v1888_v17 }
 0x4d8   : > { %5500 = vmatpush1.bf16.xpose.msra.mxu0 %v5499_v35  ;;  %v5519_v35 = vpack.c.bf16 %v575_v28, %v543_v27  ;;  %v928_v27 = vld [vmem:[%s7505_s22 + $0x1498] sm:$0xff] }
 0x4d9   : > { %5502 = vmatprep.subr.bf16.mxu0 %v5501_v37  ;;  %v5521_v37 = vpack.c.bf16 %v640_v32, %v608_v31  ;;  %v960_v28 = vld [vmem:[%s7505_s22 + $0x1598] sm:$0xff] }
 0x4da   : > { %6524 = vmatpush1.bf16.xpose.msra.mxu1 %v6523_v36  ;;  %v6543_v36 = vpack.c.bf16 %v1599_v30, %v1567_v29  ;;  %v1952_v29 = vld [vmem:[%s7505_s22 + $0x3498] sm:$0xff] }
 0x4db   : > { %6526 = vmatprep.subr.bf16.mxu1 %v6525_v38  ;;  %v6545_v38 = vpack.c.bf16 %v1664_v34, %v1632_v33  ;;  %v1984_v30 = vld [vmem:[%s7505_s22 + $0x3598] sm:$0xff]  ;;  %v5541_v33 = vpack.c.bf16 %v960_v28, %v928_v27 }
 0x4dc   : > { %v6565_v34 = vpack.c.bf16 %v1984_v30, %v1952_v29 }
 0x4df   : > { %2998 = vmatmul.mubr.f32.vlgmr.msra.gmra.mrb[0].mxu0 %v221_v47 }
 0x4e0   : > { %5504 = vmatpush1.bf16.xpose.msra.mxu0 %v5503_v48  ;;  %3003 = vmatprep.mubr.f32.mxu0 %v254_v52  ;;  %v6547_v48 = vpack.c.bf16 %v1663_v42, %v1631_v41  ;;  %v2016_v41 = vld [vmem:[%s7505_s22 + $0x3698] sm:$0xff] }
 0x4e1   : > { %4230 = vmatmul.mubr.f32.vlgmr.msra.gmra.mrb[0].mxu1 %v221_v47  ;;  %5506 = vmatprep.subr.bf16.mxu0 %v5505_v50  ;;  %v5523_v47 = vpack.c.bf16 %v639_v40, %v607_v39  ;;  %v6549_v50 = vpack.c.bf16 %v1728_v46, %v1696_v45  ;;  %v992_v39 = vld [vmem:[%s7505_s22 + $0x1698] sm:$0xff] }
 0x4e2   : > { %6528 = vmatpush1.bf16.xpose.msra.mxu1 %v6527_v49  ;;  %4235 = vmatprep.mubr.f32.mxu1 %v254_v52  ;;  %v5525_v49 = vpack.c.bf16 %v704_v44, %v672_v43  ;;  %v703_v52 = vld [vmem:[%s7505_s22 + $0xd90] sm:$0xff]  ;;  %v1024_v40 = vld [vmem:[%s7505_s22 + $0x1798] sm:$0xff] }
 0x4e3   : > { %6530 = vmatprep.subr.bf16.mxu1 %v6529_v51  ;;  %3004 = vmatmul.mubr.f32.gmra.mrb[2].mxu0 %v253_v54  ;;  %v671_v51 = vld [vmem:[%s7505_s22 + $0xc90] sm:$0xff]  ;;  %v2048_v42 = vld [vmem:[%s7505_s22 + $0x3798] sm:$0xff]  ;;  %v5545_v45 = vpack.c.bf16 %v1024_v40, %v992_v39 }
 0x4e4   : > { %3074 = vmatprep.mubr.f32.mxu0 %v224_v57  ;;  %v5527_v59 = vpack.c.bf16 %v703_v52, %v671_v51  ;;  %v6569_v46 = vpack.c.bf16 %v2048_v42, %v2016_v41  ;;  %v1056_v51 = vld [vmem:[%s7505_s22 + $0x1898] sm:$0xff] }
 0x4e5   : > { %4236 = vmatmul.mubr.f32.gmra.mrb[2].mxu1 %v253_v54  ;;  %v1727_v54 = vld [vmem:[%s7505_s22 + $0x2d90] sm:$0xff]  ;;  %v1088_v52 = vld [vmem:[%s7505_s22 + $0x1998] sm:$0xff] }
 0x4e6   : > { %4306 = vmatprep.mubr.f32.mxu1 %v224_v57  ;;  %v1760_v57 = vld [vmem:[%s7505_s22 + $0x2e98] sm:$0xff]  ;;  %v6551_v60 = vpack.c.bf16 %v1727_v54, %v1695_v53 }
 0x4e7   : > { %v6553_v62 = vpack.c.bf16 %v1792_v58, %v1760_v57  ;;  %v2080_v53 = vld [vmem:[%s7505_s22 + $0x3898] sm:$0xff]  ;;  %v5549_v57 = vpack.c.bf16 %v1088_v52, %v1056_v51  ;;  %v223_v51 = vld [vmem:[#allocation2 + $0x90] sm:$0xff] }
 0x4e8   : > { %5508 = vmatpush1.bf16.xpose.msra.mxu0 %v5507_v63  ;;  %v735_v63 = vld [vmem:[%s7505_s22 + $0xe90] sm:$0xff]  ;;  %v2112_v54 = vld [vmem:[%s7505_s22 + $0x3998] sm:$0xff] }
 0x4e9   : > { %5510 = vmatprep.subr.bf16.mxu0 %v5509_v1  ;;  %v1759_v1 = vld [vmem:[%s7505_s22 + $0x2e90] sm:$0xff]  ;;  %v6573_v58 = vpack.c.bf16 %v2112_v54, %v2080_v53 }
 0x4ea   : > { %6532 = vmatpush1.bf16.xpose.msra.mxu1 %v6531_v0  ;;  %v767_v0 = vld [vmem:[%s7505_s22 + $0xf90] sm:$0xff] }
 0x4eb   : > { %6534 = vmatprep.subr.bf16.mxu1 %v6533_v2  ;;  %v1791_v2 = vld [vmem:[%s7505_s22 + $0x2f90] sm:$0xff]  ;;  %v5531_v7 = vpack.c.bf16 %v767_v0, %v735_v63  ;;  %v1120_v63 = vld [vmem:[%s7505_s22 + $0x1a98] sm:$0xff] }
 0x4ec   : > { %v6555_v8 = vpack.c.bf16 %v1791_v2, %v1759_v1  ;;  %v1152_v0 = vld [vmem:[%s7505_s22 + $0x1b98] sm:$0xff] }
 0x4ed   : > { %v2144_v1 = vld [vmem:[%s7505_s22 + $0x3a98] sm:$0xff]  ;;  %v5553_v5 = vpack.c.bf16 %v1152_v0, %v1120_v63  ;;  %v418_v63 = vld [vmem:[%s7505_s22 + $0x4a8] sm:$0xff] }
 0x4ee   : > { %v2176_v2 = vld [vmem:[%s7505_s22 + $0x3b98] sm:$0xff]  ;;  %v450_v0 = vld [vmem:[%s7505_s22 + $0x5a8] sm:$0xff] }
 0x4ef   : > { %v6577_v6 = vpack.c.bf16 %v2176_v2, %v2144_v1  ;;  %v1442_v1 = vld [vmem:[%s7505_s22 + $0x24a8] sm:$0xff] }
 0x4f0   : > { %5512 = vmatpush1.bf16.xpose.msra.mxu0 %v5511_v11  ;;  %v799_v11 = vld [vmem:[%s7505_s22 + $0x1090] sm:$0xff]  ;;  %v1474_v2 = vld [vmem:[%s7505_s22 + $0x25a8] sm:$0xff] }
 0x4f1   : > { %5514 = vmatprep.subr.bf16.mxu0 %v5513_v13  ;;  %v1823_v13 = vld [vmem:[%s7505_s22 + $0x3090] sm:$0xff] }
 0x4f2   : > { %6536 = vmatpush1.bf16.xpose.msra.mxu1 %v6535_v12  ;;  %v831_v12 = vld [vmem:[%s7505_s22 + $0x1190] sm:$0xff] }
 0x4f3   : > { %6538 = vmatprep.subr.bf16.mxu1 %v6537_v14  ;;  %v1855_v14 = vld [vmem:[%s7505_s22 + $0x3190] sm:$0xff]  ;;  %v5535_v19 = vpack.c.bf16 %v831_v12, %v799_v11  ;;  %v1184_v11 = vld [vmem:[%s7505_s22 + $0x1c98] sm:$0xff] }
 0x4f4   : > { %v6559_v20 = vpack.c.bf16 %v1855_v14, %v1823_v13  ;;  %v1216_v12 = vld [vmem:[%s7505_s22 + $0x1d98] sm:$0xff] }
 0x4f5   : > { %v2208_v13 = vld [vmem:[%s7505_s22 + $0x3c98] sm:$0xff]  ;;  %v5557_v17 = vpack.c.bf16 %v1216_v12, %v1184_v11  ;;  %v482_v11 = vld [vmem:[%s7505_s22 + $0x6a8] sm:$0xff] }
 0x4f6   : > { %v2240_v14 = vld [vmem:[%s7505_s22 + $0x3d98] sm:$0xff]  ;;  %v514_v12 = vld [vmem:[%s7505_s22 + $0x7a8] sm:$0xff] }
 0x4f7   : > { %v6581_v18 = vpack.c.bf16 %v2240_v14, %v2208_v13  ;;  %v1506_v13 = vld [vmem:[%s7505_s22 + $0x26a8] sm:$0xff] }
 0x4f8   : > { %5516 = vmatpush1.bf16.xpose.msra.mxu0 %v5515_v23  ;;  %v863_v23 = vld [vmem:[%s7505_s22 + $0x1290] sm:$0xff]  ;;  %v1538_v14 = vld [vmem:[%s7505_s22 + $0x27a8] sm:$0xff] }
 0x4f9   : > { %5518 = vmatprep.subr.bf16.mxu0 %v5517_v25  ;;  %v1887_v25 = vld [vmem:[%s7505_s22 + $0x3290] sm:$0xff] }
 0x4fa   : > { %6540 = vmatpush1.bf16.xpose.msra.mxu1 %v6539_v24  ;;  %v895_v24 = vld [vmem:[%s7505_s22 + $0x1390] sm:$0xff] }
 0x4fb   : > { %6542 = vmatprep.subr.bf16.mxu1 %v6541_v26  ;;  %v1919_v26 = vld [vmem:[%s7505_s22 + $0x3390] sm:$0xff]  ;;  %v5539_v31 = vpack.c.bf16 %v895_v24, %v863_v23  ;;  %v1248_v23 = vld [vmem:[%s7505_s22 + $0x1e98] sm:$0xff] }
 0x4fc   : > { %v6563_v32 = vpack.c.bf16 %v1919_v26, %v1887_v25  ;;  %v1280_v24 = vld [vmem:[%s7505_s22 + $0x1f98] sm:$0xff] }
 0x4fd   : > { %v2272_v25 = vld [vmem:[%s7505_s22 + $0x3e98] sm:$0xff]  ;;  %v5561_v29 = vpack.c.bf16 %v1280_v24, %v1248_v23  ;;  %v546_v23 = vld [vmem:[%s7505_s22 + $0x8a8] sm:$0xff] }
 0x4fe   : > { %v2304_v26 = vld [vmem:[%s7505_s22 + $0x3f98] sm:$0xff]  ;;  %v578_v24 = vld [vmem:[%s7505_s22 + $0x9a8] sm:$0xff] }
 0x4ff   : > { %v6585_v30 = vpack.c.bf16 %v2304_v26, %v2272_v25  ;;  %v1570_v25 = vld [vmem:[%s7505_s22 + $0x28a8] sm:$0xff] }
 0x500   : > { %5520 = vmatpush1.bf16.xpose.msra.mxu0 %v5519_v35  ;;  %v927_v35 = vld [vmem:[%s7505_s22 + $0x1490] sm:$0xff]  ;;  %v1602_v26 = vld [vmem:[%s7505_s22 + $0x29a8] sm:$0xff] }
 0x501   : > { %5522 = vmatprep.subr.bf16.mxu0 %v5521_v37  ;;  %v1951_v37 = vld [vmem:[%s7505_s22 + $0x3490] sm:$0xff] }
 0x502   : > { %6544 = vmatpush1.bf16.xpose.msra.mxu1 %v6543_v36  ;;  %v959_v36 = vld [vmem:[%s7505_s22 + $0x1590] sm:$0xff] }
 0x503   : > { %6546 = vmatprep.subr.bf16.mxu1 %v6545_v38  ;;  %v1983_v38 = vld [vmem:[%s7505_s22 + $0x3590] sm:$0xff]  ;;  %v5543_v43 = vpack.c.bf16 %v959_v36, %v927_v35  ;;  %v290_v35 = vld [vmem:[%s7505_s22 + $0xa8] sm:$0xff] }
 0x504   : > { %v6567_v44 = vpack.c.bf16 %v1983_v38, %v1951_v37  ;;  %v322_v36 = vld [vmem:[%s7505_s22 + $0x1a8] sm:$0xff] }
 0x505   : > { %v1314_v37 = vld [vmem:[%s7505_s22 + $0x20a8] sm:$0xff]  ;;  %v5565_v41 = vpack.c.bf16 %v322_v36, %v290_v35 }
 0x506   : > { %v1346_v38 = vld [vmem:[%s7505_s22 + $0x21a8] sm:$0xff] }
 0x507   : > { %v6589_v42 = vpack.c.bf16 %v1346_v38, %v1314_v37  ;;  %v610_v35 = vld [vmem:[%s7505_s22 + $0xaa8] sm:$0xff] }
 0x508   : > { %5524 = vmatpush1.bf16.xpose.msra.mxu0 %v5523_v47  ;;  %v991_v47 = vld [vmem:[%s7505_s22 + $0x1690] sm:$0xff]  ;;  %v642_v36 = vld [vmem:[%s7505_s22 + $0xba8] sm:$0xff] }
 0x509   : > { %5526 = vmatprep.subr.bf16.mxu0 %v5525_v49  ;;  %v2015_v49 = vld [vmem:[%s7505_s22 + $0x3690] sm:$0xff]  ;;  %v1634_v37 = vld [vmem:[%s7505_s22 + $0x2aa8] sm:$0xff] }
 0x50a   : > { %6548 = vmatpush1.bf16.xpose.msra.mxu1 %v6547_v48  ;;  %v1023_v48 = vld [vmem:[%s7505_s22 + $0x1790] sm:$0xff]  ;;  %v1666_v38 = vld [vmem:[%s7505_s22 + $0x2ba8] sm:$0xff] }
 0x50b   : > { %6550 = vmatprep.subr.bf16.mxu1 %v6549_v50  ;;  %v2047_v50 = vld [vmem:[%s7505_s22 + $0x3790] sm:$0xff]  ;;  %v5547_v55 = vpack.c.bf16 %v1023_v48, %v991_v47  ;;  %v354_v47 = vld [vmem:[%s7505_s22 + $0x2a8] sm:$0xff] }
 0x50c   : > { %v6571_v56 = vpack.c.bf16 %v2047_v50, %v2015_v49  ;;  %v386_v48 = vld [vmem:[%s7505_s22 + $0x3a8] sm:$0xff] }
 0x50d   : > { %v1378_v49 = vld [vmem:[%s7505_s22 + $0x22a8] sm:$0xff]  ;;  %v5569_v54 = vpack.c.bf16 %v386_v48, %v354_v47 }
 0x50e   : > { %v1410_v50 = vld [vmem:[%s7505_s22 + $0x23a8] sm:$0xff] }
 0x50f   : > { %v674_v47 = vld [vmem:[%s7505_s22 + $0xca8] sm:$0xff] }
 0x510   : > { %5528 = vmatpush1.bf16.xpose.msra.mxu0 %v5527_v59  ;;  %v1055_v59 = vld [vmem:[%s7505_s22 + $0x1890] sm:$0xff]  ;;  %v706_v48 = vld [vmem:[%s7505_s22 + $0xda8] sm:$0xff] }
 0x511   : > { %5530 = vmatprep.subr.bf16.mxu0 %v5529_v61  ;;  %v2079_v61 = vld [vmem:[%s7505_s22 + $0x3890] sm:$0xff] }
 0x512   : > { %6552 = vmatpush1.bf16.xpose.msra.mxu1 %v6551_v60  ;;  %v1087_v60 = vld [vmem:[%s7505_s22 + $0x1990] sm:$0xff] }
 0x513   : > { %6554 = vmatprep.subr.bf16.mxu1 %v6553_v62  ;;  %v2111_v62 = vld [vmem:[%s7505_s22 + $0x3990] sm:$0xff]  ;;  %v5551_v3 = vpack.c.bf16 %v1087_v60, %v1055_v59  ;;  %v385_v59 = vld [vmem:[%s7505_s22 + $0x3a0] sm:$0xff] }
 0x514   : > { %v6575_v4 = vpack.c.bf16 %v2111_v62, %v2079_v61  ;;  %v1377_v60 = vld [vmem:[%s7505_s22 + $0x22a0] sm:$0xff]  ;;  %v226_v61 = vld [vmem:[#allocation2 + $0xa8] sm:$0xff] }
 0x515   : > { %v1409_v62 = vld [vmem:[%s7505_s22 + $0x23a0] sm:$0xff] }
 0x518   : > { %5532 = vmatpush1.bf16.xpose.msra.mxu0 %v5531_v7  ;;  %v1119_v7 = vld [vmem:[%s7505_s22 + $0x1a90] sm:$0xff] }
 0x519   : > { %5534 = vmatprep.subr.bf16.mxu0 %v5533_v9  ;;  %v2143_v9 = vld [vmem:[%s7505_s22 + $0x3a90] sm:$0xff] }
 0x51a   : > { %6556 = vmatpush1.bf16.xpose.msra.mxu1 %v6555_v8  ;;  %v1151_v8 = vld [vmem:[%s7505_s22 + $0x1b90] sm:$0xff] }
 0x51b   : > { %6558 = vmatprep.subr.bf16.mxu1 %v6557_v10  ;;  %v2175_v10 = vld [vmem:[%s7505_s22 + $0x3b90] sm:$0xff]  ;;  %v5555_v15 = vpack.c.bf16 %v1151_v8, %v1119_v7  ;;  %v417_v7 = vld [vmem:[%s7505_s22 + $0x4a0] sm:$0xff] }
 0x51c   : > { %v6579_v16 = vpack.c.bf16 %v2175_v10, %v2143_v9  ;;  %v449_v8 = vld [vmem:[%s7505_s22 + $0x5a0] sm:$0xff] }
 0x51d   : > { %v1441_v9 = vld [vmem:[%s7505_s22 + $0x24a0] sm:$0xff] }
 0x51e   : > { %v1473_v10 = vld [vmem:[%s7505_s22 + $0x25a0] sm:$0xff] }
 0x520   : > { %5536 = vmatpush1.bf16.xpose.msra.mxu0 %v5535_v19  ;;  %v1183_v19 = vld [vmem:[%s7505_s22 + $0x1c90] sm:$0xff] }
 0x521   : > { %5538 = vmatprep.subr.bf16.mxu0 %v5537_v21  ;;  %v2207_v21 = vld [vmem:[%s7505_s22 + $0x3c90] sm:$0xff] }
 0x522   : > { %6560 = vmatpush1.bf16.xpose.msra.mxu1 %v6559_v20  ;;  %v1215_v20 = vld [vmem:[%s7505_s22 + $0x1d90] sm:$0xff] }
 0x523   : > { %6562 = vmatprep.subr.bf16.mxu1 %v6561_v22  ;;  %v2239_v22 = vld [vmem:[%s7505_s22 + $0x3d90] sm:$0xff]  ;;  %v5559_v27 = vpack.c.bf16 %v1215_v20, %v1183_v19  ;;  %v481_v19 = vld [vmem:[%s7505_s22 + $0x6a0] sm:$0xff] }
 0x524   : > { %v6583_v28 = vpack.c.bf16 %v2239_v22, %v2207_v21  ;;  %v513_v20 = vld [vmem:[%s7505_s22 + $0x7a0] sm:$0xff] }
 0x525   : > { %v1505_v21 = vld [vmem:[%s7505_s22 + $0x26a0] sm:$0xff] }
 0x526   : > { %v1537_v22 = vld [vmem:[%s7505_s22 + $0x27a0] sm:$0xff] }
 0x528   : > { %5540 = vmatpush1.bf16.xpose.msra.mxu0 %v5539_v31  ;;  %v1247_v31 = vld [vmem:[%s7505_s22 + $0x1e90] sm:$0xff] }
 0x529   : > { %5542 = vmatprep.subr.bf16.mxu0 %v5541_v33  ;;  %v2271_v33 = vld [vmem:[%s7505_s22 + $0x3e90] sm:$0xff] }
 0x52a   : > { %6564 = vmatpush1.bf16.xpose.msra.mxu1 %v6563_v32  ;;  %v1279_v32 = vld [vmem:[%s7505_s22 + $0x1f90] sm:$0xff] }
 0x52b   : > { %6566 = vmatprep.subr.bf16.mxu1 %v6565_v34  ;;  %v2303_v34 = vld [vmem:[%s7505_s22 + $0x3f90] sm:$0xff]  ;;  %v5563_v39 = vpack.c.bf16 %v1279_v32, %v1247_v31  ;;  %v545_v31 = vld [vmem:[%s7505_s22 + $0x8a0] sm:$0xff] }
 0x52c   : > { %v6587_v40 = vpack.c.bf16 %v2303_v34, %v2271_v33  ;;  %v577_v32 = vld [vmem:[%s7505_s22 + $0x9a0] sm:$0xff] }
 0x52d   : > { %v1569_v33 = vld [vmem:[%s7505_s22 + $0x28a0] sm:$0xff] }
 0x52e   : > { %v1601_v34 = vld [vmem:[%s7505_s22 + $0x29a0] sm:$0xff] }
 0x530   : > { %5544 = vmatpush1.bf16.xpose.msra.mxu0 %v5543_v43  ;;  %v289_v43 = vld [vmem:[%s7505_s22 + $0xa0] sm:$0xff] }
 0x531   : > { %5546 = vmatprep.subr.bf16.mxu0 %v5545_v45  ;;  %v1313_v45 = vld [vmem:[%s7505_s22 + $0x20a0] sm:$0xff] }
 0x532   : > { %6568 = vmatpush1.bf16.xpose.msra.mxu1 %v6567_v44  ;;  %v321_v44 = vld [vmem:[%s7505_s22 + $0x1a0] sm:$0xff] }
 0x533   : > { %6570 = vmatprep.subr.bf16.mxu1 %v6569_v46  ;;  %v1345_v46 = vld [vmem:[%s7505_s22 + $0x21a0] sm:$0xff]  ;;  %v5567_v52 = vpack.c.bf16 %v321_v44, %v289_v43 }
 0x534   : > { %v6591_v53 = vpack.c.bf16 %v1345_v46, %v1313_v45  ;;  %v609_v43 = vld [vmem:[%s7505_s22 + $0xaa0] sm:$0xff] }
 0x535   : > { %v641_v44 = vld [vmem:[%s7505_s22 + $0xba0] sm:$0xff] }
 0x536   : > { %v1633_v45 = vld [vmem:[%s7505_s22 + $0x2aa0] sm:$0xff] }
 0x537   : > { %v1665_v46 = vld [vmem:[%s7505_s22 + $0x2ba0] sm:$0xff] }
 0x538   : > { %5548 = vmatpush1.bf16.xpose.msra.mxu0 %v5547_v55  ;;  %v6593_v55 = vpack.c.bf16 %v1410_v50, %v1378_v49  ;;  %v1698_v49 = vld [vmem:[%s7505_s22 + $0x2ca8] sm:$0xff] }
 0x539   : > { %5550 = vmatprep.subr.bf16.mxu0 %v5549_v57  ;;  %v353_v57 = vld [vmem:[%s7505_s22 + $0x2a0] sm:$0xff]  ;;  %v1730_v50 = vld [vmem:[%s7505_s22 + $0x2da8] sm:$0xff] }
 0x53a   : > { %6572 = vmatpush1.bf16.xpose.msra.mxu1 %v6571_v56  ;;  %v256_v56 = vld [vmem:[#allocation2 + $0x198] sm:$0xff] }
 0x53b   : > { %6574 = vmatprep.subr.bf16.mxu1 %v6573_v58  ;;  %v255_v58 = vld [vmem:[#allocation2 + $0x190] sm:$0xff] }
 0x540   : > { %5552 = vmatpush1.bf16.xpose.msra.mxu0 %v5551_v3  ;;  %v5571_v3 = vpack.c.bf16 %v385_v59, %v353_v57  ;;  %v1697_v57 = vld [vmem:[%s7505_s22 + $0x2ca0] sm:$0xff]  ;;  %v738_v59 = vld [vmem:[%s7505_s22 + $0xea8] sm:$0xff] }
 0x541   : > { %5554 = vmatprep.subr.bf16.mxu0 %v5553_v5  ;;  %v5573_v5 = vpack.c.bf16 %v450_v0, %v418_v63 }
 0x542   : > { %6576 = vmatpush1.bf16.xpose.msra.mxu1 %v6575_v4  ;;  %v6595_v4 = vpack.c.bf16 %v1409_v62, %v1377_v60  ;;  %v770_v60 = vld [vmem:[%s7505_s22 + $0xfa8] sm:$0xff] }
 0x543   : > { %6578 = vmatprep.subr.bf16.mxu1 %v6577_v6  ;;  %v6597_v6 = vpack.c.bf16 %v1474_v2, %v1442_v1  ;;  %v1794_v62 = vld [vmem:[%s7505_s22 + $0x2fa8] sm:$0xff]  ;;  %v5593_v1 = vpack.c.bf16 %v770_v60, %v738_v59 }
 0x548   : > { %5556 = vmatpush1.bf16.xpose.msra.mxu0 %v5555_v15  ;;  %v5575_v15 = vpack.c.bf16 %v449_v8, %v417_v7  ;;  %v802_v7 = vld [vmem:[%s7505_s22 + $0x10a8] sm:$0xff] }
 0x549   : > { %5558 = vmatprep.subr.bf16.mxu0 %v5557_v17  ;;  %v5577_v17 = vpack.c.bf16 %v514_v12, %v482_v11  ;;  %v834_v8 = vld [vmem:[%s7505_s22 + $0x11a8] sm:$0xff] }
 0x54a   : > { %6580 = vmatpush1.bf16.xpose.msra.mxu1 %v6579_v16  ;;  %v6599_v16 = vpack.c.bf16 %v1473_v10, %v1441_v9  ;;  %v1826_v9 = vld [vmem:[%s7505_s22 + $0x30a8] sm:$0xff] }
 0x54b   : > { %6582 = vmatprep.subr.bf16.mxu1 %v6581_v18  ;;  %v6601_v18 = vpack.c.bf16 %v1538_v14, %v1506_v13  ;;  %v1858_v10 = vld [vmem:[%s7505_s22 + $0x31a8] sm:$0xff]  ;;  %v5597_v13 = vpack.c.bf16 %v834_v8, %v802_v7 }
 0x54c   : > { %v6621_v14 = vpack.c.bf16 %v1858_v10, %v1826_v9 }
 0x550   : > { %5560 = vmatpush1.bf16.xpose.msra.mxu0 %v5559_v27  ;;  %v5579_v27 = vpack.c.bf16 %v513_v20, %v481_v19  ;;  %v866_v19 = vld [vmem:[%s7505_s22 + $0x12a8] sm:$0xff] }
 0x551   : > { %5562 = vmatprep.subr.bf16.mxu0 %v5561_v29  ;;  %v5581_v29 = vpack.c.bf16 %v578_v24, %v546_v23  ;;  %v898_v20 = vld [vmem:[%s7505_s22 + $0x13a8] sm:$0xff] }
 0x552   : > { %6584 = vmatpush1.bf16.xpose.msra.mxu1 %v6583_v28  ;;  %v6603_v28 = vpack.c.bf16 %v1537_v22, %v1505_v21  ;;  %v1890_v21 = vld [vmem:[%s7505_s22 + $0x32a8] sm:$0xff] }
 0x553   : > { %6586 = vmatprep.subr.bf16.mxu1 %v6585_v30  ;;  %v6605_v30 = vpack.c.bf16 %v1602_v26, %v1570_v25  ;;  %v1922_v22 = vld [vmem:[%s7505_s22 + $0x33a8] sm:$0xff]  ;;  %v5601_v25 = vpack.c.bf16 %v898_v20, %v866_v19 }
 0x554   : > { %v6625_v26 = vpack.c.bf16 %v1922_v22, %v1890_v21 }
 0x558   : > { %5564 = vmatpush1.bf16.xpose.msra.mxu0 %v5563_v39  ;;  %v5583_v39 = vpack.c.bf16 %v577_v32, %v545_v31  ;;  %v930_v31 = vld [vmem:[%s7505_s22 + $0x14a8] sm:$0xff] }
 0x559   : > { %5566 = vmatprep.subr.bf16.mxu0 %v5565_v41  ;;  %v5585_v41 = vpack.c.bf16 %v642_v36, %v610_v35  ;;  %v962_v32 = vld [vmem:[%s7505_s22 + $0x15a8] sm:$0xff] }
 0x55a   : > { %6588 = vmatpush1.bf16.xpose.msra.mxu1 %v6587_v40  ;;  %v6607_v40 = vpack.c.bf16 %v1601_v34, %v1569_v33  ;;  %v1954_v33 = vld [vmem:[%s7505_s22 + $0x34a8] sm:$0xff] }
 0x55b   : > { %6590 = vmatprep.subr.bf16.mxu1 %v6589_v42  ;;  %v6609_v42 = vpack.c.bf16 %v1666_v38, %v1634_v37  ;;  %v1986_v34 = vld [vmem:[%s7505_s22 + $0x35a8] sm:$0xff]  ;;  %v5605_v37 = vpack.c.bf16 %v962_v32, %v930_v31 }
 0x55c   : > { %v6629_v38 = vpack.c.bf16 %v1986_v34, %v1954_v33 }
 0x55f   : > { %3075 = vmatmul.mubr.f32.vlgmr.msra.gmra.mrb[0].mxu0 %v223_v51 }
 0x560   : > { %5568 = vmatpush1.bf16.xpose.msra.mxu0 %v5567_v52  ;;  %3080 = vmatprep.mubr.f32.mxu0 %v256_v56  ;;  %v6611_v52 = vpack.c.bf16 %v1665_v46, %v1633_v45  ;;  %v2018_v45 = vld [vmem:[%s7505_s22 + $0x36a8] sm:$0xff] }
 0x561   : > { %4307 = vmatmul.mubr.f32.vlgmr.msra.gmra.mrb[0].mxu1 %v223_v51  ;;  %5570 = vmatprep.subr.bf16.mxu0 %v5569_v54  ;;  %v5587_v51 = vpack.c.bf16 %v641_v44, %v609_v43  ;;  %v6613_v54 = vpack.c.bf16 %v1730_v50, %v1698_v49  ;;  %v994_v43 = vld [vmem:[%s7505_s22 + $0x16a8] sm:$0xff] }
 0x562   : > { %6592 = vmatpush1.bf16.xpose.msra.mxu1 %v6591_v53  ;;  %4312 = vmatprep.mubr.f32.mxu1 %v256_v56  ;;  %v5589_v53 = vpack.c.bf16 %v706_v48, %v674_v47  ;;  %v705_v56 = vld [vmem:[%s7505_s22 + $0xda0] sm:$0xff]  ;;  %v1026_v44 = vld [vmem:[%s7505_s22 + $0x17a8] sm:$0xff] }
 0x563   : > { %6594 = vmatprep.subr.bf16.mxu1 %v6593_v55  ;;  %3081 = vmatmul.mubr.f32.gmra.mrb[2].mxu0 %v255_v58  ;;  %v673_v55 = vld [vmem:[%s7505_s22 + $0xca0] sm:$0xff]  ;;  %v2050_v46 = vld [vmem:[%s7505_s22 + $0x37a8] sm:$0xff]  ;;  %v5609_v49 = vpack.c.bf16 %v1026_v44, %v994_v43 }
 0x564   : > { %3151 = vmatprep.mubr.f32.mxu0 %v226_v61  ;;  %v5591_v63 = vpack.c.bf16 %v705_v56, %v673_v55  ;;  %v6633_v50 = vpack.c.bf16 %v2050_v46, %v2018_v45  ;;  %v1058_v55 = vld [vmem:[%s7505_s22 + $0x18a8] sm:$0xff] }
 0x565   : > { %4313 = vmatmul.mubr.f32.gmra.mrb[2].mxu1 %v255_v58  ;;  %v1729_v58 = vld [vmem:[%s7505_s22 + $0x2da0] sm:$0xff]  ;;  %v1090_v56 = vld [vmem:[%s7505_s22 + $0x19a8] sm:$0xff] }
 0x566   : > { %4383 = vmatprep.mubr.f32.mxu1 %v226_v61  ;;  %v1762_v61 = vld [vmem:[%s7505_s22 + $0x2ea8] sm:$0xff]  ;;  %v6615_v0 = vpack.c.bf16 %v1729_v58, %v1697_v57 }
 0x567   : > { %v6617_v2 = vpack.c.bf16 %v1794_v62, %v1762_v61  ;;  %v2082_v57 = vld [vmem:[%s7505_s22 + $0x38a8] sm:$0xff]  ;;  %v5613_v61 = vpack.c.bf16 %v1090_v56, %v1058_v55  ;;  %v225_v55 = vld [vmem:[#allocation2 + $0xa0] sm:$0xff] }
 0x568   : > { %5572 = vmatpush1.bf16.xpose.msra.mxu0 %v5571_v3  ;;  %v737_v3 = vld [vmem:[%s7505_s22 + $0xea0] sm:$0xff]  ;;  %v2114_v58 = vld [vmem:[%s7505_s22 + $0x39a8] sm:$0xff] }
 0x569   : > { %5574 = vmatprep.subr.bf16.mxu0 %v5573_v5  ;;  %v1761_v5 = vld [vmem:[%s7505_s22 + $0x2ea0] sm:$0xff]  ;;  %v6637_v62 = vpack.c.bf16 %v2114_v58, %v2082_v57 }
 0x56a   : > { %6596 = vmatpush1.bf16.xpose.msra.mxu1 %v6595_v4  ;;  %v769_v4 = vld [vmem:[%s7505_s22 + $0xfa0] sm:$0xff] }
 0x56b   : > { %6598 = vmatprep.subr.bf16.mxu1 %v6597_v6  ;;  %v1793_v6 = vld [vmem:[%s7505_s22 + $0x2fa0] sm:$0xff]  ;;  %v5595_v11 = vpack.c.bf16 %v769_v4, %v737_v3  ;;  %v1122_v3 = vld [vmem:[%s7505_s22 + $0x1aa8] sm:$0xff] }
 0x56c   : > { %v6619_v12 = vpack.c.bf16 %v1793_v6, %v1761_v5  ;;  %v1154_v4 = vld [vmem:[%s7505_s22 + $0x1ba8] sm:$0xff] }
 0x56d   : > { %v2146_v5 = vld [vmem:[%s7505_s22 + $0x3aa8] sm:$0xff]  ;;  %v5617_v9 = vpack.c.bf16 %v1154_v4, %v1122_v3  ;;  %v420_v3 = vld [vmem:[%s7505_s22 + $0x4b8] sm:$0xff] }
 0x56e   : > { %v2178_v6 = vld [vmem:[%s7505_s22 + $0x3ba8] sm:$0xff]  ;;  %v452_v4 = vld [vmem:[%s7505_s22 + $0x5b8] sm:$0xff] }
 0x56f   : > { %v6641_v10 = vpack.c.bf16 %v2178_v6, %v2146_v5  ;;  %v1444_v5 = vld [vmem:[%s7505_s22 + $0x24b8] sm:$0xff] }
 0x570   : > { %5576 = vmatpush1.bf16.xpose.msra.mxu0 %v5575_v15  ;;  %v801_v15 = vld [vmem:[%s7505_s22 + $0x10a0] sm:$0xff]  ;;  %v1476_v6 = vld [vmem:[%s7505_s22 + $0x25b8] sm:$0xff] }
 0x571   : > { %5578 = vmatprep.subr.bf16.mxu0 %v5577_v17  ;;  %v1825_v17 = vld [vmem:[%s7505_s22 + $0x30a0] sm:$0xff] }
 0x572   : > { %6600 = vmatpush1.bf16.xpose.msra.mxu1 %v6599_v16  ;;  %v833_v16 = vld [vmem:[%s7505_s22 + $0x11a0] sm:$0xff] }
 0x573   : > { %6602 = vmatprep.subr.bf16.mxu1 %v6601_v18  ;;  %v1857_v18 = vld [vmem:[%s7505_s22 + $0x31a0] sm:$0xff]  ;;  %v5599_v23 = vpack.c.bf16 %v833_v16, %v801_v15  ;;  %v1186_v15 = vld [vmem:[%s7505_s22 + $0x1ca8] sm:$0xff] }
 0x574   : > { %v6623_v24 = vpack.c.bf16 %v1857_v18, %v1825_v17  ;;  %v1218_v16 = vld [vmem:[%s7505_s22 + $0x1da8] sm:$0xff] }
 0x575   : > { %v2210_v17 = vld [vmem:[%s7505_s22 + $0x3ca8] sm:$0xff]  ;;  %v5621_v21 = vpack.c.bf16 %v1218_v16, %v1186_v15  ;;  %v484_v15 = vld [vmem:[%s7505_s22 + $0x6b8] sm:$0xff] }
 0x576   : > { %v2242_v18 = vld [vmem:[%s7505_s22 + $0x3da8] sm:$0xff]  ;;  %v516_v16 = vld [vmem:[%s7505_s22 + $0x7b8] sm:$0xff] }
 0x577   : > { %v6645_v22 = vpack.c.bf16 %v2242_v18, %v2210_v17  ;;  %v1508_v17 = vld [vmem:[%s7505_s22 + $0x26b8] sm:$0xff] }
 0x578   : > { %5580 = vmatpush1.bf16.xpose.msra.mxu0 %v5579_v27  ;;  %v865_v27 = vld [vmem:[%s7505_s22 + $0x12a0] sm:$0xff]  ;;  %v1540_v18 = vld [vmem:[%s7505_s22 + $0x27b8] sm:$0xff] }
 0x579   : > { %5582 = vmatprep.subr.bf16.mxu0 %v5581_v29  ;;  %v1889_v29 = vld [vmem:[%s7505_s22 + $0x32a0] sm:$0xff] }
 0x57a   : > { %6604 = vmatpush1.bf16.xpose.msra.mxu1 %v6603_v28  ;;  %v897_v28 = vld [vmem:[%s7505_s22 + $0x13a0] sm:$0xff] }
 0x57b   : > { %6606 = vmatprep.subr.bf16.mxu1 %v6605_v30  ;;  %v1921_v30 = vld [vmem:[%s7505_s22 + $0x33a0] sm:$0xff]  ;;  %v5603_v35 = vpack.c.bf16 %v897_v28, %v865_v27  ;;  %v1250_v27 = vld [vmem:[%s7505_s22 + $0x1ea8] sm:$0xff] }
 0x57c   : > { %v6627_v36 = vpack.c.bf16 %v1921_v30, %v1889_v29  ;;  %v1282_v28 = vld [vmem:[%s7505_s22 + $0x1fa8] sm:$0xff] }
 0x57d   : > { %v2274_v29 = vld [vmem:[%s7505_s22 + $0x3ea8] sm:$0xff]  ;;  %v5625_v33 = vpack.c.bf16 %v1282_v28, %v1250_v27  ;;  %v548_v27 = vld [vmem:[%s7505_s22 + $0x8b8] sm:$0xff] }
 0x57e   : > { %v2306_v30 = vld [vmem:[%s7505_s22 + $0x3fa8] sm:$0xff]  ;;  %v580_v28 = vld [vmem:[%s7505_s22 + $0x9b8] sm:$0xff] }
 0x57f   : > { %v6649_v34 = vpack.c.bf16 %v2306_v30, %v2274_v29  ;;  %v1572_v29 = vld [vmem:[%s7505_s22 + $0x28b8] sm:$0xff] }
 0x580   : > { %5584 = vmatpush1.bf16.xpose.msra.mxu0 %v5583_v39  ;;  %v929_v39 = vld [vmem:[%s7505_s22 + $0x14a0] sm:$0xff]  ;;  %v1604_v30 = vld [vmem:[%s7505_s22 + $0x29b8] sm:$0xff] }
 0x581   : > { %5586 = vmatprep.subr.bf16.mxu0 %v5585_v41  ;;  %v1953_v41 = vld [vmem:[%s7505_s22 + $0x34a0] sm:$0xff] }
 0x582   : > { %6608 = vmatpush1.bf16.xpose.msra.mxu1 %v6607_v40  ;;  %v961_v40 = vld [vmem:[%s7505_s22 + $0x15a0] sm:$0xff] }
 0x583   : > { %6610 = vmatprep.subr.bf16.mxu1 %v6609_v42  ;;  %v1985_v42 = vld [vmem:[%s7505_s22 + $0x35a0] sm:$0xff]  ;;  %v5607_v47 = vpack.c.bf16 %v961_v40, %v929_v39  ;;  %v292_v39 = vld [vmem:[%s7505_s22 + $0xb8] sm:$0xff] }
 0x584   : > { %v6631_v48 = vpack.c.bf16 %v1985_v42, %v1953_v41  ;;  %v324_v40 = vld [vmem:[%s7505_s22 + $0x1b8] sm:$0xff] }
 0x585   : > { %v1316_v41 = vld [vmem:[%s7505_s22 + $0x20b8] sm:$0xff]  ;;  %v5629_v45 = vpack.c.bf16 %v324_v40, %v292_v39 }
 0x586   : > { %v1348_v42 = vld [vmem:[%s7505_s22 + $0x21b8] sm:$0xff] }
 0x587   : > { %v6653_v46 = vpack.c.bf16 %v1348_v42, %v1316_v41  ;;  %v612_v39 = vld [vmem:[%s7505_s22 + $0xab8] sm:$0xff] }
 0x588   : > { %5588 = vmatpush1.bf16.xpose.msra.mxu0 %v5587_v51  ;;  %v993_v51 = vld [vmem:[%s7505_s22 + $0x16a0] sm:$0xff]  ;;  %v644_v40 = vld [vmem:[%s7505_s22 + $0xbb8] sm:$0xff] }
 0x589   : > { %5590 = vmatprep.subr.bf16.mxu0 %v5589_v53  ;;  %v2017_v53 = vld [vmem:[%s7505_s22 + $0x36a0] sm:$0xff]  ;;  %v1636_v41 = vld [vmem:[%s7505_s22 + $0x2ab8] sm:$0xff] }
 0x58a   : > { %6612 = vmatpush1.bf16.xpose.msra.mxu1 %v6611_v52  ;;  %v1025_v52 = vld [vmem:[%s7505_s22 + $0x17a0] sm:$0xff]  ;;  %v1668_v42 = vld [vmem:[%s7505_s22 + $0x2bb8] sm:$0xff] }
 0x58b   : > { %6614 = vmatprep.subr.bf16.mxu1 %v6613_v54  ;;  %v2049_v54 = vld [vmem:[%s7505_s22 + $0x37a0] sm:$0xff]  ;;  %v5611_v59 = vpack.c.bf16 %v1025_v52, %v993_v51  ;;  %v356_v51 = vld [vmem:[%s7505_s22 + $0x2b8] sm:$0xff] }
 0x58c   : > { %v6635_v60 = vpack.c.bf16 %v2049_v54, %v2017_v53  ;;  %v388_v52 = vld [vmem:[%s7505_s22 + $0x3b8] sm:$0xff] }
 0x58d   : > { %v1380_v53 = vld [vmem:[%s7505_s22 + $0x22b8] sm:$0xff]  ;;  %v5633_v58 = vpack.c.bf16 %v388_v52, %v356_v51 }
 0x58e   : > { %v1412_v54 = vld [vmem:[%s7505_s22 + $0x23b8] sm:$0xff] }
 0x58f   : > { %v676_v51 = vld [vmem:[%s7505_s22 + $0xcb8] sm:$0xff] }
 0x590   : > { %5592 = vmatpush1.bf16.xpose.msra.mxu0 %v5591_v63  ;;  %v1057_v63 = vld [vmem:[%s7505_s22 + $0x18a0] sm:$0xff]  ;;  %v708_v52 = vld [vmem:[%s7505_s22 + $0xdb8] sm:$0xff] }
 0x591   : > { %5594 = vmatprep.subr.bf16.mxu0 %v5593_v1  ;;  %v2081_v1 = vld [vmem:[%s7505_s22 + $0x38a0] sm:$0xff] }
 0x592   : > { %6616 = vmatpush1.bf16.xpose.msra.mxu1 %v6615_v0  ;;  %v1089_v0 = vld [vmem:[%s7505_s22 + $0x19a0] sm:$0xff] }
 0x593   : > { %6618 = vmatprep.subr.bf16.mxu1 %v6617_v2  ;;  %v2113_v2 = vld [vmem:[%s7505_s22 + $0x39a0] sm:$0xff]  ;;  %v5615_v7 = vpack.c.bf16 %v1089_v0, %v1057_v63  ;;  %v387_v63 = vld [vmem:[%s7505_s22 + $0x3b0] sm:$0xff] }
 0x594   : > { %v6639_v8 = vpack.c.bf16 %v2113_v2, %v2081_v1  ;;  %v1379_v0 = vld [vmem:[%s7505_s22 + $0x22b0] sm:$0xff]  ;;  %v228_v1 = vld [vmem:[#allocation2 + $0xb8] sm:$0xff] }
 0x595   : > { %v1411_v2 = vld [vmem:[%s7505_s22 + $0x23b0] sm:$0xff] }
 0x598   : > { %5596 = vmatpush1.bf16.xpose.msra.mxu0 %v5595_v11  ;;  %v1121_v11 = vld [vmem:[%s7505_s22 + $0x1aa0] sm:$0xff] }
 0x599   : > { %5598 = vmatprep.subr.bf16.mxu0 %v5597_v13  ;;  %v2145_v13 = vld [vmem:[%s7505_s22 + $0x3aa0] sm:$0xff] }
 0x59a   : > { %6620 = vmatpush1.bf16.xpose.msra.mxu1 %v6619_v12  ;;  %v1153_v12 = vld [vmem:[%s7505_s22 + $0x1ba0] sm:$0xff] }
 0x59b   : > { %6622 = vmatprep.subr.bf16.mxu1 %v6621_v14  ;;  %v2177_v14 = vld [vmem:[%s7505_s22 + $0x3ba0] sm:$0xff]  ;;  %v5619_v19 = vpack.c.bf16 %v1153_v12, %v1121_v11  ;;  %v419_v11 = vld [vmem:[%s7505_s22 + $0x4b0] sm:$0xff] }
 0x59c   : > { %v6643_v20 = vpack.c.bf16 %v2177_v14, %v2145_v13  ;;  %v451_v12 = vld [vmem:[%s7505_s22 + $0x5b0] sm:$0xff] }
 0x59d   : > { %v1443_v13 = vld [vmem:[%s7505_s22 + $0x24b0] sm:$0xff] }
 0x59e   : > { %v1475_v14 = vld [vmem:[%s7505_s22 + $0x25b0] sm:$0xff] }
 0x5a0   : > { %5600 = vmatpush1.bf16.xpose.msra.mxu0 %v5599_v23  ;;  %v1185_v23 = vld [vmem:[%s7505_s22 + $0x1ca0] sm:$0xff] }
 0x5a1   : > { %5602 = vmatprep.subr.bf16.mxu0 %v5601_v25  ;;  %v2209_v25 = vld [vmem:[%s7505_s22 + $0x3ca0] sm:$0xff] }
 0x5a2   : > { %6624 = vmatpush1.bf16.xpose.msra.mxu1 %v6623_v24  ;;  %v1217_v24 = vld [vmem:[%s7505_s22 + $0x1da0] sm:$0xff] }
 0x5a3   : > { %6626 = vmatprep.subr.bf16.mxu1 %v6625_v26  ;;  %v2241_v26 = vld [vmem:[%s7505_s22 + $0x3da0] sm:$0xff]  ;;  %v5623_v31 = vpack.c.bf16 %v1217_v24, %v1185_v23  ;;  %v483_v23 = vld [vmem:[%s7505_s22 + $0x6b0] sm:$0xff] }
 0x5a4   : > { %v6647_v32 = vpack.c.bf16 %v2241_v26, %v2209_v25  ;;  %v515_v24 = vld [vmem:[%s7505_s22 + $0x7b0] sm:$0xff] }
 0x5a5   : > { %v1507_v25 = vld [vmem:[%s7505_s22 + $0x26b0] sm:$0xff] }
 0x5a6   : > { %v1539_v26 = vld [vmem:[%s7505_s22 + $0x27b0] sm:$0xff] }
 0x5a8   : > { %5604 = vmatpush1.bf16.xpose.msra.mxu0 %v5603_v35  ;;  %v1249_v35 = vld [vmem:[%s7505_s22 + $0x1ea0] sm:$0xff] }
 0x5a9   : > { %5606 = vmatprep.subr.bf16.mxu0 %v5605_v37  ;;  %v2273_v37 = vld [vmem:[%s7505_s22 + $0x3ea0] sm:$0xff] }
 0x5aa   : > { %6628 = vmatpush1.bf16.xpose.msra.mxu1 %v6627_v36  ;;  %v1281_v36 = vld [vmem:[%s7505_s22 + $0x1fa0] sm:$0xff] }
 0x5ab   : > { %6630 = vmatprep.subr.bf16.mxu1 %v6629_v38  ;;  %v2305_v38 = vld [vmem:[%s7505_s22 + $0x3fa0] sm:$0xff]  ;;  %v5627_v43 = vpack.c.bf16 %v1281_v36, %v1249_v35  ;;  %v547_v35 = vld [vmem:[%s7505_s22 + $0x8b0] sm:$0xff] }
 0x5ac   : > { %v6651_v44 = vpack.c.bf16 %v2305_v38, %v2273_v37  ;;  %v579_v36 = vld [vmem:[%s7505_s22 + $0x9b0] sm:$0xff] }
 0x5ad   : > { %v1571_v37 = vld [vmem:[%s7505_s22 + $0x28b0] sm:$0xff] }
 0x5ae   : > { %v1603_v38 = vld [vmem:[%s7505_s22 + $0x29b0] sm:$0xff] }
 0x5b0   : > { %5608 = vmatpush1.bf16.xpose.msra.mxu0 %v5607_v47  ;;  %v291_v47 = vld [vmem:[%s7505_s22 + $0xb0] sm:$0xff] }
 0x5b1   : > { %5610 = vmatprep.subr.bf16.mxu0 %v5609_v49  ;;  %v1315_v49 = vld [vmem:[%s7505_s22 + $0x20b0] sm:$0xff] }
 0x5b2   : > { %6632 = vmatpush1.bf16.xpose.msra.mxu1 %v6631_v48  ;;  %v323_v48 = vld [vmem:[%s7505_s22 + $0x1b0] sm:$0xff] }
 0x5b3   : > { %6634 = vmatprep.subr.bf16.mxu1 %v6633_v50  ;;  %v1347_v50 = vld [vmem:[%s7505_s22 + $0x21b0] sm:$0xff]  ;;  %v5631_v56 = vpack.c.bf16 %v323_v48, %v291_v47 }
 0x5b4   : > { %v6655_v57 = vpack.c.bf16 %v1347_v50, %v1315_v49  ;;  %v611_v47 = vld [vmem:[%s7505_s22 + $0xab0] sm:$0xff] }
 0x5b5   : > { %v643_v48 = vld [vmem:[%s7505_s22 + $0xbb0] sm:$0xff] }
 0x5b6   : > { %v1635_v49 = vld [vmem:[%s7505_s22 + $0x2ab0] sm:$0xff] }
 0x5b7   : > { %v1667_v50 = vld [vmem:[%s7505_s22 + $0x2bb0] sm:$0xff] }
 0x5b8   : > { %5612 = vmatpush1.bf16.xpose.msra.mxu0 %v5611_v59  ;;  %v6657_v59 = vpack.c.bf16 %v1412_v54, %v1380_v53  ;;  %v1700_v53 = vld [vmem:[%s7505_s22 + $0x2cb8] sm:$0xff] }
 0x5b9   : > { %5614 = vmatprep.subr.bf16.mxu0 %v5613_v61  ;;  %v355_v61 = vld [vmem:[%s7505_s22 + $0x2b0] sm:$0xff]  ;;  %v1732_v54 = vld [vmem:[%s7505_s22 + $0x2db8] sm:$0xff] }
 0x5ba   : > { %6636 = vmatpush1.bf16.xpose.msra.mxu1 %v6635_v60  ;;  %v258_v60 = vld [vmem:[#allocation2 + $0x1a8] sm:$0xff] }
 0x5bb   : > { %6638 = vmatprep.subr.bf16.mxu1 %v6637_v62  ;;  %v257_v62 = vld [vmem:[#allocation2 + $0x1a0] sm:$0xff] }
 0x5c0   : > { %5616 = vmatpush1.bf16.xpose.msra.mxu0 %v5615_v7  ;;  %v5635_v7 = vpack.c.bf16 %v387_v63, %v355_v61  ;;  %v1699_v61 = vld [vmem:[%s7505_s22 + $0x2cb0] sm:$0xff]  ;;  %v740_v63 = vld [vmem:[%s7505_s22 + $0xeb8] sm:$0xff] }
 0x5c1   : > { %5618 = vmatprep.subr.bf16.mxu0 %v5617_v9  ;;  %v5637_v9 = vpack.c.bf16 %v452_v4, %v420_v3 }
 0x5c2   : > { %6640 = vmatpush1.bf16.xpose.msra.mxu1 %v6639_v8  ;;  %v6659_v8 = vpack.c.bf16 %v1411_v2, %v1379_v0  ;;  %v772_v0 = vld [vmem:[%s7505_s22 + $0xfb8] sm:$0xff] }
 0x5c3   : > { %6642 = vmatprep.subr.bf16.mxu1 %v6641_v10  ;;  %v6661_v10 = vpack.c.bf16 %v1476_v6, %v1444_v5  ;;  %v1796_v2 = vld [vmem:[%s7505_s22 + $0x2fb8] sm:$0xff]  ;;  %v5657_v5 = vpack.c.bf16 %v772_v0, %v740_v63 }
 0x5c8   : > { %5620 = vmatpush1.bf16.xpose.msra.mxu0 %v5619_v19  ;;  %v5639_v19 = vpack.c.bf16 %v451_v12, %v419_v11  ;;  %v804_v11 = vld [vmem:[%s7505_s22 + $0x10b8] sm:$0xff] }
 0x5c9   : > { %5622 = vmatprep.subr.bf16.mxu0 %v5621_v21  ;;  %v5641_v21 = vpack.c.bf16 %v516_v16, %v484_v15  ;;  %v836_v12 = vld [vmem:[%s7505_s22 + $0x11b8] sm:$0xff] }
 0x5ca   : > { %6644 = vmatpush1.bf16.xpose.msra.mxu1 %v6643_v20  ;;  %v6663_v20 = vpack.c.bf16 %v1475_v14, %v1443_v13  ;;  %v1828_v13 = vld [vmem:[%s7505_s22 + $0x30b8] sm:$0xff] }
 0x5cb   : > { %6646 = vmatprep.subr.bf16.mxu1 %v6645_v22  ;;  %v6665_v22 = vpack.c.bf16 %v1540_v18, %v1508_v17  ;;  %v1860_v14 = vld [vmem:[%s7505_s22 + $0x31b8] sm:$0xff]  ;;  %v5661_v17 = vpack.c.bf16 %v836_v12, %v804_v11 }
 0x5cc   : > { %v6685_v18 = vpack.c.bf16 %v1860_v14, %v1828_v13 }
 0x5d0   : > { %5624 = vmatpush1.bf16.xpose.msra.mxu0 %v5623_v31  ;;  %v5643_v31 = vpack.c.bf16 %v515_v24, %v483_v23  ;;  %v868_v23 = vld [vmem:[%s7505_s22 + $0x12b8] sm:$0xff] }
 0x5d1   : > { %5626 = vmatprep.subr.bf16.mxu0 %v5625_v33  ;;  %v5645_v33 = vpack.c.bf16 %v580_v28, %v548_v27  ;;  %v900_v24 = vld [vmem:[%s7505_s22 + $0x13b8] sm:$0xff] }
 0x5d2   : > { %6648 = vmatpush1.bf16.xpose.msra.mxu1 %v6647_v32  ;;  %v6667_v32 = vpack.c.bf16 %v1539_v26, %v1507_v25  ;;  %v1892_v25 = vld [vmem:[%s7505_s22 + $0x32b8] sm:$0xff] }
 0x5d3   : > { %6650 = vmatprep.subr.bf16.mxu1 %v6649_v34  ;;  %v6669_v34 = vpack.c.bf16 %v1604_v30, %v1572_v29  ;;  %v1924_v26 = vld [vmem:[%s7505_s22 + $0x33b8] sm:$0xff]  ;;  %v5665_v29 = vpack.c.bf16 %v900_v24, %v868_v23 }
 0x5d4   : > { %v6689_v30 = vpack.c.bf16 %v1924_v26, %v1892_v25 }
 0x5d8   : > { %5628 = vmatpush1.bf16.xpose.msra.mxu0 %v5627_v43  ;;  %v5647_v43 = vpack.c.bf16 %v579_v36, %v547_v35  ;;  %v932_v35 = vld [vmem:[%s7505_s22 + $0x14b8] sm:$0xff] }
 0x5d9   : > { %5630 = vmatprep.subr.bf16.mxu0 %v5629_v45  ;;  %v5649_v45 = vpack.c.bf16 %v644_v40, %v612_v39  ;;  %v964_v36 = vld [vmem:[%s7505_s22 + $0x15b8] sm:$0xff] }
 0x5da   : > { %6652 = vmatpush1.bf16.xpose.msra.mxu1 %v6651_v44  ;;  %v6671_v44 = vpack.c.bf16 %v1603_v38, %v1571_v37  ;;  %v1956_v37 = vld [vmem:[%s7505_s22 + $0x34b8] sm:$0xff] }
 0x5db   : > { %6654 = vmatprep.subr.bf16.mxu1 %v6653_v46  ;;  %v6673_v46 = vpack.c.bf16 %v1668_v42, %v1636_v41  ;;  %v1988_v38 = vld [vmem:[%s7505_s22 + $0x35b8] sm:$0xff]  ;;  %v5669_v41 = vpack.c.bf16 %v964_v36, %v932_v35 }
 0x5dc   : > { %v6693_v42 = vpack.c.bf16 %v1988_v38, %v1956_v37 }
 0x5df   : > { %3152 = vmatmul.mubr.f32.vlgmr.msra.gmra.mrb[0].mxu0 %v225_v55 }
 0x5e0   : > { %5632 = vmatpush1.bf16.xpose.msra.mxu0 %v5631_v56  ;;  %3157 = vmatprep.mubr.f32.mxu0 %v258_v60  ;;  %v6675_v56 = vpack.c.bf16 %v1667_v50, %v1635_v49  ;;  %v2020_v49 = vld [vmem:[%s7505_s22 + $0x36b8] sm:$0xff] }
 0x5e1   : > { %4384 = vmatmul.mubr.f32.vlgmr.msra.gmra.mrb[0].mxu1 %v225_v55  ;;  %5634 = vmatprep.subr.bf16.mxu0 %v5633_v58  ;;  %v5651_v55 = vpack.c.bf16 %v643_v48, %v611_v47  ;;  %v6677_v58 = vpack.c.bf16 %v1732_v54, %v1700_v53  ;;  %v996_v47 = vld [vmem:[%s7505_s22 + $0x16b8] sm:$0xff] }
 0x5e2   : > { %6656 = vmatpush1.bf16.xpose.msra.mxu1 %v6655_v57  ;;  %4389 = vmatprep.mubr.f32.mxu1 %v258_v60  ;;  %v5653_v57 = vpack.c.bf16 %v708_v52, %v676_v51  ;;  %v707_v60 = vld [vmem:[%s7505_s22 + $0xdb0] sm:$0xff]  ;;  %v1028_v48 = vld [vmem:[%s7505_s22 + $0x17b8] sm:$0xff] }
 0x5e3   : > { %6658 = vmatprep.subr.bf16.mxu1 %v6657_v59  ;;  %3158 = vmatmul.mubr.f32.gmra.mrb[2].mxu0 %v257_v62  ;;  %v675_v59 = vld [vmem:[%s7505_s22 + $0xcb0] sm:$0xff]  ;;  %v2052_v50 = vld [vmem:[%s7505_s22 + $0x37b8] sm:$0xff]  ;;  %v5673_v53 = vpack.c.bf16 %v1028_v48, %v996_v47 }
 0x5e4   : > { %3228 = vmatprep.mubr.f32.mxu0 %v228_v1  ;;  %v5655_v3 = vpack.c.bf16 %v707_v60, %v675_v59  ;;  %v6697_v54 = vpack.c.bf16 %v2052_v50, %v2020_v49  ;;  %v1060_v59 = vld [vmem:[%s7505_s22 + $0x18b8] sm:$0xff] }
 0x5e5   : > { %4390 = vmatmul.mubr.f32.gmra.mrb[2].mxu1 %v257_v62  ;;  %v1731_v62 = vld [vmem:[%s7505_s22 + $0x2db0] sm:$0xff]  ;;  %v1092_v60 = vld [vmem:[%s7505_s22 + $0x19b8] sm:$0xff] }
 0x5e6   : > { %4460 = vmatprep.mubr.f32.mxu1 %v228_v1  ;;  %v1764_v1 = vld [vmem:[%s7505_s22 + $0x2eb8] sm:$0xff]  ;;  %v6679_v4 = vpack.c.bf16 %v1731_v62, %v1699_v61 }
 0x5e7   : > { %v6681_v6 = vpack.c.bf16 %v1796_v2, %v1764_v1  ;;  %v2084_v61 = vld [vmem:[%s7505_s22 + $0x38b8] sm:$0xff]  ;;  %v5677_v1 = vpack.c.bf16 %v1092_v60, %v1060_v59  ;;  %v227_v59 = vld [vmem:[#allocation2 + $0xb0] sm:$0xff] }
 0x5e8   : > { %5636 = vmatpush1.bf16.xpose.msra.mxu0 %v5635_v7  ;;  %v739_v7 = vld [vmem:[%s7505_s22 + $0xeb0] sm:$0xff]  ;;  %v2116_v62 = vld [vmem:[%s7505_s22 + $0x39b8] sm:$0xff] }
 0x5e9   : > { %5638 = vmatprep.subr.bf16.mxu0 %v5637_v9  ;;  %v1763_v9 = vld [vmem:[%s7505_s22 + $0x2eb0] sm:$0xff]  ;;  %v6701_v2 = vpack.c.bf16 %v2116_v62, %v2084_v61 }
 0x5ea   : > { %6660 = vmatpush1.bf16.xpose.msra.mxu1 %v6659_v8  ;;  %v771_v8 = vld [vmem:[%s7505_s22 + $0xfb0] sm:$0xff] }
 0x5eb   : > { %6662 = vmatprep.subr.bf16.mxu1 %v6661_v10  ;;  %v1795_v10 = vld [vmem:[%s7505_s22 + $0x2fb0] sm:$0xff]  ;;  %v5659_v15 = vpack.c.bf16 %v771_v8, %v739_v7  ;;  %v1124_v7 = vld [vmem:[%s7505_s22 + $0x1ab8] sm:$0xff] }
 0x5ec   : > { %v6683_v16 = vpack.c.bf16 %v1795_v10, %v1763_v9  ;;  %v1156_v8 = vld [vmem:[%s7505_s22 + $0x1bb8] sm:$0xff] }
 0x5ed   : > { %v2148_v9 = vld [vmem:[%s7505_s22 + $0x3ab8] sm:$0xff]  ;;  %v5681_v13 = vpack.c.bf16 %v1156_v8, %v1124_v7  ;;  %v422_v7 = vld [vmem:[%s7505_s22 + $0x4c8] sm:$0xff] }
 0x5ee   : > { %v2180_v10 = vld [vmem:[%s7505_s22 + $0x3bb8] sm:$0xff]  ;;  %v454_v8 = vld [vmem:[%s7505_s22 + $0x5c8] sm:$0xff] }
 0x5ef   : > { %v6705_v14 = vpack.c.bf16 %v2180_v10, %v2148_v9  ;;  %v1446_v9 = vld [vmem:[%s7505_s22 + $0x24c8] sm:$0xff] }
 0x5f0   : > { %5640 = vmatpush1.bf16.xpose.msra.mxu0 %v5639_v19  ;;  %v803_v19 = vld [vmem:[%s7505_s22 + $0x10b0] sm:$0xff]  ;;  %v1478_v10 = vld [vmem:[%s7505_s22 + $0x25c8] sm:$0xff] }
 0x5f1   : > { %5642 = vmatprep.subr.bf16.mxu0 %v5641_v21  ;;  %v1827_v21 = vld [vmem:[%s7505_s22 + $0x30b0] sm:$0xff] }
 0x5f2   : > { %6664 = vmatpush1.bf16.xpose.msra.mxu1 %v6663_v20  ;;  %v835_v20 = vld [vmem:[%s7505_s22 + $0x11b0] sm:$0xff] }
 0x5f3   : > { %6666 = vmatprep.subr.bf16.mxu1 %v6665_v22  ;;  %v1859_v22 = vld [vmem:[%s7505_s22 + $0x31b0] sm:$0xff]  ;;  %v5663_v27 = vpack.c.bf16 %v835_v20, %v803_v19  ;;  %v1188_v19 = vld [vmem:[%s7505_s22 + $0x1cb8] sm:$0xff] }
 0x5f4   : > { %v6687_v28 = vpack.c.bf16 %v1859_v22, %v1827_v21  ;;  %v1220_v20 = vld [vmem:[%s7505_s22 + $0x1db8] sm:$0xff] }
 0x5f5   : > { %v2212_v21 = vld [vmem:[%s7505_s22 + $0x3cb8] sm:$0xff]  ;;  %v5685_v25 = vpack.c.bf16 %v1220_v20, %v1188_v19  ;;  %v486_v19 = vld [vmem:[%s7505_s22 + $0x6c8] sm:$0xff] }
 0x5f6   : > { %v2244_v22 = vld [vmem:[%s7505_s22 + $0x3db8] sm:$0xff]  ;;  %v518_v20 = vld [vmem:[%s7505_s22 + $0x7c8] sm:$0xff] }
 0x5f7   : > { %v6709_v26 = vpack.c.bf16 %v2244_v22, %v2212_v21  ;;  %v1510_v21 = vld [vmem:[%s7505_s22 + $0x26c8] sm:$0xff] }
 0x5f8   : > { %5644 = vmatpush1.bf16.xpose.msra.mxu0 %v5643_v31  ;;  %v867_v31 = vld [vmem:[%s7505_s22 + $0x12b0] sm:$0xff]  ;;  %v1542_v22 = vld [vmem:[%s7505_s22 + $0x27c8] sm:$0xff] }
 0x5f9   : > { %5646 = vmatprep.subr.bf16.mxu0 %v5645_v33  ;;  %v1891_v33 = vld [vmem:[%s7505_s22 + $0x32b0] sm:$0xff] }
 0x5fa   : > { %6668 = vmatpush1.bf16.xpose.msra.mxu1 %v6667_v32  ;;  %v899_v32 = vld [vmem:[%s7505_s22 + $0x13b0] sm:$0xff] }
 0x5fb   : > { %6670 = vmatprep.subr.bf16.mxu1 %v6669_v34  ;;  %v1923_v34 = vld [vmem:[%s7505_s22 + $0x33b0] sm:$0xff]  ;;  %v5667_v39 = vpack.c.bf16 %v899_v32, %v867_v31  ;;  %v1252_v31 = vld [vmem:[%s7505_s22 + $0x1eb8] sm:$0xff] }
 0x5fc   : > { %v6691_v40 = vpack.c.bf16 %v1923_v34, %v1891_v33  ;;  %v1284_v32 = vld [vmem:[%s7505_s22 + $0x1fb8] sm:$0xff] }
 0x5fd   : > { %v2276_v33 = vld [vmem:[%s7505_s22 + $0x3eb8] sm:$0xff]  ;;  %v5689_v37 = vpack.c.bf16 %v1284_v32, %v1252_v31  ;;  %v550_v31 = vld [vmem:[%s7505_s22 + $0x8c8] sm:$0xff] }
 0x5fe   : > { %v2308_v34 = vld [vmem:[%s7505_s22 + $0x3fb8] sm:$0xff]  ;;  %v582_v32 = vld [vmem:[%s7505_s22 + $0x9c8] sm:$0xff] }
 0x5ff   : > { %v6713_v38 = vpack.c.bf16 %v2308_v34, %v2276_v33  ;;  %v1574_v33 = vld [vmem:[%s7505_s22 + $0x28c8] sm:$0xff] }
 0x600   : > { %5648 = vmatpush1.bf16.xpose.msra.mxu0 %v5647_v43  ;;  %v931_v43 = vld [vmem:[%s7505_s22 + $0x14b0] sm:$0xff]  ;;  %v1606_v34 = vld [vmem:[%s7505_s22 + $0x29c8] sm:$0xff] }
 0x601   : > { %5650 = vmatprep.subr.bf16.mxu0 %v5649_v45  ;;  %v1955_v45 = vld [vmem:[%s7505_s22 + $0x34b0] sm:$0xff] }
 0x602   : > { %6672 = vmatpush1.bf16.xpose.msra.mxu1 %v6671_v44  ;;  %v963_v44 = vld [vmem:[%s7505_s22 + $0x15b0] sm:$0xff] }
 0x603   : > { %6674 = vmatprep.subr.bf16.mxu1 %v6673_v46  ;;  %v1987_v46 = vld [vmem:[%s7505_s22 + $0x35b0] sm:$0xff]  ;;  %v5671_v51 = vpack.c.bf16 %v963_v44, %v931_v43  ;;  %v294_v43 = vld [vmem:[%s7505_s22 + $0xc8] sm:$0xff] }
 0x604   : > { %v6695_v52 = vpack.c.bf16 %v1987_v46, %v1955_v45  ;;  %v326_v44 = vld [vmem:[%s7505_s22 + $0x1c8] sm:$0xff] }
 0x605   : > { %v1318_v45 = vld [vmem:[%s7505_s22 + $0x20c8] sm:$0xff]  ;;  %v5693_v49 = vpack.c.bf16 %v326_v44, %v294_v43 }
 0x606   : > { %v1350_v46 = vld [vmem:[%s7505_s22 + $0x21c8] sm:$0xff] }
 0x607   : > { %v6717_v50 = vpack.c.bf16 %v1350_v46, %v1318_v45  ;;  %v614_v43 = vld [vmem:[%s7505_s22 + $0xac8] sm:$0xff] }
 0x608   : > { %5652 = vmatpush1.bf16.xpose.msra.mxu0 %v5651_v55  ;;  %v995_v55 = vld [vmem:[%s7505_s22 + $0x16b0] sm:$0xff]  ;;  %v646_v44 = vld [vmem:[%s7505_s22 + $0xbc8] sm:$0xff] }
 0x609   : > { %5654 = vmatprep.subr.bf16.mxu0 %v5653_v57  ;;  %v2019_v57 = vld [vmem:[%s7505_s22 + $0x36b0] sm:$0xff]  ;;  %v1638_v45 = vld [vmem:[%s7505_s22 + $0x2ac8] sm:$0xff] }
 0x60a   : > { %6676 = vmatpush1.bf16.xpose.msra.mxu1 %v6675_v56  ;;  %v1027_v56 = vld [vmem:[%s7505_s22 + $0x17b0] sm:$0xff]  ;;  %v1670_v46 = vld [vmem:[%s7505_s22 + $0x2bc8] sm:$0xff] }
 0x60b   : > { %6678 = vmatprep.subr.bf16.mxu1 %v6677_v58  ;;  %v2051_v58 = vld [vmem:[%s7505_s22 + $0x37b0] sm:$0xff]  ;;  %v5675_v63 = vpack.c.bf16 %v1027_v56, %v995_v55  ;;  %v358_v55 = vld [vmem:[%s7505_s22 + $0x2c8] sm:$0xff] }
 0x60c   : > { %v6699_v0 = vpack.c.bf16 %v2051_v58, %v2019_v57  ;;  %v390_v56 = vld [vmem:[%s7505_s22 + $0x3c8] sm:$0xff] }
 0x60d   : > { %v1382_v57 = vld [vmem:[%s7505_s22 + $0x22c8] sm:$0xff]  ;;  %v5697_v62 = vpack.c.bf16 %v390_v56, %v358_v55 }
 0x60e   : > { %v1414_v58 = vld [vmem:[%s7505_s22 + $0x23c8] sm:$0xff] }
 0x60f   : > { %v678_v55 = vld [vmem:[%s7505_s22 + $0xcc8] sm:$0xff] }
 0x610   : > { %5656 = vmatpush1.bf16.xpose.msra.mxu0 %v5655_v3  ;;  %v1059_v3 = vld [vmem:[%s7505_s22 + $0x18b0] sm:$0xff]  ;;  %v710_v56 = vld [vmem:[%s7505_s22 + $0xdc8] sm:$0xff] }
 0x611   : > { %5658 = vmatprep.subr.bf16.mxu0 %v5657_v5  ;;  %v2083_v5 = vld [vmem:[%s7505_s22 + $0x38b0] sm:$0xff] }
 0x612   : > { %6680 = vmatpush1.bf16.xpose.msra.mxu1 %v6679_v4  ;;  %v1091_v4 = vld [vmem:[%s7505_s22 + $0x19b0] sm:$0xff] }
 0x613   : > { %6682 = vmatprep.subr.bf16.mxu1 %v6681_v6  ;;  %v2115_v6 = vld [vmem:[%s7505_s22 + $0x39b0] sm:$0xff]  ;;  %v5679_v11 = vpack.c.bf16 %v1091_v4, %v1059_v3  ;;  %v389_v3 = vld [vmem:[%s7505_s22 + $0x3c0] sm:$0xff] }
 0x614   : > { %v6703_v12 = vpack.c.bf16 %v2115_v6, %v2083_v5  ;;  %v1381_v4 = vld [vmem:[%s7505_s22 + $0x22c0] sm:$0xff]  ;;  %v230_v5 = vld [vmem:[#allocation2 + $0xc8] sm:$0xff] }
 0x615   : > { %v1413_v6 = vld [vmem:[%s7505_s22 + $0x23c0] sm:$0xff] }
 0x618   : > { %5660 = vmatpush1.bf16.xpose.msra.mxu0 %v5659_v15  ;;  %v1123_v15 = vld [vmem:[%s7505_s22 + $0x1ab0] sm:$0xff] }
 0x619   : > { %5662 = vmatprep.subr.bf16.mxu0 %v5661_v17  ;;  %v2147_v17 = vld [vmem:[%s7505_s22 + $0x3ab0] sm:$0xff] }
 0x61a   : > { %6684 = vmatpush1.bf16.xpose.msra.mxu1 %v6683_v16  ;;  %v1155_v16 = vld [vmem:[%s7505_s22 + $0x1bb0] sm:$0xff] }
 0x61b   : > { %6686 = vmatprep.subr.bf16.mxu1 %v6685_v18  ;;  %v2179_v18 = vld [vmem:[%s7505_s22 + $0x3bb0] sm:$0xff]  ;;  %v5683_v23 = vpack.c.bf16 %v1155_v16, %v1123_v15  ;;  %v421_v15 = vld [vmem:[%s7505_s22 + $0x4c0] sm:$0xff] }
 0x61c   : > { %v6707_v24 = vpack.c.bf16 %v2179_v18, %v2147_v17  ;;  %v453_v16 = vld [vmem:[%s7505_s22 + $0x5c0] sm:$0xff] }
 0x61d   : > { %v1445_v17 = vld [vmem:[%s7505_s22 + $0x24c0] sm:$0xff] }
 0x61e   : > { %v1477_v18 = vld [vmem:[%s7505_s22 + $0x25c0] sm:$0xff] }
 0x620   : > { %5664 = vmatpush1.bf16.xpose.msra.mxu0 %v5663_v27  ;;  %v1187_v27 = vld [vmem:[%s7505_s22 + $0x1cb0] sm:$0xff] }
 0x621   : > { %5666 = vmatprep.subr.bf16.mxu0 %v5665_v29  ;;  %v2211_v29 = vld [vmem:[%s7505_s22 + $0x3cb0] sm:$0xff] }
 0x622   : > { %6688 = vmatpush1.bf16.xpose.msra.mxu1 %v6687_v28  ;;  %v1219_v28 = vld [vmem:[%s7505_s22 + $0x1db0] sm:$0xff] }
 0x623   : > { %6690 = vmatprep.subr.bf16.mxu1 %v6689_v30  ;;  %v2243_v30 = vld [vmem:[%s7505_s22 + $0x3db0] sm:$0xff]  ;;  %v5687_v35 = vpack.c.bf16 %v1219_v28, %v1187_v27  ;;  %v485_v27 = vld [vmem:[%s7505_s22 + $0x6c0] sm:$0xff] }
 0x624   : > { %v6711_v36 = vpack.c.bf16 %v2243_v30, %v2211_v29  ;;  %v517_v28 = vld [vmem:[%s7505_s22 + $0x7c0] sm:$0xff] }
 0x625   : > { %v1509_v29 = vld [vmem:[%s7505_s22 + $0x26c0] sm:$0xff] }
 0x626   : > { %v1541_v30 = vld [vmem:[%s7505_s22 + $0x27c0] sm:$0xff] }
 0x628   : > { %5668 = vmatpush1.bf16.xpose.msra.mxu0 %v5667_v39  ;;  %v1251_v39 = vld [vmem:[%s7505_s22 + $0x1eb0] sm:$0xff] }
 0x629   : > { %5670 = vmatprep.subr.bf16.mxu0 %v5669_v41  ;;  %v2275_v41 = vld [vmem:[%s7505_s22 + $0x3eb0] sm:$0xff] }
 0x62a   : > { %6692 = vmatpush1.bf16.xpose.msra.mxu1 %v6691_v40  ;;  %v1283_v40 = vld [vmem:[%s7505_s22 + $0x1fb0] sm:$0xff] }
 0x62b   : > { %6694 = vmatprep.subr.bf16.mxu1 %v6693_v42  ;;  %v2307_v42 = vld [vmem:[%s7505_s22 + $0x3fb0] sm:$0xff]  ;;  %v5691_v47 = vpack.c.bf16 %v1283_v40, %v1251_v39  ;;  %v549_v39 = vld [vmem:[%s7505_s22 + $0x8c0] sm:$0xff] }
 0x62c   : > { %v6715_v48 = vpack.c.bf16 %v2307_v42, %v2275_v41  ;;  %v581_v40 = vld [vmem:[%s7505_s22 + $0x9c0] sm:$0xff] }
 0x62d   : > { %v1573_v41 = vld [vmem:[%s7505_s22 + $0x28c0] sm:$0xff] }
 0x62e   : > { %v1605_v42 = vld [vmem:[%s7505_s22 + $0x29c0] sm:$0xff] }
 0x630   : > { %5672 = vmatpush1.bf16.xpose.msra.mxu0 %v5671_v51  ;;  %v293_v51 = vld [vmem:[%s7505_s22 + $0xc0] sm:$0xff] }
 0x631   : > { %5674 = vmatprep.subr.bf16.mxu0 %v5673_v53  ;;  %v1317_v53 = vld [vmem:[%s7505_s22 + $0x20c0] sm:$0xff] }
 0x632   : > { %6696 = vmatpush1.bf16.xpose.msra.mxu1 %v6695_v52  ;;  %v325_v52 = vld [vmem:[%s7505_s22 + $0x1c0] sm:$0xff] }
 0x633   : > { %6698 = vmatprep.subr.bf16.mxu1 %v6697_v54  ;;  %v1349_v54 = vld [vmem:[%s7505_s22 + $0x21c0] sm:$0xff]  ;;  %v5695_v60 = vpack.c.bf16 %v325_v52, %v293_v51 }
 0x634   : > { %v6719_v61 = vpack.c.bf16 %v1349_v54, %v1317_v53  ;;  %v613_v51 = vld [vmem:[%s7505_s22 + $0xac0] sm:$0xff] }
 0x635   : > { %v645_v52 = vld [vmem:[%s7505_s22 + $0xbc0] sm:$0xff] }
 0x636   : > { %v1637_v53 = vld [vmem:[%s7505_s22 + $0x2ac0] sm:$0xff] }
 0x637   : > { %v1669_v54 = vld [vmem:[%s7505_s22 + $0x2bc0] sm:$0xff] }
 0x638   : > { %5676 = vmatpush1.bf16.xpose.msra.mxu0 %v5675_v63  ;;  %v6721_v63 = vpack.c.bf16 %v1414_v58, %v1382_v57  ;;  %v1702_v57 = vld [vmem:[%s7505_s22 + $0x2cc8] sm:$0xff] }
 0x639   : > { %5678 = vmatprep.subr.bf16.mxu0 %v5677_v1  ;;  %v357_v1 = vld [vmem:[%s7505_s22 + $0x2c0] sm:$0xff]  ;;  %v1734_v58 = vld [vmem:[%s7505_s22 + $0x2dc8] sm:$0xff] }
 0x63a   : > { %6700 = vmatpush1.bf16.xpose.msra.mxu1 %v6699_v0  ;;  %v260_v0 = vld [vmem:[#allocation2 + $0x1b8] sm:$0xff] }
 0x63b   : > { %6702 = vmatprep.subr.bf16.mxu1 %v6701_v2  ;;  %v259_v2 = vld [vmem:[#allocation2 + $0x1b0] sm:$0xff] }
 0x640   : > { %5680 = vmatpush1.bf16.xpose.msra.mxu0 %v5679_v11  ;;  %v5699_v11 = vpack.c.bf16 %v389_v3, %v357_v1  ;;  %v1701_v1 = vld [vmem:[%s7505_s22 + $0x2cc0] sm:$0xff]  ;;  %v742_v3 = vld [vmem:[%s7505_s22 + $0xec8] sm:$0xff] }
 0x641   : > { %5682 = vmatprep.subr.bf16.mxu0 %v5681_v13  ;;  %v5701_v13 = vpack.c.bf16 %v454_v8, %v422_v7 }
 0x642   : > { %6704 = vmatpush1.bf16.xpose.msra.mxu1 %v6703_v12  ;;  %v6723_v12 = vpack.c.bf16 %v1413_v6, %v1381_v4  ;;  %v774_v4 = vld [vmem:[%s7505_s22 + $0xfc8] sm:$0xff] }
 0x643   : > { %6706 = vmatprep.subr.bf16.mxu1 %v6705_v14  ;;  %v6725_v14 = vpack.c.bf16 %v1478_v10, %v1446_v9  ;;  %v1798_v6 = vld [vmem:[%s7505_s22 + $0x2fc8] sm:$0xff]  ;;  %v5721_v9 = vpack.c.bf16 %v774_v4, %v742_v3 }
 0x648   : > { %5684 = vmatpush1.bf16.xpose.msra.mxu0 %v5683_v23  ;;  %v5703_v23 = vpack.c.bf16 %v453_v16, %v421_v15  ;;  %v806_v15 = vld [vmem:[%s7505_s22 + $0x10c8] sm:$0xff] }
 0x649   : > { %5686 = vmatprep.subr.bf16.mxu0 %v5685_v25  ;;  %v5705_v25 = vpack.c.bf16 %v518_v20, %v486_v19  ;;  %v838_v16 = vld [vmem:[%s7505_s22 + $0x11c8] sm:$0xff] }
 0x64a   : > { %6708 = vmatpush1.bf16.xpose.msra.mxu1 %v6707_v24  ;;  %v6727_v24 = vpack.c.bf16 %v1477_v18, %v1445_v17  ;;  %v1830_v17 = vld [vmem:[%s7505_s22 + $0x30c8] sm:$0xff] }
 0x64b   : > { %6710 = vmatprep.subr.bf16.mxu1 %v6709_v26  ;;  %v6729_v26 = vpack.c.bf16 %v1542_v22, %v1510_v21  ;;  %v1862_v18 = vld [vmem:[%s7505_s22 + $0x31c8] sm:$0xff]  ;;  %v5725_v21 = vpack.c.bf16 %v838_v16, %v806_v15 }
 0x64c   : > { %v6749_v22 = vpack.c.bf16 %v1862_v18, %v1830_v17 }
 0x650   : > { %5688 = vmatpush1.bf16.xpose.msra.mxu0 %v5687_v35  ;;  %v5707_v35 = vpack.c.bf16 %v517_v28, %v485_v27  ;;  %v870_v27 = vld [vmem:[%s7505_s22 + $0x12c8] sm:$0xff] }
 0x651   : > { %5690 = vmatprep.subr.bf16.mxu0 %v5689_v37  ;;  %v5709_v37 = vpack.c.bf16 %v582_v32, %v550_v31  ;;  %v902_v28 = vld [vmem:[%s7505_s22 + $0x13c8] sm:$0xff] }
 0x652   : > { %6712 = vmatpush1.bf16.xpose.msra.mxu1 %v6711_v36  ;;  %v6731_v36 = vpack.c.bf16 %v1541_v30, %v1509_v29  ;;  %v1894_v29 = vld [vmem:[%s7505_s22 + $0x32c8] sm:$0xff] }
 0x653   : > { %6714 = vmatprep.subr.bf16.mxu1 %v6713_v38  ;;  %v6733_v38 = vpack.c.bf16 %v1606_v34, %v1574_v33  ;;  %v1926_v30 = vld [vmem:[%s7505_s22 + $0x33c8] sm:$0xff]  ;;  %v5729_v33 = vpack.c.bf16 %v902_v28, %v870_v27 }
 0x654   : > { %v6753_v34 = vpack.c.bf16 %v1926_v30, %v1894_v29 }
 0x658   : > { %5692 = vmatpush1.bf16.xpose.msra.mxu0 %v5691_v47  ;;  %v5711_v47 = vpack.c.bf16 %v581_v40, %v549_v39  ;;  %v934_v39 = vld [vmem:[%s7505_s22 + $0x14c8] sm:$0xff] }
 0x659   : > { %5694 = vmatprep.subr.bf16.mxu0 %v5693_v49  ;;  %v5713_v49 = vpack.c.bf16 %v646_v44, %v614_v43  ;;  %v966_v40 = vld [vmem:[%s7505_s22 + $0x15c8] sm:$0xff] }
 0x65a   : > { %6716 = vmatpush1.bf16.xpose.msra.mxu1 %v6715_v48  ;;  %v6735_v48 = vpack.c.bf16 %v1605_v42, %v1573_v41  ;;  %v1958_v41 = vld [vmem:[%s7505_s22 + $0x34c8] sm:$0xff] }
 0x65b   : > { %6718 = vmatprep.subr.bf16.mxu1 %v6717_v50  ;;  %v6737_v50 = vpack.c.bf16 %v1670_v46, %v1638_v45  ;;  %v1990_v42 = vld [vmem:[%s7505_s22 + $0x35c8] sm:$0xff]  ;;  %v5733_v45 = vpack.c.bf16 %v966_v40, %v934_v39 }
 0x65c   : > { %v6757_v46 = vpack.c.bf16 %v1990_v42, %v1958_v41 }
 0x65f   : > { %3229 = vmatmul.mubr.f32.vlgmr.msra.gmra.mrb[0].mxu0 %v227_v59 }
 0x660   : > { %5696 = vmatpush1.bf16.xpose.msra.mxu0 %v5695_v60  ;;  %3234 = vmatprep.mubr.f32.mxu0 %v260_v0  ;;  %v6739_v60 = vpack.c.bf16 %v1669_v54, %v1637_v53  ;;  %v2022_v53 = vld [vmem:[%s7505_s22 + $0x36c8] sm:$0xff] }
 0x661   : > { %4461 = vmatmul.mubr.f32.vlgmr.msra.gmra.mrb[0].mxu1 %v227_v59  ;;  %5698 = vmatprep.subr.bf16.mxu0 %v5697_v62  ;;  %v5715_v59 = vpack.c.bf16 %v645_v52, %v613_v51  ;;  %v6741_v62 = vpack.c.bf16 %v1734_v58, %v1702_v57  ;;  %v998_v51 = vld [vmem:[%s7505_s22 + $0x16c8] sm:$0xff] }
 0x662   : > { %6720 = vmatpush1.bf16.xpose.msra.mxu1 %v6719_v61  ;;  %4466 = vmatprep.mubr.f32.mxu1 %v260_v0  ;;  %v5717_v61 = vpack.c.bf16 %v710_v56, %v678_v55  ;;  %v709_v0 = vld [vmem:[%s7505_s22 + $0xdc0] sm:$0xff]  ;;  %v1030_v52 = vld [vmem:[%s7505_s22 + $0x17c8] sm:$0xff] }
 0x663   : > { %6722 = vmatprep.subr.bf16.mxu1 %v6721_v63  ;;  %3235 = vmatmul.mubr.f32.gmra.mrb[2].mxu0 %v259_v2  ;;  %v677_v63 = vld [vmem:[%s7505_s22 + $0xcc0] sm:$0xff]  ;;  %v2054_v54 = vld [vmem:[%s7505_s22 + $0x37c8] sm:$0xff]  ;;  %v5737_v57 = vpack.c.bf16 %v1030_v52, %v998_v51 }
 0x664   : > { %3305 = vmatprep.mubr.f32.mxu0 %v230_v5  ;;  %v5719_v7 = vpack.c.bf16 %v709_v0, %v677_v63  ;;  %v6761_v58 = vpack.c.bf16 %v2054_v54, %v2022_v53  ;;  %v1062_v63 = vld [vmem:[%s7505_s22 + $0x18c8] sm:$0xff] }
 0x665   : > { %4467 = vmatmul.mubr.f32.gmra.mrb[2].mxu1 %v259_v2  ;;  %v1733_v2 = vld [vmem:[%s7505_s22 + $0x2dc0] sm:$0xff]  ;;  %v1094_v0 = vld [vmem:[%s7505_s22 + $0x19c8] sm:$0xff] }
 0x666   : > { %4537 = vmatprep.mubr.f32.mxu1 %v230_v5  ;;  %v1766_v5 = vld [vmem:[%s7505_s22 + $0x2ec8] sm:$0xff]  ;;  %v6743_v8 = vpack.c.bf16 %v1733_v2, %v1701_v1 }
 0x667   : > { %v6745_v10 = vpack.c.bf16 %v1798_v6, %v1766_v5  ;;  %v2086_v1 = vld [vmem:[%s7505_s22 + $0x38c8] sm:$0xff]  ;;  %v5741_v5 = vpack.c.bf16 %v1094_v0, %v1062_v63  ;;  %v229_v63 = vld [vmem:[#allocation2 + $0xc0] sm:$0xff] }
 0x668   : > { %5700 = vmatpush1.bf16.xpose.msra.mxu0 %v5699_v11  ;;  %v741_v11 = vld [vmem:[%s7505_s22 + $0xec0] sm:$0xff]  ;;  %v2118_v2 = vld [vmem:[%s7505_s22 + $0x39c8] sm:$0xff] }
 0x669   : > { %5702 = vmatprep.subr.bf16.mxu0 %v5701_v13  ;;  %v1765_v13 = vld [vmem:[%s7505_s22 + $0x2ec0] sm:$0xff]  ;;  %v6765_v6 = vpack.c.bf16 %v2118_v2, %v2086_v1 }
 0x66a   : > { %6724 = vmatpush1.bf16.xpose.msra.mxu1 %v6723_v12  ;;  %v773_v12 = vld [vmem:[%s7505_s22 + $0xfc0] sm:$0xff] }
 0x66b   : > { %6726 = vmatprep.subr.bf16.mxu1 %v6725_v14  ;;  %v1797_v14 = vld [vmem:[%s7505_s22 + $0x2fc0] sm:$0xff]  ;;  %v5723_v19 = vpack.c.bf16 %v773_v12, %v741_v11  ;;  %v1126_v11 = vld [vmem:[%s7505_s22 + $0x1ac8] sm:$0xff] }
 0x66c   : > { %v6747_v20 = vpack.c.bf16 %v1797_v14, %v1765_v13  ;;  %v1158_v12 = vld [vmem:[%s7505_s22 + $0x1bc8] sm:$0xff] }
 0x66d   : > { %v2150_v13 = vld [vmem:[%s7505_s22 + $0x3ac8] sm:$0xff]  ;;  %v5745_v17 = vpack.c.bf16 %v1158_v12, %v1126_v11  ;;  %v424_v11 = vld [vmem:[%s7505_s22 + $0x4d8] sm:$0xff] }
 0x66e   : > { %v2182_v14 = vld [vmem:[%s7505_s22 + $0x3bc8] sm:$0xff]  ;;  %v456_v12 = vld [vmem:[%s7505_s22 + $0x5d8] sm:$0xff] }
 0x66f   : > { %v6769_v18 = vpack.c.bf16 %v2182_v14, %v2150_v13  ;;  %v1448_v13 = vld [vmem:[%s7505_s22 + $0x24d8] sm:$0xff] }
 0x670   : > { %5704 = vmatpush1.bf16.xpose.msra.mxu0 %v5703_v23  ;;  %v805_v23 = vld [vmem:[%s7505_s22 + $0x10c0] sm:$0xff]  ;;  %v1480_v14 = vld [vmem:[%s7505_s22 + $0x25d8] sm:$0xff] }
 0x671   : > { %5706 = vmatprep.subr.bf16.mxu0 %v5705_v25  ;;  %v1829_v25 = vld [vmem:[%s7505_s22 + $0x30c0] sm:$0xff] }
 0x672   : > { %6728 = vmatpush1.bf16.xpose.msra.mxu1 %v6727_v24  ;;  %v837_v24 = vld [vmem:[%s7505_s22 + $0x11c0] sm:$0xff] }
 0x673   : > { %6730 = vmatprep.subr.bf16.mxu1 %v6729_v26  ;;  %v1861_v26 = vld [vmem:[%s7505_s22 + $0x31c0] sm:$0xff]  ;;  %v5727_v31 = vpack.c.bf16 %v837_v24, %v805_v23  ;;  %v1190_v23 = vld [vmem:[%s7505_s22 + $0x1cc8] sm:$0xff] }
 0x674   : > { %v6751_v32 = vpack.c.bf16 %v1861_v26, %v1829_v25  ;;  %v1222_v24 = vld [vmem:[%s7505_s22 + $0x1dc8] sm:$0xff] }
 0x675   : > { %v2214_v25 = vld [vmem:[%s7505_s22 + $0x3cc8] sm:$0xff]  ;;  %v5749_v29 = vpack.c.bf16 %v1222_v24, %v1190_v23  ;;  %v488_v23 = vld [vmem:[%s7505_s22 + $0x6d8] sm:$0xff] }
 0x676   : > { %v2246_v26 = vld [vmem:[%s7505_s22 + $0x3dc8] sm:$0xff]  ;;  %v520_v24 = vld [vmem:[%s7505_s22 + $0x7d8] sm:$0xff] }
 0x677   : > { %v6773_v30 = vpack.c.bf16 %v2246_v26, %v2214_v25  ;;  %v1512_v25 = vld [vmem:[%s7505_s22 + $0x26d8] sm:$0xff] }
 0x678   : > { %5708 = vmatpush1.bf16.xpose.msra.mxu0 %v5707_v35  ;;  %v869_v35 = vld [vmem:[%s7505_s22 + $0x12c0] sm:$0xff]  ;;  %v1544_v26 = vld [vmem:[%s7505_s22 + $0x27d8] sm:$0xff] }
 0x679   : > { %5710 = vmatprep.subr.bf16.mxu0 %v5709_v37  ;;  %v1893_v37 = vld [vmem:[%s7505_s22 + $0x32c0] sm:$0xff] }
 0x67a   : > { %6732 = vmatpush1.bf16.xpose.msra.mxu1 %v6731_v36  ;;  %v901_v36 = vld [vmem:[%s7505_s22 + $0x13c0] sm:$0xff] }
 0x67b   : > { %6734 = vmatprep.subr.bf16.mxu1 %v6733_v38  ;;  %v1925_v38 = vld [vmem:[%s7505_s22 + $0x33c0] sm:$0xff]  ;;  %v5731_v43 = vpack.c.bf16 %v901_v36, %v869_v35  ;;  %v1254_v35 = vld [vmem:[%s7505_s22 + $0x1ec8] sm:$0xff] }
 0x67c   : > { %v6755_v44 = vpack.c.bf16 %v1925_v38, %v1893_v37  ;;  %v1286_v36 = vld [vmem:[%s7505_s22 + $0x1fc8] sm:$0xff] }
 0x67d   : > { %v2278_v37 = vld [vmem:[%s7505_s22 + $0x3ec8] sm:$0xff]  ;;  %v5753_v41 = vpack.c.bf16 %v1286_v36, %v1254_v35  ;;  %v552_v35 = vld [vmem:[%s7505_s22 + $0x8d8] sm:$0xff] }
 0x67e   : > { %v2310_v38 = vld [vmem:[%s7505_s22 + $0x3fc8] sm:$0xff]  ;;  %v584_v36 = vld [vmem:[%s7505_s22 + $0x9d8] sm:$0xff] }
 0x67f   : > { %v6777_v42 = vpack.c.bf16 %v2310_v38, %v2278_v37  ;;  %v1576_v37 = vld [vmem:[%s7505_s22 + $0x28d8] sm:$0xff] }
 0x680   : > { %5712 = vmatpush1.bf16.xpose.msra.mxu0 %v5711_v47  ;;  %v933_v47 = vld [vmem:[%s7505_s22 + $0x14c0] sm:$0xff]  ;;  %v1608_v38 = vld [vmem:[%s7505_s22 + $0x29d8] sm:$0xff] }
 0x681   : > { %5714 = vmatprep.subr.bf16.mxu0 %v5713_v49  ;;  %v1957_v49 = vld [vmem:[%s7505_s22 + $0x34c0] sm:$0xff] }
 0x682   : > { %6736 = vmatpush1.bf16.xpose.msra.mxu1 %v6735_v48  ;;  %v965_v48 = vld [vmem:[%s7505_s22 + $0x15c0] sm:$0xff] }
 0x683   : > { %6738 = vmatprep.subr.bf16.mxu1 %v6737_v50  ;;  %v1989_v50 = vld [vmem:[%s7505_s22 + $0x35c0] sm:$0xff]  ;;  %v5735_v55 = vpack.c.bf16 %v965_v48, %v933_v47  ;;  %v296_v47 = vld [vmem:[%s7505_s22 + $0xd8] sm:$0xff] }
 0x684   : > { %v6759_v56 = vpack.c.bf16 %v1989_v50, %v1957_v49  ;;  %v328_v48 = vld [vmem:[%s7505_s22 + $0x1d8] sm:$0xff] }
 0x685   : > { %v1320_v49 = vld [vmem:[%s7505_s22 + $0x20d8] sm:$0xff]  ;;  %v5757_v53 = vpack.c.bf16 %v328_v48, %v296_v47 }
 0x686   : > { %v1352_v50 = vld [vmem:[%s7505_s22 + $0x21d8] sm:$0xff] }
 0x687   : > { %v6781_v54 = vpack.c.bf16 %v1352_v50, %v1320_v49  ;;  %v616_v47 = vld [vmem:[%s7505_s22 + $0xad8] sm:$0xff] }
 0x688   : > { %5716 = vmatpush1.bf16.xpose.msra.mxu0 %v5715_v59  ;;  %v997_v59 = vld [vmem:[%s7505_s22 + $0x16c0] sm:$0xff]  ;;  %v648_v48 = vld [vmem:[%s7505_s22 + $0xbd8] sm:$0xff] }
 0x689   : > { %5718 = vmatprep.subr.bf16.mxu0 %v5717_v61  ;;  %v2021_v61 = vld [vmem:[%s7505_s22 + $0x36c0] sm:$0xff]  ;;  %v1640_v49 = vld [vmem:[%s7505_s22 + $0x2ad8] sm:$0xff] }
 0x68a   : > { %6740 = vmatpush1.bf16.xpose.msra.mxu1 %v6739_v60  ;;  %v1029_v60 = vld [vmem:[%s7505_s22 + $0x17c0] sm:$0xff]  ;;  %v1672_v50 = vld [vmem:[%s7505_s22 + $0x2bd8] sm:$0xff] }
 0x68b   : > { %6742 = vmatprep.subr.bf16.mxu1 %v6741_v62  ;;  %v2053_v62 = vld [vmem:[%s7505_s22 + $0x37c0] sm:$0xff]  ;;  %v5739_v3 = vpack.c.bf16 %v1029_v60, %v997_v59  ;;  %v360_v59 = vld [vmem:[%s7505_s22 + $0x2d8] sm:$0xff] }
 0x68c   : > { %v6763_v4 = vpack.c.bf16 %v2053_v62, %v2021_v61  ;;  %v392_v60 = vld [vmem:[%s7505_s22 + $0x3d8] sm:$0xff] }
 0x68d   : > { %v1384_v61 = vld [vmem:[%s7505_s22 + $0x22d8] sm:$0xff]  ;;  %v5761_v2 = vpack.c.bf16 %v392_v60, %v360_v59 }
 0x68e   : > { %v1416_v62 = vld [vmem:[%s7505_s22 + $0x23d8] sm:$0xff] }
 0x68f   : > { %v680_v59 = vld [vmem:[%s7505_s22 + $0xcd8] sm:$0xff] }
 0x690   : > { %5720 = vmatpush1.bf16.xpose.msra.mxu0 %v5719_v7  ;;  %v1061_v7 = vld [vmem:[%s7505_s22 + $0x18c0] sm:$0xff]  ;;  %v712_v60 = vld [vmem:[%s7505_s22 + $0xdd8] sm:$0xff] }
 0x691   : > { %5722 = vmatprep.subr.bf16.mxu0 %v5721_v9  ;;  %v2085_v9 = vld [vmem:[%s7505_s22 + $0x38c0] sm:$0xff] }
 0x692   : > { %6744 = vmatpush1.bf16.xpose.msra.mxu1 %v6743_v8  ;;  %v1093_v8 = vld [vmem:[%s7505_s22 + $0x19c0] sm:$0xff] }
 0x693   : > { %6746 = vmatprep.subr.bf16.mxu1 %v6745_v10  ;;  %v2117_v10 = vld [vmem:[%s7505_s22 + $0x39c0] sm:$0xff]  ;;  %v5743_v15 = vpack.c.bf16 %v1093_v8, %v1061_v7  ;;  %v391_v7 = vld [vmem:[%s7505_s22 + $0x3d0] sm:$0xff] }
 0x694   : > { %v6767_v16 = vpack.c.bf16 %v2117_v10, %v2085_v9  ;;  %v1383_v8 = vld [vmem:[%s7505_s22 + $0x22d0] sm:$0xff]  ;;  %v232_v9 = vld [vmem:[#allocation2 + $0xd8] sm:$0xff] }
 0x695   : > { %v1415_v10 = vld [vmem:[%s7505_s22 + $0x23d0] sm:$0xff] }
 0x698   : > { %5724 = vmatpush1.bf16.xpose.msra.mxu0 %v5723_v19  ;;  %v1125_v19 = vld [vmem:[%s7505_s22 + $0x1ac0] sm:$0xff] }
 0x699   : > { %5726 = vmatprep.subr.bf16.mxu0 %v5725_v21  ;;  %v2149_v21 = vld [vmem:[%s7505_s22 + $0x3ac0] sm:$0xff] }
 0x69a   : > { %6748 = vmatpush1.bf16.xpose.msra.mxu1 %v6747_v20  ;;  %v1157_v20 = vld [vmem:[%s7505_s22 + $0x1bc0] sm:$0xff] }
 0x69b   : > { %6750 = vmatprep.subr.bf16.mxu1 %v6749_v22  ;;  %v2181_v22 = vld [vmem:[%s7505_s22 + $0x3bc0] sm:$0xff]  ;;  %v5747_v27 = vpack.c.bf16 %v1157_v20, %v1125_v19  ;;  %v423_v19 = vld [vmem:[%s7505_s22 + $0x4d0] sm:$0xff] }
 0x69c   : > { %v6771_v28 = vpack.c.bf16 %v2181_v22, %v2149_v21  ;;  %v455_v20 = vld [vmem:[%s7505_s22 + $0x5d0] sm:$0xff] }
 0x69d   : > { %v1447_v21 = vld [vmem:[%s7505_s22 + $0x24d0] sm:$0xff] }
 0x69e   : > { %v1479_v22 = vld [vmem:[%s7505_s22 + $0x25d0] sm:$0xff] }
 0x6a0   : > { %5728 = vmatpush1.bf16.xpose.msra.mxu0 %v5727_v31  ;;  %v1189_v31 = vld [vmem:[%s7505_s22 + $0x1cc0] sm:$0xff] }
 0x6a1   : > { %5730 = vmatprep.subr.bf16.mxu0 %v5729_v33  ;;  %v2213_v33 = vld [vmem:[%s7505_s22 + $0x3cc0] sm:$0xff] }
 0x6a2   : > { %6752 = vmatpush1.bf16.xpose.msra.mxu1 %v6751_v32  ;;  %v1221_v32 = vld [vmem:[%s7505_s22 + $0x1dc0] sm:$0xff] }
 0x6a3   : > { %6754 = vmatprep.subr.bf16.mxu1 %v6753_v34  ;;  %v2245_v34 = vld [vmem:[%s7505_s22 + $0x3dc0] sm:$0xff]  ;;  %v5751_v39 = vpack.c.bf16 %v1221_v32, %v1189_v31  ;;  %v487_v31 = vld [vmem:[%s7505_s22 + $0x6d0] sm:$0xff] }
 0x6a4   : > { %v6775_v40 = vpack.c.bf16 %v2245_v34, %v2213_v33  ;;  %v519_v32 = vld [vmem:[%s7505_s22 + $0x7d0] sm:$0xff] }
 0x6a5   : > { %v1511_v33 = vld [vmem:[%s7505_s22 + $0x26d0] sm:$0xff] }
 0x6a6   : > { %v1543_v34 = vld [vmem:[%s7505_s22 + $0x27d0] sm:$0xff] }
 0x6a8   : > { %5732 = vmatpush1.bf16.xpose.msra.mxu0 %v5731_v43  ;;  %v1253_v43 = vld [vmem:[%s7505_s22 + $0x1ec0] sm:$0xff] }
 0x6a9   : > { %5734 = vmatprep.subr.bf16.mxu0 %v5733_v45  ;;  %v2277_v45 = vld [vmem:[%s7505_s22 + $0x3ec0] sm:$0xff] }
 0x6aa   : > { %6756 = vmatpush1.bf16.xpose.msra.mxu1 %v6755_v44  ;;  %v1285_v44 = vld [vmem:[%s7505_s22 + $0x1fc0] sm:$0xff] }
 0x6ab   : > { %6758 = vmatprep.subr.bf16.mxu1 %v6757_v46  ;;  %v2309_v46 = vld [vmem:[%s7505_s22 + $0x3fc0] sm:$0xff]  ;;  %v5755_v51 = vpack.c.bf16 %v1285_v44, %v1253_v43  ;;  %v551_v43 = vld [vmem:[%s7505_s22 + $0x8d0] sm:$0xff] }
 0x6ac   : > { %v6779_v52 = vpack.c.bf16 %v2309_v46, %v2277_v45  ;;  %v583_v44 = vld [vmem:[%s7505_s22 + $0x9d0] sm:$0xff] }
 0x6ad   : > { %v1575_v45 = vld [vmem:[%s7505_s22 + $0x28d0] sm:$0xff] }
 0x6ae   : > { %v1607_v46 = vld [vmem:[%s7505_s22 + $0x29d0] sm:$0xff] }
 0x6b0   : > { %5736 = vmatpush1.bf16.xpose.msra.mxu0 %v5735_v55  ;;  %v295_v55 = vld [vmem:[%s7505_s22 + $0xd0] sm:$0xff] }
 0x6b1   : > { %5738 = vmatprep.subr.bf16.mxu0 %v5737_v57  ;;  %v1319_v57 = vld [vmem:[%s7505_s22 + $0x20d0] sm:$0xff] }
 0x6b2   : > { %6760 = vmatpush1.bf16.xpose.msra.mxu1 %v6759_v56  ;;  %v327_v56 = vld [vmem:[%s7505_s22 + $0x1d0] sm:$0xff] }
 0x6b3   : > { %6762 = vmatprep.subr.bf16.mxu1 %v6761_v58  ;;  %v1351_v58 = vld [vmem:[%s7505_s22 + $0x21d0] sm:$0xff]  ;;  %v5759_v0 = vpack.c.bf16 %v327_v56, %v295_v55 }
 0x6b4   : > { %v6783_v1 = vpack.c.bf16 %v1351_v58, %v1319_v57  ;;  %v615_v55 = vld [vmem:[%s7505_s22 + $0xad0] sm:$0xff] }
 0x6b5   : > { %v647_v56 = vld [vmem:[%s7505_s22 + $0xbd0] sm:$0xff] }
 0x6b6   : > { %v1639_v57 = vld [vmem:[%s7505_s22 + $0x2ad0] sm:$0xff] }
 0x6b7   : > { %v1671_v58 = vld [vmem:[%s7505_s22 + $0x2bd0] sm:$0xff] }
 0x6b8   : > { %5740 = vmatpush1.bf16.xpose.msra.mxu0 %v5739_v3  ;;  %v6785_v3 = vpack.c.bf16 %v1416_v62, %v1384_v61  ;;  %v1704_v61 = vld [vmem:[%s7505_s22 + $0x2cd8] sm:$0xff] }
 0x6b9   : > { %5742 = vmatprep.subr.bf16.mxu0 %v5741_v5  ;;  %v359_v5 = vld [vmem:[%s7505_s22 + $0x2d0] sm:$0xff]  ;;  %v1736_v62 = vld [vmem:[%s7505_s22 + $0x2dd8] sm:$0xff] }
 0x6ba   : > { %6764 = vmatpush1.bf16.xpose.msra.mxu1 %v6763_v4  ;;  %v262_v4 = vld [vmem:[#allocation2 + $0x1c8] sm:$0xff] }
 0x6bb   : > { %6766 = vmatprep.subr.bf16.mxu1 %v6765_v6  ;;  %v261_v6 = vld [vmem:[#allocation2 + $0x1c0] sm:$0xff] }
 0x6c0   : > { %5744 = vmatpush1.bf16.xpose.msra.mxu0 %v5743_v15  ;;  %v5763_v15 = vpack.c.bf16 %v391_v7, %v359_v5  ;;  %v1703_v5 = vld [vmem:[%s7505_s22 + $0x2cd0] sm:$0xff]  ;;  %v744_v7 = vld [vmem:[%s7505_s22 + $0xed8] sm:$0xff] }
 0x6c1   : > { %5746 = vmatprep.subr.bf16.mxu0 %v5745_v17  ;;  %v5765_v17 = vpack.c.bf16 %v456_v12, %v424_v11 }
 0x6c2   : > { %6768 = vmatpush1.bf16.xpose.msra.mxu1 %v6767_v16  ;;  %v6787_v16 = vpack.c.bf16 %v1415_v10, %v1383_v8  ;;  %v776_v8 = vld [vmem:[%s7505_s22 + $0xfd8] sm:$0xff] }
 0x6c3   : > { %6770 = vmatprep.subr.bf16.mxu1 %v6769_v18  ;;  %v6789_v18 = vpack.c.bf16 %v1480_v14, %v1448_v13  ;;  %v1800_v10 = vld [vmem:[%s7505_s22 + $0x2fd8] sm:$0xff]  ;;  %v5785_v13 = vpack.c.bf16 %v776_v8, %v744_v7 }
 0x6c8   : > { %5748 = vmatpush1.bf16.xpose.msra.mxu0 %v5747_v27  ;;  %v5767_v27 = vpack.c.bf16 %v455_v20, %v423_v19  ;;  %v808_v19 = vld [vmem:[%s7505_s22 + $0x10d8] sm:$0xff] }
 0x6c9   : > { %5750 = vmatprep.subr.bf16.mxu0 %v5749_v29  ;;  %v5769_v29 = vpack.c.bf16 %v520_v24, %v488_v23  ;;  %v840_v20 = vld [vmem:[%s7505_s22 + $0x11d8] sm:$0xff] }
 0x6ca   : > { %6772 = vmatpush1.bf16.xpose.msra.mxu1 %v6771_v28  ;;  %v6791_v28 = vpack.c.bf16 %v1479_v22, %v1447_v21  ;;  %v1832_v21 = vld [vmem:[%s7505_s22 + $0x30d8] sm:$0xff] }
 0x6cb   : > { %6774 = vmatprep.subr.bf16.mxu1 %v6773_v30  ;;  %v6793_v30 = vpack.c.bf16 %v1544_v26, %v1512_v25  ;;  %v1864_v22 = vld [vmem:[%s7505_s22 + $0x31d8] sm:$0xff]  ;;  %v5789_v25 = vpack.c.bf16 %v840_v20, %v808_v19 }
 0x6cc   : > { %v6813_v26 = vpack.c.bf16 %v1864_v22, %v1832_v21 }
 0x6d0   : > { %5752 = vmatpush1.bf16.xpose.msra.mxu0 %v5751_v39  ;;  %v5771_v39 = vpack.c.bf16 %v519_v32, %v487_v31  ;;  %v872_v31 = vld [vmem:[%s7505_s22 + $0x12d8] sm:$0xff] }
 0x6d1   : > { %5754 = vmatprep.subr.bf16.mxu0 %v5753_v41  ;;  %v5773_v41 = vpack.c.bf16 %v584_v36, %v552_v35  ;;  %v904_v32 = vld [vmem:[%s7505_s22 + $0x13d8] sm:$0xff] }
 0x6d2   : > { %6776 = vmatpush1.bf16.xpose.msra.mxu1 %v6775_v40  ;;  %v6795_v40 = vpack.c.bf16 %v1543_v34, %v1511_v33  ;;  %v1896_v33 = vld [vmem:[%s7505_s22 + $0x32d8] sm:$0xff] }
 0x6d3   : > { %6778 = vmatprep.subr.bf16.mxu1 %v6777_v42  ;;  %v6797_v42 = vpack.c.bf16 %v1608_v38, %v1576_v37  ;;  %v1928_v34 = vld [vmem:[%s7505_s22 + $0x33d8] sm:$0xff]  ;;  %v5793_v37 = vpack.c.bf16 %v904_v32, %v872_v31 }
 0x6d4   : > { %v6817_v38 = vpack.c.bf16 %v1928_v34, %v1896_v33 }
 0x6d8   : > { %5756 = vmatpush1.bf16.xpose.msra.mxu0 %v5755_v51  ;;  %v5775_v51 = vpack.c.bf16 %v583_v44, %v551_v43  ;;  %v936_v43 = vld [vmem:[%s7505_s22 + $0x14d8] sm:$0xff] }
 0x6d9   : > { %5758 = vmatprep.subr.bf16.mxu0 %v5757_v53  ;;  %v5777_v53 = vpack.c.bf16 %v648_v48, %v616_v47  ;;  %v968_v44 = vld [vmem:[%s7505_s22 + $0x15d8] sm:$0xff] }
 0x6da   : > { %6780 = vmatpush1.bf16.xpose.msra.mxu1 %v6779_v52  ;;  %v6799_v52 = vpack.c.bf16 %v1607_v46, %v1575_v45  ;;  %v1960_v45 = vld [vmem:[%s7505_s22 + $0x34d8] sm:$0xff] }
 0x6db   : > { %6782 = vmatprep.subr.bf16.mxu1 %v6781_v54  ;;  %v6801_v54 = vpack.c.bf16 %v1672_v50, %v1640_v49  ;;  %v1992_v46 = vld [vmem:[%s7505_s22 + $0x35d8] sm:$0xff]  ;;  %v5797_v49 = vpack.c.bf16 %v968_v44, %v936_v43 }
 0x6dc   : > { %v6821_v50 = vpack.c.bf16 %v1992_v46, %v1960_v45 }
 0x6df   : > { %3306 = vmatmul.mubr.f32.vlgmr.msra.gmra.mrb[0].mxu0 %v229_v63 }
 0x6e0   : > { %5760 = vmatpush1.bf16.xpose.msra.mxu0 %v5759_v0  ;;  %3311 = vmatprep.mubr.f32.mxu0 %v262_v4  ;;  %v6803_v0 = vpack.c.bf16 %v1671_v58, %v1639_v57  ;;  %v2024_v57 = vld [vmem:[%s7505_s22 + $0x36d8] sm:$0xff] }
 0x6e1   : > { %4538 = vmatmul.mubr.f32.vlgmr.msra.gmra.mrb[0].mxu1 %v229_v63  ;;  %5762 = vmatprep.subr.bf16.mxu0 %v5761_v2  ;;  %v5779_v63 = vpack.c.bf16 %v647_v56, %v615_v55  ;;  %v6805_v2 = vpack.c.bf16 %v1736_v62, %v1704_v61  ;;  %v1000_v55 = vld [vmem:[%s7505_s22 + $0x16d8] sm:$0xff] }
 0x6e2   : > { %6784 = vmatpush1.bf16.xpose.msra.mxu1 %v6783_v1  ;;  %4543 = vmatprep.mubr.f32.mxu1 %v262_v4  ;;  %v5781_v1 = vpack.c.bf16 %v712_v60, %v680_v59  ;;  %v711_v4 = vld [vmem:[%s7505_s22 + $0xdd0] sm:$0xff]  ;;  %v1032_v56 = vld [vmem:[%s7505_s22 + $0x17d8] sm:$0xff] }
 0x6e3   : > { %6786 = vmatprep.subr.bf16.mxu1 %v6785_v3  ;;  %3312 = vmatmul.mubr.f32.gmra.mrb[2].mxu0 %v261_v6  ;;  %v679_v3 = vld [vmem:[%s7505_s22 + $0xcd0] sm:$0xff]  ;;  %v2056_v58 = vld [vmem:[%s7505_s22 + $0x37d8] sm:$0xff]  ;;  %v5801_v61 = vpack.c.bf16 %v1032_v56, %v1000_v55 }
 0x6e4   : > { %3382 = vmatprep.mubr.f32.mxu0 %v232_v9  ;;  %v5783_v11 = vpack.c.bf16 %v711_v4, %v679_v3  ;;  %v6825_v62 = vpack.c.bf16 %v2056_v58, %v2024_v57  ;;  %v1064_v3 = vld [vmem:[%s7505_s22 + $0x18d8] sm:$0xff] }
 0x6e5   : > { %4544 = vmatmul.mubr.f32.gmra.mrb[2].mxu1 %v261_v6  ;;  %v1735_v6 = vld [vmem:[%s7505_s22 + $0x2dd0] sm:$0xff]  ;;  %v1096_v4 = vld [vmem:[%s7505_s22 + $0x19d8] sm:$0xff] }
 0x6e6   : > { %4614 = vmatprep.mubr.f32.mxu1 %v232_v9  ;;  %v1768_v9 = vld [vmem:[%s7505_s22 + $0x2ed8] sm:$0xff]  ;;  %v6807_v12 = vpack.c.bf16 %v1735_v6, %v1703_v5 }
 0x6e7   : > { %v6809_v14 = vpack.c.bf16 %v1800_v10, %v1768_v9  ;;  %v2088_v5 = vld [vmem:[%s7505_s22 + $0x38d8] sm:$0xff]  ;;  %v5805_v9 = vpack.c.bf16 %v1096_v4, %v1064_v3  ;;  %v231_v3 = vld [vmem:[#allocation2 + $0xd0] sm:$0xff] }
 0x6e8   : > { %5764 = vmatpush1.bf16.xpose.msra.mxu0 %v5763_v15  ;;  %v743_v15 = vld [vmem:[%s7505_s22 + $0xed0] sm:$0xff]  ;;  %v2120_v6 = vld [vmem:[%s7505_s22 + $0x39d8] sm:$0xff] }
 0x6e9   : > { %5766 = vmatprep.subr.bf16.mxu0 %v5765_v17  ;;  %v1767_v17 = vld [vmem:[%s7505_s22 + $0x2ed0] sm:$0xff]  ;;  %v6829_v10 = vpack.c.bf16 %v2120_v6, %v2088_v5 }
 0x6ea   : > { %6788 = vmatpush1.bf16.xpose.msra.mxu1 %v6787_v16  ;;  %v775_v16 = vld [vmem:[%s7505_s22 + $0xfd0] sm:$0xff] }
 0x6eb   : > { %6790 = vmatprep.subr.bf16.mxu1 %v6789_v18  ;;  %v1799_v18 = vld [vmem:[%s7505_s22 + $0x2fd0] sm:$0xff]  ;;  %v5787_v23 = vpack.c.bf16 %v775_v16, %v743_v15  ;;  %v1128_v15 = vld [vmem:[%s7505_s22 + $0x1ad8] sm:$0xff] }
 0x6ec   : > { %v6811_v24 = vpack.c.bf16 %v1799_v18, %v1767_v17  ;;  %v1160_v16 = vld [vmem:[%s7505_s22 + $0x1bd8] sm:$0xff] }
 0x6ed   : > { %v2152_v17 = vld [vmem:[%s7505_s22 + $0x3ad8] sm:$0xff]  ;;  %v5809_v21 = vpack.c.bf16 %v1160_v16, %v1128_v15  ;;  %v426_v15 = vld [vmem:[%s7505_s22 + $0x4e8] sm:$0xff] }
 0x6ee   : > { %v2184_v18 = vld [vmem:[%s7505_s22 + $0x3bd8] sm:$0xff]  ;;  %v458_v16 = vld [vmem:[%s7505_s22 + $0x5e8] sm:$0xff] }
 0x6ef   : > { %v6833_v22 = vpack.c.bf16 %v2184_v18, %v2152_v17  ;;  %v1450_v17 = vld [vmem:[%s7505_s22 + $0x24e8] sm:$0xff] }
 0x6f0   : > { %5768 = vmatpush1.bf16.xpose.msra.mxu0 %v5767_v27  ;;  %v807_v27 = vld [vmem:[%s7505_s22 + $0x10d0] sm:$0xff]  ;;  %v1482_v18 = vld [vmem:[%s7505_s22 + $0x25e8] sm:$0xff] }
 0x6f1   : > { %5770 = vmatprep.subr.bf16.mxu0 %v5769_v29  ;;  %v1831_v29 = vld [vmem:[%s7505_s22 + $0x30d0] sm:$0xff] }
 0x6f2   : > { %6792 = vmatpush1.bf16.xpose.msra.mxu1 %v6791_v28  ;;  %v839_v28 = vld [vmem:[%s7505_s22 + $0x11d0] sm:$0xff] }
 0x6f3   : > { %6794 = vmatprep.subr.bf16.mxu1 %v6793_v30  ;;  %v1863_v30 = vld [vmem:[%s7505_s22 + $0x31d0] sm:$0xff]  ;;  %v5791_v35 = vpack.c.bf16 %v839_v28, %v807_v27  ;;  %v1192_v27 = vld [vmem:[%s7505_s22 + $0x1cd8] sm:$0xff] }
 0x6f4   : > { %v6815_v36 = vpack.c.bf16 %v1863_v30, %v1831_v29  ;;  %v1224_v28 = vld [vmem:[%s7505_s22 + $0x1dd8] sm:$0xff] }
 0x6f5   : > { %v2216_v29 = vld [vmem:[%s7505_s22 + $0x3cd8] sm:$0xff]  ;;  %v5813_v33 = vpack.c.bf16 %v1224_v28, %v1192_v27  ;;  %v490_v27 = vld [vmem:[%s7505_s22 + $0x6e8] sm:$0xff] }
 0x6f6   : > { %v2248_v30 = vld [vmem:[%s7505_s22 + $0x3dd8] sm:$0xff]  ;;  %v522_v28 = vld [vmem:[%s7505_s22 + $0x7e8] sm:$0xff] }
 0x6f7   : > { %v6837_v34 = vpack.c.bf16 %v2248_v30, %v2216_v29  ;;  %v1514_v29 = vld [vmem:[%s7505_s22 + $0x26e8] sm:$0xff] }
 0x6f8   : > { %5772 = vmatpush1.bf16.xpose.msra.mxu0 %v5771_v39  ;;  %v871_v39 = vld [vmem:[%s7505_s22 + $0x12d0] sm:$0xff]  ;;  %v1546_v30 = vld [vmem:[%s7505_s22 + $0x27e8] sm:$0xff] }
 0x6f9   : > { %5774 = vmatprep.subr.bf16.mxu0 %v5773_v41  ;;  %v1895_v41 = vld [vmem:[%s7505_s22 + $0x32d0] sm:$0xff] }
 0x6fa   : > { %6796 = vmatpush1.bf16.xpose.msra.mxu1 %v6795_v40  ;;  %v903_v40 = vld [vmem:[%s7505_s22 + $0x13d0] sm:$0xff] }
 0x6fb   : > { %6798 = vmatprep.subr.bf16.mxu1 %v6797_v42  ;;  %v1927_v42 = vld [vmem:[%s7505_s22 + $0x33d0] sm:$0xff]  ;;  %v5795_v47 = vpack.c.bf16 %v903_v40, %v871_v39  ;;  %v1256_v39 = vld [vmem:[%s7505_s22 + $0x1ed8] sm:$0xff] }
 0x6fc   : > { %v6819_v48 = vpack.c.bf16 %v1927_v42, %v1895_v41  ;;  %v1288_v40 = vld [vmem:[%s7505_s22 + $0x1fd8] sm:$0xff] }
 0x6fd   : > { %v2280_v41 = vld [vmem:[%s7505_s22 + $0x3ed8] sm:$0xff]  ;;  %v5817_v45 = vpack.c.bf16 %v1288_v40, %v1256_v39  ;;  %v554_v39 = vld [vmem:[%s7505_s22 + $0x8e8] sm:$0xff] }
 0x6fe   : > { %v2312_v42 = vld [vmem:[%s7505_s22 + $0x3fd8] sm:$0xff]  ;;  %v586_v40 = vld [vmem:[%s7505_s22 + $0x9e8] sm:$0xff] }
 0x6ff   : > { %v6841_v46 = vpack.c.bf16 %v2312_v42, %v2280_v41  ;;  %v1578_v41 = vld [vmem:[%s7505_s22 + $0x28e8] sm:$0xff] }
 0x700   : > { %5776 = vmatpush1.bf16.xpose.msra.mxu0 %v5775_v51  ;;  %v935_v51 = vld [vmem:[%s7505_s22 + $0x14d0] sm:$0xff]  ;;  %v1610_v42 = vld [vmem:[%s7505_s22 + $0x29e8] sm:$0xff] }
 0x701   : > { %5778 = vmatprep.subr.bf16.mxu0 %v5777_v53  ;;  %v1959_v53 = vld [vmem:[%s7505_s22 + $0x34d0] sm:$0xff] }
 0x702   : > { %6800 = vmatpush1.bf16.xpose.msra.mxu1 %v6799_v52  ;;  %v967_v52 = vld [vmem:[%s7505_s22 + $0x15d0] sm:$0xff] }
 0x703   : > { %6802 = vmatprep.subr.bf16.mxu1 %v6801_v54  ;;  %v1991_v54 = vld [vmem:[%s7505_s22 + $0x35d0] sm:$0xff]  ;;  %v5799_v59 = vpack.c.bf16 %v967_v52, %v935_v51  ;;  %v298_v51 = vld [vmem:[%s7505_s22 + $0xe8] sm:$0xff] }
 0x704   : > { %v6823_v60 = vpack.c.bf16 %v1991_v54, %v1959_v53  ;;  %v330_v52 = vld [vmem:[%s7505_s22 + $0x1e8] sm:$0xff] }
 0x705   : > { %v1322_v53 = vld [vmem:[%s7505_s22 + $0x20e8] sm:$0xff]  ;;  %v5821_v57 = vpack.c.bf16 %v330_v52, %v298_v51 }
 0x706   : > { %v1354_v54 = vld [vmem:[%s7505_s22 + $0x21e8] sm:$0xff] }
 0x707   : > { %v6845_v58 = vpack.c.bf16 %v1354_v54, %v1322_v53  ;;  %v618_v51 = vld [vmem:[%s7505_s22 + $0xae8] sm:$0xff] }
 0x708   : > { %5780 = vmatpush1.bf16.xpose.msra.mxu0 %v5779_v63  ;;  %v999_v63 = vld [vmem:[%s7505_s22 + $0x16d0] sm:$0xff]  ;;  %v650_v52 = vld [vmem:[%s7505_s22 + $0xbe8] sm:$0xff] }
 0x709   : > { %5782 = vmatprep.subr.bf16.mxu0 %v5781_v1  ;;  %v2023_v1 = vld [vmem:[%s7505_s22 + $0x36d0] sm:$0xff]  ;;  %v1642_v53 = vld [vmem:[%s7505_s22 + $0x2ae8] sm:$0xff] }
 0x70a   : > { %6804 = vmatpush1.bf16.xpose.msra.mxu1 %v6803_v0  ;;  %v1031_v0 = vld [vmem:[%s7505_s22 + $0x17d0] sm:$0xff]  ;;  %v1674_v54 = vld [vmem:[%s7505_s22 + $0x2be8] sm:$0xff] }
 0x70b   : > { %6806 = vmatprep.subr.bf16.mxu1 %v6805_v2  ;;  %v2055_v2 = vld [vmem:[%s7505_s22 + $0x37d0] sm:$0xff]  ;;  %v5803_v7 = vpack.c.bf16 %v1031_v0, %v999_v63  ;;  %v362_v63 = vld [vmem:[%s7505_s22 + $0x2e8] sm:$0xff] }
 0x70c   : > { %v6827_v8 = vpack.c.bf16 %v2055_v2, %v2023_v1  ;;  %v394_v0 = vld [vmem:[%s7505_s22 + $0x3e8] sm:$0xff] }
 0x70d   : > { %v1386_v1 = vld [vmem:[%s7505_s22 + $0x22e8] sm:$0xff]  ;;  %v5825_v6 = vpack.c.bf16 %v394_v0, %v362_v63 }
 0x70e   : > { %v1418_v2 = vld [vmem:[%s7505_s22 + $0x23e8] sm:$0xff] }
 0x70f   : > { %v682_v63 = vld [vmem:[%s7505_s22 + $0xce8] sm:$0xff] }
 0x710   : > { %5784 = vmatpush1.bf16.xpose.msra.mxu0 %v5783_v11  ;;  %v1063_v11 = vld [vmem:[%s7505_s22 + $0x18d0] sm:$0xff]  ;;  %v714_v0 = vld [vmem:[%s7505_s22 + $0xde8] sm:$0xff] }
 0x711   : > { %5786 = vmatprep.subr.bf16.mxu0 %v5785_v13  ;;  %v2087_v13 = vld [vmem:[%s7505_s22 + $0x38d0] sm:$0xff] }
 0x712   : > { %6808 = vmatpush1.bf16.xpose.msra.mxu1 %v6807_v12  ;;  %v1095_v12 = vld [vmem:[%s7505_s22 + $0x19d0] sm:$0xff] }
 0x713   : > { %6810 = vmatprep.subr.bf16.mxu1 %v6809_v14  ;;  %v2119_v14 = vld [vmem:[%s7505_s22 + $0x39d0] sm:$0xff]  ;;  %v5807_v19 = vpack.c.bf16 %v1095_v12, %v1063_v11  ;;  %v393_v11 = vld [vmem:[%s7505_s22 + $0x3e0] sm:$0xff] }
 0x714   : > { %v6831_v20 = vpack.c.bf16 %v2119_v14, %v2087_v13  ;;  %v1385_v12 = vld [vmem:[%s7505_s22 + $0x22e0] sm:$0xff]  ;;  %v234_v13 = vld [vmem:[#allocation2 + $0xe8] sm:$0xff] }
 0x715   : > { %v1417_v14 = vld [vmem:[%s7505_s22 + $0x23e0] sm:$0xff] }
 0x718   : > { %5788 = vmatpush1.bf16.xpose.msra.mxu0 %v5787_v23  ;;  %v1127_v23 = vld [vmem:[%s7505_s22 + $0x1ad0] sm:$0xff] }
 0x719   : > { %5790 = vmatprep.subr.bf16.mxu0 %v5789_v25  ;;  %v2151_v25 = vld [vmem:[%s7505_s22 + $0x3ad0] sm:$0xff] }
 0x71a   : > { %6812 = vmatpush1.bf16.xpose.msra.mxu1 %v6811_v24  ;;  %v1159_v24 = vld [vmem:[%s7505_s22 + $0x1bd0] sm:$0xff] }
 0x71b   : > { %6814 = vmatprep.subr.bf16.mxu1 %v6813_v26  ;;  %v2183_v26 = vld [vmem:[%s7505_s22 + $0x3bd0] sm:$0xff]  ;;  %v5811_v31 = vpack.c.bf16 %v1159_v24, %v1127_v23  ;;  %v425_v23 = vld [vmem:[%s7505_s22 + $0x4e0] sm:$0xff] }
 0x71c   : > { %v6835_v32 = vpack.c.bf16 %v2183_v26, %v2151_v25  ;;  %v457_v24 = vld [vmem:[%s7505_s22 + $0x5e0] sm:$0xff] }
 0x71d   : > { %v1449_v25 = vld [vmem:[%s7505_s22 + $0x24e0] sm:$0xff] }
 0x71e   : > { %v1481_v26 = vld [vmem:[%s7505_s22 + $0x25e0] sm:$0xff] }
 0x720   : > { %5792 = vmatpush1.bf16.xpose.msra.mxu0 %v5791_v35  ;;  %v1191_v35 = vld [vmem:[%s7505_s22 + $0x1cd0] sm:$0xff] }
 0x721   : > { %5794 = vmatprep.subr.bf16.mxu0 %v5793_v37  ;;  %v2215_v37 = vld [vmem:[%s7505_s22 + $0x3cd0] sm:$0xff] }
 0x722   : > { %6816 = vmatpush1.bf16.xpose.msra.mxu1 %v6815_v36  ;;  %v1223_v36 = vld [vmem:[%s7505_s22 + $0x1dd0] sm:$0xff] }
 0x723   : > { %6818 = vmatprep.subr.bf16.mxu1 %v6817_v38  ;;  %v2247_v38 = vld [vmem:[%s7505_s22 + $0x3dd0] sm:$0xff]  ;;  %v5815_v43 = vpack.c.bf16 %v1223_v36, %v1191_v35  ;;  %v489_v35 = vld [vmem:[%s7505_s22 + $0x6e0] sm:$0xff] }
 0x724   : > { %v6839_v44 = vpack.c.bf16 %v2247_v38, %v2215_v37  ;;  %v521_v36 = vld [vmem:[%s7505_s22 + $0x7e0] sm:$0xff] }
 0x725   : > { %v1513_v37 = vld [vmem:[%s7505_s22 + $0x26e0] sm:$0xff] }
 0x726   : > { %v1545_v38 = vld [vmem:[%s7505_s22 + $0x27e0] sm:$0xff] }
 0x728   : > { %5796 = vmatpush1.bf16.xpose.msra.mxu0 %v5795_v47  ;;  %v1255_v47 = vld [vmem:[%s7505_s22 + $0x1ed0] sm:$0xff] }
 0x729   : > { %5798 = vmatprep.subr.bf16.mxu0 %v5797_v49  ;;  %v2279_v49 = vld [vmem:[%s7505_s22 + $0x3ed0] sm:$0xff] }
 0x72a   : > { %6820 = vmatpush1.bf16.xpose.msra.mxu1 %v6819_v48  ;;  %v1287_v48 = vld [vmem:[%s7505_s22 + $0x1fd0] sm:$0xff] }
 0x72b   : > { %6822 = vmatprep.subr.bf16.mxu1 %v6821_v50  ;;  %v2311_v50 = vld [vmem:[%s7505_s22 + $0x3fd0] sm:$0xff]  ;;  %v5819_v55 = vpack.c.bf16 %v1287_v48, %v1255_v47  ;;  %v553_v47 = vld [vmem:[%s7505_s22 + $0x8e0] sm:$0xff] }
 0x72c   : > { %v6843_v56 = vpack.c.bf16 %v2311_v50, %v2279_v49  ;;  %v585_v48 = vld [vmem:[%s7505_s22 + $0x9e0] sm:$0xff] }
 0x72d   : > { %v1577_v49 = vld [vmem:[%s7505_s22 + $0x28e0] sm:$0xff] }
 0x72e   : > { %v1609_v50 = vld [vmem:[%s7505_s22 + $0x29e0] sm:$0xff] }
 0x730   : > { %5800 = vmatpush1.bf16.xpose.msra.mxu0 %v5799_v59  ;;  %v297_v59 = vld [vmem:[%s7505_s22 + $0xe0] sm:$0xff] }
 0x731   : > { %5802 = vmatprep.subr.bf16.mxu0 %v5801_v61  ;;  %v1321_v61 = vld [vmem:[%s7505_s22 + $0x20e0] sm:$0xff] }
 0x732   : > { %6824 = vmatpush1.bf16.xpose.msra.mxu1 %v6823_v60  ;;  %v329_v60 = vld [vmem:[%s7505_s22 + $0x1e0] sm:$0xff] }
 0x733   : > { %6826 = vmatprep.subr.bf16.mxu1 %v6825_v62  ;;  %v1353_v62 = vld [vmem:[%s7505_s22 + $0x21e0] sm:$0xff]  ;;  %v5823_v4 = vpack.c.bf16 %v329_v60, %v297_v59 }
 0x734   : > { %v6847_v5 = vpack.c.bf16 %v1353_v62, %v1321_v61  ;;  %v617_v59 = vld [vmem:[%s7505_s22 + $0xae0] sm:$0xff] }
 0x735   : > { %v649_v60 = vld [vmem:[%s7505_s22 + $0xbe0] sm:$0xff] }
 0x736   : > { %v1641_v61 = vld [vmem:[%s7505_s22 + $0x2ae0] sm:$0xff] }
 0x737   : > { %v1673_v62 = vld [vmem:[%s7505_s22 + $0x2be0] sm:$0xff] }
 0x738   : > { %5804 = vmatpush1.bf16.xpose.msra.mxu0 %v5803_v7  ;;  %v6849_v7 = vpack.c.bf16 %v1418_v2, %v1386_v1  ;;  %v1706_v1 = vld [vmem:[%s7505_s22 + $0x2ce8] sm:$0xff] }
 0x739   : > { %5806 = vmatprep.subr.bf16.mxu0 %v5805_v9  ;;  %v361_v9 = vld [vmem:[%s7505_s22 + $0x2e0] sm:$0xff]  ;;  %v1738_v2 = vld [vmem:[%s7505_s22 + $0x2de8] sm:$0xff] }
 0x73a   : > { %6828 = vmatpush1.bf16.xpose.msra.mxu1 %v6827_v8  ;;  %v264_v8 = vld [vmem:[#allocation2 + $0x1d8] sm:$0xff] }
 0x73b   : > { %6830 = vmatprep.subr.bf16.mxu1 %v6829_v10  ;;  %v263_v10 = vld [vmem:[#allocation2 + $0x1d0] sm:$0xff] }
 0x740   : > { %5808 = vmatpush1.bf16.xpose.msra.mxu0 %v5807_v19  ;;  %v5827_v19 = vpack.c.bf16 %v393_v11, %v361_v9  ;;  %v1705_v9 = vld [vmem:[%s7505_s22 + $0x2ce0] sm:$0xff]  ;;  %v746_v11 = vld [vmem:[%s7505_s22 + $0xee8] sm:$0xff] }
 0x741   : > { %5810 = vmatprep.subr.bf16.mxu0 %v5809_v21  ;;  %v5829_v21 = vpack.c.bf16 %v458_v16, %v426_v15 }
 0x742   : > { %6832 = vmatpush1.bf16.xpose.msra.mxu1 %v6831_v20  ;;  %v6851_v20 = vpack.c.bf16 %v1417_v14, %v1385_v12  ;;  %v778_v12 = vld [vmem:[%s7505_s22 + $0xfe8] sm:$0xff] }
 0x743   : > { %6834 = vmatprep.subr.bf16.mxu1 %v6833_v22  ;;  %v6853_v22 = vpack.c.bf16 %v1482_v18, %v1450_v17  ;;  %v1802_v14 = vld [vmem:[%s7505_s22 + $0x2fe8] sm:$0xff]  ;;  %v5849_v17 = vpack.c.bf16 %v778_v12, %v746_v11 }
 0x748   : > { %5812 = vmatpush1.bf16.xpose.msra.mxu0 %v5811_v31  ;;  %v5831_v31 = vpack.c.bf16 %v457_v24, %v425_v23  ;;  %v810_v23 = vld [vmem:[%s7505_s22 + $0x10e8] sm:$0xff] }
 0x749   : > { %5814 = vmatprep.subr.bf16.mxu0 %v5813_v33  ;;  %v5833_v33 = vpack.c.bf16 %v522_v28, %v490_v27  ;;  %v842_v24 = vld [vmem:[%s7505_s22 + $0x11e8] sm:$0xff] }
 0x74a   : > { %6836 = vmatpush1.bf16.xpose.msra.mxu1 %v6835_v32  ;;  %v6855_v32 = vpack.c.bf16 %v1481_v26, %v1449_v25  ;;  %v1834_v25 = vld [vmem:[%s7505_s22 + $0x30e8] sm:$0xff] }
 0x74b   : > { %6838 = vmatprep.subr.bf16.mxu1 %v6837_v34  ;;  %v6857_v34 = vpack.c.bf16 %v1546_v30, %v1514_v29  ;;  %v1866_v26 = vld [vmem:[%s7505_s22 + $0x31e8] sm:$0xff]  ;;  %v5853_v29 = vpack.c.bf16 %v842_v24, %v810_v23 }
 0x74c   : > { %v6877_v30 = vpack.c.bf16 %v1866_v26, %v1834_v25 }
 0x750   : > { %5816 = vmatpush1.bf16.xpose.msra.mxu0 %v5815_v43  ;;  %v5835_v43 = vpack.c.bf16 %v521_v36, %v489_v35  ;;  %v874_v35 = vld [vmem:[%s7505_s22 + $0x12e8] sm:$0xff] }
 0x751   : > { %5818 = vmatprep.subr.bf16.mxu0 %v5817_v45  ;;  %v5837_v45 = vpack.c.bf16 %v586_v40, %v554_v39  ;;  %v906_v36 = vld [vmem:[%s7505_s22 + $0x13e8] sm:$0xff] }
 0x752   : > { %6840 = vmatpush1.bf16.xpose.msra.mxu1 %v6839_v44  ;;  %v6859_v44 = vpack.c.bf16 %v1545_v38, %v1513_v37  ;;  %v1898_v37 = vld [vmem:[%s7505_s22 + $0x32e8] sm:$0xff] }
 0x753   : > { %6842 = vmatprep.subr.bf16.mxu1 %v6841_v46  ;;  %v6861_v46 = vpack.c.bf16 %v1610_v42, %v1578_v41  ;;  %v1930_v38 = vld [vmem:[%s7505_s22 + $0x33e8] sm:$0xff]  ;;  %v5857_v41 = vpack.c.bf16 %v906_v36, %v874_v35 }
 0x754   : > { %v6881_v42 = vpack.c.bf16 %v1930_v38, %v1898_v37 }
 0x758   : > { %5820 = vmatpush1.bf16.xpose.msra.mxu0 %v5819_v55  ;;  %v5839_v55 = vpack.c.bf16 %v585_v48, %v553_v47  ;;  %v938_v47 = vld [vmem:[%s7505_s22 + $0x14e8] sm:$0xff] }
 0x759   : > { %5822 = vmatprep.subr.bf16.mxu0 %v5821_v57  ;;  %v5841_v57 = vpack.c.bf16 %v650_v52, %v618_v51  ;;  %v970_v48 = vld [vmem:[%s7505_s22 + $0x15e8] sm:$0xff] }
 0x75a   : > { %6844 = vmatpush1.bf16.xpose.msra.mxu1 %v6843_v56  ;;  %v6863_v56 = vpack.c.bf16 %v1609_v50, %v1577_v49  ;;  %v1962_v49 = vld [vmem:[%s7505_s22 + $0x34e8] sm:$0xff] }
 0x75b   : > { %6846 = vmatprep.subr.bf16.mxu1 %v6845_v58  ;;  %v6865_v58 = vpack.c.bf16 %v1674_v54, %v1642_v53  ;;  %v1994_v50 = vld [vmem:[%s7505_s22 + $0x35e8] sm:$0xff]  ;;  %v5861_v53 = vpack.c.bf16 %v970_v48, %v938_v47 }
 0x75c   : > { %v6885_v54 = vpack.c.bf16 %v1994_v50, %v1962_v49 }
 0x75f   : > { %3383 = vmatmul.mubr.f32.vlgmr.msra.gmra.mrb[0].mxu0 %v231_v3 }
 0x760   : > { %5824 = vmatpush1.bf16.xpose.msra.mxu0 %v5823_v4  ;;  %3388 = vmatprep.mubr.f32.mxu0 %v264_v8  ;;  %v6867_v4 = vpack.c.bf16 %v1673_v62, %v1641_v61  ;;  %v2026_v61 = vld [vmem:[%s7505_s22 + $0x36e8] sm:$0xff] }
 0x761   : > { %4615 = vmatmul.mubr.f32.vlgmr.msra.gmra.mrb[0].mxu1 %v231_v3  ;;  %5826 = vmatprep.subr.bf16.mxu0 %v5825_v6  ;;  %v5843_v3 = vpack.c.bf16 %v649_v60, %v617_v59  ;;  %v6869_v6 = vpack.c.bf16 %v1738_v2, %v1706_v1  ;;  %v1002_v59 = vld [vmem:[%s7505_s22 + $0x16e8] sm:$0xff] }
 0x762   : > { %6848 = vmatpush1.bf16.xpose.msra.mxu1 %v6847_v5  ;;  %4620 = vmatprep.mubr.f32.mxu1 %v264_v8  ;;  %v5845_v5 = vpack.c.bf16 %v714_v0, %v682_v63  ;;  %v713_v8 = vld [vmem:[%s7505_s22 + $0xde0] sm:$0xff]  ;;  %v1034_v60 = vld [vmem:[%s7505_s22 + $0x17e8] sm:$0xff] }
 0x763   : > { %6850 = vmatprep.subr.bf16.mxu1 %v6849_v7  ;;  %3389 = vmatmul.mubr.f32.gmra.mrb[2].mxu0 %v263_v10  ;;  %v681_v7 = vld [vmem:[%s7505_s22 + $0xce0] sm:$0xff]  ;;  %v2058_v62 = vld [vmem:[%s7505_s22 + $0x37e8] sm:$0xff]  ;;  %v5865_v1 = vpack.c.bf16 %v1034_v60, %v1002_v59 }
 0x764   : > { %3459 = vmatprep.mubr.f32.mxu0 %v234_v13  ;;  %v5847_v15 = vpack.c.bf16 %v713_v8, %v681_v7  ;;  %v6889_v2 = vpack.c.bf16 %v2058_v62, %v2026_v61  ;;  %v1066_v7 = vld [vmem:[%s7505_s22 + $0x18e8] sm:$0xff] }
 0x765   : > { %4621 = vmatmul.mubr.f32.gmra.mrb[2].mxu1 %v263_v10  ;;  %v1737_v10 = vld [vmem:[%s7505_s22 + $0x2de0] sm:$0xff]  ;;  %v1098_v8 = vld [vmem:[%s7505_s22 + $0x19e8] sm:$0xff] }
 0x766   : > { %4691 = vmatprep.mubr.f32.mxu1 %v234_v13  ;;  %v1770_v13 = vld [vmem:[%s7505_s22 + $0x2ee8] sm:$0xff]  ;;  %v6871_v16 = vpack.c.bf16 %v1737_v10, %v1705_v9 }
 0x767   : > { %v6873_v18 = vpack.c.bf16 %v1802_v14, %v1770_v13  ;;  %v2090_v9 = vld [vmem:[%s7505_s22 + $0x38e8] sm:$0xff]  ;;  %v5869_v13 = vpack.c.bf16 %v1098_v8, %v1066_v7  ;;  %v233_v7 = vld [vmem:[#allocation2 + $0xe0] sm:$0xff] }
 0x768   : > { %5828 = vmatpush1.bf16.xpose.msra.mxu0 %v5827_v19  ;;  %v745_v19 = vld [vmem:[%s7505_s22 + $0xee0] sm:$0xff]  ;;  %v2122_v10 = vld [vmem:[%s7505_s22 + $0x39e8] sm:$0xff] }
 0x769   : > { %5830 = vmatprep.subr.bf16.mxu0 %v5829_v21  ;;  %v1769_v21 = vld [vmem:[%s7505_s22 + $0x2ee0] sm:$0xff]  ;;  %v6893_v14 = vpack.c.bf16 %v2122_v10, %v2090_v9 }
 0x76a   : > { %6852 = vmatpush1.bf16.xpose.msra.mxu1 %v6851_v20  ;;  %v777_v20 = vld [vmem:[%s7505_s22 + $0xfe0] sm:$0xff] }
 0x76b   : > { %6854 = vmatprep.subr.bf16.mxu1 %v6853_v22  ;;  %v1801_v22 = vld [vmem:[%s7505_s22 + $0x2fe0] sm:$0xff]  ;;  %v5851_v27 = vpack.c.bf16 %v777_v20, %v745_v19  ;;  %v1130_v19 = vld [vmem:[%s7505_s22 + $0x1ae8] sm:$0xff] }
 0x76c   : > { %v6875_v28 = vpack.c.bf16 %v1801_v22, %v1769_v21  ;;  %v1162_v20 = vld [vmem:[%s7505_s22 + $0x1be8] sm:$0xff] }
 0x76d   : > { %v2154_v21 = vld [vmem:[%s7505_s22 + $0x3ae8] sm:$0xff]  ;;  %v5873_v25 = vpack.c.bf16 %v1162_v20, %v1130_v19  ;;  %v428_v19 = vld [vmem:[%s7505_s22 + $0x4f8] sm:$0xff] }
 0x76e   : > { %v2186_v22 = vld [vmem:[%s7505_s22 + $0x3be8] sm:$0xff]  ;;  %v460_v20 = vld [vmem:[%s7505_s22 + $0x5f8] sm:$0xff] }
 0x76f   : > { %v6897_v26 = vpack.c.bf16 %v2186_v22, %v2154_v21  ;;  %v1452_v21 = vld [vmem:[%s7505_s22 + $0x24f8] sm:$0xff] }
 0x770   : > { %5832 = vmatpush1.bf16.xpose.msra.mxu0 %v5831_v31  ;;  %v809_v31 = vld [vmem:[%s7505_s22 + $0x10e0] sm:$0xff]  ;;  %v1484_v22 = vld [vmem:[%s7505_s22 + $0x25f8] sm:$0xff] }
 0x771   : > { %5834 = vmatprep.subr.bf16.mxu0 %v5833_v33  ;;  %v1833_v33 = vld [vmem:[%s7505_s22 + $0x30e0] sm:$0xff] }
 0x772   : > { %6856 = vmatpush1.bf16.xpose.msra.mxu1 %v6855_v32  ;;  %v841_v32 = vld [vmem:[%s7505_s22 + $0x11e0] sm:$0xff] }
 0x773   : > { %6858 = vmatprep.subr.bf16.mxu1 %v6857_v34  ;;  %v1865_v34 = vld [vmem:[%s7505_s22 + $0x31e0] sm:$0xff]  ;;  %v5855_v39 = vpack.c.bf16 %v841_v32, %v809_v31  ;;  %v1194_v31 = vld [vmem:[%s7505_s22 + $0x1ce8] sm:$0xff] }
 0x774   : > { %v6879_v40 = vpack.c.bf16 %v1865_v34, %v1833_v33  ;;  %v1226_v32 = vld [vmem:[%s7505_s22 + $0x1de8] sm:$0xff] }
 0x775   : > { %v2218_v33 = vld [vmem:[%s7505_s22 + $0x3ce8] sm:$0xff]  ;;  %v5877_v37 = vpack.c.bf16 %v1226_v32, %v1194_v31  ;;  %v492_v31 = vld [vmem:[%s7505_s22 + $0x6f8] sm:$0xff] }
 0x776   : > { %v2250_v34 = vld [vmem:[%s7505_s22 + $0x3de8] sm:$0xff]  ;;  %v524_v32 = vld [vmem:[%s7505_s22 + $0x7f8] sm:$0xff] }
 0x777   : > { %v6901_v38 = vpack.c.bf16 %v2250_v34, %v2218_v33  ;;  %v1516_v33 = vld [vmem:[%s7505_s22 + $0x26f8] sm:$0xff] }
 0x778   : > { %5836 = vmatpush1.bf16.xpose.msra.mxu0 %v5835_v43  ;;  %v873_v43 = vld [vmem:[%s7505_s22 + $0x12e0] sm:$0xff]  ;;  %v1548_v34 = vld [vmem:[%s7505_s22 + $0x27f8] sm:$0xff] }
 0x779   : > { %5838 = vmatprep.subr.bf16.mxu0 %v5837_v45  ;;  %v1897_v45 = vld [vmem:[%s7505_s22 + $0x32e0] sm:$0xff] }
 0x77a   : > { %6860 = vmatpush1.bf16.xpose.msra.mxu1 %v6859_v44  ;;  %v905_v44 = vld [vmem:[%s7505_s22 + $0x13e0] sm:$0xff] }
 0x77b   : > { %6862 = vmatprep.subr.bf16.mxu1 %v6861_v46  ;;  %v1929_v46 = vld [vmem:[%s7505_s22 + $0x33e0] sm:$0xff]  ;;  %v5859_v51 = vpack.c.bf16 %v905_v44, %v873_v43  ;;  %v1258_v43 = vld [vmem:[%s7505_s22 + $0x1ee8] sm:$0xff] }
 0x77c   : > { %v6883_v52 = vpack.c.bf16 %v1929_v46, %v1897_v45  ;;  %v1290_v44 = vld [vmem:[%s7505_s22 + $0x1fe8] sm:$0xff] }
 0x77d   : > { %v2282_v45 = vld [vmem:[%s7505_s22 + $0x3ee8] sm:$0xff]  ;;  %v5881_v49 = vpack.c.bf16 %v1290_v44, %v1258_v43  ;;  %v556_v43 = vld [vmem:[%s7505_s22 + $0x8f8] sm:$0xff] }
 0x77e   : > { %v2314_v46 = vld [vmem:[%s7505_s22 + $0x3fe8] sm:$0xff]  ;;  %v588_v44 = vld [vmem:[%s7505_s22 + $0x9f8] sm:$0xff] }
 0x77f   : > { %v6905_v50 = vpack.c.bf16 %v2314_v46, %v2282_v45  ;;  %v1580_v45 = vld [vmem:[%s7505_s22 + $0x28f8] sm:$0xff] }
 0x780   : > { %5840 = vmatpush1.bf16.xpose.msra.mxu0 %v5839_v55  ;;  %v937_v55 = vld [vmem:[%s7505_s22 + $0x14e0] sm:$0xff]  ;;  %v1612_v46 = vld [vmem:[%s7505_s22 + $0x29f8] sm:$0xff] }
 0x781   : > { %5842 = vmatprep.subr.bf16.mxu0 %v5841_v57  ;;  %v1961_v57 = vld [vmem:[%s7505_s22 + $0x34e0] sm:$0xff] }
 0x782   : > { %6864 = vmatpush1.bf16.xpose.msra.mxu1 %v6863_v56  ;;  %v969_v56 = vld [vmem:[%s7505_s22 + $0x15e0] sm:$0xff] }
 0x783   : > { %6866 = vmatprep.subr.bf16.mxu1 %v6865_v58  ;;  %v1993_v58 = vld [vmem:[%s7505_s22 + $0x35e0] sm:$0xff]  ;;  %v5863_v63 = vpack.c.bf16 %v969_v56, %v937_v55  ;;  %v300_v55 = vld [vmem:[%s7505_s22 + $0xf8] sm:$0xff] }
 0x784   : > { %v6887_v0 = vpack.c.bf16 %v1993_v58, %v1961_v57  ;;  %v332_v56 = vld [vmem:[%s7505_s22 + $0x1f8] sm:$0xff] }
 0x785   : > { %v1324_v57 = vld [vmem:[%s7505_s22 + $0x20f8] sm:$0xff]  ;;  %v5885_v61 = vpack.c.bf16 %v332_v56, %v300_v55 }
 0x786   : > { %v1356_v58 = vld [vmem:[%s7505_s22 + $0x21f8] sm:$0xff] }
 0x787   : > { %v6909_v62 = vpack.c.bf16 %v1356_v58, %v1324_v57  ;;  %v620_v55 = vld [vmem:[%s7505_s22 + $0xaf8] sm:$0xff] }
 0x788   : > { %5844 = vmatpush1.bf16.xpose.msra.mxu0 %v5843_v3  ;;  %v1001_v3 = vld [vmem:[%s7505_s22 + $0x16e0] sm:$0xff]  ;;  %v652_v56 = vld [vmem:[%s7505_s22 + $0xbf8] sm:$0xff] }
 0x789   : > { %5846 = vmatprep.subr.bf16.mxu0 %v5845_v5  ;;  %v2025_v5 = vld [vmem:[%s7505_s22 + $0x36e0] sm:$0xff]  ;;  %v1644_v57 = vld [vmem:[%s7505_s22 + $0x2af8] sm:$0xff] }
 0x78a   : > { %6868 = vmatpush1.bf16.xpose.msra.mxu1 %v6867_v4  ;;  %v1033_v4 = vld [vmem:[%s7505_s22 + $0x17e0] sm:$0xff]  ;;  %v1676_v58 = vld [vmem:[%s7505_s22 + $0x2bf8] sm:$0xff] }
 0x78b   : > { %6870 = vmatprep.subr.bf16.mxu1 %v6869_v6  ;;  %v2057_v6 = vld [vmem:[%s7505_s22 + $0x37e0] sm:$0xff]  ;;  %v5867_v11 = vpack.c.bf16 %v1033_v4, %v1001_v3  ;;  %v364_v3 = vld [vmem:[%s7505_s22 + $0x2f8] sm:$0xff] }
 0x78c   : > { %v6891_v12 = vpack.c.bf16 %v2057_v6, %v2025_v5  ;;  %v396_v4 = vld [vmem:[%s7505_s22 + $0x3f8] sm:$0xff] }
 0x78d   : > { %v1388_v5 = vld [vmem:[%s7505_s22 + $0x22f8] sm:$0xff]  ;;  %v5889_v10 = vpack.c.bf16 %v396_v4, %v364_v3 }
 0x78e   : > { %v1420_v6 = vld [vmem:[%s7505_s22 + $0x23f8] sm:$0xff] }
 0x78f   : > { %v684_v3 = vld [vmem:[%s7505_s22 + $0xcf8] sm:$0xff] }
 0x790   : > { %5848 = vmatpush1.bf16.xpose.msra.mxu0 %v5847_v15  ;;  %v1065_v15 = vld [vmem:[%s7505_s22 + $0x18e0] sm:$0xff]  ;;  %v716_v4 = vld [vmem:[%s7505_s22 + $0xdf8] sm:$0xff] }
 0x791   : > { %5850 = vmatprep.subr.bf16.mxu0 %v5849_v17  ;;  %v2089_v17 = vld [vmem:[%s7505_s22 + $0x38e0] sm:$0xff] }
 0x792   : > { %6872 = vmatpush1.bf16.xpose.msra.mxu1 %v6871_v16  ;;  %v1097_v16 = vld [vmem:[%s7505_s22 + $0x19e0] sm:$0xff] }
 0x793   : > { %6874 = vmatprep.subr.bf16.mxu1 %v6873_v18  ;;  %v2121_v18 = vld [vmem:[%s7505_s22 + $0x39e0] sm:$0xff]  ;;  %v5871_v23 = vpack.c.bf16 %v1097_v16, %v1065_v15  ;;  %v395_v15 = vld [vmem:[%s7505_s22 + $0x3f0] sm:$0xff] }
 0x794   : > { %v6895_v24 = vpack.c.bf16 %v2121_v18, %v2089_v17  ;;  %v1387_v16 = vld [vmem:[%s7505_s22 + $0x22f0] sm:$0xff]  ;;  %v236_v17 = vld [vmem:[#allocation2 + $0xf8] sm:$0xff] }
 0x795   : > { %v1419_v18 = vld [vmem:[%s7505_s22 + $0x23f0] sm:$0xff] }
 0x798   : > { %5852 = vmatpush1.bf16.xpose.msra.mxu0 %v5851_v27  ;;  %v1129_v27 = vld [vmem:[%s7505_s22 + $0x1ae0] sm:$0xff] }
 0x799   : > { %5854 = vmatprep.subr.bf16.mxu0 %v5853_v29  ;;  %v2153_v29 = vld [vmem:[%s7505_s22 + $0x3ae0] sm:$0xff] }
 0x79a   : > { %6876 = vmatpush1.bf16.xpose.msra.mxu1 %v6875_v28  ;;  %v1161_v28 = vld [vmem:[%s7505_s22 + $0x1be0] sm:$0xff] }
 0x79b   : > { %6878 = vmatprep.subr.bf16.mxu1 %v6877_v30  ;;  %v2185_v30 = vld [vmem:[%s7505_s22 + $0x3be0] sm:$0xff]  ;;  %v5875_v35 = vpack.c.bf16 %v1161_v28, %v1129_v27  ;;  %v427_v27 = vld [vmem:[%s7505_s22 + $0x4f0] sm:$0xff] }
 0x79c   : > { %v6899_v36 = vpack.c.bf16 %v2185_v30, %v2153_v29  ;;  %v459_v28 = vld [vmem:[%s7505_s22 + $0x5f0] sm:$0xff] }
 0x79d   : > { %v1451_v29 = vld [vmem:[%s7505_s22 + $0x24f0] sm:$0xff] }
 0x79e   : > { %v1483_v30 = vld [vmem:[%s7505_s22 + $0x25f0] sm:$0xff] }
 0x7a0   : > { %5856 = vmatpush1.bf16.xpose.msra.mxu0 %v5855_v39  ;;  %v1193_v39 = vld [vmem:[%s7505_s22 + $0x1ce0] sm:$0xff] }
 0x7a1   : > { %5858 = vmatprep.subr.bf16.mxu0 %v5857_v41  ;;  %v2217_v41 = vld [vmem:[%s7505_s22 + $0x3ce0] sm:$0xff] }
 0x7a2   : > { %6880 = vmatpush1.bf16.xpose.msra.mxu1 %v6879_v40  ;;  %v1225_v40 = vld [vmem:[%s7505_s22 + $0x1de0] sm:$0xff] }
 0x7a3   : > { %6882 = vmatprep.subr.bf16.mxu1 %v6881_v42  ;;  %v2249_v42 = vld [vmem:[%s7505_s22 + $0x3de0] sm:$0xff]  ;;  %v5879_v47 = vpack.c.bf16 %v1225_v40, %v1193_v39  ;;  %v491_v39 = vld [vmem:[%s7505_s22 + $0x6f0] sm:$0xff] }
 0x7a4   : > { %v6903_v48 = vpack.c.bf16 %v2249_v42, %v2217_v41  ;;  %v523_v40 = vld [vmem:[%s7505_s22 + $0x7f0] sm:$0xff] }
 0x7a5   : > { %v1515_v41 = vld [vmem:[%s7505_s22 + $0x26f0] sm:$0xff] }
 0x7a6   : > { %v1547_v42 = vld [vmem:[%s7505_s22 + $0x27f0] sm:$0xff] }
 0x7a8   : > { %5860 = vmatpush1.bf16.xpose.msra.mxu0 %v5859_v51  ;;  %v1257_v51 = vld [vmem:[%s7505_s22 + $0x1ee0] sm:$0xff] }
 0x7a9   : > { %5862 = vmatprep.subr.bf16.mxu0 %v5861_v53  ;;  %v2281_v53 = vld [vmem:[%s7505_s22 + $0x3ee0] sm:$0xff] }
 0x7aa   : > { %6884 = vmatpush1.bf16.xpose.msra.mxu1 %v6883_v52  ;;  %v1289_v52 = vld [vmem:[%s7505_s22 + $0x1fe0] sm:$0xff] }
 0x7ab   : > { %6886 = vmatprep.subr.bf16.mxu1 %v6885_v54  ;;  %v2313_v54 = vld [vmem:[%s7505_s22 + $0x3fe0] sm:$0xff]  ;;  %v5883_v59 = vpack.c.bf16 %v1289_v52, %v1257_v51  ;;  %v555_v51 = vld [vmem:[%s7505_s22 + $0x8f0] sm:$0xff] }
 0x7ac   : > { %v6907_v60 = vpack.c.bf16 %v2313_v54, %v2281_v53  ;;  %v587_v52 = vld [vmem:[%s7505_s22 + $0x9f0] sm:$0xff] }
 0x7ad   : > { %v1579_v53 = vld [vmem:[%s7505_s22 + $0x28f0] sm:$0xff] }
 0x7ae   : > { %v1611_v54 = vld [vmem:[%s7505_s22 + $0x29f0] sm:$0xff] }
 0x7b0   : > { %5864 = vmatpush1.bf16.xpose.msra.mxu0 %v5863_v63  ;;  %v299_v63 = vld [vmem:[%s7505_s22 + $0xf0] sm:$0xff] }
 0x7b1   : > { %5866 = vmatprep.subr.bf16.mxu0 %v5865_v1  ;;  %v1323_v1 = vld [vmem:[%s7505_s22 + $0x20f0] sm:$0xff] }
 0x7b2   : > { %6888 = vmatpush1.bf16.xpose.msra.mxu1 %v6887_v0  ;;  %v331_v0 = vld [vmem:[%s7505_s22 + $0x1f0] sm:$0xff] }
 0x7b3   : > { %6890 = vmatprep.subr.bf16.mxu1 %v6889_v2  ;;  %v1355_v2 = vld [vmem:[%s7505_s22 + $0x21f0] sm:$0xff]  ;;  %v5887_v8 = vpack.c.bf16 %v331_v0, %v299_v63 }
 0x7b4   : > { %v6911_v9 = vpack.c.bf16 %v1355_v2, %v1323_v1  ;;  %v619_v63 = vld [vmem:[%s7505_s22 + $0xaf0] sm:$0xff] }
 0x7b5   : > { %v651_v0 = vld [vmem:[%s7505_s22 + $0xbf0] sm:$0xff] }
 0x7b6   : > { %v1643_v1 = vld [vmem:[%s7505_s22 + $0x2af0] sm:$0xff] }
 0x7b7   : > { %v1675_v2 = vld [vmem:[%s7505_s22 + $0x2bf0] sm:$0xff] }
 0x7b8   : > { %5868 = vmatpush1.bf16.xpose.msra.mxu0 %v5867_v11  ;;  %v6913_v11 = vpack.c.bf16 %v1420_v6, %v1388_v5  ;;  %v1708_v5 = vld [vmem:[%s7505_s22 + $0x2cf8] sm:$0xff] }
 0x7b9   : > { %5870 = vmatprep.subr.bf16.mxu0 %v5869_v13  ;;  %v363_v13 = vld [vmem:[%s7505_s22 + $0x2f0] sm:$0xff]  ;;  %v1740_v6 = vld [vmem:[%s7505_s22 + $0x2df8] sm:$0xff] }
 0x7ba   : > { %6892 = vmatpush1.bf16.xpose.msra.mxu1 %v6891_v12  ;;  %v266_v12 = vld [vmem:[#allocation2 + $0x1e8] sm:$0xff] }
 0x7bb   : > { %6894 = vmatprep.subr.bf16.mxu1 %v6893_v14  ;;  %v265_v14 = vld [vmem:[#allocation2 + $0x1e0] sm:$0xff] }
 0x7c0   : > { %5872 = vmatpush1.bf16.xpose.msra.mxu0 %v5871_v23  ;;  %v5891_v23 = vpack.c.bf16 %v395_v15, %v363_v13  ;;  %v1707_v13 = vld [vmem:[%s7505_s22 + $0x2cf0] sm:$0xff]  ;;  %v748_v15 = vld [vmem:[%s7505_s22 + $0xef8] sm:$0xff] }
 0x7c1   : > { %5874 = vmatprep.subr.bf16.mxu0 %v5873_v25  ;;  %v5893_v25 = vpack.c.bf16 %v460_v20, %v428_v19 }
 0x7c2   : > { %6896 = vmatpush1.bf16.xpose.msra.mxu1 %v6895_v24  ;;  %v6915_v24 = vpack.c.bf16 %v1419_v18, %v1387_v16  ;;  %v780_v16 = vld [vmem:[%s7505_s22 + $0xff8] sm:$0xff] }
 0x7c3   : > { %6898 = vmatprep.subr.bf16.mxu1 %v6897_v26  ;;  %v6917_v26 = vpack.c.bf16 %v1484_v22, %v1452_v21  ;;  %v1804_v18 = vld [vmem:[%s7505_s22 + $0x2ff8] sm:$0xff]  ;;  %v5913_v21 = vpack.c.bf16 %v780_v16, %v748_v15 }
 0x7c8   : > { %5876 = vmatpush1.bf16.xpose.msra.mxu0 %v5875_v35  ;;  %v5895_v35 = vpack.c.bf16 %v459_v28, %v427_v27  ;;  %v812_v27 = vld [vmem:[%s7505_s22 + $0x10f8] sm:$0xff] }
 0x7c9   : > { %5878 = vmatprep.subr.bf16.mxu0 %v5877_v37  ;;  %v5897_v37 = vpack.c.bf16 %v524_v32, %v492_v31  ;;  %v844_v28 = vld [vmem:[%s7505_s22 + $0x11f8] sm:$0xff] }
 0x7ca   : > { %6900 = vmatpush1.bf16.xpose.msra.mxu1 %v6899_v36  ;;  %v6919_v36 = vpack.c.bf16 %v1483_v30, %v1451_v29  ;;  %v1836_v29 = vld [vmem:[%s7505_s22 + $0x30f8] sm:$0xff] }
 0x7cb   : > { %6902 = vmatprep.subr.bf16.mxu1 %v6901_v38  ;;  %v6921_v38 = vpack.c.bf16 %v1548_v34, %v1516_v33  ;;  %v1868_v30 = vld [vmem:[%s7505_s22 + $0x31f8] sm:$0xff]  ;;  %v5917_v33 = vpack.c.bf16 %v844_v28, %v812_v27 }
 0x7cc   : > { %v6941_v34 = vpack.c.bf16 %v1868_v30, %v1836_v29 }
 0x7d0   : > { %5880 = vmatpush1.bf16.xpose.msra.mxu0 %v5879_v47  ;;  %v5899_v47 = vpack.c.bf16 %v523_v40, %v491_v39  ;;  %v876_v39 = vld [vmem:[%s7505_s22 + $0x12f8] sm:$0xff] }
 0x7d1   : > { %5882 = vmatprep.subr.bf16.mxu0 %v5881_v49  ;;  %v5901_v49 = vpack.c.bf16 %v588_v44, %v556_v43  ;;  %v908_v40 = vld [vmem:[%s7505_s22 + $0x13f8] sm:$0xff] }
 0x7d2   : > { %6904 = vmatpush1.bf16.xpose.msra.mxu1 %v6903_v48  ;;  %v6923_v48 = vpack.c.bf16 %v1547_v42, %v1515_v41  ;;  %v1900_v41 = vld [vmem:[%s7505_s22 + $0x32f8] sm:$0xff] }
 0x7d3   : > { %6906 = vmatprep.subr.bf16.mxu1 %v6905_v50  ;;  %v6925_v50 = vpack.c.bf16 %v1612_v46, %v1580_v45  ;;  %v1932_v42 = vld [vmem:[%s7505_s22 + $0x33f8] sm:$0xff]  ;;  %v5921_v45 = vpack.c.bf16 %v908_v40, %v876_v39 }
 0x7d4   : > { %v6945_v46 = vpack.c.bf16 %v1932_v42, %v1900_v41 }
 0x7d8   : > { %5884 = vmatpush1.bf16.xpose.msra.mxu0 %v5883_v59  ;;  %v5903_v59 = vpack.c.bf16 %v587_v52, %v555_v51  ;;  %v940_v51 = vld [vmem:[%s7505_s22 + $0x14f8] sm:$0xff] }
 0x7d9   : > { %5886 = vmatprep.subr.bf16.mxu0 %v5885_v61  ;;  %v5905_v61 = vpack.c.bf16 %v652_v56, %v620_v55  ;;  %v972_v52 = vld [vmem:[%s7505_s22 + $0x15f8] sm:$0xff] }
 0x7da   : > { %6908 = vmatpush1.bf16.xpose.msra.mxu1 %v6907_v60  ;;  %v6927_v60 = vpack.c.bf16 %v1611_v54, %v1579_v53  ;;  %v1964_v53 = vld [vmem:[%s7505_s22 + $0x34f8] sm:$0xff] }
 0x7db   : > { %6910 = vmatprep.subr.bf16.mxu1 %v6909_v62  ;;  %v6929_v62 = vpack.c.bf16 %v1676_v58, %v1644_v57  ;;  %v1996_v54 = vld [vmem:[%s7505_s22 + $0x35f8] sm:$0xff]  ;;  %v5925_v57 = vpack.c.bf16 %v972_v52, %v940_v51 }
 0x7dc   : > { %v6949_v58 = vpack.c.bf16 %v1996_v54, %v1964_v53 }
 0x7df   : > { %3460 = vmatmul.mubr.f32.vlgmr.msra.gmra.mrb[0].mxu0 %v233_v7 }
 0x7e0   : > { %5888 = vmatpush1.bf16.xpose.msra.mxu0 %v5887_v8  ;;  %3465 = vmatprep.mubr.f32.mxu0 %v266_v12  ;;  %v6931_v8 = vpack.c.bf16 %v1675_v2, %v1643_v1  ;;  %v2028_v1 = vld [vmem:[%s7505_s22 + $0x36f8] sm:$0xff] }
 0x7e1   : > { %4692 = vmatmul.mubr.f32.vlgmr.msra.gmra.mrb[0].mxu1 %v233_v7  ;;  %5890 = vmatprep.subr.bf16.mxu0 %v5889_v10  ;;  %v5907_v7 = vpack.c.bf16 %v651_v0, %v619_v63  ;;  %v6933_v10 = vpack.c.bf16 %v1740_v6, %v1708_v5  ;;  %v1004_v63 = vld [vmem:[%s7505_s22 + $0x16f8] sm:$0xff] }
 0x7e2   : > { %6912 = vmatpush1.bf16.xpose.msra.mxu1 %v6911_v9  ;;  %4697 = vmatprep.mubr.f32.mxu1 %v266_v12  ;;  %v5909_v9 = vpack.c.bf16 %v716_v4, %v684_v3  ;;  %v715_v12 = vld [vmem:[%s7505_s22 + $0xdf0] sm:$0xff]  ;;  %v1036_v0 = vld [vmem:[%s7505_s22 + $0x17f8] sm:$0xff] }
 0x7e3   : > { %6914 = vmatprep.subr.bf16.mxu1 %v6913_v11  ;;  %3466 = vmatmul.mubr.f32.gmra.mrb[2].mxu0 %v265_v14  ;;  %v683_v11 = vld [vmem:[%s7505_s22 + $0xcf0] sm:$0xff]  ;;  %v2060_v2 = vld [vmem:[%s7505_s22 + $0x37f8] sm:$0xff]  ;;  %v5929_v5 = vpack.c.bf16 %v1036_v0, %v1004_v63 }
 0x7e4   : > { %3536 = vmatprep.mubr.f32.mxu0 %v236_v17  ;;  %v5911_v19 = vpack.c.bf16 %v715_v12, %v683_v11  ;;  %v6953_v6 = vpack.c.bf16 %v2060_v2, %v2028_v1  ;;  %v1068_v11 = vld [vmem:[%s7505_s22 + $0x18f8] sm:$0xff]  ;;  %v267_v63 = vld [vmem:[#allocation2 + $0x1f0] sm:$0xff] }
 0x7e5   : > { %4698 = vmatmul.mubr.f32.gmra.mrb[2].mxu1 %v265_v14  ;;  %v1739_v14 = vld [vmem:[%s7505_s22 + $0x2df0] sm:$0xff]  ;;  %v1100_v12 = vld [vmem:[%s7505_s22 + $0x19f8] sm:$0xff] }
 0x7e6   : > { %4768 = vmatprep.mubr.f32.mxu1 %v236_v17  ;;  %v1772_v17 = vld [vmem:[%s7505_s22 + $0x2ef8] sm:$0xff]  ;;  %v6935_v20 = vpack.c.bf16 %v1739_v14, %v1707_v13 }
 0x7e7   : > { %v6937_v22 = vpack.c.bf16 %v1804_v18, %v1772_v17  ;;  %v2092_v13 = vld [vmem:[%s7505_s22 + $0x38f8] sm:$0xff]  ;;  %v5933_v17 = vpack.c.bf16 %v1100_v12, %v1068_v11 }
 0x7e8   : > { %5892 = vmatpush1.bf16.xpose.msra.mxu0 %v5891_v23  ;;  %v747_v23 = vld [vmem:[%s7505_s22 + $0xef0] sm:$0xff]  ;;  %v2124_v14 = vld [vmem:[%s7505_s22 + $0x39f8] sm:$0xff] }
 0x7e9   : > { %5894 = vmatprep.subr.bf16.mxu0 %v5893_v25  ;;  %v1771_v25 = vld [vmem:[%s7505_s22 + $0x2ef0] sm:$0xff]  ;;  %v6957_v18 = vpack.c.bf16 %v2124_v14, %v2092_v13 }
 0x7ea   : > { %6916 = vmatpush1.bf16.xpose.msra.mxu1 %v6915_v24  ;;  %v779_v24 = vld [vmem:[%s7505_s22 + $0xff0] sm:$0xff] }
 0x7eb   : > { %6918 = vmatprep.subr.bf16.mxu1 %v6917_v26  ;;  %v1803_v26 = vld [vmem:[%s7505_s22 + $0x2ff0] sm:$0xff]  ;;  %v5915_v31 = vpack.c.bf16 %v779_v24, %v747_v23  ;;  %v1132_v23 = vld [vmem:[%s7505_s22 + $0x1af8] sm:$0xff] }
 0x7ec   : > { %v6939_v32 = vpack.c.bf16 %v1803_v26, %v1771_v25  ;;  %v1164_v24 = vld [vmem:[%s7505_s22 + $0x1bf8] sm:$0xff] }
 0x7ed   : > { %v2156_v25 = vld [vmem:[%s7505_s22 + $0x3af8] sm:$0xff]  ;;  %v5937_v29 = vpack.c.bf16 %v1164_v24, %v1132_v23 }
 0x7ee   : > { %v2188_v26 = vld [vmem:[%s7505_s22 + $0x3bf8] sm:$0xff] }
 0x7ef   : > { %v6961_v30 = vpack.c.bf16 %v2188_v26, %v2156_v25 }
 0x7f0   : > { %5896 = vmatpush1.bf16.xpose.msra.mxu0 %v5895_v35  ;;  %v811_v35 = vld [vmem:[%s7505_s22 + $0x10f0] sm:$0xff] }
 0x7f1   : > { %5898 = vmatprep.subr.bf16.mxu0 %v5897_v37  ;;  %v1835_v37 = vld [vmem:[%s7505_s22 + $0x30f0] sm:$0xff] }
 0x7f2   : > { %6920 = vmatpush1.bf16.xpose.msra.mxu1 %v6919_v36  ;;  %v843_v36 = vld [vmem:[%s7505_s22 + $0x11f0] sm:$0xff] }
 0x7f3   : > { %6922 = vmatprep.subr.bf16.mxu1 %v6921_v38  ;;  %v1867_v38 = vld [vmem:[%s7505_s22 + $0x31f0] sm:$0xff]  ;;  %v5919_v43 = vpack.c.bf16 %v843_v36, %v811_v35  ;;  %v1196_v35 = vld [vmem:[%s7505_s22 + $0x1cf8] sm:$0xff] }
 0x7f4   : > { %v6943_v44 = vpack.c.bf16 %v1867_v38, %v1835_v37  ;;  %v1228_v36 = vld [vmem:[%s7505_s22 + $0x1df8] sm:$0xff] }
 0x7f5   : > { %v2220_v37 = vld [vmem:[%s7505_s22 + $0x3cf8] sm:$0xff]  ;;  %v5941_v41 = vpack.c.bf16 %v1228_v36, %v1196_v35 }
 0x7f6   : > { %v2252_v38 = vld [vmem:[%s7505_s22 + $0x3df8] sm:$0xff] }
 0x7f7   : > { %v6965_v42 = vpack.c.bf16 %v2252_v38, %v2220_v37 }
 0x7f8   : > { %5900 = vmatpush1.bf16.xpose.msra.mxu0 %v5899_v47  ;;  %v875_v47 = vld [vmem:[%s7505_s22 + $0x12f0] sm:$0xff] }
 0x7f9   : > { %5902 = vmatprep.subr.bf16.mxu0 %v5901_v49  ;;  %v1899_v49 = vld [vmem:[%s7505_s22 + $0x32f0] sm:$0xff] }
 0x7fa   : > { %6924 = vmatpush1.bf16.xpose.msra.mxu1 %v6923_v48  ;;  %v907_v48 = vld [vmem:[%s7505_s22 + $0x13f0] sm:$0xff] }
 0x7fb   : > { %6926 = vmatprep.subr.bf16.mxu1 %v6925_v50  ;;  %v1931_v50 = vld [vmem:[%s7505_s22 + $0x33f0] sm:$0xff]  ;;  %v5923_v55 = vpack.c.bf16 %v907_v48, %v875_v47  ;;  %v1260_v47 = vld [vmem:[%s7505_s22 + $0x1ef8] sm:$0xff] }
 0x7fc   : > { %v6947_v56 = vpack.c.bf16 %v1931_v50, %v1899_v49  ;;  %v1292_v48 = vld [vmem:[%s7505_s22 + $0x1ff8] sm:$0xff] }
 0x7fd   : > { %v2284_v49 = vld [vmem:[%s7505_s22 + $0x3ef8] sm:$0xff]  ;;  %v5945_v53 = vpack.c.bf16 %v1292_v48, %v1260_v47 }
 0x7fe   : > { %v2316_v50 = vld [vmem:[%s7505_s22 + $0x3ff8] sm:$0xff] }
 0x7ff   : > { %v6969_v54 = vpack.c.bf16 %v2316_v50, %v2284_v49 }
 0x800   : > { %5904 = vmatpush1.bf16.xpose.msra.mxu0 %v5903_v59  ;;  %v939_v59 = vld [vmem:[%s7505_s22 + $0x14f0] sm:$0xff] }
 0x801   : > { %5906 = vmatprep.subr.bf16.mxu0 %v5905_v61  ;;  %v1963_v61 = vld [vmem:[%s7505_s22 + $0x34f0] sm:$0xff] }
 0x802   : > { %6928 = vmatpush1.bf16.xpose.msra.mxu1 %v6927_v60  ;;  %v971_v60 = vld [vmem:[%s7505_s22 + $0x15f0] sm:$0xff] }
 0x803   : > { %6930 = vmatprep.subr.bf16.mxu1 %v6929_v62  ;;  %v1995_v62 = vld [vmem:[%s7505_s22 + $0x35f0] sm:$0xff]  ;;  %v5927_v3 = vpack.c.bf16 %v971_v60, %v939_v59 }
 0x804   : > { %v6951_v4 = vpack.c.bf16 %v1995_v62, %v1963_v61  ;;  %v235_v61 = vld [vmem:[#allocation2 + $0xf0] sm:$0xff]  ;;  %v268_v62 = vld [vmem:[#allocation2 + $0x1f8] sm:$0xff] }
 0x808   : > { %5908 = vmatpush1.bf16.xpose.msra.mxu0 %v5907_v7  ;;  %v1003_v7 = vld [vmem:[%s7505_s22 + $0x16f0] sm:$0xff] }
 0x809   : > { %5910 = vmatprep.subr.bf16.mxu0 %v5909_v9  ;;  %v2027_v9 = vld [vmem:[%s7505_s22 + $0x36f0] sm:$0xff] }
 0x80a   : > { %6932 = vmatpush1.bf16.xpose.msra.mxu1 %v6931_v8  ;;  %v1035_v8 = vld [vmem:[%s7505_s22 + $0x17f0] sm:$0xff] }
 0x80b   : > { %6934 = vmatprep.subr.bf16.mxu1 %v6933_v10  ;;  %v2059_v10 = vld [vmem:[%s7505_s22 + $0x37f0] sm:$0xff]  ;;  %v5931_v15 = vpack.c.bf16 %v1035_v8, %v1003_v7 }
 0x80c   : > { %v6955_v16 = vpack.c.bf16 %v2059_v10, %v2027_v9 }
 0x810   : > { %5912 = vmatpush1.bf16.xpose.msra.mxu0 %v5911_v19  ;;  %v1067_v19 = vld [vmem:[%s7505_s22 + $0x18f0] sm:$0xff] }
 0x811   : > { %5914 = vmatprep.subr.bf16.mxu0 %v5913_v21  ;;  %v2091_v21 = vld [vmem:[%s7505_s22 + $0x38f0] sm:$0xff] }
 0x812   : > { %6936 = vmatpush1.bf16.xpose.msra.mxu1 %v6935_v20  ;;  %v1099_v20 = vld [vmem:[%s7505_s22 + $0x19f0] sm:$0xff] }
 0x813   : > { %6938 = vmatprep.subr.bf16.mxu1 %v6937_v22  ;;  %v2123_v22 = vld [vmem:[%s7505_s22 + $0x39f0] sm:$0xff]  ;;  %v5935_v27 = vpack.c.bf16 %v1099_v20, %v1067_v19 }
 0x814   : > { %v6959_v28 = vpack.c.bf16 %v2123_v22, %v2091_v21 }
 0x818   : > { %5916 = vmatpush1.bf16.xpose.msra.mxu0 %v5915_v31  ;;  %v1131_v31 = vld [vmem:[%s7505_s22 + $0x1af0] sm:$0xff] }
 0x819   : > { %5918 = vmatprep.subr.bf16.mxu0 %v5917_v33  ;;  %v2155_v33 = vld [vmem:[%s7505_s22 + $0x3af0] sm:$0xff] }
 0x81a   : > { %6940 = vmatpush1.bf16.xpose.msra.mxu1 %v6939_v32  ;;  %v1163_v32 = vld [vmem:[%s7505_s22 + $0x1bf0] sm:$0xff] }
 0x81b   : > { %6942 = vmatprep.subr.bf16.mxu1 %v6941_v34  ;;  %v2187_v34 = vld [vmem:[%s7505_s22 + $0x3bf0] sm:$0xff]  ;;  %v5939_v39 = vpack.c.bf16 %v1163_v32, %v1131_v31 }
 0x81c   : > { %v6963_v40 = vpack.c.bf16 %v2187_v34, %v2155_v33 }
 0x820   : > { %5920 = vmatpush1.bf16.xpose.msra.mxu0 %v5919_v43  ;;  %v1195_v43 = vld [vmem:[%s7505_s22 + $0x1cf0] sm:$0xff] }
 0x821   : > { %5922 = vmatprep.subr.bf16.mxu0 %v5921_v45  ;;  %v2219_v45 = vld [vmem:[%s7505_s22 + $0x3cf0] sm:$0xff] }
 0x822   : > { %6944 = vmatpush1.bf16.xpose.msra.mxu1 %v6943_v44  ;;  %v1227_v44 = vld [vmem:[%s7505_s22 + $0x1df0] sm:$0xff] }
 0x823   : > { %6946 = vmatprep.subr.bf16.mxu1 %v6945_v46  ;;  %v2251_v46 = vld [vmem:[%s7505_s22 + $0x3df0] sm:$0xff]  ;;  %v5943_v51 = vpack.c.bf16 %v1227_v44, %v1195_v43 }
 0x824   : > { %v6967_v52 = vpack.c.bf16 %v2251_v46, %v2219_v45 }
 0x828   : > { %5924 = vmatpush1.bf16.xpose.msra.mxu0 %v5923_v55  ;;  %v1259_v55 = vld [vmem:[%s7505_s22 + $0x1ef0] sm:$0xff] }
 0x829   : > { %5926 = vmatprep.subr.bf16.mxu0 %v5925_v57  ;;  %v2283_v57 = vld [vmem:[%s7505_s22 + $0x3ef0] sm:$0xff] }
 0x82a   : > { %6948 = vmatpush1.bf16.xpose.msra.mxu1 %v6947_v56  ;;  %v1291_v56 = vld [vmem:[%s7505_s22 + $0x1ff0] sm:$0xff] }
 0x82b   : > { %6950 = vmatprep.subr.bf16.mxu1 %v6949_v58  ;;  %v2315_v58 = vld [vmem:[%s7505_s22 + $0x3ff0] sm:$0xff]  ;;  %v5947_v59 = vpack.c.bf16 %v1291_v56, %v1259_v55 }
 0x82c   : > { %v6971_v60 = vpack.c.bf16 %v2315_v58, %v2283_v57 }
 0x830   : > { %5928 = vmatpush1.bf16.xpose.msra.mxu0 %v5927_v3 }
 0x831   : > { %5930 = vmatprep.subr.bf16.mxu0 %v5929_v5 }
 0x832   : > { %6952 = vmatpush1.bf16.xpose.msra.mxu1 %v6951_v4 }
 0x833   : > { %6954 = vmatprep.subr.bf16.mxu1 %v6953_v6 }
 0x838   : > { %5932 = vmatpush1.bf16.xpose.msra.mxu0 %v5931_v15 }
 0x839   : > { %5934 = vmatprep.subr.bf16.mxu0 %v5933_v17 }
 0x83a   : > { %6956 = vmatpush1.bf16.xpose.msra.mxu1 %v6955_v16 }
 0x83b   : > { %6958 = vmatprep.subr.bf16.mxu1 %v6957_v18 }
 0x840   : > { %5936 = vmatpush1.bf16.xpose.msra.mxu0 %v5935_v27 }
 0x841   : > { %5938 = vmatprep.subr.bf16.mxu0 %v5937_v29 }
 0x842   : > { %6960 = vmatpush1.bf16.xpose.msra.mxu1 %v6959_v28 }
 0x843   : > { %6962 = vmatprep.subr.bf16.mxu1 %v6961_v30 }
 0x848   : > { %5940 = vmatpush1.bf16.xpose.msra.mxu0 %v5939_v39 }
 0x849   : > { %5942 = vmatprep.subr.bf16.mxu0 %v5941_v41 }
 0x84a   : > { %6964 = vmatpush1.bf16.xpose.msra.mxu1 %v6963_v40 }
 0x84b   : > { %6966 = vmatprep.subr.bf16.mxu1 %v6965_v42 }
 0x850   : > { %5944 = vmatpush1.bf16.xpose.msra.mxu0 %v5943_v51 }
 0x851   : > { %5946 = vmatprep.subr.bf16.mxu0 %v5945_v53 }
 0x852   : > { %6968 = vmatpush1.bf16.xpose.msra.mxu1 %v6967_v52 }
 0x853   : > { %6970 = vmatprep.subr.bf16.mxu1 %v6969_v54 }
 0x858   : > { %5948 = vmatpush1.bf16.xpose.msra.mxu0 %v5947_v59 }
 0x85a   : > { %6972 = vmatpush1.bf16.xpose.msra.mxu1 %v6971_v60 }
 0x85f   : > { %3537 = vmatmul.mubr.f32.vlgmr.msra.gmra.mrb[0].mxu0 %v235_v61 }
 0x860   : > { %3542 = vmatprep.mubr.f32.mxu0 %v268_v62 }
 0x861   : > { %4769 = vmatmul.mubr.f32.vlgmr.msra.gmra.mrb[0].mxu1 %v235_v61 }
 0x862   : > { %4774 = vmatprep.mubr.f32.mxu1 %v268_v62 }
 0x863   : > { %3543 = vmatmul.mubr.f32.gmra.mrb[2].mxu0 %v267_v63 }
 0x865   : > { %4775 = vmatmul.mubr.f32.gmra.mrb[2].mxu1 %v267_v63 }
 0x932   : > { %v3538_v0 = vpop.f32.mrb[0].mxu0 }
 0x933   : > { %4781 = vst [vmem:[%s200_s19] sm:$0xff] %v3538_v0  ;;  %v3540_v2 = vpop.f32.mrb[1].mxu0 }
 0x934   : > { %v4770_v1 = vpop.f32.mrb[0].mxu1  ;;  %4782 = vst [vmem:[%s200_s19 + $0x8] sm:$0xff] %v3540_v2 }
 0x935   : > { %4783 = vst [vmem:[%s200_s19 + $0x10] sm:$0xff] %v4770_v1  ;;  %v4772_v3 = vpop.f32.mrb[1].mxu1 }
 0x936   : > { %4784 = vst [vmem:[%s200_s19 + $0x18] sm:$0xff] %v4772_v3  ;;  %v3544_v4 = vpop.f32.mrb[2].mxu0 }
 0x937   : > { %4785 = vst [vmem:[%s200_s19 + $0x20] sm:$0xff] %v3544_v4  ;;  %v3546_v6 = vpop.f32.mrb[3].mxu0 }
 0x938   : > { %v4776_v5 = vpop.f32.mrb[2].mxu1  ;;  %4786 = vst [vmem:[%s200_s19 + $0x28] sm:$0xff] %v3546_v6 }
 0x939   : > { %4787 = vst [vmem:[%s200_s19 + $0x30] sm:$0xff] %v4776_v5  ;;  %v4778_v7 = vpop.f32.mrb[3].mxu1 }
 0x93a   : > { %4788 = vst [vmem:[%s200_s19 + $0x38] sm:$0xff] %v4778_v7 }
 0x93b   : > { %7242 = shalt.err (!%p7239_p5)
}
 0x93c   : > { %s7243_s3 = scalar_lea.hbm %s9566_s5, 1024  ;;  %s7247_s8 = scalar_lea.hbm %s9616_s2, 8192 }
 0x93d   : > { %p7244_p9 = scmp.ne.s32.totalorder %s9566_s5, %s7243_s3  ;;  %p7248_p3 = scmp.lt.u32.totalorder %s9566_s5, %s9616_s2 }
 0x93e   : > { %p7249_p7 = scmp.lt.u32.totalorder %s7247_s8, %s7243_s3  ;;  %p7251_p4 = scmp.lt.u32.totalorder %s7243_s3, %s9566_s5 }
 0x93f   : > { %p7245_p1 = pnand %p7244_p9, %p7438_p11 }
 0x940   : > { %p7250_p13 = por %p7249_p7, %p7248_p3 }
 0x941   : > { %p7246_p2 = pneg %p7245_p1 }
 0x942   : > { %p7252_p6 = por %p7251_p4, %p7250_p13 }
 0x944   : > { %p7253_p8 = pnand %p7252_p6, %p7246_p2 }
 0x946   : > { %7256 = shalt.err (!%p7253_p8)
}
 0x947   : > { %s7322_s17 = smov 512   ;;  %s7323_s19 = smov 4096  }
 0x948   : > { %s7324_s6 = smov 32  }
 0x949   : > { %7099 = dma.vmem_to_hbm [thread:$0]  (%p7438_p11), %s9561_s21, 1024, %s9566_s5, %s4790_s12, %s7322_s17, %s7323_s19, %s7324_s6  }
 0x94a PF: > { %p7116_p12 = scmp.ge.s32.totalorder %s7315_s14, 2  ;;  %s4821_s7 = sand.u32 1, %s7295_s9  }
 0x94b   : > { %p9634_p10 = scmp.ne.s32.totalorder %s9624_s20, 0  ;;  %s4822_s4 = scalar_lea.sflag [#allocation4], %s4821_s7 }
 0x94d   : > { %p7110_p0 = pnand %p7116_p12, %p9634_p10 }
 0x94f   : > { %7290 = dma.done.wait (!%p7110_p0), %s4822_s4, 1024  }
 0x950   : > { %7292 = vsyncadd (!%p7110_p0), %s4822_s4, 4294966272  ;;  %s19_s14 = sadd.s32 1, %s7315_s14   ;;  %s9635_s9 = smov %s7299_s10 }
 0x951   : > { %p16_p5 = scmp.ge.s32.totalorder %s19_s14, 10   ;;  %s9636_s10 = smov %s7303_s11 }
 0x952   : > { %s9637_s11 = smov %s7447_s28  ;;  %s9638_s12 = smov %s7311_s13 }
 0x953   : > { %s9639_s13 = smov %s9641_s25  ;;  %18 = sbr.rel (!%p16_p5) target bundleno = 7 (0x7), region = 79 }
 0x95a   :  { %4827 = vsyncpa [#allocation3], 1 }
 0x95b   :  { %4829 = vsyncpa [#allocation3 + $0x1], 1 }
 0x95c   :  { %4830 = vsyncpa [#allocation6], 1 }
 0x95d   :  { %4832 = vsyncpa [#allocation6 + $0x1], 1 }
 0x95e   :  { %4833 = vsyncpa [#allocation4], 1 }
 0x95f   :  { %4835 = vsyncpa [#allocation4 + $0x1], 1 }

</bundles_post_ra>
